<compile_context>
chip_gen: v5e
topology: v5e:2x2
jax: 0.10.0
libtpu: 0.0.40
codegen_flags: <defaults>
</compile_context>

<pallas_src>
import numpy as np
import jax
import jax.numpy as jnp
from jax import lax
from jax.experimental import pallas as pl
from jax.experimental.pallas import tpu as pltpu

NEG_SLOPE = 0.2                       # LeakyReLU slope used as activation_fn
GN_EPS = 1e-5                         # torch.nn.GroupNorm default eps
NUM_GROUPS = 32                       # module default
INV_SQRT2 = float(1.0 / np.sqrt(2.0))
VMEM_LIMIT = 32 * 1024 * 1024         # safe scoped-VMEM limit on v5e/v6e/v7x


# ----------------------------------------------------------------------------
# Small helpers
# ----------------------------------------------------------------------------
def _pick_tile(n, candidates, want_multiple=False):
    """Largest candidate dividing n (optionally preferring >=2 tiles for megacore)."""
    best = None
    for t in candidates:
        if n % t == 0:
            if best is None:
                best = t
            if (not want_multiple) or n // t >= 2:
                return t
    return best


def _blur_filter_3d():
    a = jnp.array([1.0, 2.0, 1.0], jnp.float32)
    f = a[:, None, None] * a[None, :, None] * a[None, None, :]
    return f / jnp.sum(f)                                   # (3, 3, 3), sums to 1


def _im2col_3x3x3(x, stride, pad_mode):
    """x: (N, D, H, W, C) -> patches (N*OD*OH*OW, 27*C), K ordered (kd, kh, kw, cin).

    Only used for the (small, 1/8-sized) strided residual conv and as a fallback."""
    sd, sh, sw = stride
    N, D, H, W, C = x.shape
    OD = (D - 1) // sd + 1
    OH = (H - 1) // sh + 1
    OW = (W - 1) // sw + 1
    mode = "constant" if pad_mode == "zero" else "reflect"
    xp = jnp.pad(x, ((0, 0), (1, 1), (1, 1), (1, 1), (0, 0)), mode=mode)
    cols = []
    for kd in range(3):
        for kh in range(3):
            for kw in range(3):
                cols.append(xp[:, kd:kd + sd * OD:sd,
                               kh:kh + sh * OH:sh,
                               kw:kw + sw * OW:sw, :])
    patches = jnp.concatenate(cols, axis=-1)
    return patches.reshape(N * OD * OH * OW, 27 * C), (OD, OH, OW)


def _blur_axis_stride2(v, axis):
    """One separable BlurPool pass ([1,2,1]/4, stride 2, reflect pad) along `axis`."""
    pads = [(0, 0)] * v.ndim
    pads[axis] = (1, 1)
    vp = jnp.pad(v, pads, mode="reflect")
    n_out = (v.shape[axis] - 1) // 2 + 1

    def tap(k):
        idx = [slice(None)] * v.ndim
        idx[axis] = slice(k, k + 2 * n_out, 2)
        return vp[tuple(idx)].astype(jnp.float32)

    return (tap(0) + 2.0 * tap(1) + tap(2)) * 0.25


# ----------------------------------------------------------------------------
# Generic tiled matmul kernel (used by the residual branch / fallback)
# ----------------------------------------------------------------------------
def _mm_kernel(a_ref, b_ref, bias_ref, o_ref, acc_ref):
    @pl.when(pl.program_id(2) == 0)
    def _():
        acc_ref[...] = jnp.zeros_like(acc_ref)

    acc_ref[...] += jnp.dot(a_ref[...], b_ref[...],
                            preferred_element_type=jnp.float32)

    @pl.when(pl.program_id(2) == pl.num_programs(2) - 1)
    def _():
        o_ref[...] = (acc_ref[...] + bias_ref[...]).astype(o_ref.dtype)


def pallas_matmul_bias(a, b, bias, out_dtype=jnp.bfloat16, vmem_budget=20 * 2**20):
    """a: (M, K), b: (K, Cout) -> (M, Cout) out_dtype.  bf16 MXU, f32 accumulation,
    fused bias, VMEM-aware tiles with an optional K-split grid axis."""
    M, K = a.shape
    Cout = b.shape[1]
    a = a.astype(jnp.bfloat16)
    b = b.astype(jnp.bfloat16)

    tm = _pick_tile(M, (512, 256, 128, 64, 32, 16, 8), want_multiple=True)
    pad_m = 0
    if tm is None:
        tm = 256
        pad_m = -M % tm
        a = jnp.pad(a, ((0, pad_m), (0, 0)))
    Mp = M + pad_m

    if Cout % 256 == 0:
        tn = 256
    elif Cout % 128 == 0:
        tn = 128
    else:
        tn = Cout

    def vmem_need(tk):
        return 2 * (tm * tk + tk * tn + tm * tn) * 2 + tm * tn * 4

    k_cands = [K] + [K // d for d in (3, 9, 27) if K % d == 0]
    tk = k_cands[-1]
    for cand in k_cands:
        if vmem_need(cand) <= vmem_budget:
            tk = cand
            break

    bias_arr = bias if bias is not None else jnp.zeros((Cout,), jnp.float32)
    bias2 = bias_arr.reshape(1, Cout).astype(jnp.float32)

    grid = (Mp // tm, Cout // tn, K // tk)
    out = pl.pallas_call(
        _mm_kernel,
        out_shape=jax.ShapeDtypeStruct((Mp, Cout), out_dtype),
        grid_spec=pltpu.PrefetchScalarGridSpec(
            num_scalar_prefetch=0,
            grid=grid,
            in_specs=[pl.BlockSpec((tm, tk), lambda i, j, k: (i, k)),
                      pl.BlockSpec((tk, tn), lambda i, j, k: (k, j)),
                      pl.BlockSpec((1, tn), lambda i, j, k: (0, j))],
            out_specs=pl.BlockSpec((tm, tn), lambda i, j, k: (i, j)),
            scratch_shapes=[pltpu.VMEM((tm, tn), jnp.float32)]),
        compiler_params=pltpu.CompilerParams(
            dimension_semantics=("parallel", "parallel", "arbitrary"),
            vmem_limit_bytes=VMEM_LIMIT),
    )(a, b, bias2)
    return out[:M] if pad_m else out


# ----------------------------------------------------------------------------
# Fused 3^3 stride-1 conv (implicit im2col) + bias + GroupNorm partial stats
# ----------------------------------------------------------------------------
def conv3x3_gn_partials(x, w, b, vmem_budget=20 * 2**20):
    """x: (N, D, H, W, C) bf16, w: (3,3,3,C,F), b: (F,).

    Returns y (N, D, H*W, F) bf16, sums (N, D, 1, F) f32, sqs (N, D, 1, F) f32
    where sums / sqs are per-(n, d) partial GroupNorm statistics of y (incl. bias).
    """
    N, D, H, W, C = x.shape
    F = w.shape[-1]
    HW = H * W
    Hp = H + 2
    HpW = Hp * W
    C3 = 3 * C

    if F <= 256:
        tf = F
    elif F % 256 == 0:
        tf = 256
    elif F % 128 == 0:
        tf = 128
    else:
        tf = F
    nf = F // tf

    need = 3 * 2 * HpW * C3 * 2 + 2 * 9 * C3 * tf * 2 + 2 * HW * tf * 2 + HW * tf * 4
    if need > vmem_budget:
        # TODO(synk): add spatial (H*W) tiling with halo so very large planes also use
        # the fused implicit-im2col path; fall back to materialized im2col for now.
        patches, _ = _im2col_3x3x3(x, (1, 1, 1), "zero")
        y = pallas_matmul_bias(patches, w.reshape(27 * C, F), b)
        y = y.reshape(N, D, HW, F)
        yf = y.astype(jnp.float32)
        return y, jnp.sum(yf, axis=2, keepdims=True), jnp.sum(yf * yf, axis=2, keepdims=True)

    # W-shifted copies packed on the channel axis: row (hp, w) of depth plane d holds
    # [xpad[d, hp, w+0, :], xpad[d, hp, w+1, :], xpad[d, hp, w+2, :]]  (implicit
    # im2col along W -> ~4x the input instead of 27x).
    xp = jnp.pad(x, ((0, 0), (1, 1), (1, 1), (1, 1), (0, 0)))
    xs = jnp.concatenate([xp[:, :, :, kw:kw + W, :] for kw in range(3)], axis=-1)
    xs = xs.reshape(N, D + 2, HpW, C3).astype(jnp.bfloat16)

    w9 = w.reshape(9, C3, F).astype(jnp.bfloat16)          # [(kd,kh), (kw,cin), cout]
    b2 = b.reshape(1, F).astype(jnp.float32)

    def kernel(x0, x1, x2, w_ref, b_ref, y_ref, sm_ref, sq_ref):
        acc = jnp.zeros((HW, tf), jnp.float32) + b_ref[...]
        planes = (x0, x1, x2)
        for kd in range(3):
            for kh in range(3):
                # rows (h+kh)*W + w of the padded plane, all three kw taps packed in C3
                a = planes[kd][0, 0, kh * W:kh * W + HW, :]        # (HW, 3C) bf16
                acc = acc + jnp.dot(a, w_ref[kd * 3 + kh],
                                    preferred_element_type=jnp.float32)
        y_ref[0, 0] = acc.astype(y_ref.dtype)
        sm_ref[0, 0] = jnp.sum(acc, axis=0, keepdims=True)
        sq_ref[0, 0] = jnp.sum(acc * acc, axis=0, keepdims=True)

    def x_spec(kd):
        return pl.BlockSpec((1, 1, HpW, C3),
                            lambda n, d, j, kd=kd: (n, d + kd, 0, 0))

    y, sums, sqs = pl.pallas_call(
        kernel,
        out_shape=(jax.ShapeDtypeStruct((N, D, HW, F), jnp.bfloat16),
                   jax.ShapeDtypeStruct((N, D, 1, F), jnp.float32),
                   jax.ShapeDtypeStruct((N, D, 1, F), jnp.float32)),
        grid_spec=pltpu.PrefetchScalarGridSpec(
            num_scalar_prefetch=0,
            grid=(N, D, nf),
            in_specs=[x_spec(0), x_spec(1), x_spec(2),
                      pl.BlockSpec((9, C3, tf), lambda n, d, j: (0, 0, j)),
                      pl.BlockSpec((1, tf), lambda n, d, j: (0, j))],
            out_specs=[pl.BlockSpec((1, 1, HW, tf), lambda n, d, j: (n, d, 0, j)),
                       pl.BlockSpec((1, 1, 1, tf), lambda n, d, j: (n, d, 0, j)),
                       pl.BlockSpec((1, 1, 1, tf), lambda n, d, j: (n, d, 0, j))]),
        compiler_params=pltpu.CompilerParams(
            dimension_semantics=("parallel", "parallel", "parallel"),
            vmem_limit_bytes=VMEM_LIMIT),
    )(xs, xs, xs, w9, b2)
    return y, sums, sqs


def gn_scale_shift_from_partials(sums, sqs, gamma, beta, count, num_groups):
    """Finalize GroupNorm statistics from per-(n, d) partials -> per-channel affine."""
    N = sums.shape[0]
    F = sums.shape[-1]
    cg = F // num_groups
    s = jnp.sum(sums, axis=(1, 2)).reshape(N, num_groups, cg).sum(-1)   # (N, G)
    q = jnp.sum(sqs, axis=(1, 2)).reshape(N, num_groups, cg).sum(-1)
    cnt = float(count * cg)
    mean = s / cnt
    var = jnp.maximum(q / cnt - mean * mean, 0.0)          # biased, as in torch GN
    inv = lax.rsqrt(var + GN_EPS)
    scale = jnp.repeat(inv, cg, axis=1) * gamma[None, :].astype(jnp.float32)
    shift = beta[None, :].astype(jnp.float32) - jnp.repeat(mean, cg, axis=1) * scale
    return scale, shift                                    # (N, F) f32 each


# ----------------------------------------------------------------------------
# Fused GroupNorm-apply + LeakyReLU + depth BlurPool pass (stride 2, reflect)
# ----------------------------------------------------------------------------
def _gn_act_blurd_kernel(y0, y1r, y2, sc_ref, sh_ref, o_ref):
    sc = sc_ref[0, 0]
    sh = sh_ref[0, 0]

    def act(yref):
        h = yref[0, 0].astype(jnp.float32) * sc + sh
        return jnp.where(h >= 0, h, NEG_SLOPE * h)

    o_ref[0, 0] = (0.25 * act(y0) + 0.5 * act(y1r) + 0.25 * act(y2)).astype(o_ref.dtype)


def gn_act_blur_depth(y, scale, shift):
    """y: (N, D, HW, C) bf16; scale/shift: (N, C) f32.
    Returns act(GN(y)) blurred+downsampled along depth: (N, ceil(D/2), HW, C) bf16."""
    N, D, HW, C = y.shape
    if C % 128 == 0 or not (128 % C == 0 and HW % (128 // C) == 0):
        p = 1
    else:
        p = 128 // C                      # lane-dense packing for C < 128
    L = C * p
    R = HW // p
    yv = y.reshape(N, D, R, L)
    scv = jnp.tile(scale.astype(jnp.float32), (1, p)).reshape(N, 1, 1, L)
    shv = jnp.tile(shift.astype(jnp.float32), (1, p)).reshape(N, 1, 1, L)
    OD = (D - 1) // 2 + 1
    ts = _pick_tile(R, (1024, 512, 256, 128, 64, 32, 16, 8)) or R

    def dmap(kd):
        def m(n, od, s):
            r = 2 * od - 1 + kd           # reflect pad of 1 along depth
            r = jnp.abs(r)
            r = jnp.where(r > D - 1, 2 * (D - 1) - r, r)
            return (n, r, s, 0)
        return m

    y_specs = [pl.BlockSpec((1, 1, ts, L), dmap(kd)) for kd in range(3)]
    p_spec = pl.BlockSpec((1, 1, 1, L), lambda n, od, s: (n, 0, 0, 0))

    out = pl.pallas_call(
        _gn_act_blurd_kernel,
        out_shape=jax.ShapeDtypeStruct((N, OD, R, L), jnp.bfloat16),
        grid_spec=pltpu.PrefetchScalarGridSpec(
            num_scalar_prefetch=0,
            grid=(N, OD, R // ts),
            in_specs=y_specs + [p_spec, p_spec],
            out_specs=pl.BlockSpec((1, 1, ts, L), lambda n, od, s: (n, od, s, 0))),
        compiler_params=pltpu.CompilerParams(
            dimension_semantics=("parallel", "parallel", "parallel")),
    )(yv, yv, yv, scv, shv)
    return out.reshape(N, OD, HW, C)


# ----------------------------------------------------------------------------
# Fused GroupNorm-apply + LeakyReLU + residual add + 1/sqrt(2)
# ----------------------------------------------------------------------------
def _gn_act_res_kernel(y_ref, sc_ref, sh_ref, r_ref, o_ref):
    h = y_ref[0].astype(jnp.float32) * sc_ref[0] + sh_ref[0]
    h = jnp.where(h >= 0, h, NEG_SLOPE * h)
    o_ref[0] = ((h + r_ref[0].astype(jnp.float32)) * INV_SQRT2).astype(o_ref.dtype)


def gn_act_residual(y, scale, shift, res):
    """y, res: (N, S, F) bf16; scale/shift: (N, F) f32 -> (N, S, F) bf16."""
    N, S, F = y.shape
    if F % 128 == 0 or not (128 % F == 0 and S % (128 // F) == 0):
        p = 1
    else:
        p = 128 // F
    L = F * p
    R = S // p
    yv = y.reshape(N, R, L)
    rv = res.reshape(N, R, L)
    scv = jnp.tile(scale.astype(jnp.float32), (1, p)).reshape(N, 1, L)
    shv = jnp.tile(shift.astype(jnp.float32), (1, p)).reshape(N, 1, L)
    ts = _pick_tile(R, (1024, 512, 256, 128, 64, 32, 16, 8), want_multiple=True) or R

    x_spec = pl.BlockSpec((1, ts, L), lambda n, s: (n, s, 0))
    p_spec = pl.BlockSpec((1, 1, L), lambda n, s: (n, 0, 0))

    out = pl.pallas_call(
        _gn_act_res_kernel,
        out_shape=jax.ShapeDtypeStruct((N, R, L), jnp.bfloat16),
        grid_spec=pltpu.PrefetchScalarGridSpec(
            num_scalar_prefetch=0,
            grid=(N, R // ts),
            in_specs=[x_spec, p_spec, p_spec, x_spec],
            out_specs=x_spec),
        compiler_params=pltpu.CompilerParams(
            dimension_semantics=("parallel", "parallel")),
    )(yv, scv, shv, rv)
    return out.reshape(N, S, F)


# ----------------------------------------------------------------------------
# ResBlockDown forward (Pallas path)
# ----------------------------------------------------------------------------
def resblock_down_forward(x_ncdhw, params, num_groups=NUM_GROUPS):
    x = jnp.transpose(x_ncdhw, (0, 2, 3, 4, 1))                     # NDHWC
    N, D, H, W, C = x.shape
    F = params["w3"].shape[-1]
    x_bf = x.astype(jnp.bfloat16)

    # ---- main branch: conv1 (3^3 zero pad 1) + GN1 partial stats --------------
    y1, sm1, sq1 = conv3x3_gn_partials(x_bf, params["w1"], params["b1"])
    s1, t1 = gn_scale_shift_from_partials(sm1, sq1, params["g1"], params["be1"],
                                          D * H * W, num_groups)

    # GN1 apply + LeakyReLU fused with the depth BlurPool pass (stride 2, reflect)
    a1d = gn_act_blur_depth(y1, s1, t1).reshape(N, -1, H, W, C)

    # H / W BlurPool passes (XLA)
    # TODO(synk): the overlapping stride-2 H/W blur windows stay in XLA glue; a single
    # halo-exchange Pallas kernel for all three axes is left as follow-up work.
    xb = _blur_axis_stride2(a1d, 2)
    xb = _blur_axis_stride2(xb, 3).astype(jnp.bfloat16)
    OD, OH, OW = xb.shape[1:4]
    S2 = OD * OH * OW

    # conv3 (3^3 zero pad 1) + GN2 partial stats
    y3, sm2, sq2 = conv3x3_gn_partials(xb, params["w3"], params["b3"])
    s2, t2 = gn_scale_shift_from_partials(sm2, sq2, params["g2"], params["be2"],
                                          S2, num_groups)

    # ---- residual branch: BlurPool + 1x1 conv fused into one strided conv ------
    f3 = _blur_filter_3d().reshape(27)
    wf = (f3[:, None, None] * params["w2"][None, :, :]).reshape(27 * C, F)
    pr, _ = _im2col_3x3x3(x_bf, (2, 2, 2), "reflect")
    res = pallas_matmul_bias(pr, wf, None).reshape(N, S2, F)

    # ---- GN2 apply + LeakyReLU + residual add + 1/sqrt(2), all fused -----------
    y3f = y3.reshape(N, S2, F)
    out = gn_act_residual(y3f, s2, t2, res).reshape(N, OD, OH, OW, F)
    return jnp.transpose(out, (0, 4, 1, 2, 3))                      # back to NCDHW


# ----------------------------------------------------------------------------
# Parameters (deterministic synthetic init matching the module's shapes)
# ----------------------------------------------------------------------------
def init_params(key, in_channels, filters):
    # Conv weights stored as (kd, kh, kw, Cin, Cout) == torch weight.permute(2,3,4,1,0)
    ks = jax.random.split(key, 9)
    fan1 = 27 * in_channels
    w1 = jax.random.normal(ks[0], (3, 3, 3, in_channels, in_channels),
                           jnp.float32) / np.sqrt(fan1)
    b1 = 0.05 * jax.random.normal(ks[1], (in_channels,), jnp.float32)
    g1 = 1.0 + 0.1 * jax.random.normal(ks[2], (in_channels,), jnp.float32)
    be1 = 0.1 * jax.random.normal(ks[3], (in_channels,), jnp.float32)
    w2 = jax.random.normal(ks[4], (in_channels, filters),
                           jnp.float32) / np.sqrt(in_channels)       # 1x1x1, no bias
    w3 = jax.random.normal(ks[5], (3, 3, 3, in_channels, filters),
                           jnp.float32) / np.sqrt(fan1)
    b3 = 0.05 * jax.random.normal(ks[6], (filters,), jnp.float32)
    g2 = 1.0 + 0.1 * jax.random.normal(ks[7], (filters,), jnp.float32)
    be2 = 0.1 * jax.random.normal(ks[8], (filters,), jnp.float32)
    return dict(w1=w1, b1=b1, g1=g1, be1=be1, w2=w2, w3=w3, b3=b3, g2=g2, be2=be2)


# ----------------------------------------------------------------------------
# Pure-JAX reference (lax.conv_general_dilated) for validation
# ----------------------------------------------------------------------------
def reference_forward(x_ncdhw, params, num_groups=NUM_GROUPS):
    x = jnp.transpose(x_ncdhw, (0, 2, 3, 4, 1)).astype(jnp.float32)
    C = x.shape[-1]
    F = params["w3"].shape[-1]

    def conv(inp, w, stride, padding):
        return lax.conv_general_dilated(
            inp.astype(jnp.bfloat16), w.astype(jnp.bfloat16),
            window_strides=stride, padding=padding,
            dimension_numbers=("NDHWC", "DHWIO", "NDHWC"),
            preferred_element_type=jnp.float32)

    def gn(y, gamma, beta):
        n, d, h, w_, c = y.shape
        yg = y.reshape(n, d * h * w_, num_groups, c // num_groups)
        mean = yg.mean(axis=(1, 3), keepdims=True)
        var = yg.var(axis=(1, 3), keepdims=True)
        yn = (yg - mean) / jnp.sqrt(var + GN_EPS)
        return yn.reshape(n, d, h, w_, c) * gamma + beta

    def act(v):
        return jnp.where(v >= 0, v, NEG_SLOPE * v)

    def blur(v):
        c = v.shape[-1]
        vp = jnp.pad(v, ((0, 0), (1, 1), (1, 1), (1, 1), (0, 0)), mode="reflect")
        f = _blur_filter_3d()
        w = jnp.tile(f[:, :, :, None, None], (1, 1, 1, 1, c))
        return lax.conv_general_dilated(
            vp, w, (2, 2, 2), "VALID",
            dimension_numbers=("NDHWC", "DHWIO", "NDHWC"),
            feature_group_count=c)

    residual = x
    h1 = conv(x, params["w1"], (1, 1, 1), [(1, 1)] * 3) + params["b1"]
    h1 = act(gn(h1, params["g1"], params["be1"]))
    residual = blur(residual)
    residual = conv(residual, params["w2"].reshape(1, 1, 1, C, F), (1, 1, 1), "VALID")
    h1 = blur(h1)
    h3 = conv(h1, params["w3"], (1, 1, 1), [(1, 1)] * 3) + params["b3"]
    h3 = act(gn(h3, params["g2"], params["be2"]))
    out = (residual + h3) * INV_SQRT2
    return jnp.transpose(out, (0, 4, 1, 2, 3))


if __name__ == "__main__":
    key = jax.random.PRNGKey(0)
    kx, kp = jax.random.split(key)

    # PyTorch-convention input: (N, C=in_channels, D, H, W); filters = output channels.
    N, C, D, H, W = 2, 64, 8, 16, 16          # in_channels divisible by num_groups=32
    FILTERS = 128

    x = jax.random.normal(kx, (N, C, D, H, W), jnp.float32)
    params = init_params(kp, C, FILTERS)

    out = jax.block_until_ready(jax.jit(resblock_down_forward)(x, params))
    ref = jax.block_until_ready(jax.jit(reference_forward)(x, params))

    assert out.shape == (N, FILTERS, D // 2, H // 2, W // 2), out.shape
    assert out.shape == ref.shape, (out.shape, ref.shape)
    max_err = float(jnp.max(jnp.abs(out.astype(jnp.float32) - ref)))
    assert max_err < 5e-2, f"max abs diff too large: {max_err}"
    print("KERNEL_OK")
</pallas_src>

<mosaic_0001>
module attributes {stable_mosaic.version = 11 : i64} {
  func.func @_mm_kernel(%arg0: i32, %arg1: i32, %arg2: i32, %arg3: memref<256x1728xbf16, #tpu.memory_space<vmem>>, %arg4: memref<1728x128xbf16, #tpu.memory_space<vmem>>, %arg5: memref<1x128xf32, #tpu.memory_space<vmem>>, %arg6: memref<256x128xbf16, #tpu.memory_space<vmem>>, %arg7: memref<256x128xf32, #tpu.memory_space<vmem>>) attributes {dimension_semantics = [#tpu.dimension_semantics<parallel>, #tpu.dimension_semantics<parallel>, #tpu.dimension_semantics<arbitrary>], iteration_bounds = array<i64: 2, 1, 1>, scalar_prefetch = 0 : i64, scratch_operands = 1 : i64, tpu.core_type = #tpu.core_type<tc>, window_params = [{transform_indices = @transform_0, window_bounds = array<i64: 256, 1728>}, {transform_indices = @transform_1, window_bounds = array<i64: 1728, 128>}, {transform_indices = @transform_2, window_bounds = array<i64: 1, 128>}, {transform_indices = @transform_3, window_bounds = array<i64: 256, 128>}]} {
    %c0_i32 = arith.constant 0 : i32
    %0 = arith.cmpi eq, %arg2, %c0_i32 : i32
    %1 = arith.extui %0 : i1 to i32
    %c0_i32_0 = arith.constant 0 : i32
    %2 = arith.cmpi ne, %1, %c0_i32_0 : i32
    scf.if %2 {
      %cst_10 = arith.constant 0.000000e+00 : f32
      %12 = vector.broadcast %cst_10 : f32 to vector<256x128xf32>
      %c0_11 = arith.constant 0 : index
      %c0_12 = arith.constant 0 : index
      %13 = vector.load %arg7[%c0_11, %c0_12] : memref<256x128xf32, #tpu.memory_space<vmem>>, vector<256x128xf32>
      tpu.vector_store %arg7[%c0_11, %c0_12], %12 {strides = array<i32>} : memref<256x128xf32, #tpu.memory_space<vmem>>, vector<256x128xf32>,
    } else {
    }
    %c0 = arith.constant 0 : index
    %c0_1 = arith.constant 0 : index
    %3 = vector.load %arg7[%c0, %c0_1] : memref<256x128xf32, #tpu.memory_space<vmem>>, vector<256x128xf32>
    %c0_2 = arith.constant 0 : index
    %c0_3 = arith.constant 0 : index
    %4 = vector.load %arg3[%c0_2, %c0_3] : memref<256x1728xbf16, #tpu.memory_space<vmem>>, vector<256x1728xbf16>
    %c0_4 = arith.constant 0 : index
    %c0_5 = arith.constant 0 : index
    %5 = vector.load %arg4[%c0_4, %c0_5] : memref<1728x128xbf16, #tpu.memory_space<vmem>>, vector<1728x128xbf16>
    %cst = arith.constant dense<0.000000e+00> : vector<256x128xf32>
    %6 = tpu.matmul %4, %5, %cst {dimension_numbers = #tpu.dot_dimension_numbers<[1], [0], [0], [1], [0, 0, 1, 1], [], []>} : vector<256x1728xbf16>, vector<1728x128xbf16>, vector<256x128xf32> -> vector<256x128xf32>
    %7 = arith.addf %3, %6 : vector<256x128xf32>
    %c0_6 = arith.constant 0 : index
    %c0_7 = arith.constant 0 : index
    %8 = vector.load %arg7[%c0_6, %c0_7] : memref<256x128xf32, #tpu.memory_space<vmem>>, vector<256x128xf32>
    tpu.vector_store %arg7[%c0_6, %c0_7], %7 {strides = array<i32>} : memref<256x128xf32, #tpu.memory_space<vmem>>, vector<256x128xf32>,
    %c0_i32_8 = arith.constant 0 : i32
    %9 = arith.cmpi eq, %arg2, %c0_i32_8 : i32
    %10 = arith.extui %9 : i1 to i32
    %c0_i32_9 = arith.constant 0 : i32
    %11 = arith.cmpi ne, %10, %c0_i32_9 : i32
    scf.if %11 {
      %c0_10 = arith.constant 0 : index
      %c0_11 = arith.constant 0 : index
      %12 = vector.load %arg7[%c0_10, %c0_11] : memref<256x128xf32, #tpu.memory_space<vmem>>, vector<256x128xf32>
      %c0_12 = arith.constant 0 : index
      %c0_13 = arith.constant 0 : index
      %13 = vector.load %arg5[%c0_12, %c0_13] : memref<1x128xf32, #tpu.memory_space<vmem>>, vector<1x128xf32>
      %14 = vector.broadcast %13 : vector<1x128xf32> to vector<256x128xf32>
      %15 = arith.addf %12, %14 : vector<256x128xf32>
      %16 = arith.truncf %15 : vector<256x128xf32> to vector<256x128xbf16>
      %c0_14 = arith.constant 0 : index
      %c0_15 = arith.constant 0 : index
      %17 = vector.load %arg6[%c0_14, %c0_15] : memref<256x128xbf16, #tpu.memory_space<vmem>>, vector<256x128xbf16>
      tpu.vector_store %arg6[%c0_14, %c0_15], %16 {strides = array<i32>} : memref<256x128xbf16, #tpu.memory_space<vmem>>, vector<256x128xbf16>,
    } else {
    }
    return
  }
  func.func @transform_0(%arg0: i32, %arg1: i32, %arg2: i32) -> (i32, i32) {
    %c0_i32 = arith.constant 0 : i32
    return %arg0, %arg2 : i32, i32
  }
  func.func @transform_1(%arg0: i32, %arg1: i32, %arg2: i32) -> (i32, i32) {
    %c0_i32 = arith.constant 0 : i32
    return %arg2, %arg1 : i32, i32
  }
  func.func @transform_2(%arg0: i32, %arg1: i32, %arg2: i32) -> (i32, i32) {
    %c0_i32 = arith.constant 0 : i32
    %c0_i32_0 = arith.constant 0 : i32
    return %c0_i32, %arg1 : i32, i32
  }
  func.func @transform_3(%arg0: i32, %arg1: i32, %arg2: i32) -> (i32, i32) {
    %c0_i32 = arith.constant 0 : i32
    return %arg0, %arg1 : i32, i32
  }
}

module attributes {stable_mosaic.version = 11 : i64} {
  func.func @kernel(%arg0: i32, %arg1: i32, %arg2: i32, %arg3: memref<1x1x288x192xbf16, #tpu.memory_space<vmem>>, %arg4: memref<1x1x288x192xbf16, #tpu.memory_space<vmem>>, %arg5: memref<1x1x288x192xbf16, #tpu.memory_space<vmem>>, %arg6: memref<9x192x64xbf16, #tpu.memory_space<vmem>>, %arg7: memref<1x64xf32, #tpu.memory_space<vmem>>, %arg8: memref<1x1x256x64xbf16, #tpu.memory_space<vmem>>, %arg9: memref<1x1x1x64xf32, #tpu.memory_space<vmem>>, %arg10: memref<1x1x1x64xf32, #tpu.memory_space<vmem>>) attributes {dimension_semantics = [#tpu.dimension_semantics<parallel>, #tpu.dimension_semantics<parallel>, #tpu.dimension_semantics<parallel>], iteration_bounds = array<i64: 2, 8, 1>, scalar_prefetch = 0 : i64, scratch_operands = 0 : i64, tpu.core_type = #tpu.core_type<tc>, window_params = [{transform_indices = @transform_0, window_bounds = array<i64: 1, 1, 288, 192>}, {transform_indices = @transform_1, window_bounds = array<i64: 1, 1, 288, 192>}, {transform_indices = @transform_2, window_bounds = array<i64: 1, 1, 288, 192>}, {transform_indices = @transform_3, window_bounds = array<i64: 9, 192, 64>}, {transform_indices = @transform_4, window_bounds = array<i64: 1, 64>}, {transform_indices = @transform_5, window_bounds = array<i64: 1, 1, 256, 64>}, {transform_indices = @transform_6, window_bounds = array<i64: 1, 1, 1, 64>}, {transform_indices = @transform_7, window_bounds = array<i64: 1, 1, 1, 64>}]} {
    %cst = arith.constant 0.000000e+00 : f32
    %0 = vector.broadcast %cst : f32 to vector<256x64xf32>
    %c0 = arith.constant 0 : index
    %c0_0 = arith.constant 0 : index
    %1 = vector.load %arg7[%c0, %c0_0] : memref<1x64xf32, #tpu.memory_space<vmem>>, vector<1x64xf32>
    %2 = vector.broadcast %1 : vector<1x64xf32> to vector<256x64xf32>
    %3 = arith.addf %0, %2 : vector<256x64xf32>
    %c0_1 = arith.constant 0 : index
    %c0_2 = arith.constant 0 : index
    %c0_3 = arith.constant 0 : index
    %c0_4 = arith.constant 0 : index
    %4 = vector.load %arg3[%c0_1, %c0_2, %c0_3, %c0_4] : memref<1x1x288x192xbf16, #tpu.memory_space<vmem>>, vector<1x1x256x192xbf16>
    %5 = vector.shape_cast %4 : vector<1x1x256x192xbf16> to vector<256x192xbf16>
    %c0_5 = arith.constant 0 : index
    %c0_6 = arith.constant 0 : index
    %c0_7 = arith.constant 0 : index
    %6 = vector.load %arg6[%c0_5, %c0_6, %c0_7] : memref<9x192x64xbf16, #tpu.memory_space<vmem>>, vector<1x192x64xbf16>
    %7 = vector.shape_cast %6 : vector<1x192x64xbf16> to vector<192x64xbf16>
    %cst_8 = arith.constant dense<0.000000e+00> : vector<256x64xf32>
    %8 = tpu.matmul %5, %7, %cst_8 {dimension_numbers = #tpu.dot_dimension_numbers<[1], [0], [0], [1], [0, 0, 1, 1], [], []>} : vector<256x192xbf16>, vector<192x64xbf16>, vector<256x64xf32> -> vector<256x64xf32>
    %9 = arith.addf %3, %8 : vector<256x64xf32>
    %c0_9 = arith.constant 0 : index
    %c0_10 = arith.constant 0 : index
    %c16 = arith.constant 16 : index
    %c0_11 = arith.constant 0 : index
    %10 = vector.load %arg3[%c0_9, %c0_10, %c16, %c0_11] : memref<1x1x288x192xbf16, #tpu.memory_space<vmem>>, vector<1x1x256x192xbf16>
    %11 = vector.shape_cast %10 : vector<1x1x256x192xbf16> to vector<256x192xbf16>
    %c1 = arith.constant 1 : index
    %c0_12 = arith.constant 0 : index
    %c0_13 = arith.constant 0 : index
    %12 = vector.load %arg6[%c1, %c0_12, %c0_13] : memref<9x192x64xbf16, #tpu.memory_space<vmem>>, vector<1x192x64xbf16>
    %13 = vector.shape_cast %12 : vector<1x192x64xbf16> to vector<192x64xbf16>
    %cst_14 = arith.constant dense<0.000000e+00> : vector<256x64xf32>
    %14 = tpu.matmul %11, %13, %cst_14 {dimension_numbers = #tpu.dot_dimension_numbers<[1], [0], [0], [1], [0, 0, 1, 1], [], []>} : vector<256x192xbf16>, vector<192x64xbf16>, vector<256x64xf32> -> vector<256x64xf32>
    %15 = arith.addf %9, %14 : vector<256x64xf32>
    %c0_15 = arith.constant 0 : index
    %c0_16 = arith.constant 0 : index
    %c32 = arith.constant 32 : index
    %c0_17 = arith.constant 0 : index
    %16 = vector.load %arg3[%c0_15, %c0_16, %c32, %c0_17] : memref<1x1x288x192xbf16, #tpu.memory_space<vmem>>, vector<1x1x256x192xbf16>
    %17 = vector.shape_cast %16 : vector<1x1x256x192xbf16> to vector<256x192xbf16>
    %c2 = arith.constant 2 : index
    %c0_18 = arith.constant 0 : index
    %c0_19 = arith.constant 0 : index
    %18 = vector.load %arg6[%c2, %c0_18, %c0_19] : memref<9x192x64xbf16, #tpu.memory_space<vmem>>, vector<1x192x64xbf16>
    %19 = vector.shape_cast %18 : vector<1x192x64xbf16> to vector<192x64xbf16>
    %cst_20 = arith.constant dense<0.000000e+00> : vector<256x64xf32>
    %20 = tpu.matmul %17, %19, %cst_20 {dimension_numbers = #tpu.dot_dimension_numbers<[1], [0], [0], [1], [0, 0, 1, 1], [], []>} : vector<256x192xbf16>, vector<192x64xbf16>, vector<256x64xf32> -> vector<256x64xf32>
    %21 = arith.addf %15, %20 : vector<256x64xf32>
    %c0_21 = arith.constant 0 : index
    %c0_22 = arith.constant 0 : index
    %c0_23 = arith.constant 0 : index
    %c0_24 = arith.constant 0 : index
    %22 = vector.load %arg4[%c0_21, %c0_22, %c0_23, %c0_24] : memref<1x1x288x192xbf16, #tpu.memory_space<vmem>>, vector<1x1x256x192xbf16>
    %23 = vector.shape_cast %22 : vector<1x1x256x192xbf16> to vector<256x192xbf16>
    %c3 = arith.constant 3 : index
    %c0_25 = arith.constant 0 : index
    %c0_26 = arith.constant 0 : index
    %24 = vector.load %arg6[%c3, %c0_25, %c0_26] : memref<9x192x64xbf16, #tpu.memory_space<vmem>>, vector<1x192x64xbf16>
    %25 = vector.shape_cast %24 : vector<1x192x64xbf16> to vector<192x64xbf16>
    %cst_27 = arith.constant dense<0.000000e+00> : vector<256x64xf32>
    %26 = tpu.matmul %23, %25, %cst_27 {dimension_numbers = #tpu.dot_dimension_numbers<[1], [0], [0], [1], [0, 0, 1, 1], [], []>} : vector<256x192xbf16>, vector<192x64xbf16>, vector<256x64xf32> -> vector<256x64xf32>
    %27 = arith.addf %21, %26 : vector<256x64xf32>
    %c0_28 = arith.constant 0 : index
    %c0_29 = arith.constant 0 : index
    %c16_30 = arith.constant 16 : index
    %c0_31 = arith.constant 0 : index
    %28 = vector.load %arg4[%c0_28, %c0_29, %c16_30, %c0_31] : memref<1x1x288x192xbf16, #tpu.memory_space<vmem>>, vector<1x1x256x192xbf16>
    %29 = vector.shape_cast %28 : vector<1x1x256x192xbf16> to vector<256x192xbf16>
    %c4 = arith.constant 4 : index
    %c0_32 = arith.constant 0 : index
    %c0_33 = arith.constant 0 : index
    %30 = vector.load %arg6[%c4, %c0_32, %c0_33] : memref<9x192x64xbf16, #tpu.memory_space<vmem>>, vector<1x192x64xbf16>
    %31 = vector.shape_cast %30 : vector<1x192x64xbf16> to vector<192x64xbf16>
    %cst_34 = arith.constant dense<0.000000e+00> : vector<256x64xf32>
    %32 = tpu.matmul %29, %31, %cst_34 {dimension_numbers = #tpu.dot_dimension_numbers<[1], [0], [0], [1], [0, 0, 1, 1], [], []>} : vector<256x192xbf16>, vector<192x64xbf16>, vector<256x64xf32> -> vector<256x64xf32>
    %33 = arith.addf %27, %32 : vector<256x64xf32>
    %c0_35 = arith.constant 0 : index
    %c0_36 = arith.constant 0 : index
    %c32_37 = arith.constant 32 : index
    %c0_38 = arith.constant 0 : index
    %34 = vector.load %arg4[%c0_35, %c0_36, %c32_37, %c0_38] : memref<1x1x288x192xbf16, #tpu.memory_space<vmem>>, vector<1x1x256x192xbf16>
    %35 = vector.shape_cast %34 : vector<1x1x256x192xbf16> to vector<256x192xbf16>
    %c5 = arith.constant 5 : index
    %c0_39 = arith.constant 0 : index
    %c0_40 = arith.constant 0 : index
    %36 = vector.load %arg6[%c5, %c0_39, %c0_40] : memref<9x192x64xbf16, #tpu.memory_space<vmem>>, vector<1x192x64xbf16>
    %37 = vector.shape_cast %36 : vector<1x192x64xbf16> to vector<192x64xbf16>
    %cst_41 = arith.constant dense<0.000000e+00> : vector<256x64xf32>
    %38 = tpu.matmul %35, %37, %cst_41 {dimension_numbers = #tpu.dot_dimension_numbers<[1], [0], [0], [1], [0, 0, 1, 1], [], []>} : vector<256x192xbf16>, vector<192x64xbf16>, vector<256x64xf32> -> vector<256x64xf32>
    %39 = arith.addf %33, %38 : vector<256x64xf32>
    %c0_42 = arith.constant 0 : index
    %c0_43 = arith.constant 0 : index
    %c0_44 = arith.constant 0 : index
    %c0_45 = arith.constant 0 : index
    %40 = vector.load %arg5[%c0_42, %c0_43, %c0_44, %c0_45] : memref<1x1x288x192xbf16, #tpu.memory_space<vmem>>, vector<1x1x256x192xbf16>
    %41 = vector.shape_cast %40 : vector<1x1x256x192xbf16> to vector<256x192xbf16>
    %c6 = arith.constant 6 : index
    %c0_46 = arith.constant 0 : index
    %c0_47 = arith.constant 0 : index
    %42 = vector.load %arg6[%c6, %c0_46, %c0_47] : memref<9x192x64xbf16, #tpu.memory_space<vmem>>, vector<1x192x64xbf16>
    %43 = vector.shape_cast %42 : vector<1x192x64xbf16> to vector<192x64xbf16>
    %cst_48 = arith.constant dense<0.000000e+00> : vector<256x64xf32>
    %44 = tpu.matmul %41, %43, %cst_48 {dimension_numbers = #tpu.dot_dimension_numbers<[1], [0], [0], [1], [0, 0, 1, 1], [], []>} : vector<256x192xbf16>, vector<192x64xbf16>, vector<256x64xf32> -> vector<256x64xf32>
    %45 = arith.addf %39, %44 : vector<256x64xf32>
    %c0_49 = arith.constant 0 : index
    %c0_50 = arith.constant 0 : index
    %c16_51 = arith.constant 16 : index
    %c0_52 = arith.constant 0 : index
    %46 = vector.load %arg5[%c0_49, %c0_50, %c16_51, %c0_52] : memref<1x1x288x192xbf16, #tpu.memory_space<vmem>>, vector<1x1x256x192xbf16>
    %47 = vector.shape_cast %46 : vector<1x1x256x192xbf16> to vector<256x192xbf16>
    %c7 = arith.constant 7 : index
    %c0_53 = arith.constant 0 : index
    %c0_54 = arith.constant 0 : index
    %48 = vector.load %arg6[%c7, %c0_53, %c0_54] : memref<9x192x64xbf16, #tpu.memory_space<vmem>>, vector<1x192x64xbf16>
    %49 = vector.shape_cast %48 : vector<1x192x64xbf16> to vector<192x64xbf16>
    %cst_55 = arith.constant dense<0.000000e+00> : vector<256x64xf32>
    %50 = tpu.matmul %47, %49, %cst_55 {dimension_numbers = #tpu.dot_dimension_numbers<[1], [0], [0], [1], [0, 0, 1, 1], [], []>} : vector<256x192xbf16>, vector<192x64xbf16>, vector<256x64xf32> -> vector<256x64xf32>
    %51 = arith.addf %45, %50 : vector<256x64xf32>
    %c0_56 = arith.constant 0 : index
    %c0_57 = arith.constant 0 : index
    %c32_58 = arith.constant 32 : index
    %c0_59 = arith.constant 0 : index
    %52 = vector.load %arg5[%c0_56, %c0_57, %c32_58, %c0_59] : memref<1x1x288x192xbf16, #tpu.memory_space<vmem>>, vector<1x1x256x192xbf16>
    %53 = vector.shape_cast %52 : vector<1x1x256x192xbf16> to vector<256x192xbf16>
    %c8 = arith.constant 8 : index
    %c0_60 = arith.constant 0 : index
    %c0_61 = arith.constant 0 : index
    %54 = vector.load %arg6[%c8, %c0_60, %c0_61] : memref<9x192x64xbf16, #tpu.memory_space<vmem>>, vector<1x192x64xbf16>
    %55 = vector.shape_cast %54 : vector<1x192x64xbf16> to vector<192x64xbf16>
    %cst_62 = arith.constant dense<0.000000e+00> : vector<256x64xf32>
    %56 = tpu.matmul %53, %55, %cst_62 {dimension_numbers = #tpu.dot_dimension_numbers<[1], [0], [0], [1], [0, 0, 1, 1], [], []>} : vector<256x192xbf16>, vector<192x64xbf16>, vector<256x64xf32> -> vector<256x64xf32>
    %57 = arith.addf %51, %56 : vector<256x64xf32>
    %58 = arith.truncf %57 : vector<256x64xf32> to vector<256x64xbf16>
    %c0_63 = arith.constant 0 : index
    %c0_64 = arith.constant 0 : index
    %c0_65 = arith.constant 0 : index
    %c0_66 = arith.constant 0 : index
    %59 = vector.load %arg8[%c0_63, %c0_64, %c0_65, %c0_66] : memref<1x1x256x64xbf16, #tpu.memory_space<vmem>>, vector<1x1x256x64xbf16>
    %60 = vector.shape_cast %59 : vector<1x1x256x64xbf16> to vector<256x64xbf16>
    %61 = vector.shape_cast %58 : vector<256x64xbf16> to vector<1x1x256x64xbf16>
    tpu.vector_store %arg8[%c0_63, %c0_64, %c0_65, %c0_66], %61 {strides = array<i32>} : memref<1x1x256x64xbf16, #tpu.memory_space<vmem>>, vector<1x1x256x64xbf16>,
    %cst_67 = arith.constant dense<0.000000e+00> : vector<64xf32>
    %62 = vector.multi_reduction <add>, %57, %cst_67 [0] : vector<256x64xf32> to vector<64xf32>
    %63 = vector.shape_cast %62 : vector<64xf32> to vector<1x64xf32>
    %c0_68 = arith.constant 0 : index
    %c0_69 = arith.constant 0 : index
    %c0_70 = arith.constant 0 : index
    %c0_71 = arith.constant 0 : index
    %64 = vector.load %arg9[%c0_68, %c0_69, %c0_70, %c0_71] : memref<1x1x1x64xf32, #tpu.memory_space<vmem>>, vector<1x1x1x64xf32>
    %65 = vector.shape_cast %64 : vector<1x1x1x64xf32> to vector<1x64xf32>
    %66 = vector.shape_cast %63 : vector<1x64xf32> to vector<1x1x1x64xf32>
    tpu.vector_store %arg9[%c0_68, %c0_69, %c0_70, %c0_71], %66 {strides = array<i32>} : memref<1x1x1x64xf32, #tpu.memory_space<vmem>>, vector<1x1x1x64xf32>,
    %67 = arith.mulf %57, %57 : vector<256x64xf32>
    %cst_72 = arith.constant dense<0.000000e+00> : vector<64xf32>
    %68 = vector.multi_reduction <add>, %67, %cst_72 [0] : vector<256x64xf32> to vector<64xf32>
    %69 = vector.shape_cast %68 : vector<64xf32> to vector<1x64xf32>
    %c0_73 = arith.constant 0 : index
    %c0_74 = arith.constant 0 : index
    %c0_75 = arith.constant 0 : index
    %c0_76 = arith.constant 0 : index
    %70 = vector.load %arg10[%c0_73, %c0_74, %c0_75, %c0_76] : memref<1x1x1x64xf32, #tpu.memory_space<vmem>>, vector<1x1x1x64xf32>
    %71 = vector.shape_cast %70 : vector<1x1x1x64xf32> to vector<1x64xf32>
    %72 = vector.shape_cast %69 : vector<1x64xf32> to vector<1x1x1x64xf32>
    tpu.vector_store %arg10[%c0_73, %c0_74, %c0_75, %c0_76], %72 {strides = array<i32>} : memref<1x1x1x64xf32, #tpu.memory_space<vmem>>, vector<1x1x1x64xf32>,
    return
  }
  func.func @transform_0(%arg0: i32, %arg1: i32, %arg2: i32) -> (i32, i32, i32, i32) {
    %c0_i32 = arith.constant 0 : i32
    %0 = arith.addi %arg1, %c0_i32 : i32
    %c0_i32_0 = arith.constant 0 : i32
    %c0_i32_1 = arith.constant 0 : i32
    %c0_i32_2 = arith.constant 0 : i32
    return %arg0, %0, %c0_i32_0, %c0_i32_1 : i32, i32, i32, i32
  }
  func.func @transform_1(%arg0: i32, %arg1: i32, %arg2: i32) -> (i32, i32, i32, i32) {
    %c1_i32 = arith.constant 1 : i32
    %0 = arith.addi %arg1, %c1_i32 : i32
    %c0_i32 = arith.constant 0 : i32
    %c0_i32_0 = arith.constant 0 : i32
    %c0_i32_1 = arith.constant 0 : i32
    return %arg0, %0, %c0_i32, %c0_i32_0 : i32, i32, i32, i32
  }
  func.func @transform_2(%arg0: i32, %arg1: i32, %arg2: i32) -> (i32, i32, i32, i32) {
    %c2_i32 = arith.constant 2 : i32
    %0 = arith.addi %arg1, %c2_i32 : i32
    %c0_i32 = arith.constant 0 : i32
    %c0_i32_0 = arith.constant 0 : i32
    %c0_i32_1 = arith.constant 0 : i32
    return %arg0, %0, %c0_i32, %c0_i32_0 : i32, i32, i32, i32
  }
  func.func @transform_3(%arg0: i32, %arg1: i32, %arg2: i32) -> (i32, i32, i32) {
    %c0_i32 = arith.constant 0 : i32
    %c0_i32_0 = arith.constant 0 : i32
    %c0_i32_1 = arith.constant 0 : i32
    return %c0_i32, %c0_i32_0, %arg2 : i32, i32, i32
  }
  func.func @transform_4(%arg0: i32, %arg1: i32, %arg2: i32) -> (i32, i32) {
    %c0_i32 = arith.constant 0 : i32
    %c0_i32_0 = arith.constant 0 : i32
    return %c0_i32, %arg2 : i32, i32
  }
  func.func @transform_5(%arg0: i32, %arg1: i32, %arg2: i32) -> (i32, i32, i32, i32) {
    %c0_i32 = arith.constant 0 : i32
    %c0_i32_0 = arith.constant 0 : i32
    return %arg0, %arg1, %c0_i32, %arg2 : i32, i32, i32, i32
  }
  func.func @transform_6(%arg0: i32, %arg1: i32, %arg2: i32) -> (i32, i32, i32, i32) {
    %c0_i32 = arith.constant 0 : i32
    %c0_i32_0 = arith.constant 0 : i32
    return %arg0, %arg1, %c0_i32, %arg2 : i32, i32, i32, i32
  }
  func.func @transform_7(%arg0: i32, %arg1: i32, %arg2: i32) -> (i32, i32, i32, i32) {
    %c0_i32 = arith.constant 0 : i32
    %c0_i32_0 = arith.constant 0 : i32
    return %arg0, %arg1, %c0_i32, %arg2 : i32, i32, i32, i32
  }
}

module attributes {stable_mosaic.version = 11 : i64} {
  func.func @_gn_act_blurd_kernel(%arg0: i32, %arg1: i32, %arg2: i32, %arg3: memref<1x1x128x128xbf16, #tpu.memory_space<vmem>>, %arg4: memref<1x1x128x128xbf16, #tpu.memory_space<vmem>>, %arg5: memref<1x1x128x128xbf16, #tpu.memory_space<vmem>>, %arg6: memref<1x1x1x128xf32, #tpu.memory_space<vmem>>, %arg7: memref<1x1x1x128xf32, #tpu.memory_space<vmem>>, %arg8: memref<1x1x128x128xbf16, #tpu.memory_space<vmem>>) attributes {dimension_semantics = [#tpu.dimension_semantics<parallel>, #tpu.dimension_semantics<parallel>, #tpu.dimension_semantics<parallel>], iteration_bounds = array<i64: 2, 4, 1>, scalar_prefetch = 0 : i64, scratch_operands = 0 : i64, tpu.core_type = #tpu.core_type<tc>, window_params = [{transform_indices = @transform_0, window_bounds = array<i64: 1, 1, 128, 128>}, {transform_indices = @transform_1, window_bounds = array<i64: 1, 1, 128, 128>}, {transform_indices = @transform_2, window_bounds = array<i64: 1, 1, 128, 128>}, {transform_indices = @transform_3, window_bounds = array<i64: 1, 1, 1, 128>}, {transform_indices = @transform_4, window_bounds = array<i64: 1, 1, 1, 128>}, {transform_indices = @transform_5, window_bounds = array<i64: 1, 1, 128, 128>}]} {
    %c0 = arith.constant 0 : index
    %c0_0 = arith.constant 0 : index
    %c0_1 = arith.constant 0 : index
    %c0_2 = arith.constant 0 : index
    %0 = vector.load %arg6[%c0, %c0_0, %c0_1, %c0_2] : memref<1x1x1x128xf32, #tpu.memory_space<vmem>>, vector<1x1x1x128xf32>
    %1 = vector.shape_cast %0 : vector<1x1x1x128xf32> to vector<1x128xf32>
    %c0_3 = arith.constant 0 : index
    %c0_4 = arith.constant 0 : index
    %c0_5 = arith.constant 0 : index
    %c0_6 = arith.constant 0 : index
    %2 = vector.load %arg7[%c0_3, %c0_4, %c0_5, %c0_6] : memref<1x1x1x128xf32, #tpu.memory_space<vmem>>, vector<1x1x1x128xf32>
    %3 = vector.shape_cast %2 : vector<1x1x1x128xf32> to vector<1x128xf32>
    %c0_7 = arith.constant 0 : index
    %c0_8 = arith.constant 0 : index
    %c0_9 = arith.constant 0 : index
    %c0_10 = arith.constant 0 : index
    %4 = vector.load %arg3[%c0_7, %c0_8, %c0_9, %c0_10] : memref<1x1x128x128xbf16, #tpu.memory_space<vmem>>, vector<1x1x128x128xbf16>
    %5 = vector.shape_cast %4 : vector<1x1x128x128xbf16> to vector<128x128xbf16>
    %6 = arith.extf %5 : vector<128x128xbf16> to vector<128x128xf32>
    %7 = vector.broadcast %1 : vector<1x128xf32> to vector<128x128xf32>
    %8 = arith.mulf %6, %7 : vector<128x128xf32>
    %9 = vector.broadcast %3 : vector<1x128xf32> to vector<128x128xf32>
    %10 = arith.addf %8, %9 : vector<128x128xf32>
    %cst = arith.constant 0.000000e+00 : f32
    %11 = vector.broadcast %cst : f32 to vector<128x128xf32>
    %12 = arith.cmpf oge, %10, %11 : vector<128x128xf32>
    %cst_11 = arith.constant 2.000000e-01 : f32
    %13 = vector.broadcast %cst_11 : f32 to vector<128x128xf32>
    %14 = arith.mulf %13, %10 : vector<128x128xf32>
    %15 = arith.select %12, %10, %14 : vector<128x128xi1>, vector<128x128xf32>
    %cst_12 = arith.constant 2.500000e-01 : f32
    %16 = vector.broadcast %cst_12 : f32 to vector<128x128xf32>
    %17 = arith.mulf %16, %15 : vector<128x128xf32>
    %c0_13 = arith.constant 0 : index
    %c0_14 = arith.constant 0 : index
    %c0_15 = arith.constant 0 : index
    %c0_16 = arith.constant 0 : index
    %18 = vector.load %arg4[%c0_13, %c0_14, %c0_15, %c0_16] : memref<1x1x128x128xbf16, #tpu.memory_space<vmem>>, vector<1x1x128x128xbf16>
    %19 = vector.shape_cast %18 : vector<1x1x128x128xbf16> to vector<128x128xbf16>
    %20 = arith.extf %19 : vector<128x128xbf16> to vector<128x128xf32>
    %21 = vector.broadcast %1 : vector<1x128xf32> to vector<128x128xf32>
    %22 = arith.mulf %20, %21 : vector<128x128xf32>
    %23 = vector.broadcast %3 : vector<1x128xf32> to vector<128x128xf32>
    %24 = arith.addf %22, %23 : vector<128x128xf32>
    %cst_17 = arith.constant 0.000000e+00 : f32
    %25 = vector.broadcast %cst_17 : f32 to vector<128x128xf32>
    %26 = arith.cmpf oge, %24, %25 : vector<128x128xf32>
    %cst_18 = arith.constant 2.000000e-01 : f32
    %27 = vector.broadcast %cst_18 : f32 to vector<128x128xf32>
    %28 = arith.mulf %27, %24 : vector<128x128xf32>
    %29 = arith.select %26, %24, %28 : vector<128x128xi1>, vector<128x128xf32>
    %cst_19 = arith.constant 5.000000e-01 : f32
    %30 = vector.broadcast %cst_19 : f32 to vector<128x128xf32>
    %31 = arith.mulf %30, %29 : vector<128x128xf32>
    %32 = arith.addf %17, %31 : vector<128x128xf32>
    %c0_20 = arith.constant 0 : index
    %c0_21 = arith.constant 0 : index
    %c0_22 = arith.constant 0 : index
    %c0_23 = arith.constant 0 : index
    %33 = vector.load %arg5[%c0_20, %c0_21, %c0_22, %c0_23] : memref<1x1x128x128xbf16, #tpu.memory_space<vmem>>, vector<1x1x128x128xbf16>
    %34 = vector.shape_cast %33 : vector<1x1x128x128xbf16> to vector<128x128xbf16>
    %35 = arith.extf %34 : vector<128x128xbf16> to vector<128x128xf32>
    %36 = vector.broadcast %1 : vector<1x128xf32> to vector<128x128xf32>
    %37 = arith.mulf %35, %36 : vector<128x128xf32>
    %38 = vector.broadcast %3 : vector<1x128xf32> to vector<128x128xf32>
    %39 = arith.addf %37, %38 : vector<128x128xf32>
    %cst_24 = arith.constant 0.000000e+00 : f32
    %40 = vector.broadcast %cst_24 : f32 to vector<128x128xf32>
    %41 = arith.cmpf oge, %39, %40 : vector<128x128xf32>
    %cst_25 = arith.constant 2.000000e-01 : f32
    %42 = vector.broadcast %cst_25 : f32 to vector<128x128xf32>
    %43 = arith.mulf %42, %39 : vector<128x128xf32>
    %44 = arith.select %41, %39, %43 : vector<128x128xi1>, vector<128x128xf32>
    %cst_26 = arith.constant 2.500000e-01 : f32
    %45 = vector.broadcast %cst_26 : f32 to vector<128x128xf32>
    %46 = arith.mulf %45, %44 : vector<128x128xf32>
    %47 = arith.addf %32, %46 : vector<128x128xf32>
    %48 = arith.truncf %47 : vector<128x128xf32> to vector<128x128xbf16>
    %c0_27 = arith.constant 0 : index
    %c0_28 = arith.constant 0 : index
    %c0_29 = arith.constant 0 : index
    %c0_30 = arith.constant 0 : index
    %49 = vector.load %arg8[%c0_27, %c0_28, %c0_29, %c0_30] : memref<1x1x128x128xbf16, #tpu.memory_space<vmem>>, vector<1x1x128x128xbf16>
    %50 = vector.shape_cast %49 : vector<1x1x128x128xbf16> to vector<128x128xbf16>
    %51 = vector.shape_cast %48 : vector<128x128xbf16> to vector<1x1x128x128xbf16>
    tpu.vector_store %arg8[%c0_27, %c0_28, %c0_29, %c0_30], %51 {strides = array<i32>} : memref<1x1x128x128xbf16, #tpu.memory_space<vmem>>, vector<1x1x128x128xbf16>,
    return
  }
  func.func @transform_0(%arg0: i32, %arg1: i32, %arg2: i32) -> (i32, i32, i32, i32) {
    %c2_i32 = arith.constant 2 : i32
    %0 = arith.muli %c2_i32, %arg1 : i32
    %c1_i32 = arith.constant 1 : i32
    %1 = arith.subi %0, %c1_i32 : i32
    %c0_i32 = arith.constant 0 : i32
    %2 = arith.addi %1, %c0_i32 : i32
    %3 = math.absi %2 : i32
    %c7_i32 = arith.constant 7 : i32
    %4 = arith.cmpi sgt, %3, %c7_i32 : i32
    %c14_i32 = arith.constant 14 : i32
    %5 = arith.subi %c14_i32, %3 : i32
    %6 = arith.select %4, %5, %3 : i32
    %c0_i32_0 = arith.constant 0 : i32
    %c0_i32_1 = arith.constant 0 : i32
    return %arg0, %6, %arg2, %c0_i32_0 : i32, i32, i32, i32
  }
  func.func @transform_1(%arg0: i32, %arg1: i32, %arg2: i32) -> (i32, i32, i32, i32) {
    %c2_i32 = arith.constant 2 : i32
    %0 = arith.muli %c2_i32, %arg1 : i32
    %c1_i32 = arith.constant 1 : i32
    %1 = arith.subi %0, %c1_i32 : i32
    %c1_i32_0 = arith.constant 1 : i32
    %2 = arith.addi %1, %c1_i32_0 : i32
    %3 = math.absi %2 : i32
    %c7_i32 = arith.constant 7 : i32
    %4 = arith.cmpi sgt, %3, %c7_i32 : i32
    %c14_i32 = arith.constant 14 : i32
    %5 = arith.subi %c14_i32, %3 : i32
    %6 = arith.select %4, %5, %3 : i32
    %c0_i32 = arith.constant 0 : i32
    %c0_i32_1 = arith.constant 0 : i32
    return %arg0, %6, %arg2, %c0_i32 : i32, i32, i32, i32
  }
  func.func @transform_2(%arg0: i32, %arg1: i32, %arg2: i32) -> (i32, i32, i32, i32) {
    %c2_i32 = arith.constant 2 : i32
    %0 = arith.muli %c2_i32, %arg1 : i32
    %c1_i32 = arith.constant 1 : i32
    %1 = arith.subi %0, %c1_i32 : i32
    %c2_i32_0 = arith.constant 2 : i32
    %2 = arith.addi %1, %c2_i32_0 : i32
    %3 = math.absi %2 : i32
    %c7_i32 = arith.constant 7 : i32
    %4 = arith.cmpi sgt, %3, %c7_i32 : i32
    %c14_i32 = arith.constant 14 : i32
    %5 = arith.subi %c14_i32, %3 : i32
    %6 = arith.select %4, %5, %3 : i32
    %c0_i32 = arith.constant 0 : i32
    %c0_i32_1 = arith.constant 0 : i32
    return %arg0, %6, %arg2, %c0_i32 : i32, i32, i32, i32
  }
  func.func @transform_3(%arg0: i32, %arg1: i32, %arg2: i32) -> (i32, i32, i32, i32) {
    %c0_i32 = arith.constant 0 : i32
    %c0_i32_0 = arith.constant 0 : i32
    %c0_i32_1 = arith.constant 0 : i32
    %c0_i32_2 = arith.constant 0 : i32
    return %arg0, %c0_i32, %c0_i32_0, %c0_i32_1 : i32, i32, i32, i32
  }
  func.func @transform_4(%arg0: i32, %arg1: i32, %arg2: i32) -> (i32, i32, i32, i32) {
    %c0_i32 = arith.constant 0 : i32
    %c0_i32_0 = arith.constant 0 : i32
    %c0_i32_1 = arith.constant 0 : i32
    %c0_i32_2 = arith.constant 0 : i32
    return %arg0, %c0_i32, %c0_i32_0, %c0_i32_1 : i32, i32, i32, i32
  }
  func.func @transform_5(%arg0: i32, %arg1: i32, %arg2: i32) -> (i32, i32, i32, i32) {
    %c0_i32 = arith.constant 0 : i32
    %c0_i32_0 = arith.constant 0 : i32
    return %arg0, %arg1, %arg2, %c0_i32 : i32, i32, i32, i32
  }
}

module attributes {stable_mosaic.version = 11 : i64} {
  func.func @kernel(%arg0: i32, %arg1: i32, %arg2: i32, %arg3: memref<1x1x80x192xbf16, #tpu.memory_space<vmem>>, %arg4: memref<1x1x80x192xbf16, #tpu.memory_space<vmem>>, %arg5: memref<1x1x80x192xbf16, #tpu.memory_space<vmem>>, %arg6: memref<9x192x128xbf16, #tpu.memory_space<vmem>>, %arg7: memref<1x128xf32, #tpu.memory_space<vmem>>, %arg8: memref<1x1x64x128xbf16, #tpu.memory_space<vmem>>, %arg9: memref<1x1x1x128xf32, #tpu.memory_space<vmem>>, %arg10: memref<1x1x1x128xf32, #tpu.memory_space<vmem>>) attributes {dimension_semantics = [#tpu.dimension_semantics<parallel>, #tpu.dimension_semantics<parallel>, #tpu.dimension_semantics<parallel>], iteration_bounds = array<i64: 2, 4, 1>, scalar_prefetch = 0 : i64, scratch_operands = 0 : i64, tpu.core_type = #tpu.core_type<tc>, window_params = [{transform_indices = @transform_0, window_bounds = array<i64: 1, 1, 80, 192>}, {transform_indices = @transform_1, window_bounds = array<i64: 1, 1, 80, 192>}, {transform_indices = @transform_2, window_bounds = array<i64: 1, 1, 80, 192>}, {transform_indices = @transform_3, window_bounds = array<i64: 9, 192, 128>}, {transform_indices = @transform_4, window_bounds = array<i64: 1, 128>}, {transform_indices = @transform_5, window_bounds = array<i64: 1, 1, 64, 128>}, {transform_indices = @transform_6, window_bounds = array<i64: 1, 1, 1, 128>}, {transform_indices = @transform_7, window_bounds = array<i64: 1, 1, 1, 128>}]} {
    %cst = arith.constant 0.000000e+00 : f32
    %0 = vector.broadcast %cst : f32 to vector<64x128xf32>
    %c0 = arith.constant 0 : index
    %c0_0 = arith.constant 0 : index
    %1 = vector.load %arg7[%c0, %c0_0] : memref<1x128xf32, #tpu.memory_space<vmem>>, vector<1x128xf32>
    %2 = vector.broadcast %1 : vector<1x128xf32> to vector<64x128xf32>
    %3 = arith.addf %0, %2 : vector<64x128xf32>
    %c0_1 = arith.constant 0 : index
    %c0_2 = arith.constant 0 : index
    %c0_3 = arith.constant 0 : index
    %c0_4 = arith.constant 0 : index
    %4 = vector.load %arg3[%c0_1, %c0_2, %c0_3, %c0_4] : memref<1x1x80x192xbf16, #tpu.memory_space<vmem>>, vector<1x1x64x192xbf16>
    %5 = vector.shape_cast %4 : vector<1x1x64x192xbf16> to vector<64x192xbf16>
    %c0_5 = arith.constant 0 : index
    %c0_6 = arith.constant 0 : index
    %c0_7 = arith.constant 0 : index
    %6 = vector.load %arg6[%c0_5, %c0_6, %c0_7] : memref<9x192x128xbf16, #tpu.memory_space<vmem>>, vector<1x192x128xbf16>
    %7 = vector.shape_cast %6 : vector<1x192x128xbf16> to vector<192x128xbf16>
    %cst_8 = arith.constant dense<0.000000e+00> : vector<64x128xf32>
    %8 = tpu.matmul %5, %7, %cst_8 {dimension_numbers = #tpu.dot_dimension_numbers<[1], [0], [0], [1], [0, 0, 1, 1], [], []>} : vector<64x192xbf16>, vector<192x128xbf16>, vector<64x128xf32> -> vector<64x128xf32>
    %9 = arith.addf %3, %8 : vector<64x128xf32>
    %c0_9 = arith.constant 0 : index
    %c0_10 = arith.constant 0 : index
    %c8 = arith.constant 8 : index
    %c0_11 = arith.constant 0 : index
    %10 = vector.load %arg3[%c0_9, %c0_10, %c8, %c0_11] : memref<1x1x80x192xbf16, #tpu.memory_space<vmem>>, vector<1x1x64x192xbf16>
    %11 = vector.shape_cast %10 : vector<1x1x64x192xbf16> to vector<64x192xbf16>
    %c1 = arith.constant 1 : index
    %c0_12 = arith.constant 0 : index
    %c0_13 = arith.constant 0 : index
    %12 = vector.load %arg6[%c1, %c0_12, %c0_13] : memref<9x192x128xbf16, #tpu.memory_space<vmem>>, vector<1x192x128xbf16>
    %13 = vector.shape_cast %12 : vector<1x192x128xbf16> to vector<192x128xbf16>
    %cst_14 = arith.constant dense<0.000000e+00> : vector<64x128xf32>
    %14 = tpu.matmul %11, %13, %cst_14 {dimension_numbers = #tpu.dot_dimension_numbers<[1], [0], [0], [1], [0, 0, 1, 1], [], []>} : vector<64x192xbf16>, vector<192x128xbf16>, vector<64x128xf32> -> vector<64x128xf32>
    %15 = arith.addf %9, %14 : vector<64x128xf32>
    %c0_15 = arith.constant 0 : index
    %c0_16 = arith.constant 0 : index
    %c16 = arith.constant 16 : index
    %c0_17 = arith.constant 0 : index
    %16 = vector.load %arg3[%c0_15, %c0_16, %c16, %c0_17] : memref<1x1x80x192xbf16, #tpu.memory_space<vmem>>, vector<1x1x64x192xbf16>
    %17 = vector.shape_cast %16 : vector<1x1x64x192xbf16> to vector<64x192xbf16>
    %c2 = arith.constant 2 : index
    %c0_18 = arith.constant 0 : index
    %c0_19 = arith.constant 0 : index
    %18 = vector.load %arg6[%c2, %c0_18, %c0_19] : memref<9x192x128xbf16, #tpu.memory_space<vmem>>, vector<1x192x128xbf16>
    %19 = vector.shape_cast %18 : vector<1x192x128xbf16> to vector<192x128xbf16>
    %cst_20 = arith.constant dense<0.000000e+00> : vector<64x128xf32>
    %20 = tpu.matmul %17, %19, %cst_20 {dimension_numbers = #tpu.dot_dimension_numbers<[1], [0], [0], [1], [0, 0, 1, 1], [], []>} : vector<64x192xbf16>, vector<192x128xbf16>, vector<64x128xf32> -> vector<64x128xf32>
    %21 = arith.addf %15, %20 : vector<64x128xf32>
    %c0_21 = arith.constant 0 : index
    %c0_22 = arith.constant 0 : index
    %c0_23 = arith.constant 0 : index
    %c0_24 = arith.constant 0 : index
    %22 = vector.load %arg4[%c0_21, %c0_22, %c0_23, %c0_24] : memref<1x1x80x192xbf16, #tpu.memory_space<vmem>>, vector<1x1x64x192xbf16>
    %23 = vector.shape_cast %22 : vector<1x1x64x192xbf16> to vector<64x192xbf16>
    %c3 = arith.constant 3 : index
    %c0_25 = arith.constant 0 : index
    %c0_26 = arith.constant 0 : index
    %24 = vector.load %arg6[%c3, %c0_25, %c0_26] : memref<9x192x128xbf16, #tpu.memory_space<vmem>>, vector<1x192x128xbf16>
    %25 = vector.shape_cast %24 : vector<1x192x128xbf16> to vector<192x128xbf16>
    %cst_27 = arith.constant dense<0.000000e+00> : vector<64x128xf32>
    %26 = tpu.matmul %23, %25, %cst_27 {dimension_numbers = #tpu.dot_dimension_numbers<[1], [0], [0], [1], [0, 0, 1, 1], [], []>} : vector<64x192xbf16>, vector<192x128xbf16>, vector<64x128xf32> -> vector<64x128xf32>
    %27 = arith.addf %21, %26 : vector<64x128xf32>
    %c0_28 = arith.constant 0 : index
    %c0_29 = arith.constant 0 : index
    %c8_30 = arith.constant 8 : index
    %c0_31 = arith.constant 0 : index
    %28 = vector.load %arg4[%c0_28, %c0_29, %c8_30, %c0_31] : memref<1x1x80x192xbf16, #tpu.memory_space<vmem>>, vector<1x1x64x192xbf16>
    %29 = vector.shape_cast %28 : vector<1x1x64x192xbf16> to vector<64x192xbf16>
    %c4 = arith.constant 4 : index
    %c0_32 = arith.constant 0 : index
    %c0_33 = arith.constant 0 : index
    %30 = vector.load %arg6[%c4, %c0_32, %c0_33] : memref<9x192x128xbf16, #tpu.memory_space<vmem>>, vector<1x192x128xbf16>
    %31 = vector.shape_cast %30 : vector<1x192x128xbf16> to vector<192x128xbf16>
    %cst_34 = arith.constant dense<0.000000e+00> : vector<64x128xf32>
    %32 = tpu.matmul %29, %31, %cst_34 {dimension_numbers = #tpu.dot_dimension_numbers<[1], [0], [0], [1], [0, 0, 1, 1], [], []>} : vector<64x192xbf16>, vector<192x128xbf16>, vector<64x128xf32> -> vector<64x128xf32>
    %33 = arith.addf %27, %32 : vector<64x128xf32>
    %c0_35 = arith.constant 0 : index
    %c0_36 = arith.constant 0 : index
    %c16_37 = arith.constant 16 : index
    %c0_38 = arith.constant 0 : index
    %34 = vector.load %arg4[%c0_35, %c0_36, %c16_37, %c0_38] : memref<1x1x80x192xbf16, #tpu.memory_space<vmem>>, vector<1x1x64x192xbf16>
    %35 = vector.shape_cast %34 : vector<1x1x64x192xbf16> to vector<64x192xbf16>
    %c5 = arith.constant 5 : index
    %c0_39 = arith.constant 0 : index
    %c0_40 = arith.constant 0 : index
    %36 = vector.load %arg6[%c5, %c0_39, %c0_40] : memref<9x192x128xbf16, #tpu.memory_space<vmem>>, vector<1x192x128xbf16>
    %37 = vector.shape_cast %36 : vector<1x192x128xbf16> to vector<192x128xbf16>
    %cst_41 = arith.constant dense<0.000000e+00> : vector<64x128xf32>
    %38 = tpu.matmul %35, %37, %cst_41 {dimension_numbers = #tpu.dot_dimension_numbers<[1], [0], [0], [1], [0, 0, 1, 1], [], []>} : vector<64x192xbf16>, vector<192x128xbf16>, vector<64x128xf32> -> vector<64x128xf32>
    %39 = arith.addf %33, %38 : vector<64x128xf32>
    %c0_42 = arith.constant 0 : index
    %c0_43 = arith.constant 0 : index
    %c0_44 = arith.constant 0 : index
    %c0_45 = arith.constant 0 : index
    %40 = vector.load %arg5[%c0_42, %c0_43, %c0_44, %c0_45] : memref<1x1x80x192xbf16, #tpu.memory_space<vmem>>, vector<1x1x64x192xbf16>
    %41 = vector.shape_cast %40 : vector<1x1x64x192xbf16> to vector<64x192xbf16>
    %c6 = arith.constant 6 : index
    %c0_46 = arith.constant 0 : index
    %c0_47 = arith.constant 0 : index
    %42 = vector.load %arg6[%c6, %c0_46, %c0_47] : memref<9x192x128xbf16, #tpu.memory_space<vmem>>, vector<1x192x128xbf16>
    %43 = vector.shape_cast %42 : vector<1x192x128xbf16> to vector<192x128xbf16>
    %cst_48 = arith.constant dense<0.000000e+00> : vector<64x128xf32>
    %44 = tpu.matmul %41, %43, %cst_48 {dimension_numbers = #tpu.dot_dimension_numbers<[1], [0], [0], [1], [0, 0, 1, 1], [], []>} : vector<64x192xbf16>, vector<192x128xbf16>, vector<64x128xf32> -> vector<64x128xf32>
    %45 = arith.addf %39, %44 : vector<64x128xf32>
    %c0_49 = arith.constant 0 : index
    %c0_50 = arith.constant 0 : index
    %c8_51 = arith.constant 8 : index
    %c0_52 = arith.constant 0 : index
    %46 = vector.load %arg5[%c0_49, %c0_50, %c8_51, %c0_52] : memref<1x1x80x192xbf16, #tpu.memory_space<vmem>>, vector<1x1x64x192xbf16>
    %47 = vector.shape_cast %46 : vector<1x1x64x192xbf16> to vector<64x192xbf16>
    %c7 = arith.constant 7 : index
    %c0_53 = arith.constant 0 : index
    %c0_54 = arith.constant 0 : index
    %48 = vector.load %arg6[%c7, %c0_53, %c0_54] : memref<9x192x128xbf16, #tpu.memory_space<vmem>>, vector<1x192x128xbf16>
    %49 = vector.shape_cast %48 : vector<1x192x128xbf16> to vector<192x128xbf16>
    %cst_55 = arith.constant dense<0.000000e+00> : vector<64x128xf32>
    %50 = tpu.matmul %47, %49, %cst_55 {dimension_numbers = #tpu.dot_dimension_numbers<[1], [0], [0], [1], [0, 0, 1, 1], [], []>} : vector<64x192xbf16>, vector<192x128xbf16>, vector<64x128xf32> -> vector<64x128xf32>
    %51 = arith.addf %45, %50 : vector<64x128xf32>
    %c0_56 = arith.constant 0 : index
    %c0_57 = arith.constant 0 : index
    %c16_58 = arith.constant 16 : index
    %c0_59 = arith.constant 0 : index
    %52 = vector.load %arg5[%c0_56, %c0_57, %c16_58, %c0_59] : memref<1x1x80x192xbf16, #tpu.memory_space<vmem>>, vector<1x1x64x192xbf16>
    %53 = vector.shape_cast %52 : vector<1x1x64x192xbf16> to vector<64x192xbf16>
    %c8_60 = arith.constant 8 : index
    %c0_61 = arith.constant 0 : index
    %c0_62 = arith.constant 0 : index
    %54 = vector.load %arg6[%c8_60, %c0_61, %c0_62] : memref<9x192x128xbf16, #tpu.memory_space<vmem>>, vector<1x192x128xbf16>
    %55 = vector.shape_cast %54 : vector<1x192x128xbf16> to vector<192x128xbf16>
    %cst_63 = arith.constant dense<0.000000e+00> : vector<64x128xf32>
    %56 = tpu.matmul %53, %55, %cst_63 {dimension_numbers = #tpu.dot_dimension_numbers<[1], [0], [0], [1], [0, 0, 1, 1], [], []>} : vector<64x192xbf16>, vector<192x128xbf16>, vector<64x128xf32> -> vector<64x128xf32>
    %57 = arith.addf %51, %56 : vector<64x128xf32>
    %58 = arith.truncf %57 : vector<64x128xf32> to vector<64x128xbf16>
    %c0_64 = arith.constant 0 : index
    %c0_65 = arith.constant 0 : index
    %c0_66 = arith.constant 0 : index
    %c0_67 = arith.constant 0 : index
    %59 = vector.load %arg8[%c0_64, %c0_65, %c0_66, %c0_67] : memref<1x1x64x128xbf16, #tpu.memory_space<vmem>>, vector<1x1x64x128xbf16>
    %60 = vector.shape_cast %59 : vector<1x1x64x128xbf16> to vector<64x128xbf16>
    %61 = vector.shape_cast %58 : vector<64x128xbf16> to vector<1x1x64x128xbf16>
    tpu.vector_store %arg8[%c0_64, %c0_65, %c0_66, %c0_67], %61 {strides = array<i32>} : memref<1x1x64x128xbf16, #tpu.memory_space<vmem>>, vector<1x1x64x128xbf16>,
    %cst_68 = arith.constant dense<0.000000e+00> : vector<128xf32>
    %62 = vector.multi_reduction <add>, %57, %cst_68 [0] : vector<64x128xf32> to vector<128xf32>
    %63 = vector.shape_cast %62 : vector<128xf32> to vector<1x128xf32>
    %c0_69 = arith.constant 0 : index
    %c0_70 = arith.constant 0 : index
    %c0_71 = arith.constant 0 : index
    %c0_72 = arith.constant 0 : index
    %64 = vector.load %arg9[%c0_69, %c0_70, %c0_71, %c0_72] : memref<1x1x1x128xf32, #tpu.memory_space<vmem>>, vector<1x1x1x128xf32>
    %65 = vector.shape_cast %64 : vector<1x1x1x128xf32> to vector<1x128xf32>
    %66 = vector.shape_cast %63 : vector<1x128xf32> to vector<1x1x1x128xf32>
    tpu.vector_store %arg9[%c0_69, %c0_70, %c0_71, %c0_72], %66 {strides = array<i32>} : memref<1x1x1x128xf32, #tpu.memory_space<vmem>>, vector<1x1x1x128xf32>,
    %67 = arith.mulf %57, %57 : vector<64x128xf32>
    %cst_73 = arith.constant dense<0.000000e+00> : vector<128xf32>
    %68 = vector.multi_reduction <add>, %67, %cst_73 [0] : vector<64x128xf32> to vector<128xf32>
    %69 = vector.shape_cast %68 : vector<128xf32> to vector<1x128xf32>
    %c0_74 = arith.constant 0 : index
    %c0_75 = arith.constant 0 : index
    %c0_76 = arith.constant 0 : index
    %c0_77 = arith.constant 0 : index
    %70 = vector.load %arg10[%c0_74, %c0_75, %c0_76, %c0_77] : memref<1x1x1x128xf32, #tpu.memory_space<vmem>>, vector<1x1x1x128xf32>
    %71 = vector.shape_cast %70 : vector<1x1x1x128xf32> to vector<1x128xf32>
    %72 = vector.shape_cast %69 : vector<1x128xf32> to vector<1x1x1x128xf32>
    tpu.vector_store %arg10[%c0_74, %c0_75, %c0_76, %c0_77], %72 {strides = array<i32>} : memref<1x1x1x128xf32, #tpu.memory_space<vmem>>, vector<1x1x1x128xf32>,
    return
  }
  func.func @transform_0(%arg0: i32, %arg1: i32, %arg2: i32) -> (i32, i32, i32, i32) {
    %c0_i32 = arith.constant 0 : i32
    %0 = arith.addi %arg1, %c0_i32 : i32
    %c0_i32_0 = arith.constant 0 : i32
    %c0_i32_1 = arith.constant 0 : i32
    %c0_i32_2 = arith.constant 0 : i32
    return %arg0, %0, %c0_i32_0, %c0_i32_1 : i32, i32, i32, i32
  }
  func.func @transform_1(%arg0: i32, %arg1: i32, %arg2: i32) -> (i32, i32, i32, i32) {
    %c1_i32 = arith.constant 1 : i32
    %0 = arith.addi %arg1, %c1_i32 : i32
    %c0_i32 = arith.constant 0 : i32
    %c0_i32_0 = arith.constant 0 : i32
    %c0_i32_1 = arith.constant 0 : i32
    return %arg0, %0, %c0_i32, %c0_i32_0 : i32, i32, i32, i32
  }
  func.func @transform_2(%arg0: i32, %arg1: i32, %arg2: i32) -> (i32, i32, i32, i32) {
    %c2_i32 = arith.constant 2 : i32
    %0 = arith.addi %arg1, %c2_i32 : i32
    %c0_i32 = arith.constant 0 : i32
    %c0_i32_0 = arith.constant 0 : i32
    %c0_i32_1 = arith.constant 0 : i32
    return %arg0, %0, %c0_i32, %c0_i32_0 : i32, i32, i32, i32
  }
  func.func @transform_3(%arg0: i32, %arg1: i32, %arg2: i32) -> (i32, i32, i32) {
    %c0_i32 = arith.constant 0 : i32
    %c0_i32_0 = arith.constant 0 : i32
    %c0_i32_1 = arith.constant 0 : i32
    return %c0_i32, %c0_i32_0, %arg2 : i32, i32, i32
  }
  func.func @transform_4(%arg0: i32, %arg1: i32, %arg2: i32) -> (i32, i32) {
    %c0_i32 = arith.constant 0 : i32
    %c0_i32_0 = arith.constant 0 : i32
    return %c0_i32, %arg2 : i32, i32
  }
  func.func @transform_5(%arg0: i32, %arg1: i32, %arg2: i32) -> (i32, i32, i32, i32) {
    %c0_i32 = arith.constant 0 : i32
    %c0_i32_0 = arith.constant 0 : i32
    return %arg0, %arg1, %c0_i32, %arg2 : i32, i32, i32, i32
  }
  func.func @transform_6(%arg0: i32, %arg1: i32, %arg2: i32) -> (i32, i32, i32, i32) {
    %c0_i32 = arith.constant 0 : i32
    %c0_i32_0 = arith.constant 0 : i32
    return %arg0, %arg1, %c0_i32, %arg2 : i32, i32, i32, i32
  }
  func.func @transform_7(%arg0: i32, %arg1: i32, %arg2: i32) -> (i32, i32, i32, i32) {
    %c0_i32 = arith.constant 0 : i32
    %c0_i32_0 = arith.constant 0 : i32
    return %arg0, %arg1, %c0_i32, %arg2 : i32, i32, i32, i32
  }
}

module attributes {stable_mosaic.version = 11 : i64} {
  func.func @_gn_act_res_kernel(%arg0: i32, %arg1: i32, %arg2: memref<1x128x128xbf16, #tpu.memory_space<vmem>>, %arg3: memref<1x1x128xf32, #tpu.memory_space<vmem>>, %arg4: memref<1x1x128xf32, #tpu.memory_space<vmem>>, %arg5: memref<1x128x128xbf16, #tpu.memory_space<vmem>>, %arg6: memref<1x128x128xbf16, #tpu.memory_space<vmem>>) attributes {dimension_semantics = [#tpu.dimension_semantics<parallel>, #tpu.dimension_semantics<parallel>], iteration_bounds = array<i64: 2, 2>, scalar_prefetch = 0 : i64, scratch_operands = 0 : i64, tpu.core_type = #tpu.core_type<tc>, window_params = [{transform_indices = @transform_0, window_bounds = array<i64: 1, 128, 128>}, {transform_indices = @transform_1, window_bounds = array<i64: 1, 1, 128>}, {transform_indices = @transform_2, window_bounds = array<i64: 1, 1, 128>}, {transform_indices = @transform_3, window_bounds = array<i64: 1, 128, 128>}, {transform_indices = @transform_4, window_bounds = array<i64: 1, 128, 128>}]} {
    %c0 = arith.constant 0 : index
    %c0_0 = arith.constant 0 : index
    %c0_1 = arith.constant 0 : index
    %0 = vector.load %arg2[%c0, %c0_0, %c0_1] : memref<1x128x128xbf16, #tpu.memory_space<vmem>>, vector<1x128x128xbf16>
    %1 = vector.shape_cast %0 : vector<1x128x128xbf16> to vector<128x128xbf16>
    %2 = arith.extf %1 : vector<128x128xbf16> to vector<128x128xf32>
    %c0_2 = arith.constant 0 : index
    %c0_3 = arith.constant 0 : index
    %c0_4 = arith.constant 0 : index
    %3 = vector.load %arg3[%c0_2, %c0_3, %c0_4] : memref<1x1x128xf32, #tpu.memory_space<vmem>>, vector<1x1x128xf32>
    %4 = vector.shape_cast %3 : vector<1x1x128xf32> to vector<1x128xf32>
    %5 = vector.broadcast %4 : vector<1x128xf32> to vector<128x128xf32>
    %6 = arith.mulf %2, %5 : vector<128x128xf32>
    %c0_5 = arith.constant 0 : index
    %c0_6 = arith.constant 0 : index
    %c0_7 = arith.constant 0 : index
    %7 = vector.load %arg4[%c0_5, %c0_6, %c0_7] : memref<1x1x128xf32, #tpu.memory_space<vmem>>, vector<1x1x128xf32>
    %8 = vector.shape_cast %7 : vector<1x1x128xf32> to vector<1x128xf32>
    %9 = vector.broadcast %8 : vector<1x128xf32> to vector<128x128xf32>
    %10 = arith.addf %6, %9 : vector<128x128xf32>
    %cst = arith.constant 0.000000e+00 : f32
    %11 = vector.broadcast %cst : f32 to vector<128x128xf32>
    %12 = arith.cmpf oge, %10, %11 : vector<128x128xf32>
    %cst_8 = arith.constant 2.000000e-01 : f32
    %13 = vector.broadcast %cst_8 : f32 to vector<128x128xf32>
    %14 = arith.mulf %13, %10 : vector<128x128xf32>
    %15 = arith.select %12, %10, %14 : vector<128x128xi1>, vector<128x128xf32>
    %c0_9 = arith.constant 0 : index
    %c0_10 = arith.constant 0 : index
    %c0_11 = arith.constant 0 : index
    %16 = vector.load %arg5[%c0_9, %c0_10, %c0_11] : memref<1x128x128xbf16, #tpu.memory_space<vmem>>, vector<1x128x128xbf16>
    %17 = vector.shape_cast %16 : vector<1x128x128xbf16> to vector<128x128xbf16>
    %18 = arith.extf %17 : vector<128x128xbf16> to vector<128x128xf32>
    %19 = arith.addf %15, %18 : vector<128x128xf32>
    %cst_12 = arith.constant 0.707106769 : f32
    %20 = vector.broadcast %cst_12 : f32 to vector<128x128xf32>
    %21 = arith.mulf %19, %20 : vector<128x128xf32>
    %22 = arith.truncf %21 : vector<128x128xf32> to vector<128x128xbf16>
    %c0_13 = arith.constant 0 : index
    %c0_14 = arith.constant 0 : index
    %c0_15 = arith.constant 0 : index
    %23 = vector.load %arg6[%c0_13, %c0_14, %c0_15] : memref<1x128x128xbf16, #tpu.memory_space<vmem>>, vector<1x128x128xbf16>
    %24 = vector.shape_cast %23 : vector<1x128x128xbf16> to vector<128x128xbf16>
    %25 = vector.shape_cast %22 : vector<128x128xbf16> to vector<1x128x128xbf16>
    tpu.vector_store %arg6[%c0_13, %c0_14, %c0_15], %25 {strides = array<i32>} : memref<1x128x128xbf16, #tpu.memory_space<vmem>>, vector<1x128x128xbf16>,
    return
  }
  func.func @transform_0(%arg0: i32, %arg1: i32) -> (i32, i32, i32) {
    %c0_i32 = arith.constant 0 : i32
    %c0_i32_0 = arith.constant 0 : i32
    return %arg0, %arg1, %c0_i32 : i32, i32, i32
  }
  func.func @transform_1(%arg0: i32, %arg1: i32) -> (i32, i32, i32) {
    %c0_i32 = arith.constant 0 : i32
    %c0_i32_0 = arith.constant 0 : i32
    %c0_i32_1 = arith.constant 0 : i32
    return %arg0, %c0_i32, %c0_i32_0 : i32, i32, i32
  }
  func.func @transform_2(%arg0: i32, %arg1: i32) -> (i32, i32, i32) {
    %c0_i32 = arith.constant 0 : i32
    %c0_i32_0 = arith.constant 0 : i32
    %c0_i32_1 = arith.constant 0 : i32
    return %arg0, %c0_i32, %c0_i32_0 : i32, i32, i32
  }
  func.func @transform_3(%arg0: i32, %arg1: i32) -> (i32, i32, i32) {
    %c0_i32 = arith.constant 0 : i32
    %c0_i32_0 = arith.constant 0 : i32
    return %arg0, %arg1, %c0_i32 : i32, i32, i32
  }
  func.func @transform_4(%arg0: i32, %arg1: i32) -> (i32, i32, i32) {
    %c0_i32 = arith.constant 0 : i32
    %c0_i32_0 = arith.constant 0 : i32
    return %arg0, %arg1, %c0_i32 : i32, i32, i32
  }
}

</mosaic_0001>

<bundles_post_ra>
// kernel: resblock_down_forward.8
= control target key start
LH: loop header
LB: loop body
LE: loop exit
PB: predicated region body
PF: predicated region fallthrough
CT: control target
= control target key end

     0   :  { %s6006_s12 = smov 0   ;;  %s6008_s13 = smov 0   ;;  %s7179_s0 = inlined_call_operand.vmem [shape: bf16[512,1728], index: 0, kind: input, shape index: {}]   ;;  %s7180_s1 = inlined_call_operand.vmem [shape: bf16[1728,128], index: 1, kind: input, shape index: {}]   ;;  %s7181_s2 = inlined_call_operand.vmem [shape: f32[1,128], index: 2, kind: input, shape index: {}]   ;;  %s7182_s3 = inlined_call_operand.vmem [shape: bf16[512,128], index: 3, kind: output, shape index: {}]  }
   0x1   :  { %s6010_s14 = smov 0  }
   0x2 LB: > { %s32_s15 = sadd.s32 1, %s5980_s13  ;;  %p4142_p0 = scmp.ge.s32.totalorder %s5984_s14, 1  ;;  %s5984_s14 = sphi %s6010_s14, %s13_s14   ;;  %s5980_s13 = sphi %s6008_s13, %s7184_s13   ;;  %s5976_s12 = sphi %s6006_s12, %s7183_s12  }
   0x3   : > { %p34_p1 = scmp.ge.s32.totalorder %s32_s15, 2  ;;  %p191_p2 = scmp.lt.s32.totalorder %s5984_s14, 3 }
   0x5   : > { %s7186_s15 = smov (%p34_p1, %s32_s15), 0  ;;  %p192_p3 = pnand %p4142_p0, %p191_p2 }
   0x6   : > { %s4143_s28 = sshll.u32 (!%p192_p3), %s5976_s12, 5 }
   0x7   : > { %195 = sbr.rel (%p192_p3) target bundleno = 1077 (0x435), region = 32  ;;  %p236_p4 = scmp.lt.s32.totalorder (!%p192_p3), %s4143_s28, 63 }
   0xc   : > { %v5724_v0 = vld [vmem:[%s7180_s1 + $0x38] sm:$0xff]  ;;  %v5723_v2 = vld [vmem:[%s7180_s1 + $0x30] sm:$0xff]  ;;  %v5722_v4 = vld [vmem:[%s7180_s1 + $0x28] sm:$0xff]  ;;  %s7188_s28 = smov (!%p236_p4, %s4143_s28), 63  ;;  %vm2528_vm0 = vcmask 523264  }
   0xd   : > { %v5732_v1 = vld [vmem:[%s7180_s1 + $0x78] sm:$0xff]  ;;  %5920 = vmatpush.bf16.msra.mxu2 %v5724_v0  ;;  %v5731_v3 = vld [vmem:[%s7180_s1 + $0x70] sm:$0xff]  ;;  %2577 = vmatpush.bf16.msra.mxu0 %v5724_v0  ;;  %v5730_v5 = vld [vmem:[%s7180_s1 + $0x68] sm:$0xff]  ;;  %s5936_s17 = smul.u32 56, %s7188_s28  ;;  %s4146_s16 = sshll.u32 %s7188_s28, 2 }
   0xe   : > { %5928 = vmatpush.bf16.msra.mxu3 %v5732_v1  ;;  %2666 = vmatpush.bf16.msra.mxu1 %v5732_v1  ;;  %v5721_v6 = vld [vmem:[%s7180_s1 + $0x20] sm:$0xff]  ;;  %v5720_v8 = vld [vmem:[%s7180_s1 + $0x18] sm:$0xff]  ;;  %v5719_v10 = vld [vmem:[%s7180_s1 + $0x10] sm:$0xff]  ;;  %s7039_s19 = scalar_lea.vmem %s7182_s3, %s4146_s16 }
   0xf   : > { %v5729_v7 = vld [vmem:[%s7180_s1 + $0x60] sm:$0xff]  ;;  %v5728_v9 = vld [vmem:[%s7180_s1 + $0x58] sm:$0xff]  ;;  %v5727_v11 = vld [vmem:[%s7180_s1 + $0x50] sm:$0xff]  ;;  %s6075_s24 = scalar_lea.vmem %s7179_s0, %s5936_s17 }
  0x10   : > { %v5718_v12 = vld [vmem:[%s7180_s1 + $0x8] sm:$0xff]  ;;  %v5717_v14 = vld [vmem:[%s7180_s1] sm:$0xff]  ;;  %v5612_v17 = vld [vmem:[%s6075_s24 + $0x3b4] sm:$0xf0] }
  0x11   : > { %5921 = vmatpush.bf16.msra.mxu2 %v5723_v2  ;;  %2578 = vmatpush.bf16.msra.mxu0 %v5723_v2  ;;  %v5726_v13 = vld [vmem:[%s7180_s1 + $0x48] sm:$0xff]  ;;  %v5725_v15 = vld [vmem:[%s7180_s1 + $0x40] sm:$0xff]  ;;  %v4599_v19 = vld [vmem:[%s6075_s24 + $0x3b8] sm:$0xf0] }
  0x12   : > { %5929 = vmatpush.bf16.msra.mxu3 %v5731_v3  ;;  %2667 = vmatpush.bf16.msra.mxu1 %v5731_v3  ;;  %v4597_v16 = vld [vmem:[%s6075_s24 + $0x380] sm:$0xf]  ;;  %v5605_v18 = vld [vmem:[%s6075_s24 + $0x384] sm:$0xf]  ;;  %v5500_v21 = vld [vmem:[%s6075_s24 + $0x34] sm:$0xf0] }
  0x13   : > { %v4149_v20 = vld [vmem:[%s6075_s24] sm:$0xf]  ;;  %v5493_v22 = vld [vmem:[%s6075_s24 + $0x4] sm:$0xf]  ;;  %v4151_v23 = vld [vmem:[%s6075_s24 + $0x38] sm:$0xf0]  ;;  %v4598_v26 = vor.u32 %v5612_v17, %v4597_v16  ;;  %v4602_v27 = vor.u32 %v5605_v18, %v4599_v19 }
  0x14   : > { %v5740_v24 = vld [vmem:[%s7180_s1 + $0xb8] sm:$0xff]  ;;  %v4150_v28 = vor.u32 %v5500_v21, %v4149_v20  ;;  %v4154_v29 = vor.u32 %v5493_v22, %v4151_v23  ;;  %v5739_v32 = vld [vmem:[%s7180_s1 + $0xb0] sm:$0xff]  ;;  %v5738_v36 = vld [vmem:[%s7180_s1 + $0xa8] sm:$0xff] }
  0x15   : > { %5922 = vmatpush.bf16.msra.mxu2 %v5722_v4  ;;  %2579 = vmatpush.bf16.msra.mxu0 %v5722_v4  ;;  %v5748_v25 = vld [vmem:[%s7180_s1 + $0xf8] sm:$0xff]  ;;  %v5747_v33 = vld [vmem:[%s7180_s1 + $0xf0] sm:$0xff]  ;;  %v5746_v37 = vld [vmem:[%s7180_s1 + $0xe8] sm:$0xff] }
  0x16   : > { %5930 = vmatpush.bf16.msra.mxu3 %v5730_v5  ;;  %2668 = vmatpush.bf16.msra.mxu1 %v5730_v5  ;;  %v5756_v30 = vld [vmem:[%s7180_s1 + $0x138] sm:$0xff]  ;;  %v5755_v34 = vld [vmem:[%s7180_s1 + $0x130] sm:$0xff]  ;;  %v5754_v38 = vld [vmem:[%s7180_s1 + $0x128] sm:$0xff] }
  0x17   : > { %v5764_v31 = vld [vmem:[%s7180_s1 + $0x178] sm:$0xff]  ;;  %v5763_v35 = vld [vmem:[%s7180_s1 + $0x170] sm:$0xff]  ;;  %v5762_v39 = vld [vmem:[%s7180_s1 + $0x168] sm:$0xff] }
  0x18   : > { %v4653_v40 = vld [vmem:[%s6075_s24 + $0x3f0] sm:$0xf]  ;;  %v5626_v41 = vld [vmem:[%s6075_s24 + $0x424] sm:$0xf0]  ;;  %v5619_v42 = vld [vmem:[%s6075_s24 + $0x3f4] sm:$0xf] }
  0x19   : > { %5923 = vmatpush.bf16.msra.mxu2 %v5721_v6  ;;  %2580 = vmatpush.bf16.msra.mxu0 %v5721_v6  ;;  %v4655_v43 = vld [vmem:[%s6075_s24 + $0x428] sm:$0xf0]  ;;  %v4205_v44 = vld [vmem:[%s6075_s24 + $0x70] sm:$0xf]  ;;  %v5514_v45 = vld [vmem:[%s6075_s24 + $0xa4] sm:$0xf0]  ;;  %v4654_v48 = vor.u32 %v5626_v41, %v4653_v40 }
  0x1a   : > { %5931 = vmatpush.bf16.msra.mxu3 %v5729_v7  ;;  %2669 = vmatpush.bf16.msra.mxu1 %v5729_v7  ;;  %v5507_v46 = vld [vmem:[%s6075_s24 + $0x74] sm:$0xf]  ;;  %v4207_v47 = vld [vmem:[%s6075_s24 + $0xa8] sm:$0xf0]  ;;  %v4658_v49 = vor.u32 %v5619_v42, %v4655_v43  ;;  %v4206_v50 = vor.u32 %v5514_v45, %v4205_v44  ;;  %v5737_v52 = vld [vmem:[%s7180_s1 + $0xa0] sm:$0xff] }
  0x1b   : > { %v4210_v51 = vor.u32 %v5507_v46, %v4207_v47  ;;  %v5745_v53 = vld [vmem:[%s7180_s1 + $0xe0] sm:$0xff]  ;;  %v5640_v57 = vld [vmem:[%s6075_s24 + $0x494] sm:$0xf0]  ;;  %v4711_v59 = vld [vmem:[%s6075_s24 + $0x498] sm:$0xf0] }
  0x1c   : > { %v5753_v54 = vld [vmem:[%s7180_s1 + $0x120] sm:$0xff]  ;;  %v5528_v61 = vld [vmem:[%s6075_s24 + $0x114] sm:$0xf0]  ;;  %v4263_v63 = vld [vmem:[%s6075_s24 + $0x118] sm:$0xf0] }
  0x1d   : > { %5924 = vmatpush.bf16.msra.mxu2 %v5720_v8  ;;  %2581 = vmatpush.bf16.msra.mxu0 %v5720_v8  ;;  %v5761_v55 = vld [vmem:[%s7180_s1 + $0x160] sm:$0xff]  ;;  %v5736_v4 = vld [vmem:[%s7180_s1 + $0x98] sm:$0xff]  ;;  %v4765_v8 = vld [vmem:[%s6075_s24 + $0x4d0] sm:$0xf] }
  0x1e   : > { %5932 = vmatpush.bf16.msra.mxu3 %v5728_v9  ;;  %2670 = vmatpush.bf16.msra.mxu1 %v5728_v9  ;;  %v4709_v56 = vld [vmem:[%s6075_s24 + $0x460] sm:$0xf]  ;;  %v5633_v58 = vld [vmem:[%s6075_s24 + $0x464] sm:$0xf]  ;;  %v5744_v5 = vld [vmem:[%s7180_s1 + $0xd8] sm:$0xff] }
  0x1f   : > { %v4261_v60 = vld [vmem:[%s6075_s24 + $0xe0] sm:$0xf]  ;;  %v5521_v62 = vld [vmem:[%s6075_s24 + $0xe4] sm:$0xf]  ;;  %v4710_v0 = vor.u32 %v5640_v57, %v4709_v56  ;;  %v4714_v1 = vor.u32 %v5633_v58, %v4711_v59  ;;  %v5752_v6 = vld [vmem:[%s7180_s1 + $0x118] sm:$0xff] }
  0x20   : > { %v4262_v2 = vor.u32 %v5528_v61, %v4261_v60  ;;  %v4266_v3 = vor.u32 %v5521_v62, %v4263_v63  ;;  %v5760_v7 = vld [vmem:[%s7180_s1 + $0x158] sm:$0xff]  ;;  %v5654_v9 = vld [vmem:[%s6075_s24 + $0x504] sm:$0xf0]  ;;  %v5735_v20 = vld [vmem:[%s7180_s1 + $0x90] sm:$0xff] }
  0x21   : > { %5925 = vmatpush.bf16.msra.mxu2 %v5719_v10  ;;  %2582 = vmatpush.bf16.msra.mxu0 %v5719_v10  ;;  %v5647_v10 = vld [vmem:[%s6075_s24 + $0x4d4] sm:$0xf]  ;;  %v4766_v16 = vor.u32 %v5654_v9, %v4765_v8  ;;  %v4877_v40 = vld [vmem:[%s6075_s24 + $0x5b0] sm:$0xf]  ;;  %v5682_v41 = vld [vmem:[%s6075_s24 + $0x5e4] sm:$0xf0] }
  0x22   : > { %5933 = vmatpush.bf16.msra.mxu3 %v5727_v11  ;;  %2671 = vmatpush.bf16.msra.mxu1 %v5727_v11  ;;  %v4767_v11 = vld [vmem:[%s6075_s24 + $0x508] sm:$0xf0]  ;;  %v5743_v21 = vld [vmem:[%s7180_s1 + $0xd0] sm:$0xff]  ;;  %v5570_v45 = vld [vmem:[%s6075_s24 + $0x264] sm:$0xf0] }
  0x23   : > { %v4770_v17 = vor.u32 %v5647_v10, %v4767_v11  ;;  %v5751_v22 = vld [vmem:[%s7180_s1 + $0x110] sm:$0xff]  ;;  %v4879_v43 = vld [vmem:[%s6075_s24 + $0x5e8] sm:$0xf0]  ;;  %v4933_v56 = vld [vmem:[%s6075_s24 + $0x620] sm:$0xf] }
  0x24   : > { %v5759_v23 = vld [vmem:[%s7180_s1 + $0x150] sm:$0xff]  ;;  %v4431_v47 = vld [vmem:[%s6075_s24 + $0x268] sm:$0xf0]  ;;  %v5696_v57 = vld [vmem:[%s6075_s24 + $0x654] sm:$0xf0] }
  0x25   : > { %5926 = vmatpush.bf16.msra.mxu2 %v5718_v12  ;;  %2583 = vmatpush.bf16.msra.mxu0 %v5718_v12  ;;  %v4317_v12 = vld [vmem:[%s6075_s24 + $0x150] sm:$0xf]  ;;  %v5675_v42 = vld [vmem:[%s6075_s24 + $0x5b4] sm:$0xf]  ;;  %v5689_v58 = vld [vmem:[%s6075_s24 + $0x624] sm:$0xf] }
  0x26   : > { %5934 = vmatpush.bf16.msra.mxu3 %v5726_v13  ;;  %2672 = vmatpush.bf16.msra.mxu1 %v5726_v13  ;;  %v5542_v13 = vld [vmem:[%s6075_s24 + $0x184] sm:$0xf0]  ;;  %v4429_v44 = vld [vmem:[%s6075_s24 + $0x230] sm:$0xf]  ;;  %v5563_v46 = vld [vmem:[%s6075_s24 + $0x234] sm:$0xf] }
  0x27   : > { %v4318_v18 = vor.u32 %v5542_v13, %v4317_v12  ;;  %v4935_v59 = vld [vmem:[%s6075_s24 + $0x658] sm:$0xf0]  ;;  %v4485_v60 = vld [vmem:[%s6075_s24 + $0x2a0] sm:$0xf]  ;;  %v5584_v61 = vld [vmem:[%s6075_s24 + $0x2d4] sm:$0xf0] }
  0x28   : > { %v5577_v62 = vld [vmem:[%s6075_s24 + $0x2a4] sm:$0xf]  ;;  %v4487_v63 = vld [vmem:[%s6075_s24 + $0x2d8] sm:$0xf0]  ;;  %v5710_v8 = vld [vmem:[%s6075_s24 + $0x6c4] sm:$0xf0] }
  0x29   : > { %5927 = vmatpush.bf16.msra.mxu2 %v5717_v14  ;;  %2584 = vmatpush.bf16.msra.mxu0 %v5717_v14  ;;  %v5535_v14 = vld [vmem:[%s6075_s24 + $0x154] sm:$0xf]  ;;  %v4991_v10 = vld [vmem:[%s6075_s24 + $0x6c8] sm:$0xf0]  ;;  %v4541_v11 = vld [vmem:[%s6075_s24 + $0x310] sm:$0xf] }
  0x2a   : > { %5935 = vmatpush.bf16.msra.mxu3 %v5725_v15  ;;  %2673 = vmatpush.bf16.msra.mxu1 %v5725_v15  ;;  %v4319_v15 = vld [vmem:[%s6075_s24 + $0x188] sm:$0xf0]  ;;  %v5703_v9 = vld [vmem:[%s6075_s24 + $0x694] sm:$0xf]  ;;  %v5598_v12 = vld [vmem:[%s6075_s24 + $0x344] sm:$0xf0] }
  0x2b   : > { %v4322_v19 = vor.u32 %v5535_v14, %v4319_v15  ;;  %v5591_v13 = vld [vmem:[%s6075_s24 + $0x314] sm:$0xf]  ;;  %v4543_v14 = vld [vmem:[%s6075_s24 + $0x348] sm:$0xf0] }
  0x2c   : > { %2625 = vmatmul.bf16.vlgmr.msra.gmra.mxu2 %v4598_v26  ;;  %2585 = vmatmul.bf16.vlgmr.msra.gmra.mxu0 %v4150_v28  ;;  %v5661_v26 = vld [vmem:[%s6075_s24 + $0x544] sm:$0xf]  ;;  %v4373_v28 = vld [vmem:[%s6075_s24 + $0x1c0] sm:$0xf] }
  0x2d   : > { %2755 = vmatpush.bf16.msrb.mxu2 %v5740_v24  ;;  %2714 = vmatmul.bf16.vlgmr.msra.gmra.mxu3 %v4602_v27  ;;  %v4821_v24 = vld [vmem:[%s6075_s24 + $0x540] sm:$0xf]  ;;  %v4823_v27 = vld [vmem:[%s6075_s24 + $0x578] sm:$0xf0] }
  0x2e   : > { %2844 = vmatpush.bf16.msrb.mxu3 %v5748_v25  ;;  %2674 = vmatmul.bf16.vlgmr.msra.gmra.mxu1 %v4154_v29  ;;  %v5668_v25 = vld [vmem:[%s6075_s24 + $0x574] sm:$0xf0] }
  0x2f   : > { %2933 = vmatpush.bf16.msrb.mxu0 %v5756_v30  ;;  %3022 = vmatpush.bf16.msrb.mxu1 %v5764_v31  ;;  %v5556_v29 = vld [vmem:[%s6075_s24 + $0x1f4] sm:$0xf0]  ;;  %v5549_v30 = vld [vmem:[%s6075_s24 + $0x1c4] sm:$0xf]  ;;  %v4375_v31 = vld [vmem:[%s6075_s24 + $0x1f8] sm:$0xf0] }
  0x31   : > { %2756 = vmatpush.bf16.msrb.mxu2 %v5739_v32  ;;  %v4822_v32 = vor.u32 %v5668_v25, %v4821_v24  ;;  %v4165_v24 = vld [vmem:[%s6075_s24 + $0x10] sm:$0xf]  ;;  %v5502_v25 = vld [vmem:[%s6075_s24 + $0x44] sm:$0xf0] }
  0x32   : > { %2845 = vmatpush.bf16.msrb.mxu3 %v5747_v33  ;;  %v4826_v33 = vor.u32 %v5661_v26, %v4823_v27  ;;  %v5495_v26 = vld [vmem:[%s6075_s24 + $0x14] sm:$0xf]  ;;  %v4167_v27 = vld [vmem:[%s6075_s24 + $0x48] sm:$0xf0] }
  0x33   : > { %2934 = vmatpush.bf16.msrb.mxu0 %v5755_v34  ;;  %3023 = vmatpush.bf16.msrb.mxu1 %v5763_v35  ;;  %v4374_v34 = vor.u32 %v5556_v29, %v4373_v28  ;;  %v4378_v35 = vor.u32 %v5549_v30, %v4375_v31  ;;  %v4166_v30 = vor.u32 %v5502_v25, %v4165_v24  ;;  %v5778_v24 = vld [vmem:[%s7180_s1 + $0x1e8] sm:$0xff] }
  0x34   : > { %v4170_v31 = vor.u32 %v5495_v26, %v4167_v27 }
  0x35   : > { %2757 = vmatpush.bf16.msrb.mxu2 %v5738_v36  ;;  %v5734_v36 = vld [vmem:[%s7180_s1 + $0x88] sm:$0xff] }
  0x36   : > { %2846 = vmatpush.bf16.msrb.mxu3 %v5746_v37  ;;  %v5742_v37 = vld [vmem:[%s7180_s1 + $0xc8] sm:$0xff] }
  0x37   : > { %2935 = vmatpush.bf16.msrb.mxu0 %v5754_v38  ;;  %3024 = vmatpush.bf16.msrb.mxu1 %v5762_v39  ;;  %v5750_v38 = vld [vmem:[%s7180_s1 + $0x108] sm:$0xff] }
  0x38   : > { %v5758_v39 = vld [vmem:[%s7180_s1 + $0x148] sm:$0xff] }
  0x39   : > { %2758 = vmatpush.bf16.msrb.mxu2 %v5737_v52  ;;  %v5733_v52 = vld [vmem:[%s7180_s1 + $0x80] sm:$0xff] }
  0x3a   : > { %2847 = vmatpush.bf16.msrb.mxu3 %v5745_v53  ;;  %v5741_v53 = vld [vmem:[%s7180_s1 + $0xc0] sm:$0xff] }
  0x3b   : > { %2936 = vmatpush.bf16.msrb.mxu0 %v5753_v54  ;;  %3025 = vmatpush.bf16.msrb.mxu1 %v5761_v55  ;;  %v5749_v54 = vld [vmem:[%s7180_s1 + $0x100] sm:$0xff] }
  0x3c   : > { %2630 = vmatmul.bf16.gmra.mxu2 %v4654_v48  ;;  %2590 = vmatmul.bf16.gmra.mxu0 %v4206_v50  ;;  %v4878_v48 = vor.u32 %v5682_v41, %v4877_v40  ;;  %v4430_v50 = vor.u32 %v5570_v45, %v4429_v44  ;;  %v5757_v55 = vld [vmem:[%s7180_s1 + $0x140] sm:$0xff]  ;;  %v4213_v44 = vld [vmem:[%s6075_s24 + $0x78] sm:$0xf]  ;;  %v5515_v45 = vld [vmem:[%s6075_s24 + $0xac] sm:$0xf0] }
  0x3d   : > { %2719 = vmatmul.bf16.gmra.mxu3 %v4658_v49  ;;  %2759 = vmatpush.bf16.msrb.mxu2 %v5736_v4  ;;  %v4882_v49 = vor.u32 %v5675_v42, %v4879_v43  ;;  %v5772_v4 = vld [vmem:[%s7180_s1 + $0x1b8] sm:$0xff]  ;;  %v5787_v43 = vld [vmem:[%s7180_s1 + $0x230] sm:$0xff] }
  0x3e   : > { %2679 = vmatmul.bf16.gmra.mxu1 %v4210_v51  ;;  %2848 = vmatpush.bf16.msrb.mxu3 %v5744_v5  ;;  %v4434_v51 = vor.u32 %v5563_v46, %v4431_v47  ;;  %v5780_v5 = vld [vmem:[%s7180_s1 + $0x1f8] sm:$0xff]  ;;  %v4215_v47 = vld [vmem:[%s6075_s24 + $0xb0] sm:$0xf0] }
  0x3f   : > { %2937 = vmatpush.bf16.msrb.mxu0 %v5752_v6  ;;  %3026 = vmatpush.bf16.msrb.mxu1 %v5760_v7  ;;  %v5788_v6 = vld [vmem:[%s7180_s1 + $0x238] sm:$0xff]  ;;  %v4989_v7 = vld [vmem:[%s6075_s24 + $0x690] sm:$0xf] }
  0x40   : > { %v4990_v15 = vor.u32 %v5710_v8, %v4989_v7  ;;  %v5508_v46 = vld [vmem:[%s6075_s24 + $0x7c] sm:$0xf]  ;;  %v5522_v7 = vld [vmem:[%s6075_s24 + $0xec] sm:$0xf]  ;;  %v4271_v8 = vld [vmem:[%s6075_s24 + $0x120] sm:$0xf0] }
  0x41   : > { %2760 = vmatpush.bf16.msrb.mxu2 %v5735_v20  ;;  %v4157_v20 = vld [vmem:[%s6075_s24 + $0x8] sm:$0xf] }
  0x42   : > { %2849 = vmatpush.bf16.msrb.mxu3 %v5743_v21  ;;  %v5501_v21 = vld [vmem:[%s6075_s24 + $0x3c] sm:$0xf0] }
  0x43   : > { %2938 = vmatpush.bf16.msrb.mxu0 %v5751_v22  ;;  %3027 = vmatpush.bf16.msrb.mxu1 %v5759_v23  ;;  %v5494_v22 = vld [vmem:[%s6075_s24 + $0xc] sm:$0xf]  ;;  %v4159_v23 = vld [vmem:[%s6075_s24 + $0x40] sm:$0xf0]  ;;  %v4158_v28 = vor.u32 %v5501_v21, %v4157_v20 }
  0x44   : > { %v4162_v29 = vor.u32 %v5494_v22, %v4159_v23  ;;  %v5770_v23 = vld [vmem:[%s7180_s1 + $0x1a8] sm:$0xff] }
  0x45   : > { %2761 = vmatpush.bf16.msrb.mxu2 %v5734_v36  ;;  %v5779_v36 = vld [vmem:[%s7180_s1 + $0x1f0] sm:$0xff] }
  0x46   : > { %2850 = vmatpush.bf16.msrb.mxu3 %v5742_v37 }
  0x47   : > { %2939 = vmatpush.bf16.msrb.mxu0 %v5750_v38  ;;  %3028 = vmatpush.bf16.msrb.mxu1 %v5758_v39 }
  0x49   : > { %2762 = vmatpush.bf16.msrb.mxu2 %v5733_v52 }
  0x4a   : > { %2851 = vmatpush.bf16.msrb.mxu3 %v5741_v53 }
  0x4b   : > { %2940 = vmatpush.bf16.msrb.mxu0 %v5749_v54  ;;  %3029 = vmatpush.bf16.msrb.mxu1 %v5757_v55  ;;  %v4214_v55 = vor.u32 %v5515_v45, %v4213_v44 }
  0x4c   : > { %2635 = vmatmul.bf16.gmra.mxu2 %v4710_v0  ;;  %2595 = vmatmul.bf16.gmra.mxu0 %v4262_v2  ;;  %v4934_v0 = vor.u32 %v5696_v57, %v4933_v56  ;;  %v4486_v2 = vor.u32 %v5584_v61, %v4485_v60  ;;  %v4218_v56 = vor.u32 %v5508_v46, %v4215_v47  ;;  %v5795_v57 = vld [vmem:[%s7180_s1 + $0x270] sm:$0xff] }
  0x4d   : > { %2724 = vmatmul.bf16.gmra.mxu3 %v4714_v1  ;;  %v4938_v1 = vor.u32 %v5689_v58, %v4935_v59  ;;  %3111 = vmatpush.bf16.msra.mxu2 %v5772_v4 }
  0x4e   : > { %2684 = vmatmul.bf16.gmra.mxu1 %v4266_v3  ;;  %v4490_v3 = vor.u32 %v5577_v62, %v4487_v63  ;;  %3200 = vmatpush.bf16.msra.mxu3 %v5780_v5  ;;  %v4269_v5 = vld [vmem:[%s6075_s24 + $0xe8] sm:$0xf] }
  0x4f   : > { %3289 = vmatpush.bf16.msra.mxu0 %v5788_v6  ;;  %v5529_v6 = vld [vmem:[%s6075_s24 + $0x11c] sm:$0xf0] }
  0x52   : > { %3201 = vmatpush.bf16.msra.mxu3 %v5779_v36  ;;  %v4327_v36 = vld [vmem:[%s6075_s24 + $0x190] sm:$0xf0] }
  0x53   : > { %3290 = vmatpush.bf16.msra.mxu0 %v5787_v43 }
  0x56   : > { %3202 = vmatpush.bf16.msra.mxu3 %v5778_v24 }
  0x5c   : > { %2640 = vmatmul.bf16.gmra.mxu2 %v4766_v16  ;;  %2600 = vmatmul.bf16.gmra.mxu0 %v4318_v18  ;;  %v4994_v16 = vor.u32 %v5703_v9, %v4991_v10  ;;  %v4542_v18 = vor.u32 %v5598_v12, %v4541_v11  ;;  %v4277_v9 = vld [vmem:[%s6075_s24 + $0xf0] sm:$0xf]  ;;  %v5530_v10 = vld [vmem:[%s6075_s24 + $0x124] sm:$0xf0]  ;;  %v5523_v11 = vld [vmem:[%s6075_s24 + $0xf4] sm:$0xf] }
  0x5d   : > { %2729 = vmatmul.bf16.gmra.mxu3 %v4770_v17  ;;  %v5796_v17 = vld [vmem:[%s7180_s1 + $0x278] sm:$0xff]  ;;  %v4279_v12 = vld [vmem:[%s6075_s24 + $0x128] sm:$0xf0] }
  0x5e   : > { %2689 = vmatmul.bf16.gmra.mxu1 %v4322_v19  ;;  %v4546_v19 = vor.u32 %v5591_v13, %v4543_v14 }
  0x5f   : > { %3378 = vmatpush.bf16.msra.mxu1 %v5796_v17  ;;  %v4274_v17 = vor.u32 %v5522_v7, %v4271_v8  ;;  %v4391_v7 = vld [vmem:[%s6075_s24 + $0x208] sm:$0xf0] }
  0x63   : > { %3379 = vmatpush.bf16.msra.mxu1 %v5795_v57 }
  0x6c   : > { %2645 = vmatmul.bf16.gmra.mxu2 %v4822_v32  ;;  %2605 = vmatmul.bf16.gmra.mxu0 %v4374_v34 }
  0x6d   : > { %2734 = vmatmul.bf16.gmra.mxu3 %v4826_v33 }
  0x6e   : > { %2694 = vmatmul.bf16.gmra.mxu1 %v4378_v35  ;;  %v5771_v35 = vld [vmem:[%s7180_s1 + $0x1b0] sm:$0xff] }
  0x6f   : > { %3112 = vmatpush.bf16.msra.mxu2 %v5771_v35  ;;  %v5536_v35 = vld [vmem:[%s6075_s24 + $0x15c] sm:$0xf] }
  0x70   : > { %v4330_v47 = vor.u32 %v5536_v35, %v4327_v36  ;;  %v4439_v35 = vld [vmem:[%s6075_s24 + $0x270] sm:$0xf0]  ;;  %v4445_v36 = vld [vmem:[%s6075_s24 + $0x240] sm:$0xf] }
  0x73   : > { %3113 = vmatpush.bf16.msra.mxu2 %v5770_v23 }
  0x7c   : > { %2650 = vmatmul.bf16.gmra.mxu2 %v4878_v48  ;;  %2610 = vmatmul.bf16.gmra.mxu0 %v4430_v50  ;;  %v4221_v48 = vld [vmem:[%s6075_s24 + $0x80] sm:$0xf]  ;;  %v5509_v50 = vld [vmem:[%s6075_s24 + $0x84] sm:$0xf] }
  0x7d   : > { %2739 = vmatmul.bf16.gmra.mxu3 %v4882_v49  ;;  %v5516_v49 = vld [vmem:[%s6075_s24 + $0xb4] sm:$0xf0] }
  0x7e   : > { %2699 = vmatmul.bf16.gmra.mxu1 %v4434_v51  ;;  %v4223_v51 = vld [vmem:[%s6075_s24 + $0xb8] sm:$0xf0]  ;;  %v4222_v58 = vor.u32 %v5516_v49, %v4221_v48  ;;  %v5794_v48 = vld [vmem:[%s7180_s1 + $0x268] sm:$0xff] }
  0x7f   : > { %v4226_v59 = vor.u32 %v5509_v50, %v4223_v51  ;;  %3380 = vmatpush.bf16.msra.mxu1 %v5794_v48  ;;  %v5793_v48 = vld [vmem:[%s7180_s1 + $0x260] sm:$0xff] }
  0x83   : > { %3381 = vmatpush.bf16.msra.mxu1 %v5793_v48  ;;  %v5600_v48 = vld [vmem:[%s6075_s24 + $0x354] sm:$0xf0] }
  0x8c   : > { %2655 = vmatmul.bf16.gmra.mxu2 %v4934_v0  ;;  %2615 = vmatmul.bf16.gmra.mxu0 %v4486_v2 }
  0x8d   : > { %2744 = vmatmul.bf16.gmra.mxu3 %v4938_v1 }
  0x8e   : > { %2704 = vmatmul.bf16.gmra.mxu1 %v4490_v3 }
  0x9c   : > { %2660 = vmatmul.bf16.gmra.mxu2 %v4990_v15  ;;  %2620 = vmatmul.bf16.gmra.mxu0 %v4542_v18  ;;  %v4278_v18 = vor.u32 %v5530_v10, %v4277_v9 }
  0x9d   : > { %2749 = vmatmul.bf16.gmra.mxu3 %v4994_v16  ;;  %v4270_v16 = vor.u32 %v5529_v6, %v4269_v5  ;;  %v5558_v5 = vld [vmem:[%s6075_s24 + $0x204] sm:$0xf0]  ;;  %v5551_v6 = vld [vmem:[%s6075_s24 + $0x1d4] sm:$0xf] }
  0x9e   : > { %2709 = vmatmul.bf16.gmra.mxu1 %v4546_v19  ;;  %v4282_v19 = vor.u32 %v5523_v11, %v4279_v12 }
  0xa9   : > { %v2586_v32 = vpop.f32.mrf.mxu0 }
  0xab   : > { %v2675_v33 = vpop.f32.mrf.mxu1 }
  0xac   : > { %v6263_v34 = vadd.f32 %v2675_v33, %v2586_v32  ;;  %2763 = vmatmul.bf16.vlgmr.msrb.gmra.mxu2 %v4158_v28  ;;  %2941 = vmatmul.bf16.vlgmr.msrb.gmra.mxu0 %v4166_v30  ;;  %v4325_v32 = vld [vmem:[%s6075_s24 + $0x158] sm:$0xf]  ;;  %v5543_v33 = vld [vmem:[%s6075_s24 + $0x18c] sm:$0xf0] }
  0xad   : > { %2852 = vmatmul.bf16.vlgmr.msrb.gmra.mxu3 %v4162_v29  ;;  %v4326_v46 = vor.u32 %v5543_v33, %v4325_v32  ;;  %v5571_v32 = vld [vmem:[%s6075_s24 + $0x26c] sm:$0xf0]  ;;  %v5564_v33 = vld [vmem:[%s6075_s24 + $0x23c] sm:$0xf] }
  0xae   : > { %3030 = vmatmul.bf16.vlgmr.msrb.gmra.mxu1 %v4170_v31  ;;  %v5786_v31 = vld [vmem:[%s7180_s1 + $0x228] sm:$0xff] }
  0xaf   : > { %v2626_v37 = vpop.f32.mrf.mxu2  ;;  %3291 = vmatpush.bf16.msra.mxu0 %v5786_v31  ;;  %v4437_v31 = vld [vmem:[%s6075_s24 + $0x238] sm:$0xf] }
  0xb0   : > { %v2715_v38 = vpop.f32.mrf.mxu3 }
  0xb1   : > { %v6271_v39 = vadd.f32 %v2715_v38, %v2626_v37  ;;  %v2588_v40 = vpop.f32.mrf.mxu0  ;;  %v4333_v37 = vld [vmem:[%s6075_s24 + $0x160] sm:$0xf]  ;;  %v5544_v38 = vld [vmem:[%s6075_s24 + $0x194] sm:$0xf0] }
  0xb2   : > { %v4334_v49 = vor.u32 %v5544_v38, %v4333_v37  ;;  %v5572_v37 = vld [vmem:[%s6075_s24 + $0x274] sm:$0xf0]  ;;  %v5565_v38 = vld [vmem:[%s6075_s24 + $0x244] sm:$0xf] }
  0xb3   : > { %v2677_v41 = vpop.f32.mrf.mxu1 }
  0xb4   : > { %v6273_v42 = vadd.f32 %v2677_v41, %v2588_v40  ;;  %v5537_v40 = vld [vmem:[%s6075_s24 + $0x164] sm:$0xf]  ;;  %v4335_v41 = vld [vmem:[%s6075_s24 + $0x198] sm:$0xf0] }
  0xb5   : > { %v4338_v50 = vor.u32 %v5537_v40, %v4335_v41  ;;  %v4447_v40 = vld [vmem:[%s6075_s24 + $0x278] sm:$0xf0] }
  0xb7   : > { %v2628_v52 = vpop.f32.mrf.mxu2 }
  0xb8   : > { %v2717_v53 = vpop.f32.mrf.mxu3 }
  0xb9   : > { %v6286_v54 = vadd.f32 %v2717_v53, %v2628_v52  ;;  %v2591_v60 = vpop.f32.mrf.mxu0 }
  0xbb   : > { %v2680_v61 = vpop.f32.mrf.mxu1 }
  0xbc   : > { %v6291_v62 = vadd.f32 %v2680_v61, %v2591_v60  ;;  %2768 = vmatmul.bf16.gmra.mxu2 %v4214_v55  ;;  %2946 = vmatmul.bf16.gmra.mxu0 %v4222_v58  ;;  %v4381_v61 = vld [vmem:[%s6075_s24 + $0x1c8] sm:$0xf] }
  0xbd   : > { %2857 = vmatmul.bf16.gmra.mxu3 %v4218_v56 }
  0xbe   : > { %3035 = vmatmul.bf16.gmra.mxu1 %v4226_v59 }
  0xbf   : > { %v2631_v63 = vpop.f32.mrf.mxu2 }
  0xc0   : > { %v2720_v0 = vpop.f32.mrf.mxu3 }
  0xc1   : > { %v6293_v1 = vadd.f32 %v2720_v0, %v2631_v63  ;;  %v2593_v2 = vpop.f32.mrf.mxu0  ;;  %v5557_v63 = vld [vmem:[%s6075_s24 + $0x1fc] sm:$0xf0]  ;;  %v5550_v0 = vld [vmem:[%s6075_s24 + $0x1cc] sm:$0xf] }
  0xc2   : > { %v4382_v11 = vor.u32 %v5557_v63, %v4381_v61 }
  0xc3   : > { %v2682_v3 = vpop.f32.mrf.mxu1 }
  0xc4   : > { %v6295_v4 = vadd.f32 %v2682_v3, %v2593_v2  ;;  %v4383_v2 = vld [vmem:[%s6075_s24 + $0x200] sm:$0xf0]  ;;  %v4389_v3 = vld [vmem:[%s6075_s24 + $0x1d0] sm:$0xf] }
  0xc5   : > { %v4386_v12 = vor.u32 %v5550_v0, %v4383_v2  ;;  %v4493_v2 = vld [vmem:[%s6075_s24 + $0x2a8] sm:$0xf] }
  0xc7   : > { %v2633_v13 = vpop.f32.mrf.mxu2 }
  0xc8   : > { %v2722_v14 = vpop.f32.mrf.mxu3 }
  0xc9   : > { %v6305_v15 = vadd.f32 %v2722_v14, %v2633_v13  ;;  %v2596_v20 = vpop.f32.mrf.mxu0  ;;  %v4390_v13 = vor.u32 %v5558_v5, %v4389_v3  ;;  %v4394_v14 = vor.u32 %v5551_v6, %v4391_v7  ;;  %v5585_v3 = vld [vmem:[%s6075_s24 + $0x2dc] sm:$0xf0]  ;;  %v5578_v5 = vld [vmem:[%s6075_s24 + $0x2ac] sm:$0xf]  ;;  %v4495_v6 = vld [vmem:[%s6075_s24 + $0x2e0] sm:$0xf0] }
  0xca   : > { %v4501_v7 = vld [vmem:[%s6075_s24 + $0x2b0] sm:$0xf] }
  0xcb   : > { %v2685_v21 = vpop.f32.mrf.mxu1 }
  0xcc   : > { %v6307_v22 = vadd.f32 %v2685_v21, %v2596_v20  ;;  %2773 = vmatmul.bf16.gmra.mxu2 %v4270_v16  ;;  %2951 = vmatmul.bf16.gmra.mxu0 %v4278_v18  ;;  %v5777_v20 = vld [vmem:[%s7180_s1 + $0x1e0] sm:$0xff] }
  0xcd   : > { %2862 = vmatmul.bf16.gmra.mxu3 %v4274_v17 }
  0xce   : > { %3040 = vmatmul.bf16.gmra.mxu1 %v4282_v19  ;;  %v5769_v19 = vld [vmem:[%s7180_s1 + $0x1a0] sm:$0xff]  ;;  %3203 = vmatpush.bf16.msra.mxu3 %v5777_v20 }
  0xcf   : > { %v2636_v25 = vpop.f32.mrf.mxu2  ;;  %3114 = vmatpush.bf16.msra.mxu2 %v5769_v19 }
  0xd0   : > { %v2725_v26 = vpop.f32.mrf.mxu3 }
  0xd1   : > { %v6315_v27 = vadd.f32 %v2725_v26, %v2636_v25  ;;  %v2598_v28 = vpop.f32.mrf.mxu0 }
  0xd3   : > { %v2687_v29 = vpop.f32.mrf.mxu1 }
  0xd4   : > { %v6317_v30 = vadd.f32 %v2687_v29, %v2598_v28  ;;  %v5785_v29 = vld [vmem:[%s7180_s1 + $0x220] sm:$0xff] }
  0xd5   : > { %3292 = vmatpush.bf16.msra.mxu0 %v5785_v29  ;;  %v5776_v29 = vld [vmem:[%s7180_s1 + $0x1d8] sm:$0xff] }
  0xd6   : > { %3204 = vmatpush.bf16.msra.mxu3 %v5776_v29  ;;  %v5607_v29 = vld [vmem:[%s6075_s24 + $0x394] sm:$0xf] }
  0xd7   : > { %v2638_v43 = vpop.f32.mrf.mxu2 }
  0xd8   : > { %v2727_v44 = vpop.f32.mrf.mxu3 }
  0xd9   : > { %v6330_v45 = vadd.f32 %v2727_v44, %v2638_v43  ;;  %v2601_v51 = vpop.f32.mrf.mxu0 }
  0xdb   : > { %v2690_v52 = vpop.f32.mrf.mxu1 }
  0xdc   : > { %v6335_v53 = vadd.f32 %v2690_v52, %v2601_v51  ;;  %2778 = vmatmul.bf16.gmra.mxu2 %v4326_v46  ;;  %2956 = vmatmul.bf16.gmra.mxu0 %v4334_v49  ;;  %v4438_v46 = vor.u32 %v5571_v32, %v4437_v31  ;;  %v4446_v49 = vor.u32 %v5572_v37, %v4445_v36 }
  0xdd   : > { %2867 = vmatmul.bf16.gmra.mxu3 %v4330_v47  ;;  %v4442_v47 = vor.u32 %v5564_v33, %v4439_v35 }
  0xde   : > { %3045 = vmatmul.bf16.gmra.mxu1 %v4338_v50  ;;  %v4450_v50 = vor.u32 %v5565_v38, %v4447_v40  ;;  %v4549_v38 = vld [vmem:[%s6075_s24 + $0x318] sm:$0xf]  ;;  %v5599_v40 = vld [vmem:[%s6075_s24 + $0x34c] sm:$0xf0] }
  0xdf   : > { %v2641_v55 = vpop.f32.mrf.mxu2 }
  0xe0   : > { %v2730_v56 = vpop.f32.mrf.mxu3 }
  0xe1   : > { %v6337_v57 = vadd.f32 %v2730_v56, %v2641_v55  ;;  %v2603_v58 = vpop.f32.mrf.mxu0 }
  0xe3   : > { %v2692_v59 = vpop.f32.mrf.mxu1 }
  0xe4   : > { %v6339_v60 = vadd.f32 %v2692_v59, %v2603_v58 }
  0xe7   : > { %v2643_v8 = vpop.f32.mrf.mxu2 }
  0xe8   : > { %v2732_v9 = vpop.f32.mrf.mxu3 }
  0xe9   : > { %v6349_v10 = vadd.f32 %v2732_v9, %v2643_v8  ;;  %v2606_v16 = vpop.f32.mrf.mxu0  ;;  %v5586_v8 = vld [vmem:[%s6075_s24 + $0x2e4] sm:$0xf0]  ;;  %v5579_v9 = vld [vmem:[%s6075_s24 + $0x2b4] sm:$0xf] }
  0xea   : > { %v4502_v19 = vor.u32 %v5586_v8, %v4501_v7  ;;  %v5792_v7 = vld [vmem:[%s7180_s1 + $0x258] sm:$0xff] }
  0xeb   : > { %v2695_v17 = vpop.f32.mrf.mxu1  ;;  %3382 = vmatpush.bf16.msra.mxu1 %v5792_v7  ;;  %v5783_v7 = vld [vmem:[%s7180_s1 + $0x210] sm:$0xff] }
  0xec   : > { %v6351_v18 = vadd.f32 %v2695_v17, %v2606_v16  ;;  %2783 = vmatmul.bf16.gmra.mxu2 %v4382_v11  ;;  %2961 = vmatmul.bf16.gmra.mxu0 %v4390_v13  ;;  %v4503_v11 = vld [vmem:[%s6075_s24 + $0x2e8] sm:$0xf0]  ;;  %v4494_v16 = vor.u32 %v5585_v3, %v4493_v2  ;;  %v4498_v17 = vor.u32 %v5578_v5, %v4495_v6 }
  0xed   : > { %2872 = vmatmul.bf16.gmra.mxu3 %v4386_v12  ;;  %v4506_v20 = vor.u32 %v5579_v9, %v4503_v11 }
  0xee   : > { %3050 = vmatmul.bf16.gmra.mxu1 %v4394_v14 }
  0xef   : > { %v2646_v21 = vpop.f32.mrf.mxu2 }
  0xf0   : > { %v2735_v23 = vpop.f32.mrf.mxu3 }
  0xf1   : > { %v6359_v24 = vadd.f32 %v2735_v23, %v2646_v21  ;;  %v2608_v25 = vpop.f32.mrf.mxu0 }
  0xf3   : > { %v2697_v26 = vpop.f32.mrf.mxu1 }
  0xf4   : > { %v6361_v28 = vadd.f32 %v2697_v26, %v2608_v25  ;;  %v5768_v26 = vld [vmem:[%s7180_s1 + $0x198] sm:$0xff] }
  0xf5   : > { %3115 = vmatpush.bf16.msra.mxu2 %v5768_v26  ;;  %v5614_v26 = vld [vmem:[%s6075_s24 + $0x3c4] sm:$0xf0] }
  0xf7   : > { %v2648_v41 = vpop.f32.mrf.mxu2 }
  0xf8   : > { %v2737_v43 = vpop.f32.mrf.mxu3 }
  0xf9   : > { %v6374_v44 = vadd.f32 %v2737_v43, %v2648_v41  ;;  %v2611_v51 = vpop.f32.mrf.mxu0  ;;  %v5784_v41 = vld [vmem:[%s7180_s1 + $0x218] sm:$0xff] }
  0xfa   : > { %v5592_v43 = vld [vmem:[%s6075_s24 + $0x31c] sm:$0xf]  ;;  %3293 = vmatpush.bf16.msra.mxu0 %v5784_v41 }
  0xfb   : > { %v2700_v52 = vpop.f32.mrf.mxu1 }
  0xfc   : > { %v6379_v55 = vadd.f32 %v2700_v52, %v2611_v51  ;;  %2788 = vmatmul.bf16.gmra.mxu2 %v4438_v46  ;;  %2966 = vmatmul.bf16.gmra.mxu0 %v4446_v49  ;;  %v4551_v46 = vld [vmem:[%s6075_s24 + $0x350] sm:$0xf0]  ;;  %v5593_v49 = vld [vmem:[%s6075_s24 + $0x324] sm:$0xf] }
  0xfd   : > { %2877 = vmatmul.bf16.gmra.mxu3 %v4442_v47  ;;  %v4557_v47 = vld [vmem:[%s6075_s24 + $0x320] sm:$0xf] }
  0xfe   : > { %3055 = vmatmul.bf16.gmra.mxu1 %v4450_v50  ;;  %v4559_v50 = vld [vmem:[%s6075_s24 + $0x358] sm:$0xf0]  ;;  %3294 = vmatpush.bf16.msra.mxu0 %v5783_v7  ;;  %v5642_v7 = vld [vmem:[%s6075_s24 + $0x4a4] sm:$0xf0] }
  0xff   : > { %v2651_v56 = vpop.f32.mrf.mxu2  ;;  %v4562_v2 = vor.u32 %v5593_v49, %v4559_v50  ;;  %v5775_v49 = vld [vmem:[%s7180_s1 + $0x1d0] sm:$0xff] }
 0x100   : > { %v2740_v58 = vpop.f32.mrf.mxu3  ;;  %3205 = vmatpush.bf16.msra.mxu3 %v5775_v49 }
 0x101   : > { %v6381_v59 = vadd.f32 %v2740_v58, %v2651_v56  ;;  %v2613_v61 = vpop.f32.mrf.mxu0  ;;  %v4550_v58 = vor.u32 %v5599_v40, %v4549_v38 }
 0x103   : > { %v2702_v63 = vpop.f32.mrf.mxu1 }
 0x104   : > { %v6383_v0 = vadd.f32 %v2702_v63, %v2613_v61  ;;  %v4554_v61 = vor.u32 %v5592_v43, %v4551_v46  ;;  %v4558_v63 = vor.u32 %v5600_v48, %v4557_v47  ;;  %v5767_v48 = vld [vmem:[%s7180_s1 + $0x190] sm:$0xff] }
 0x105   : > { %3116 = vmatpush.bf16.msra.mxu2 %v5767_v48 }
 0x107   : > { %v2653_v12 = vpop.f32.mrf.mxu2 }
 0x108   : > { %v2742_v13 = vpop.f32.mrf.mxu3 }
 0x109   : > { %v6393_v14 = vadd.f32 %v2742_v13, %v2653_v12  ;;  %v2616_v21 = vpop.f32.mrf.mxu0 }
 0x10b   : > { %v2705_v23 = vpop.f32.mrf.mxu1 }
 0x10c   : > { %v6395_v25 = vadd.f32 %v2705_v23, %v2616_v21  ;;  %2793 = vmatmul.bf16.gmra.mxu2 %v4494_v16  ;;  %2971 = vmatmul.bf16.gmra.mxu0 %v4502_v19  ;;  %v5613_v19 = vld [vmem:[%s6075_s24 + $0x3bc] sm:$0xf0]  ;;  %v4607_v21 = vld [vmem:[%s6075_s24 + $0x3c0] sm:$0xf0]  ;;  %v4613_v23 = vld [vmem:[%s6075_s24 + $0x390] sm:$0xf] }
 0x10d   : > { %2882 = vmatmul.bf16.gmra.mxu3 %v4498_v17  ;;  %v4605_v17 = vld [vmem:[%s6075_s24 + $0x388] sm:$0xf]  ;;  %v4614_v41 = vor.u32 %v5614_v26, %v4613_v23 }
 0x10e   : > { %3060 = vmatmul.bf16.gmra.mxu1 %v4506_v20  ;;  %v5606_v20 = vld [vmem:[%s6075_s24 + $0x38c] sm:$0xf]  ;;  %v4606_v38 = vor.u32 %v5613_v19, %v4605_v17  ;;  %v5621_v17 = vld [vmem:[%s6075_s24 + $0x404] sm:$0xf]  ;;  %v4671_v19 = vld [vmem:[%s6075_s24 + $0x438] sm:$0xf0] }
 0x10f   : > { %v2656_v31 = vpop.f32.mrf.mxu2  ;;  %v4610_v40 = vor.u32 %v5606_v20, %v4607_v21 }
 0x110   : > { %v2745_v32 = vpop.f32.mrf.mxu3 }
 0x111   : > { %v6403_v33 = vadd.f32 %v2745_v32, %v2656_v31  ;;  %v2618_v35 = vpop.f32.mrf.mxu0  ;;  %v4615_v31 = vld [vmem:[%s6075_s24 + $0x3c8] sm:$0xf0] }
 0x112   : > { %v4618_v43 = vor.u32 %v5607_v29, %v4615_v31 }
 0x113   : > { %v2707_v36 = vpop.f32.mrf.mxu1 }
 0x114   : > { %v6405_v37 = vadd.f32 %v2707_v36, %v2618_v35 }
 0x117   : > { %v2658_v51 = vpop.f32.mrf.mxu2 }
 0x118   : > { %v2747_v52 = vpop.f32.mrf.mxu3 }
 0x119   : > { %v6418_v56 = vadd.f32 %v2747_v52, %v2658_v51  ;;  %v2621_v3 = vpop.f32.mrf.mxu0 }
 0x11b   : > { %v2710_v5 = vpop.f32.mrf.mxu1 }
 0x11c   : > { %v6420_v6 = vadd.f32 %v2710_v5, %v2621_v3  ;;  %2798 = vmatmul.bf16.gmra.mxu2 %v4550_v58  ;;  %2976 = vmatmul.bf16.gmra.mxu0 %v4558_v63  ;;  %v4661_v3 = vld [vmem:[%s6075_s24 + $0x3f8] sm:$0xf]  ;;  %v5627_v5 = vld [vmem:[%s6075_s24 + $0x42c] sm:$0xf0] }
 0x11d   : > { %2887 = vmatmul.bf16.gmra.mxu3 %v4554_v61  ;;  %v4662_v26 = vor.u32 %v5627_v5, %v4661_v3  ;;  %v4719_v3 = vld [vmem:[%s6075_s24 + $0x4a0] sm:$0xf0]  ;;  %v4725_v5 = vld [vmem:[%s6075_s24 + $0x470] sm:$0xf] }
 0x11e   : > { %3065 = vmatmul.bf16.gmra.mxu1 %v4562_v2 }
 0x11f   : > { %v2661_v8 = vpop.f32.mrf.mxu2 }
 0x120   : > { %v2750_v9 = vpop.f32.mrf.mxu3 }
 0x121   : > { %v6425_v11 = vadd.f32 %v2750_v9, %v2661_v8  ;;  %v2623_v12 = vpop.f32.mrf.mxu0  ;;  %v5620_v8 = vld [vmem:[%s6075_s24 + $0x3fc] sm:$0xf]  ;;  %v4663_v9 = vld [vmem:[%s6075_s24 + $0x430] sm:$0xf0] }
 0x122   : > { %v4666_v29 = vor.u32 %v5620_v8, %v4663_v9  ;;  %v5635_v8 = vld [vmem:[%s6075_s24 + $0x474] sm:$0xf]  ;;  %v4727_v9 = vld [vmem:[%s6075_s24 + $0x4a8] sm:$0xf0] }
 0x123   : > { %v2712_v13 = vpop.f32.mrf.mxu1 }
 0x124   : > { %v6427_v16 = vadd.f32 %v2712_v13, %v2623_v12  ;;  %v4669_v12 = vld [vmem:[%s6075_s24 + $0x400] sm:$0xf]  ;;  %v5628_v13 = vld [vmem:[%s6075_s24 + $0x434] sm:$0xf0] }
 0x125   : > { %v4670_v31 = vor.u32 %v5628_v13, %v4669_v12 }
 0x127   : > { %v2663_v32 = vpop.f32.mrf.mxu2 }
 0x128   : > { %v2752_v35 = vpop.f32.mrf.mxu3 }
 0x129   : > { %v6437_v36 = vadd.f32 %v2752_v35, %v2663_v32  ;;  %v2942_v46 = vpop.f32.mrf.mxu0  ;;  %v4674_v32 = vor.u32 %v5621_v17, %v4671_v19 }
 0x12b   : > { %v3031_v47 = vpop.f32.mrf.mxu1 }
 0x12c   : > { %2803 = vmatmul.bf16.gmra.mxu2 %v4606_v38  ;;  %2981 = vmatmul.bf16.gmra.mxu0 %v4614_v41 }
 0x12d   : > { %2892 = vmatmul.bf16.gmra.mxu3 %v4610_v40 }
 0x12e   : > { %3070 = vmatmul.bf16.gmra.mxu1 %v4618_v43  ;;  %v5791_v43 = vld [vmem:[%s7180_s1 + $0x250] sm:$0xff] }
 0x12f   : > { %v2764_v50 = vpop.f32.mrf.mxu2  ;;  %3383 = vmatpush.bf16.msra.mxu1 %v5791_v43 }
 0x130   : > { %v2853_v51 = vpop.f32.mrf.mxu3  ;;  %v2765_v52 = vadd.f32 %v2764_v50, %v6263_v34 }
 0x131   : > { %v2944_v61 = vpop.f32.mrf.mxu0 }
 0x132   : > { %v2854_v58 = vadd.f32 %v2853_v51, %v2765_v52 }
 0x133   : > { %v3033_v63 = vpop.f32.mrf.mxu1 }
 0x134   : > { %v2943_v2 = vadd.f32 %v2942_v46, %v2854_v58  ;;  %v4717_v58 = vld [vmem:[%s6075_s24 + $0x468] sm:$0xf] }
 0x136   : > { %v6457_v20 = vadd.f32 %v3031_v47, %v2943_v2  ;;  %v5634_v2 = vld [vmem:[%s6075_s24 + $0x46c] sm:$0xf] }
 0x137   : > { %v2766_v34 = vpop.f32.mrf.mxu2 }
 0x138   : > { %v2855_v21 = vpop.f32.mrf.mxu3  ;;  %v2767_v23 = vadd.f32 %v2766_v34, %v6273_v42  ;;  %v4726_v34 = vor.u32 %v5642_v7, %v4725_v5  ;;  %v4783_v5 = vld [vmem:[%s6075_s24 + $0x518] sm:$0xf0] }
 0x139   : > { %v2947_v38 = vpop.f32.mrf.mxu0 }
 0x13a   : > { %v2856_v35 = vadd.f32 %v2855_v21, %v2767_v23  ;;  %v4730_v21 = vor.u32 %v5635_v8, %v4727_v9 }
 0x13b   : > { %v3036_v40 = vpop.f32.mrf.mxu1 }
 0x13c   : > { %v2945_v41 = vadd.f32 %v2944_v61, %v2856_v35  ;;  %2808 = vmatmul.bf16.gmra.mxu2 %v4662_v26  ;;  %2986 = vmatmul.bf16.gmra.mxu0 %v4670_v31  ;;  %v5641_v61 = vld [vmem:[%s6075_s24 + $0x49c] sm:$0xf0] }
 0x13d   : > { %2897 = vmatmul.bf16.gmra.mxu3 %v4666_v29  ;;  %v4718_v19 = vor.u32 %v5641_v61, %v4717_v58  ;;  %v5648_v58 = vld [vmem:[%s6075_s24 + $0x4dc] sm:$0xf]  ;;  %v4781_v61 = vld [vmem:[%s6075_s24 + $0x4e0] sm:$0xf] }
 0x13e   : > { %3075 = vmatmul.bf16.gmra.mxu1 %v4674_v32  ;;  %v6463_v42 = vadd.f32 %v3033_v63, %v2945_v41  ;;  %v5766_v32 = vld [vmem:[%s7180_s1 + $0x188] sm:$0xff] }
 0x13f   : > { %v2769_v46 = vpop.f32.mrf.mxu2  ;;  %3117 = vmatpush.bf16.msra.mxu2 %v5766_v32 }
 0x140   : > { %v2858_v47 = vpop.f32.mrf.mxu3  ;;  %v2770_v48 = vadd.f32 %v2769_v46, %v6291_v62  ;;  %v4722_v62 = vor.u32 %v5634_v2, %v4719_v3  ;;  %v5656_v2 = vld [vmem:[%s6075_s24 + $0x514] sm:$0xf0]  ;;  %v5649_v3 = vld [vmem:[%s6075_s24 + $0x4e4] sm:$0xf] }
 0x141   : > { %v2949_v50 = vpop.f32.mrf.mxu0 }
 0x142   : > { %v2859_v49 = vadd.f32 %v2858_v47, %v2770_v48 }
 0x143   : > { %v3038_v51 = vpop.f32.mrf.mxu1 }
 0x144   : > { %v2948_v52 = vadd.f32 %v2947_v38, %v2859_v49  ;;  %v4773_v49 = vld [vmem:[%s6075_s24 + $0x4d8] sm:$0xf] }
 0x146   : > { %v6474_v12 = vadd.f32 %v3036_v40, %v2948_v52  ;;  %v5782_v52 = vld [vmem:[%s7180_s1 + $0x208] sm:$0xff] }
 0x147   : > { %v2771_v63 = vpop.f32.mrf.mxu2  ;;  %3295 = vmatpush.bf16.msra.mxu0 %v5782_v52  ;;  %v5670_v52 = vld [vmem:[%s6075_s24 + $0x584] sm:$0xf0] }
 0x148   : > { %v2860_v13 = vpop.f32.mrf.mxu3  ;;  %v2772_v17 = vadd.f32 %v2771_v63, %v6295_v4  ;;  %v5774_v4 = vld [vmem:[%s7180_s1 + $0x1c8] sm:$0xff] }
 0x149   : > { %v2952_v26 = vpop.f32.mrf.mxu0  ;;  %3206 = vmatpush.bf16.msra.mxu3 %v5774_v4 }
 0x14a   : > { %v2861_v23 = vadd.f32 %v2860_v13, %v2772_v17  ;;  %v4782_v17 = vor.u32 %v5656_v2, %v4781_v61 }
 0x14b   : > { %v3041_v29 = vpop.f32.mrf.mxu1 }
 0x14c   : > { %v2950_v31 = vadd.f32 %v2949_v50, %v2861_v23  ;;  %2813 = vmatmul.bf16.gmra.mxu2 %v4718_v19  ;;  %2991 = vmatmul.bf16.gmra.mxu0 %v4726_v34  ;;  %v5655_v50 = vld [vmem:[%s6075_s24 + $0x50c] sm:$0xf0]  ;;  %v4786_v19 = vor.u32 %v5649_v3, %v4783_v5 }
 0x14d   : > { %2902 = vmatmul.bf16.gmra.mxu3 %v4722_v62  ;;  %v4774_v63 = vor.u32 %v5655_v50, %v4773_v49  ;;  %v4831_v49 = vld [vmem:[%s6075_s24 + $0x580] sm:$0xf0]  ;;  %v4837_v50 = vld [vmem:[%s6075_s24 + $0x550] sm:$0xf] }
 0x14e   : > { %3080 = vmatmul.bf16.gmra.mxu1 %v4730_v21  ;;  %v6483_v35 = vadd.f32 %v3038_v51, %v2950_v31  ;;  %v4775_v51 = vld [vmem:[%s6075_s24 + $0x510] sm:$0xf0] }
 0x14f   : > { %v2774_v38 = vpop.f32.mrf.mxu2  ;;  %v4778_v13 = vor.u32 %v5648_v58, %v4775_v51  ;;  %v5663_v58 = vld [vmem:[%s6075_s24 + $0x554] sm:$0xf]  ;;  %v4839_v51 = vld [vmem:[%s6075_s24 + $0x588] sm:$0xf0] }
 0x150   : > { %v2863_v40 = vpop.f32.mrf.mxu3  ;;  %v2775_v41 = vadd.f32 %v2774_v38, %v6307_v22 }
 0x151   : > { %v2954_v46 = vpop.f32.mrf.mxu0 }
 0x152   : > { %v2864_v43 = vadd.f32 %v2863_v40, %v2775_v41 }
 0x153   : > { %v3043_v47 = vpop.f32.mrf.mxu1 }
 0x154   : > { %v2953_v48 = vadd.f32 %v2952_v26, %v2864_v43  ;;  %v5790_v26 = vld [vmem:[%s7180_s1 + $0x248] sm:$0xff] }
 0x155   : > { %3384 = vmatpush.bf16.msra.mxu1 %v5790_v26  ;;  %v4829_v43 = vld [vmem:[%s6075_s24 + $0x548] sm:$0xf] }
 0x156   : > { %v6497_v7 = vadd.f32 %v3041_v29, %v2953_v48  ;;  %v5662_v48 = vld [vmem:[%s6075_s24 + $0x54c] sm:$0xf] }
 0x157   : > { %v2776_v22 = vpop.f32.mrf.mxu2 }
 0x158   : > { %v2865_v8 = vpop.f32.mrf.mxu3  ;;  %v2777_v9 = vadd.f32 %v2776_v22, %v6317_v30  ;;  %v4838_v22 = vor.u32 %v5670_v52, %v4837_v50  ;;  %v4895_v50 = vld [vmem:[%s6075_s24 + $0x5f8] sm:$0xf0] }
 0x159   : > { %v2957_v34 = vpop.f32.mrf.mxu0 }
 0x15a   : > { %v2866_v62 = vadd.f32 %v2865_v8, %v2777_v9  ;;  %v4842_v8 = vor.u32 %v5663_v58, %v4839_v51 }
 0x15b   : > { %v3046_v21 = vpop.f32.mrf.mxu1 }
 0x15c   : > { %v2955_v23 = vadd.f32 %v2954_v46, %v2866_v62  ;;  %2818 = vmatmul.bf16.gmra.mxu2 %v4774_v63  ;;  %2996 = vmatmul.bf16.gmra.mxu0 %v4782_v17  ;;  %v5669_v46 = vld [vmem:[%s6075_s24 + $0x57c] sm:$0xf0] }
 0x15d   : > { %2907 = vmatmul.bf16.gmra.mxu3 %v4778_v13  ;;  %v4830_v5 = vor.u32 %v5669_v46, %v4829_v43  ;;  %v5676_v43 = vld [vmem:[%s6075_s24 + $0x5bc] sm:$0xf]  ;;  %v4893_v46 = vld [vmem:[%s6075_s24 + $0x5c0] sm:$0xf] }
 0x15e   : > { %3085 = vmatmul.bf16.gmra.mxu1 %v4786_v19  ;;  %v6503_v30 = vadd.f32 %v3043_v47, %v2955_v23  ;;  %v5765_v19 = vld [vmem:[%s7180_s1 + $0x180] sm:$0xff] }
 0x15f   : > { %v2779_v29 = vpop.f32.mrf.mxu2  ;;  %3118 = vmatpush.bf16.msra.mxu2 %v5765_v19 }
 0x160   : > { %v2868_v31 = vpop.f32.mrf.mxu3  ;;  %v2780_v32 = vadd.f32 %v2779_v29, %v6335_v53  ;;  %v4834_v53 = vor.u32 %v5662_v48, %v4831_v49  ;;  %v5684_v48 = vld [vmem:[%s6075_s24 + $0x5f4] sm:$0xf0]  ;;  %v5677_v49 = vld [vmem:[%s6075_s24 + $0x5c4] sm:$0xf] }
 0x161   : > { %v2959_v38 = vpop.f32.mrf.mxu0 }
 0x162   : > { %v2869_v4 = vadd.f32 %v2868_v31, %v2780_v32 }
 0x163   : > { %v3048_v40 = vpop.f32.mrf.mxu1 }
 0x164   : > { %v2958_v41 = vadd.f32 %v2957_v34, %v2869_v4  ;;  %v4885_v4 = vld [vmem:[%s6075_s24 + $0x5b8] sm:$0xf] }
 0x166   : > { %v6514_v61 = vadd.f32 %v3046_v21, %v2958_v41  ;;  %v5781_v41 = vld [vmem:[%s7180_s1 + $0x200] sm:$0xff] }
 0x167   : > { %v2781_v47 = vpop.f32.mrf.mxu2  ;;  %3296 = vmatpush.bf16.msra.mxu0 %v5781_v41  ;;  %v5698_v41 = vld [vmem:[%s6075_s24 + $0x664] sm:$0xf0] }
 0x168   : > { %v2870_v2 = vpop.f32.mrf.mxu3  ;;  %v2782_v3 = vadd.f32 %v2781_v47, %v6339_v60  ;;  %v5773_v60 = vld [vmem:[%s7180_s1 + $0x1c0] sm:$0xff] }
 0x169   : > { %v2962_v63 = vpop.f32.mrf.mxu0  ;;  %3207 = vmatpush.bf16.msra.mxu3 %v5773_v60 }
 0x16a   : > { %v2871_v9 = vadd.f32 %v2870_v2, %v2782_v3  ;;  %v4894_v3 = vor.u32 %v5684_v48, %v4893_v46 }
 0x16b   : > { %v3051_v13 = vpop.f32.mrf.mxu1 }
 0x16c   : > { %v2960_v17 = vadd.f32 %v2959_v38, %v2871_v9  ;;  %2823 = vmatmul.bf16.gmra.mxu2 %v4830_v5  ;;  %3001 = vmatmul.bf16.gmra.mxu0 %v4838_v22  ;;  %v5683_v38 = vld [vmem:[%s6075_s24 + $0x5ec] sm:$0xf0]  ;;  %v4898_v5 = vor.u32 %v5677_v49, %v4895_v50 }
 0x16d   : > { %2912 = vmatmul.bf16.gmra.mxu3 %v4834_v53  ;;  %v4886_v47 = vor.u32 %v5683_v38, %v4885_v4  ;;  %v4943_v4 = vld [vmem:[%s6075_s24 + $0x660] sm:$0xf0]  ;;  %v4949_v38 = vld [vmem:[%s6075_s24 + $0x630] sm:$0xf] }
 0x16e   : > { %3090 = vmatmul.bf16.gmra.mxu1 %v4842_v8  ;;  %v6523_v62 = vadd.f32 %v3048_v40, %v2960_v17  ;;  %v4887_v40 = vld [vmem:[%s6075_s24 + $0x5f0] sm:$0xf0] }
 0x16f   : > { %v2784_v34 = vpop.f32.mrf.mxu2  ;;  %v4890_v2 = vor.u32 %v5676_v43, %v4887_v40  ;;  %v5691_v43 = vld [vmem:[%s6075_s24 + $0x634] sm:$0xf]  ;;  %v4951_v40 = vld [vmem:[%s6075_s24 + $0x668] sm:$0xf0] }
 0x170   : > { %v2873_v21 = vpop.f32.mrf.mxu3  ;;  %v2785_v23 = vadd.f32 %v2784_v34, %v6351_v18 }
 0x171   : > { %v2964_v29 = vpop.f32.mrf.mxu0 }
 0x172   : > { %v2874_v26 = vadd.f32 %v2873_v21, %v2785_v23 }
 0x173   : > { %v3053_v31 = vpop.f32.mrf.mxu1 }
 0x174   : > { %v2963_v32 = vadd.f32 %v2962_v63, %v2874_v26  ;;  %v5789_v63 = vld [vmem:[%s7180_s1 + $0x240] sm:$0xff]  ;;  %v4941_v26 = vld [vmem:[%s6075_s24 + $0x628] sm:$0xf] }
 0x175   : > { %3385 = vmatpush.bf16.msra.mxu1 %v5789_v63 }
 0x176   : > { %v6537_v52 = vadd.f32 %v3051_v13, %v2963_v32  ;;  %v5690_v32 = vld [vmem:[%s6075_s24 + $0x62c] sm:$0xf] }
 0x177   : > { %v2786_v18 = vpop.f32.mrf.mxu2 }
 0x178   : > { %v2875_v58 = vpop.f32.mrf.mxu3  ;;  %v2787_v51 = vadd.f32 %v2786_v18, %v6361_v28  ;;  %v4950_v18 = vor.u32 %v5698_v41, %v4949_v38  ;;  %v5007_v38 = vld [vmem:[%s6075_s24 + $0x6d8] sm:$0xf0] }
 0x179   : > { %v2967_v22 = vpop.f32.mrf.mxu0 }
 0x17a   : > { %v2876_v53 = vadd.f32 %v2875_v58, %v2787_v51  ;;  %v4954_v58 = vor.u32 %v5691_v43, %v4951_v40 }
 0x17b   : > { %v3056_v8 = vpop.f32.mrf.mxu1 }
 0x17c   : > { %v2965_v9 = vadd.f32 %v2964_v29, %v2876_v53  ;;  %2828 = vmatmul.bf16.gmra.mxu2 %v4886_v47  ;;  %3006 = vmatmul.bf16.gmra.mxu0 %v4894_v3  ;;  %v5697_v29 = vld [vmem:[%s6075_s24 + $0x65c] sm:$0xf0] }
 0x17d   : > { %2917 = vmatmul.bf16.gmra.mxu3 %v4890_v2  ;;  %v4942_v50 = vor.u32 %v5697_v29, %v4941_v26  ;;  %v5704_v26 = vld [vmem:[%s6075_s24 + $0x69c] sm:$0xf]  ;;  %v5005_v29 = vld [vmem:[%s6075_s24 + $0x6a0] sm:$0xf] }
 0x17e   : > { %3095 = vmatmul.bf16.gmra.mxu1 %v4898_v5  ;;  %v6543_v28 = vadd.f32 %v3053_v31, %v2965_v9  ;;  %v5804_v5 = vld [vmem:[%s7180_s1 + $0x2b8] sm:$0xff] }
 0x17f   : > { %v2789_v13 = vpop.f32.mrf.mxu2  ;;  %3467 = vmatpush.bf16.msrb.mxu2 %v5804_v5 }
 0x180   : > { %v2878_v17 = vpop.f32.mrf.mxu3  ;;  %v2790_v19 = vadd.f32 %v2789_v13, %v6379_v55  ;;  %v4946_v55 = vor.u32 %v5690_v32, %v4943_v4  ;;  %v5712_v32 = vld [vmem:[%s6075_s24 + $0x6d4] sm:$0xf0]  ;;  %v5705_v4 = vld [vmem:[%s6075_s24 + $0x6a4] sm:$0xf] }
 0x181   : > { %v2969_v34 = vpop.f32.mrf.mxu0 }
 0x182   : > { %v2879_v60 = vadd.f32 %v2878_v17, %v2790_v19 }
 0x183   : > { %v3058_v21 = vpop.f32.mrf.mxu1 }
 0x184   : > { %v2968_v23 = vadd.f32 %v2967_v22, %v2879_v60  ;;  %v4997_v60 = vld [vmem:[%s6075_s24 + $0x698] sm:$0xf] }
 0x186   : > { %v6554_v46 = vadd.f32 %v3056_v8, %v2968_v23  ;;  %v5820_v23 = vld [vmem:[%s7180_s1 + $0x338] sm:$0xff] }
 0x187   : > { %v2791_v31 = vpop.f32.mrf.mxu2  ;;  %3645 = vmatpush.bf16.msrb.mxu0 %v5820_v23  ;;  %v5504_v23 = vld [vmem:[%s6075_s24 + $0x54] sm:$0xf0] }
 0x188   : > { %v2880_v48 = vpop.f32.mrf.mxu3  ;;  %v2792_v49 = vadd.f32 %v2791_v31, %v6383_v0  ;;  %v5812_v0 = vld [vmem:[%s7180_s1 + $0x2f8] sm:$0xff] }
 0x189   : > { %v2972_v47 = vpop.f32.mrf.mxu0  ;;  %3556 = vmatpush.bf16.msrb.mxu3 %v5812_v0 }
 0x18a   : > { %v2881_v51 = vadd.f32 %v2880_v48, %v2792_v49  ;;  %v5006_v49 = vor.u32 %v5712_v32, %v5005_v29 }
 0x18b   : > { %v3061_v2 = vpop.f32.mrf.mxu1 }
 0x18c   : > { %v2970_v3 = vadd.f32 %v2969_v34, %v2881_v51  ;;  %2833 = vmatmul.bf16.gmra.mxu2 %v4942_v50  ;;  %3011 = vmatmul.bf16.gmra.mxu0 %v4950_v18  ;;  %v5711_v34 = vld [vmem:[%s6075_s24 + $0x6cc] sm:$0xf0]  ;;  %v5010_v50 = vor.u32 %v5705_v4, %v5007_v38 }
 0x18d   : > { %2922 = vmatmul.bf16.gmra.mxu3 %v4946_v55  ;;  %v4998_v31 = vor.u32 %v5711_v34, %v4997_v60  ;;  %v4175_v60 = vld [vmem:[%s6075_s24 + $0x50] sm:$0xf0]  ;;  %v4181_v34 = vld [vmem:[%s6075_s24 + $0x20] sm:$0xf] }
 0x18e   : > { %3100 = vmatmul.bf16.gmra.mxu1 %v4954_v58  ;;  %v6563_v53 = vadd.f32 %v3058_v21, %v2970_v3  ;;  %v4999_v21 = vld [vmem:[%s6075_s24 + $0x6d0] sm:$0xf0] }
 0x18f   : > { %v2794_v22 = vpop.f32.mrf.mxu2  ;;  %v5002_v48 = vor.u32 %v5704_v26, %v4999_v21  ;;  %v5497_v26 = vld [vmem:[%s6075_s24 + $0x24] sm:$0xf]  ;;  %v4183_v21 = vld [vmem:[%s6075_s24 + $0x58] sm:$0xf0] }
 0x190   : > { %v2883_v8 = vpop.f32.mrf.mxu3  ;;  %v2795_v9 = vadd.f32 %v2794_v22, %v6395_v25 }
 0x191   : > { %v2974_v13 = vpop.f32.mrf.mxu0 }
 0x192   : > { %v2884_v63 = vadd.f32 %v2883_v8, %v2795_v9 }
 0x193   : > { %v3063_v17 = vpop.f32.mrf.mxu1 }
 0x194   : > { %v2973_v19 = vadd.f32 %v2972_v47, %v2884_v63  ;;  %v5824_v47 = vld [vmem:[%s7180_s1 + $0x358] sm:$0xff] }
 0x195   : > { %3738 = vmatpush.bf16.msrb.mxu1 %v5824_v47  ;;  %v4173_v63 = vld [vmem:[%s6075_s24 + $0x18] sm:$0xf] }
 0x196   : > { %v6577_v41 = vadd.f32 %v3061_v2, %v2973_v19  ;;  %v5496_v19 = vld [vmem:[%s6075_s24 + $0x1c] sm:$0xf] }
 0x197   : > { %v2796_v25 = vpop.f32.mrf.mxu2 }
 0x198   : > { %v2885_v43 = vpop.f32.mrf.mxu3  ;;  %v2797_v40 = vadd.f32 %v2796_v25, %v6405_v37  ;;  %v4182_v25 = vor.u32 %v5504_v23, %v4181_v34  ;;  %v4239_v34 = vld [vmem:[%s6075_s24 + $0xc8] sm:$0xf0] }
 0x199   : > { %v2977_v18 = vpop.f32.mrf.mxu0 }
 0x19a   : > { %v2886_v55 = vadd.f32 %v2885_v43, %v2797_v40  ;;  %v4186_v43 = vor.u32 %v5497_v26, %v4183_v21 }
 0x19b   : > { %v3066_v58 = vpop.f32.mrf.mxu1 }
 0x19c   : > { %v2975_v51 = vadd.f32 %v2974_v13, %v2886_v55  ;;  %2838 = vmatmul.bf16.gmra.mxu2 %v4998_v31  ;;  %3016 = vmatmul.bf16.gmra.mxu0 %v5006_v49  ;;  %v5503_v13 = vld [vmem:[%s6075_s24 + $0x4c] sm:$0xf0] }
 0x19d   : > { %2927 = vmatmul.bf16.gmra.mxu3 %v5002_v48  ;;  %v4174_v38 = vor.u32 %v5503_v13, %v4173_v63  ;;  %v5510_v63 = vld [vmem:[%s6075_s24 + $0x8c] sm:$0xf]  ;;  %v4237_v13 = vld [vmem:[%s6075_s24 + $0x90] sm:$0xf] }
 0x19e   : > { %3105 = vmatmul.bf16.gmra.mxu1 %v5010_v50  ;;  %v6583_v37 = vadd.f32 %v3063_v17, %v2975_v51  ;;  %v5803_v50 = vld [vmem:[%s7180_s1 + $0x2b0] sm:$0xff] }
 0x19f   : > { %v2799_v2 = vpop.f32.mrf.mxu2  ;;  %3468 = vmatpush.bf16.msrb.mxu2 %v5803_v50 }
 0x1a0   : > { %v2888_v3 = vpop.f32.mrf.mxu3  ;;  %v2800_v5 = vadd.f32 %v2799_v2, %v6420_v6  ;;  %v4178_v6 = vor.u32 %v5496_v19, %v4175_v60  ;;  %v5518_v19 = vld [vmem:[%s6075_s24 + $0xc4] sm:$0xf0]  ;;  %v5511_v60 = vld [vmem:[%s6075_s24 + $0x94] sm:$0xf] }
 0x1a1   : > { %v2979_v22 = vpop.f32.mrf.mxu0 }
 0x1a2   : > { %v2889_v0 = vadd.f32 %v2888_v3, %v2800_v5 }
 0x1a3   : > { %v3068_v8 = vpop.f32.mrf.mxu1 }
 0x1a4   : > { %v2978_v9 = vadd.f32 %v2977_v18, %v2889_v0  ;;  %v4229_v0 = vld [vmem:[%s6075_s24 + $0x88] sm:$0xf] }
 0x1a6   : > { %v6594_v29 = vadd.f32 %v3066_v58, %v2978_v9  ;;  %v5819_v9 = vld [vmem:[%s7180_s1 + $0x330] sm:$0xff] }
 0x1a7   : > { %v2801_v17 = vpop.f32.mrf.mxu2  ;;  %3646 = vmatpush.bf16.msrb.mxu0 %v5819_v9  ;;  %v5525_v9 = vld [vmem:[%s6075_s24 + $0x104] sm:$0xf] }
 0x1a8   : > { %v2890_v32 = vpop.f32.mrf.mxu3  ;;  %v2802_v4 = vadd.f32 %v2801_v17, %v6427_v16  ;;  %v5811_v16 = vld [vmem:[%s7180_s1 + $0x2f0] sm:$0xff] }
 0x1a9   : > { %v2982_v31 = vpop.f32.mrf.mxu0  ;;  %3557 = vmatpush.bf16.msrb.mxu3 %v5811_v16 }
 0x1aa   : > { %v2891_v40 = vadd.f32 %v2890_v32, %v2802_v4  ;;  %v4238_v4 = vor.u32 %v5518_v19, %v4237_v13 }
 0x1ab   : > { %v3071_v48 = vpop.f32.mrf.mxu1 }
 0x1ac   : > { %v2980_v49 = vadd.f32 %v2979_v22, %v2891_v40  ;;  %3119 = vmatmul.bf16.vlgmr.msra.gmra.mxu2 %v4174_v38  ;;  %3297 = vmatmul.bf16.vlgmr.msra.gmra.mxu0 %v4182_v25  ;;  %v5517_v22 = vld [vmem:[%s6075_s24 + $0xbc] sm:$0xf0]  ;;  %v4242_v38 = vor.u32 %v5511_v60, %v4239_v34 }
 0x1ad   : > { %3208 = vmatmul.bf16.vlgmr.msra.gmra.mxu3 %v4178_v6  ;;  %v4230_v17 = vor.u32 %v5517_v22, %v4229_v0  ;;  %v4293_v0 = vld [vmem:[%s6075_s24 + $0x100] sm:$0xf]  ;;  %v5532_v22 = vld [vmem:[%s6075_s24 + $0x134] sm:$0xf0] }
 0x1ae   : > { %3386 = vmatmul.bf16.vlgmr.msra.gmra.mxu1 %v4186_v43  ;;  %v6603_v55 = vadd.f32 %v3068_v8, %v2980_v49  ;;  %v4231_v8 = vld [vmem:[%s6075_s24 + $0xc0] sm:$0xf0]  ;;  %v4294_v34 = vor.u32 %v5532_v22, %v4293_v0  ;;  %v4351_v0 = vld [vmem:[%s6075_s24 + $0x1a8] sm:$0xf0] }
 0x1af   : > { %v2804_v18 = vpop.f32.mrf.mxu2  ;;  %v4234_v32 = vor.u32 %v5510_v63, %v4231_v8  ;;  %v4295_v63 = vld [vmem:[%s6075_s24 + $0x138] sm:$0xf0] }
 0x1b0   : > { %v2893_v58 = vpop.f32.mrf.mxu3  ;;  %v2805_v51 = vadd.f32 %v2804_v18, %v6271_v39 }
 0x1b1   : > { %v2984_v2 = vpop.f32.mrf.mxu0 }
 0x1b2   : > { %v2894_v47 = vadd.f32 %v2893_v58, %v2805_v51  ;;  %v4285_v51 = vld [vmem:[%s6075_s24 + $0xf8] sm:$0xf] }
 0x1b3   : > { %v3073_v3 = vpop.f32.mrf.mxu1 }
 0x1b4   : > { %v2983_v5 = vadd.f32 %v2982_v31, %v2894_v47  ;;  %v5531_v47 = vld [vmem:[%s6075_s24 + $0x12c] sm:$0xf0] }
 0x1b5   : > { %v4286_v60 = vor.u32 %v5531_v47, %v4285_v51  ;;  %v5538_v51 = vld [vmem:[%s6075_s24 + $0x16c] sm:$0xf]  ;;  %v4349_v47 = vld [vmem:[%s6075_s24 + $0x170] sm:$0xf] }
 0x1b6   : > { %v6617_v23 = vadd.f32 %v3071_v48, %v2983_v5  ;;  %v4287_v5 = vld [vmem:[%s6075_s24 + $0x130] sm:$0xf0] }
 0x1b7   : > { %v2806_v39 = vpop.f32.mrf.mxu2 }
 0x1b8   : > { %v2895_v26 = vpop.f32.mrf.mxu3  ;;  %v2807_v21 = vadd.f32 %v2806_v39, %v6286_v54  ;;  %v4298_v39 = vor.u32 %v5525_v9, %v4295_v63 }
 0x1b9   : > { %v2987_v25 = vpop.f32.mrf.mxu0 }
 0x1ba   : > { %v2896_v6 = vadd.f32 %v2895_v26, %v2807_v21 }
 0x1bb   : > { %v3076_v43 = vpop.f32.mrf.mxu1 }
 0x1bc   : > { %v2985_v40 = vadd.f32 %v2984_v2, %v2896_v6  ;;  %3124 = vmatmul.bf16.gmra.mxu2 %v4230_v17  ;;  %3302 = vmatmul.bf16.gmra.mxu0 %v4238_v4  ;;  %v5524_v2 = vld [vmem:[%s6075_s24 + $0xfc] sm:$0xf]  ;;  %v5802_v4 = vld [vmem:[%s7180_s1 + $0x2a8] sm:$0xff] }
 0x1bd   : > { %3213 = vmatmul.bf16.gmra.mxu3 %v4234_v32  ;;  %3469 = vmatpush.bf16.msrb.mxu2 %v5802_v4 }
 0x1be   : > { %3391 = vmatmul.bf16.gmra.mxu1 %v4242_v38  ;;  %v6620_v54 = vadd.f32 %v3073_v3, %v2985_v40 }
 0x1bf   : > { %v2809_v31 = vpop.f32.mrf.mxu2 }
 0x1c0   : > { %v2898_v48 = vpop.f32.mrf.mxu3  ;;  %v2810_v49 = vadd.f32 %v2809_v31, %v6293_v1  ;;  %v4290_v1 = vor.u32 %v5524_v2, %v4287_v5  ;;  %v5546_v2 = vld [vmem:[%s6075_s24 + $0x1a4] sm:$0xf0]  ;;  %v5539_v5 = vld [vmem:[%s6075_s24 + $0x174] sm:$0xf] }
 0x1c1   : > { %v2989_v16 = vpop.f32.mrf.mxu0 }
 0x1c2   : > { %v2899_v50 = vadd.f32 %v2898_v48, %v2810_v49 }
 0x1c3   : > { %v3078_v18 = vpop.f32.mrf.mxu1 }
 0x1c4   : > { %v2988_v58 = vadd.f32 %v2987_v25, %v2899_v50  ;;  %v4341_v50 = vld [vmem:[%s6075_s24 + $0x168] sm:$0xf] }
 0x1c6   : > { %v6631_v8 = vadd.f32 %v3076_v43, %v2988_v58  ;;  %v5818_v58 = vld [vmem:[%s7180_s1 + $0x328] sm:$0xff] }
 0x1c7   : > { %v2811_v3 = vpop.f32.mrf.mxu2  ;;  %3647 = vmatpush.bf16.msrb.mxu0 %v5818_v58  ;;  %v5560_v58 = vld [vmem:[%s6075_s24 + $0x214] sm:$0xf0] }
 0x1c8   : > { %v2900_v13 = vpop.f32.mrf.mxu3  ;;  %v2812_v19 = vadd.f32 %v2811_v3, %v6305_v15  ;;  %v5810_v15 = vld [vmem:[%s7180_s1 + $0x2e8] sm:$0xff] }
 0x1c9   : > { %v2992_v21 = vpop.f32.mrf.mxu0  ;;  %3558 = vmatpush.bf16.msrb.mxu3 %v5810_v15 }
 0x1ca   : > { %v2901_v26 = vadd.f32 %v2900_v13, %v2812_v19  ;;  %v4350_v19 = vor.u32 %v5546_v2, %v4349_v47 }
 0x1cb   : > { %v3081_v17 = vpop.f32.mrf.mxu1 }
 0x1cc   : > { %v2990_v32 = vadd.f32 %v2989_v16, %v2901_v26  ;;  %3129 = vmatmul.bf16.gmra.mxu2 %v4286_v60  ;;  %3307 = vmatmul.bf16.gmra.mxu0 %v4294_v34  ;;  %v5545_v16 = vld [vmem:[%s6075_s24 + $0x19c] sm:$0xf0]  ;;  %v4354_v60 = vor.u32 %v5539_v5, %v4351_v0 }
 0x1cd   : > { %3218 = vmatmul.bf16.gmra.mxu3 %v4290_v1  ;;  %v4342_v3 = vor.u32 %v5545_v16, %v4341_v50  ;;  %v4399_v50 = vld [vmem:[%s6075_s24 + $0x210] sm:$0xf0]  ;;  %v4405_v16 = vld [vmem:[%s6075_s24 + $0x1e0] sm:$0xf] }
 0x1ce   : > { %3396 = vmatmul.bf16.gmra.mxu1 %v4298_v39  ;;  %v6640_v38 = vadd.f32 %v3078_v18, %v2990_v32  ;;  %v4343_v18 = vld [vmem:[%s6075_s24 + $0x1a0] sm:$0xf0] }
 0x1cf   : > { %v2814_v6 = vpop.f32.mrf.mxu2  ;;  %v4346_v13 = vor.u32 %v5538_v51, %v4343_v18  ;;  %v5553_v51 = vld [vmem:[%s6075_s24 + $0x1e4] sm:$0xf]  ;;  %v4407_v18 = vld [vmem:[%s6075_s24 + $0x218] sm:$0xf0] }
 0x1d0   : > { %v2903_v25 = vpop.f32.mrf.mxu3  ;;  %v2815_v43 = vadd.f32 %v2814_v6, %v6315_v27 }
 0x1d1   : > { %v2994_v31 = vpop.f32.mrf.mxu0 }
 0x1d2   : > { %v2904_v40 = vadd.f32 %v2903_v25, %v2815_v43 }
 0x1d3   : > { %v3083_v48 = vpop.f32.mrf.mxu1 }
 0x1d4   : > { %v2993_v49 = vadd.f32 %v2992_v21, %v2904_v40  ;;  %v5823_v21 = vld [vmem:[%s7180_s1 + $0x350] sm:$0xff]  ;;  %v4397_v40 = vld [vmem:[%s6075_s24 + $0x1d8] sm:$0xf] }
 0x1d5   : > { %3739 = vmatpush.bf16.msrb.mxu1 %v5823_v21 }
 0x1d6   : > { %v6654_v22 = vadd.f32 %v3081_v17, %v2993_v49  ;;  %v5552_v49 = vld [vmem:[%s6075_s24 + $0x1dc] sm:$0xf] }
 0x1d7   : > { %v2816_v27 = vpop.f32.mrf.mxu2 }
 0x1d8   : > { %v2905_v9 = vpop.f32.mrf.mxu3  ;;  %v2817_v63 = vadd.f32 %v2816_v27, %v6330_v45  ;;  %v4406_v27 = vor.u32 %v5560_v58, %v4405_v16  ;;  %v4463_v16 = vld [vmem:[%s6075_s24 + $0x288] sm:$0xf0] }
 0x1d9   : > { %v2997_v34 = vpop.f32.mrf.mxu0 }
 0x1da   : > { %v2906_v1 = vadd.f32 %v2905_v9, %v2817_v63  ;;  %v4410_v9 = vor.u32 %v5553_v51, %v4407_v18 }
 0x1db   : > { %v3086_v39 = vpop.f32.mrf.mxu1 }
 0x1dc   : > { %v2995_v26 = vadd.f32 %v2994_v31, %v2906_v1  ;;  %3134 = vmatmul.bf16.gmra.mxu2 %v4342_v3  ;;  %3312 = vmatmul.bf16.gmra.mxu0 %v4350_v19  ;;  %v5559_v31 = vld [vmem:[%s6075_s24 + $0x20c] sm:$0xf0] }
 0x1dd   : > { %3223 = vmatmul.bf16.gmra.mxu3 %v4346_v13  ;;  %v4398_v0 = vor.u32 %v5559_v31, %v4397_v40  ;;  %v5566_v40 = vld [vmem:[%s6075_s24 + $0x24c] sm:$0xf]  ;;  %v4461_v31 = vld [vmem:[%s6075_s24 + $0x250] sm:$0xf] }
 0x1de   : > { %3401 = vmatmul.bf16.gmra.mxu1 %v4354_v60  ;;  %v6660_v45 = vadd.f32 %v3083_v48, %v2995_v26  ;;  %v5801_v60 = vld [vmem:[%s7180_s1 + $0x2a0] sm:$0xff] }
 0x1df   : > { %v2819_v17 = vpop.f32.mrf.mxu2  ;;  %3470 = vmatpush.bf16.msrb.mxu2 %v5801_v60 }
 0x1e0   : > { %v2908_v32 = vpop.f32.mrf.mxu3  ;;  %v2820_v4 = vadd.f32 %v2819_v17, %v6337_v57  ;;  %v4402_v57 = vor.u32 %v5552_v49, %v4399_v50  ;;  %v5574_v49 = vld [vmem:[%s6075_s24 + $0x284] sm:$0xf0]  ;;  %v5567_v50 = vld [vmem:[%s6075_s24 + $0x254] sm:$0xf] }
 0x1e1   : > { %v2999_v6 = vpop.f32.mrf.mxu0 }
 0x1e2   : > { %v2909_v15 = vadd.f32 %v2908_v32, %v2820_v4 }
 0x1e3   : > { %v3088_v25 = vpop.f32.mrf.mxu1 }
 0x1e4   : > { %v2998_v43 = vadd.f32 %v2997_v34, %v2909_v15  ;;  %v4453_v15 = vld [vmem:[%s6075_s24 + $0x248] sm:$0xf] }
 0x1e6   : > { %v6671_v47 = vadd.f32 %v3086_v39, %v2998_v43  ;;  %v5817_v43 = vld [vmem:[%s7180_s1 + $0x320] sm:$0xff] }
 0x1e7   : > { %v2821_v48 = vpop.f32.mrf.mxu2  ;;  %3648 = vmatpush.bf16.msrb.mxu0 %v5817_v43  ;;  %v5581_v43 = vld [vmem:[%s6075_s24 + $0x2c4] sm:$0xf] }
 0x1e8   : > { %v2910_v2 = vpop.f32.mrf.mxu3  ;;  %v2822_v5 = vadd.f32 %v2821_v48, %v6349_v10  ;;  %v5809_v10 = vld [vmem:[%s7180_s1 + $0x2e0] sm:$0xff] }
 0x1e9   : > { %v3002_v3 = vpop.f32.mrf.mxu0  ;;  %3559 = vmatpush.bf16.msrb.mxu3 %v5809_v10 }
 0x1ea   : > { %v2911_v63 = vadd.f32 %v2910_v2, %v2822_v5  ;;  %v4462_v5 = vor.u32 %v5574_v49, %v4461_v31 }
 0x1eb   : > { %v3091_v13 = vpop.f32.mrf.mxu1 }
 0x1ec   : > { %v3000_v19 = vadd.f32 %v2999_v6, %v2911_v63  ;;  %3139 = vmatmul.bf16.gmra.mxu2 %v4398_v0  ;;  %3317 = vmatmul.bf16.gmra.mxu0 %v4406_v27  ;;  %v5573_v6 = vld [vmem:[%s6075_s24 + $0x27c] sm:$0xf0]  ;;  %v4466_v0 = vor.u32 %v5567_v50, %v4463_v16 }
 0x1ed   : > { %3228 = vmatmul.bf16.gmra.mxu3 %v4402_v57  ;;  %v4454_v48 = vor.u32 %v5573_v6, %v4453_v15  ;;  %v4517_v15 = vld [vmem:[%s6075_s24 + $0x2c0] sm:$0xf]  ;;  %v5588_v6 = vld [vmem:[%s6075_s24 + $0x2f4] sm:$0xf0] }
 0x1ee   : > { %3406 = vmatmul.bf16.gmra.mxu1 %v4410_v9  ;;  %v6680_v1 = vadd.f32 %v3088_v25, %v3000_v19  ;;  %v4455_v25 = vld [vmem:[%s6075_s24 + $0x280] sm:$0xf0]  ;;  %v4518_v16 = vor.u32 %v5588_v6, %v4517_v15  ;;  %v4575_v15 = vld [vmem:[%s6075_s24 + $0x368] sm:$0xf0] }
 0x1ef   : > { %v2824_v34 = vpop.f32.mrf.mxu2  ;;  %v4458_v2 = vor.u32 %v5566_v40, %v4455_v25  ;;  %v4519_v40 = vld [vmem:[%s6075_s24 + $0x2f8] sm:$0xf0] }
 0x1f0   : > { %v2913_v39 = vpop.f32.mrf.mxu3  ;;  %v2825_v26 = vadd.f32 %v2824_v34, %v6359_v24 }
 0x1f1   : > { %v3004_v17 = vpop.f32.mrf.mxu0 }
 0x1f2   : > { %v2914_v21 = vadd.f32 %v2913_v39, %v2825_v26  ;;  %v4509_v26 = vld [vmem:[%s6075_s24 + $0x2b8] sm:$0xf] }
 0x1f3   : > { %v3093_v32 = vpop.f32.mrf.mxu1 }
 0x1f4   : > { %v3003_v4 = vadd.f32 %v3002_v3, %v2914_v21  ;;  %v5587_v21 = vld [vmem:[%s6075_s24 + $0x2ec] sm:$0xf0] }
 0x1f5   : > { %v4510_v50 = vor.u32 %v5587_v21, %v4509_v26  ;;  %v5594_v26 = vld [vmem:[%s6075_s24 + $0x32c] sm:$0xf]  ;;  %v4573_v21 = vld [vmem:[%s6075_s24 + $0x330] sm:$0xf] }
 0x1f6   : > { %v6694_v58 = vadd.f32 %v3091_v13, %v3003_v4  ;;  %v4511_v4 = vld [vmem:[%s6075_s24 + $0x2f0] sm:$0xf0] }
 0x1f7   : > { %v2826_v24 = vpop.f32.mrf.mxu2 }
 0x1f8   : > { %v2915_v51 = vpop.f32.mrf.mxu3  ;;  %v2827_v18 = vadd.f32 %v2826_v24, %v6374_v44  ;;  %v4522_v24 = vor.u32 %v5581_v43, %v4519_v40 }
 0x1f9   : > { %v3007_v27 = vpop.f32.mrf.mxu0 }
 0x1fa   : > { %v2916_v57 = vadd.f32 %v2915_v51, %v2827_v18 }
 0x1fb   : > { %v3096_v9 = vpop.f32.mrf.mxu1 }
 0x1fc   : > { %v3005_v63 = vadd.f32 %v3004_v17, %v2916_v57  ;;  %3144 = vmatmul.bf16.gmra.mxu2 %v4454_v48  ;;  %3322 = vmatmul.bf16.gmra.mxu0 %v4462_v5  ;;  %v5580_v17 = vld [vmem:[%s6075_s24 + $0x2bc] sm:$0xf] }
 0x1fd   : > { %3233 = vmatmul.bf16.gmra.mxu3 %v4458_v2  ;;  %v5800_v5 = vld [vmem:[%s7180_s1 + $0x298] sm:$0xff] }
 0x1fe   : > { %3411 = vmatmul.bf16.gmra.mxu1 %v4466_v0  ;;  %v6697_v44 = vadd.f32 %v3093_v32, %v3005_v63  ;;  %3471 = vmatpush.bf16.msrb.mxu2 %v5800_v5 }
 0x1ff   : > { %v2829_v3 = vpop.f32.mrf.mxu2 }
 0x200   : > { %v2918_v13 = vpop.f32.mrf.mxu3  ;;  %v2830_v19 = vadd.f32 %v2829_v3, %v6381_v59  ;;  %v4514_v59 = vor.u32 %v5580_v17, %v4511_v4  ;;  %v5602_v17 = vld [vmem:[%s6075_s24 + $0x364] sm:$0xf0]  ;;  %v5595_v4 = vld [vmem:[%s6075_s24 + $0x334] sm:$0xf] }
 0x201   : > { %v3009_v10 = vpop.f32.mrf.mxu0 }
 0x202   : > { %v2919_v60 = vadd.f32 %v2918_v13, %v2830_v19 }
 0x203   : > { %v3098_v34 = vpop.f32.mrf.mxu1 }
 0x204   : > { %v3008_v39 = vadd.f32 %v3007_v27, %v2919_v60  ;;  %v4565_v60 = vld [vmem:[%s6075_s24 + $0x328] sm:$0xf] }
 0x206   : > { %v6708_v25 = vadd.f32 %v3096_v9, %v3008_v39  ;;  %v5816_v39 = vld [vmem:[%s7180_s1 + $0x318] sm:$0xff] }
 0x207   : > { %v2831_v32 = vpop.f32.mrf.mxu2  ;;  %3649 = vmatpush.bf16.msrb.mxu0 %v5816_v39  ;;  %v5616_v39 = vld [vmem:[%s6075_s24 + $0x3d4] sm:$0xf0] }
 0x208   : > { %v2920_v31 = vpop.f32.mrf.mxu3  ;;  %v2832_v49 = vadd.f32 %v2831_v32, %v6393_v14  ;;  %v5808_v14 = vld [vmem:[%s7180_s1 + $0x2d8] sm:$0xff] }
 0x209   : > { %v3012_v18 = vpop.f32.mrf.mxu0  ;;  %3560 = vmatpush.bf16.msrb.mxu3 %v5808_v14 }
 0x20a   : > { %v2921_v51 = vadd.f32 %v2920_v31, %v2832_v49  ;;  %v4574_v49 = vor.u32 %v5602_v17, %v4573_v21 }
 0x20b   : > { %v3101_v48 = vpop.f32.mrf.mxu1 }
 0x20c   : > { %v3010_v2 = vadd.f32 %v3009_v10, %v2921_v51  ;;  %3149 = vmatmul.bf16.gmra.mxu2 %v4510_v50  ;;  %3327 = vmatmul.bf16.gmra.mxu0 %v4518_v16  ;;  %v5601_v10 = vld [vmem:[%s6075_s24 + $0x35c] sm:$0xf0]  ;;  %v4578_v50 = vor.u32 %v5595_v4, %v4575_v15 }
 0x20d   : > { %3238 = vmatmul.bf16.gmra.mxu3 %v4514_v59  ;;  %v4566_v32 = vor.u32 %v5601_v10, %v4565_v60  ;;  %v4623_v60 = vld [vmem:[%s6075_s24 + $0x3d0] sm:$0xf0]  ;;  %v4629_v10 = vld [vmem:[%s6075_s24 + $0x3a0] sm:$0xf] }
 0x20e   : > { %3416 = vmatmul.bf16.gmra.mxu1 %v4522_v24  ;;  %v6717_v0 = vadd.f32 %v3098_v34, %v3010_v2  ;;  %v4567_v34 = vld [vmem:[%s6075_s24 + $0x360] sm:$0xf0] }
 0x20f   : > { %v2834_v57 = vpop.f32.mrf.mxu2  ;;  %v4570_v31 = vor.u32 %v5594_v26, %v4567_v34  ;;  %v5609_v26 = vld [vmem:[%s6075_s24 + $0x3a4] sm:$0xf]  ;;  %v4631_v34 = vld [vmem:[%s6075_s24 + $0x3d8] sm:$0xf0] }
 0x210   : > { %v2923_v27 = vpop.f32.mrf.mxu3  ;;  %v2835_v9 = vadd.f32 %v2834_v57, %v6403_v33 }
 0x211   : > { %v3014_v3 = vpop.f32.mrf.mxu0 }
 0x212   : > { %v2924_v63 = vadd.f32 %v2923_v27, %v2835_v9 }
 0x213   : > { %v3103_v13 = vpop.f32.mrf.mxu1 }
 0x214   : > { %v3013_v19 = vadd.f32 %v3012_v18, %v2924_v63  ;;  %v5822_v18 = vld [vmem:[%s7180_s1 + $0x348] sm:$0xff]  ;;  %v4621_v63 = vld [vmem:[%s6075_s24 + $0x398] sm:$0xf] }
 0x215   : > { %3740 = vmatpush.bf16.msrb.mxu1 %v5822_v18 }
 0x216   : > { %v6731_v6 = vadd.f32 %v3101_v48, %v3013_v19  ;;  %v5608_v19 = vld [vmem:[%s6075_s24 + $0x39c] sm:$0xf] }
 0x217   : > { %v2836_v33 = vpop.f32.mrf.mxu2 }
 0x218   : > { %v2925_v43 = vpop.f32.mrf.mxu3  ;;  %v2837_v40 = vadd.f32 %v2836_v33, %v6418_v56  ;;  %v4630_v33 = vor.u32 %v5616_v39, %v4629_v10  ;;  %v4687_v10 = vld [vmem:[%s6075_s24 + $0x448] sm:$0xf0] }
 0x219   : > { %v3017_v16 = vpop.f32.mrf.mxu0 }
 0x21a   : > { %v2926_v59 = vadd.f32 %v2925_v43, %v2837_v40  ;;  %v4634_v43 = vor.u32 %v5609_v26, %v4631_v34 }
 0x21b   : > { %v3106_v24 = vpop.f32.mrf.mxu1 }
 0x21c   : > { %v3015_v51 = vadd.f32 %v3014_v3, %v2926_v59  ;;  %3154 = vmatmul.bf16.gmra.mxu2 %v4566_v32  ;;  %3332 = vmatmul.bf16.gmra.mxu0 %v4574_v49  ;;  %v5615_v3 = vld [vmem:[%s6075_s24 + $0x3cc] sm:$0xf0] }
 0x21d   : > { %3243 = vmatmul.bf16.gmra.mxu3 %v4570_v31  ;;  %v4622_v15 = vor.u32 %v5615_v3, %v4621_v63  ;;  %v5622_v63 = vld [vmem:[%s6075_s24 + $0x40c] sm:$0xf]  ;;  %v4685_v3 = vld [vmem:[%s6075_s24 + $0x410] sm:$0xf] }
 0x21e   : > { %3421 = vmatmul.bf16.gmra.mxu1 %v4578_v50  ;;  %v6737_v56 = vadd.f32 %v3103_v13, %v3015_v51  ;;  %v5799_v50 = vld [vmem:[%s7180_s1 + $0x290] sm:$0xff] }
 0x21f   : > { %v2839_v48 = vpop.f32.mrf.mxu2  ;;  %3472 = vmatpush.bf16.msrb.mxu2 %v5799_v50 }
 0x220   : > { %v2928_v2 = vpop.f32.mrf.mxu3  ;;  %v2840_v5 = vadd.f32 %v2839_v48, %v6425_v11  ;;  %v4626_v11 = vor.u32 %v5608_v19, %v4623_v60  ;;  %v5630_v19 = vld [vmem:[%s6075_s24 + $0x444] sm:$0xf0]  ;;  %v5623_v60 = vld [vmem:[%s6075_s24 + $0x414] sm:$0xf] }
 0x221   : > { %v3019_v57 = vpop.f32.mrf.mxu0 }
 0x222   : > { %v2929_v14 = vadd.f32 %v2928_v2, %v2840_v5 }
 0x223   : > { %v3108_v27 = vpop.f32.mrf.mxu1 }
 0x224   : > { %v3018_v9 = vadd.f32 %v3017_v16, %v2929_v14  ;;  %v4677_v14 = vld [vmem:[%s6075_s24 + $0x408] sm:$0xf] }
 0x226   : > { %v6748_v21 = vadd.f32 %v3106_v24, %v3018_v9  ;;  %v5815_v9 = vld [vmem:[%s7180_s1 + $0x310] sm:$0xff] }
 0x227   : > { %v2841_v13 = vpop.f32.mrf.mxu2  ;;  %3650 = vmatpush.bf16.msrb.mxu0 %v5815_v9  ;;  %v5637_v9 = vld [vmem:[%s6075_s24 + $0x484] sm:$0xf] }
 0x228   : > { %v2930_v17 = vpop.f32.mrf.mxu3  ;;  %v2842_v4 = vadd.f32 %v2841_v13, %v6437_v36  ;;  %v5807_v36 = vld [vmem:[%s7180_s1 + $0x2d0] sm:$0xff] }
 0x229   : > { %v3298_v32 = vpop.f32.mrf.mxu0  ;;  %3561 = vmatpush.bf16.msrb.mxu3 %v5807_v36 }
 0x22a   : > { %v2931_v40 = vadd.f32 %v2930_v17, %v2842_v4  ;;  %v4686_v4 = vor.u32 %v5630_v19, %v4685_v3 }
 0x22b   : > { %v3387_v31 = vpop.f32.mrf.mxu1 }
 0x22c   : > { %v3020_v49 = vadd.f32 %v3019_v57, %v2931_v40  ;;  %3159 = vmatmul.bf16.gmra.mxu2 %v4622_v15  ;;  %3337 = vmatmul.bf16.gmra.mxu0 %v4630_v33  ;;  %v5629_v57 = vld [vmem:[%s6075_s24 + $0x43c] sm:$0xf0]  ;;  %v4690_v15 = vor.u32 %v5623_v60, %v4687_v10 }
 0x22d   : > { %3248 = vmatmul.bf16.gmra.mxu3 %v4626_v11  ;;  %v4678_v13 = vor.u32 %v5629_v57, %v4677_v14  ;;  %v4741_v14 = vld [vmem:[%s6075_s24 + $0x480] sm:$0xf]  ;;  %v5644_v57 = vld [vmem:[%s6075_s24 + $0x4b4] sm:$0xf0] }
 0x22e   : > { %3426 = vmatmul.bf16.gmra.mxu1 %v4634_v43  ;;  %v6757_v59 = vadd.f32 %v3108_v27, %v3020_v49  ;;  %v4679_v27 = vld [vmem:[%s6075_s24 + $0x440] sm:$0xf0]  ;;  %v4742_v10 = vor.u32 %v5644_v57, %v4741_v14  ;;  %v4799_v14 = vld [vmem:[%s6075_s24 + $0x528] sm:$0xf0] }
 0x22f   : > { %v3120_v16 = vpop.f32.mrf.mxu2  ;;  %v4682_v17 = vor.u32 %v5622_v63, %v4679_v27  ;;  %v4743_v63 = vld [vmem:[%s6075_s24 + $0x4b8] sm:$0xf0] }
 0x230   : > { %v3209_v24 = vpop.f32.mrf.mxu3  ;;  %v3121_v51 = vadd.f32 %v3120_v16, %v6457_v20 }
 0x231   : > { %v3300_v48 = vpop.f32.mrf.mxu0 }
 0x232   : > { %v3210_v18 = vadd.f32 %v3209_v24, %v3121_v51  ;;  %v4733_v51 = vld [vmem:[%s6075_s24 + $0x478] sm:$0xf] }
 0x233   : > { %v3389_v2 = vpop.f32.mrf.mxu1 }
 0x234   : > { %v3299_v5 = vadd.f32 %v3298_v32, %v3210_v18  ;;  %v5643_v18 = vld [vmem:[%s6075_s24 + $0x4ac] sm:$0xf0] }
 0x235   : > { %v4734_v60 = vor.u32 %v5643_v18, %v4733_v51  ;;  %v5650_v51 = vld [vmem:[%s6075_s24 + $0x4ec] sm:$0xf]  ;;  %v4797_v18 = vld [vmem:[%s6075_s24 + $0x4f0] sm:$0xf] }
 0x236   : > { %v6771_v39 = vadd.f32 %v3387_v31, %v3299_v5  ;;  %v4735_v5 = vld [vmem:[%s6075_s24 + $0x4b0] sm:$0xf0] }
 0x237   : > { %v3122_v20 = vpop.f32.mrf.mxu2 }
 0x238   : > { %v3211_v26 = vpop.f32.mrf.mxu3  ;;  %v3123_v34 = vadd.f32 %v3122_v20, %v6463_v42  ;;  %v4746_v20 = vor.u32 %v5637_v9, %v4743_v63 }
 0x239   : > { %v3303_v33 = vpop.f32.mrf.mxu0 }
 0x23a   : > { %v3212_v11 = vadd.f32 %v3211_v26, %v3123_v34 }
 0x23b   : > { %v3392_v43 = vpop.f32.mrf.mxu1 }
 0x23c   : > { %v3301_v40 = vadd.f32 %v3300_v48, %v3212_v11  ;;  %3164 = vmatmul.bf16.gmra.mxu2 %v4678_v13  ;;  %3342 = vmatmul.bf16.gmra.mxu0 %v4686_v4  ;;  %v5636_v48 = vld [vmem:[%s6075_s24 + $0x47c] sm:$0xf]  ;;  %v5798_v4 = vld [vmem:[%s7180_s1 + $0x288] sm:$0xff] }
 0x23d   : > { %3253 = vmatmul.bf16.gmra.mxu3 %v4682_v17  ;;  %3473 = vmatpush.bf16.msrb.mxu2 %v5798_v4 }
 0x23e   : > { %3431 = vmatmul.bf16.gmra.mxu1 %v4690_v15  ;;  %v6774_v42 = vadd.f32 %v3389_v2, %v3301_v40 }
 0x23f   : > { %v3125_v32 = vpop.f32.mrf.mxu2 }
 0x240   : > { %v3214_v31 = vpop.f32.mrf.mxu3  ;;  %v3126_v49 = vadd.f32 %v3125_v32, %v6474_v12  ;;  %v4738_v12 = vor.u32 %v5636_v48, %v4735_v5  ;;  %v5658_v48 = vld [vmem:[%s6075_s24 + $0x524] sm:$0xf0]  ;;  %v5651_v5 = vld [vmem:[%s6075_s24 + $0x4f4] sm:$0xf] }
 0x241   : > { %v3305_v36 = vpop.f32.mrf.mxu0 }
 0x242   : > { %v3215_v50 = vadd.f32 %v3214_v31, %v3126_v49 }
 0x243   : > { %v3394_v16 = vpop.f32.mrf.mxu1 }
 0x244   : > { %v3304_v24 = vadd.f32 %v3303_v33, %v3215_v50  ;;  %v4789_v50 = vld [vmem:[%s6075_s24 + $0x4e8] sm:$0xf] }
 0x246   : > { %v6785_v27 = vadd.f32 %v3392_v43, %v3304_v24  ;;  %v5814_v24 = vld [vmem:[%s7180_s1 + $0x308] sm:$0xff] }
 0x247   : > { %v3127_v2 = vpop.f32.mrf.mxu2  ;;  %3651 = vmatpush.bf16.msrb.mxu0 %v5814_v24  ;;  %v5672_v24 = vld [vmem:[%s6075_s24 + $0x594] sm:$0xf0] }
 0x248   : > { %v3216_v3 = vpop.f32.mrf.mxu3  ;;  %v3128_v19 = vadd.f32 %v3127_v2, %v6483_v35  ;;  %v5806_v35 = vld [vmem:[%s7180_s1 + $0x2c8] sm:$0xff] }
 0x249   : > { %v3308_v34 = vpop.f32.mrf.mxu0  ;;  %3562 = vmatpush.bf16.msrb.mxu3 %v5806_v35 }
 0x24a   : > { %v3217_v26 = vadd.f32 %v3216_v3, %v3128_v19  ;;  %v4798_v19 = vor.u32 %v5658_v48, %v4797_v18 }
 0x24b   : > { %v3397_v13 = vpop.f32.mrf.mxu1 }
 0x24c   : > { %v3306_v17 = vadd.f32 %v3305_v36, %v3217_v26  ;;  %3169 = vmatmul.bf16.gmra.mxu2 %v4734_v60  ;;  %3347 = vmatmul.bf16.gmra.mxu0 %v4742_v10  ;;  %v5657_v36 = vld [vmem:[%s6075_s24 + $0x51c] sm:$0xf0]  ;;  %v4802_v60 = vor.u32 %v5651_v5, %v4799_v14 }
 0x24d   : > { %3258 = vmatmul.bf16.gmra.mxu3 %v4738_v12  ;;  %v4790_v2 = vor.u32 %v5657_v36, %v4789_v50  ;;  %v4847_v50 = vld [vmem:[%s6075_s24 + $0x590] sm:$0xf0]  ;;  %v4853_v36 = vld [vmem:[%s6075_s24 + $0x560] sm:$0xf] }
 0x24e   : > { %3436 = vmatmul.bf16.gmra.mxu1 %v4746_v20  ;;  %v6794_v15 = vadd.f32 %v3394_v16, %v3306_v17  ;;  %v4791_v16 = vld [vmem:[%s6075_s24 + $0x520] sm:$0xf0] }
 0x24f   : > { %v3130_v11 = vpop.f32.mrf.mxu2  ;;  %v4794_v3 = vor.u32 %v5650_v51, %v4791_v16  ;;  %v5665_v51 = vld [vmem:[%s6075_s24 + $0x564] sm:$0xf]  ;;  %v4855_v16 = vld [vmem:[%s6075_s24 + $0x598] sm:$0xf0] }
 0x250   : > { %v3219_v33 = vpop.f32.mrf.mxu3  ;;  %v3131_v43 = vadd.f32 %v3130_v11, %v6497_v7 }
 0x251   : > { %v3310_v32 = vpop.f32.mrf.mxu0 }
 0x252   : > { %v3220_v40 = vadd.f32 %v3219_v33, %v3131_v43 }
 0x253   : > { %v3399_v31 = vpop.f32.mrf.mxu1 }
 0x254   : > { %v3309_v49 = vadd.f32 %v3308_v34, %v3220_v40  ;;  %v5821_v34 = vld [vmem:[%s7180_s1 + $0x340] sm:$0xff]  ;;  %v4845_v40 = vld [vmem:[%s6075_s24 + $0x558] sm:$0xf] }
 0x255   : > { %3741 = vmatpush.bf16.msrb.mxu1 %v5821_v34 }
 0x256   : > { %v6808_v57 = vadd.f32 %v3397_v13, %v3309_v49  ;;  %v5664_v49 = vld [vmem:[%s6075_s24 + $0x55c] sm:$0xf] }
 0x257   : > { %v3132_v7 = vpop.f32.mrf.mxu2 }
 0x258   : > { %v3221_v9 = vpop.f32.mrf.mxu3  ;;  %v3133_v63 = vadd.f32 %v3132_v7, %v6503_v30  ;;  %v4854_v7 = vor.u32 %v5672_v24, %v4853_v36  ;;  %v4911_v36 = vld [vmem:[%s6075_s24 + $0x608] sm:$0xf0] }
 0x259   : > { %v3313_v10 = vpop.f32.mrf.mxu0 }
 0x25a   : > { %v3222_v12 = vadd.f32 %v3221_v9, %v3133_v63  ;;  %v4858_v9 = vor.u32 %v5665_v51, %v4855_v16 }
 0x25b   : > { %v3402_v20 = vpop.f32.mrf.mxu1 }
 0x25c   : > { %v3311_v26 = vadd.f32 %v3310_v32, %v3222_v12  ;;  %3174 = vmatmul.bf16.gmra.mxu2 %v4790_v2  ;;  %3352 = vmatmul.bf16.gmra.mxu0 %v4798_v19  ;;  %v5671_v32 = vld [vmem:[%s6075_s24 + $0x58c] sm:$0xf0] }
 0x25d   : > { %3263 = vmatmul.bf16.gmra.mxu3 %v4794_v3  ;;  %v4846_v14 = vor.u32 %v5671_v32, %v4845_v40  ;;  %v5678_v40 = vld [vmem:[%s6075_s24 + $0x5cc] sm:$0xf]  ;;  %v4909_v32 = vld [vmem:[%s6075_s24 + $0x5d0] sm:$0xf] }
 0x25e   : > { %3441 = vmatmul.bf16.gmra.mxu1 %v4802_v60  ;;  %v6814_v30 = vadd.f32 %v3399_v31, %v3311_v26  ;;  %v5797_v60 = vld [vmem:[%s7180_s1 + $0x280] sm:$0xff] }
 0x25f   : > { %v3135_v13 = vpop.f32.mrf.mxu2  ;;  %3474 = vmatpush.bf16.msrb.mxu2 %v5797_v60 }
 0x260   : > { %v3224_v17 = vpop.f32.mrf.mxu3  ;;  %v3136_v4 = vadd.f32 %v3135_v13, %v6514_v61  ;;  %v4850_v61 = vor.u32 %v5664_v49, %v4847_v50  ;;  %v5686_v49 = vld [vmem:[%s6075_s24 + $0x604] sm:$0xf0]  ;;  %v5679_v50 = vld [vmem:[%s6075_s24 + $0x5d4] sm:$0xf] }
 0x261   : > { %v3315_v11 = vpop.f32.mrf.mxu0 }
 0x262   : > { %v3225_v35 = vadd.f32 %v3224_v17, %v3136_v4 }
 0x263   : > { %v3404_v33 = vpop.f32.mrf.mxu1 }
 0x264   : > { %v3314_v43 = vadd.f32 %v3313_v10, %v3225_v35  ;;  %v4901_v35 = vld [vmem:[%s6075_s24 + $0x5c8] sm:$0xf] }
 0x266   : > { %v6825_v18 = vadd.f32 %v3402_v20, %v3314_v43  ;;  %v5813_v43 = vld [vmem:[%s7180_s1 + $0x300] sm:$0xff] }
 0x267   : > { %v3137_v31 = vpop.f32.mrf.mxu2  ;;  %3652 = vmatpush.bf16.msrb.mxu0 %v5813_v43  ;;  %v5693_v43 = vld [vmem:[%s6075_s24 + $0x644] sm:$0xf] }
 0x268   : > { %v3226_v48 = vpop.f32.mrf.mxu3  ;;  %v3138_v5 = vadd.f32 %v3137_v31, %v6523_v62  ;;  %v5805_v62 = vld [vmem:[%s7180_s1 + $0x2c0] sm:$0xff] }
 0x269   : > { %v3318_v2 = vpop.f32.mrf.mxu0  ;;  %3563 = vmatpush.bf16.msrb.mxu3 %v5805_v62 }
 0x26a   : > { %v3227_v63 = vadd.f32 %v3226_v48, %v3138_v5  ;;  %v4910_v5 = vor.u32 %v5686_v49, %v4909_v32 }
 0x26b   : > { %v3407_v3 = vpop.f32.mrf.mxu1 }
 0x26c   : > { %v3316_v19 = vadd.f32 %v3315_v11, %v3227_v63  ;;  %3179 = vmatmul.bf16.gmra.mxu2 %v4846_v14  ;;  %3357 = vmatmul.bf16.gmra.mxu0 %v4854_v7  ;;  %v5685_v11 = vld [vmem:[%s6075_s24 + $0x5fc] sm:$0xf0]  ;;  %v4914_v14 = vor.u32 %v5679_v50, %v4911_v36 }
 0x26d   : > { %3268 = vmatmul.bf16.gmra.mxu3 %v4850_v61  ;;  %v4902_v31 = vor.u32 %v5685_v11, %v4901_v35  ;;  %v4965_v35 = vld [vmem:[%s6075_s24 + $0x640] sm:$0xf]  ;;  %v5700_v11 = vld [vmem:[%s6075_s24 + $0x674] sm:$0xf0] }
 0x26e   : > { %3446 = vmatmul.bf16.gmra.mxu1 %v4858_v9  ;;  %v6834_v12 = vadd.f32 %v3404_v33, %v3316_v19  ;;  %v4903_v33 = vld [vmem:[%s6075_s24 + $0x600] sm:$0xf0]  ;;  %v4966_v36 = vor.u32 %v5700_v11, %v4965_v35 }
 0x26f   : > { %v3140_v10 = vpop.f32.mrf.mxu2  ;;  %v4906_v48 = vor.u32 %v5678_v40, %v4903_v33  ;;  %v4967_v40 = vld [vmem:[%s6075_s24 + $0x678] sm:$0xf0] }
 0x270   : > { %v3229_v20 = vpop.f32.mrf.mxu3  ;;  %v3141_v26 = vadd.f32 %v3140_v10, %v6537_v52 }
 0x271   : > { %v3320_v13 = vpop.f32.mrf.mxu0 }
 0x272   : > { %v3230_v34 = vadd.f32 %v3229_v20, %v3141_v26  ;;  %v4957_v26 = vld [vmem:[%s6075_s24 + $0x638] sm:$0xf] }
 0x273   : > { %v3409_v17 = vpop.f32.mrf.mxu1 }
 0x274   : > { %v3319_v4 = vadd.f32 %v3318_v2, %v3230_v34  ;;  %v5699_v34 = vld [vmem:[%s6075_s24 + $0x66c] sm:$0xf0] }
 0x275   : > { %v4958_v50 = vor.u32 %v5699_v34, %v4957_v26  ;;  %v5714_v26 = vld [vmem:[%s6075_s24 + $0x6e4] sm:$0xf0]  ;;  %v5707_v34 = vld [vmem:[%s6075_s24 + $0x6b4] sm:$0xf] }
 0x276   : > { %v6848_v24 = vadd.f32 %v3407_v3, %v3319_v4  ;;  %v4959_v4 = vld [vmem:[%s6075_s24 + $0x670] sm:$0xf0] }
 0x277   : > { %v3142_v52 = vpop.f32.mrf.mxu2 }
 0x278   : > { %v3231_v51 = vpop.f32.mrf.mxu3  ;;  %v3143_v16 = vadd.f32 %v3142_v52, %v6543_v28  ;;  %v4970_v52 = vor.u32 %v5693_v43, %v4967_v40 }
 0x279   : > { %v3323_v7 = vpop.f32.mrf.mxu0 }
 0x27a   : > { %v3232_v61 = vadd.f32 %v3231_v51, %v3143_v16 }
 0x27b   : > { %v3412_v9 = vpop.f32.mrf.mxu1 }
 0x27c   : > { %v3321_v63 = vadd.f32 %v3320_v13, %v3232_v61  ;;  %3184 = vmatmul.bf16.gmra.mxu2 %v4902_v31  ;;  %3362 = vmatmul.bf16.gmra.mxu0 %v4910_v5  ;;  %v5692_v13 = vld [vmem:[%s6075_s24 + $0x63c] sm:$0xf] }
 0x27d   : > { %3273 = vmatmul.bf16.gmra.mxu3 %v4906_v48 }
 0x27e   : > { %3451 = vmatmul.bf16.gmra.mxu1 %v4914_v14  ;;  %v6851_v28 = vadd.f32 %v3409_v17, %v3321_v63 }
 0x27f   : > { %v3145_v2 = vpop.f32.mrf.mxu2 }
 0x280   : > { %v3234_v3 = vpop.f32.mrf.mxu3  ;;  %v3146_v19 = vadd.f32 %v3145_v2, %v6554_v46  ;;  %v4962_v46 = vor.u32 %v5692_v13, %v4959_v4  ;;  %v5023_v13 = vld [vmem:[%s6075_s24 + $0x6e8] sm:$0xf0] }
 0x281   : > { %v3325_v62 = vpop.f32.mrf.mxu0 }
 0x282   : > { %v3235_v60 = vadd.f32 %v3234_v3, %v3146_v19  ;;  %v5013_v3 = vld [vmem:[%s6075_s24 + $0x6a8] sm:$0xf]  ;;  %v5713_v19 = vld [vmem:[%s6075_s24 + $0x6dc] sm:$0xf0] }
 0x283   : > { %v3414_v10 = vpop.f32.mrf.mxu1  ;;  %v5014_v43 = vor.u32 %v5713_v19, %v5013_v3  ;;  %v5506_v3 = vld [vmem:[%s6075_s24 + $0x64] sm:$0xf0]  ;;  %v5499_v19 = vld [vmem:[%s6075_s24 + $0x34] sm:$0xf] }
 0x284   : > { %v3324_v20 = vadd.f32 %v3323_v7, %v3235_v60  ;;  %v5706_v60 = vld [vmem:[%s6075_s24 + $0x6ac] sm:$0xf] }
 0x286   : > { %v6862_v33 = vadd.f32 %v3412_v9, %v3324_v20  ;;  %v5021_v20 = vld [vmem:[%s6075_s24 + $0x6b0] sm:$0xf] }
 0x287   : > { %v3147_v17 = vpop.f32.mrf.mxu2  ;;  %v5022_v40 = vor.u32 %v5714_v26, %v5021_v20 }
 0x288   : > { %v3236_v32 = vpop.f32.mrf.mxu3  ;;  %v3148_v49 = vadd.f32 %v3147_v17, %v6563_v53  ;;  %v5026_v17 = vor.u32 %v5707_v34, %v5023_v13 }
 0x289   : > { %v3328_v16 = vpop.f32.mrf.mxu0 }
 0x28a   : > { %v3237_v51 = vadd.f32 %v3236_v32, %v3148_v49 }
 0x28b   : > { %v3417_v31 = vpop.f32.mrf.mxu1 }
 0x28c   : > { %v3326_v48 = vadd.f32 %v3325_v62, %v3237_v51  ;;  %3189 = vmatmul.bf16.gmra.mxu2 %v4958_v50  ;;  %3367 = vmatmul.bf16.gmra.mxu0 %v4966_v36  ;;  %v5015_v62 = vld [vmem:[%s6075_s24 + $0x6e0] sm:$0xf0] }
 0x28d   : > { %3278 = vmatmul.bf16.gmra.mxu3 %v4962_v46 }
 0x28e   : > { %3456 = vmatmul.bf16.gmra.mxu1 %v4970_v52  ;;  %v6865_v53 = vadd.f32 %v3414_v10, %v3326_v48 }
 0x28f   : > { %v3150_v5 = vpop.f32.mrf.mxu2 }
 0x290   : > { %v3239_v14 = vpop.f32.mrf.mxu3  ;;  %v3151_v61 = vadd.f32 %v3150_v5, %v6577_v41  ;;  %v5018_v41 = vor.u32 %v5706_v60, %v5015_v62  ;;  %v4199_v60 = vld [vmem:[%s6075_s24 + $0x68] sm:$0xf0] }
 0x291   : > { %v3330_v9 = vpop.f32.mrf.mxu0 }
 0x292   : > { %v3240_v7 = vadd.f32 %v3239_v14, %v3151_v61  ;;  %v4189_v14 = vld [vmem:[%s6075_s24 + $0x28] sm:$0xf]  ;;  %v5505_v61 = vld [vmem:[%s6075_s24 + $0x5c] sm:$0xf0] }
 0x293   : > { %v3419_v63 = vpop.f32.mrf.mxu1  ;;  %v4190_v34 = vor.u32 %v5505_v61, %v4189_v14  ;;  %v5520_v14 = vld [vmem:[%s6075_s24 + $0xd4] sm:$0xf0]  ;;  %v5513_v61 = vld [vmem:[%s6075_s24 + $0xa4] sm:$0xf] }
 0x294   : > { %v3329_v2 = vadd.f32 %v3328_v16, %v3240_v7  ;;  %v5498_v7 = vld [vmem:[%s6075_s24 + $0x2c] sm:$0xf] }
 0x296   : > { %v6876_v4 = vadd.f32 %v3417_v31, %v3329_v2  ;;  %v4197_v2 = vld [vmem:[%s6075_s24 + $0x30] sm:$0xf] }
 0x297   : > { %v3152_v10 = vpop.f32.mrf.mxu2  ;;  %v4198_v13 = vor.u32 %v5506_v3, %v4197_v2 }
 0x298   : > { %v3241_v35 = vpop.f32.mrf.mxu3  ;;  %v3153_v11 = vadd.f32 %v3152_v10, %v6583_v37  ;;  %v4202_v10 = vor.u32 %v5499_v19, %v4199_v60 }
 0x299   : > { %v3333_v49 = vpop.f32.mrf.mxu0 }
 0x29a   : > { %v3242_v32 = vadd.f32 %v3241_v35, %v3153_v11 }
 0x29b   : > { %v3422_v50 = vpop.f32.mrf.mxu1 }
 0x29c   : > { %v3331_v46 = vadd.f32 %v3330_v9, %v3242_v32  ;;  %3194 = vmatmul.bf16.gmra.mxu2 %v5014_v43  ;;  %3372 = vmatmul.bf16.gmra.mxu0 %v5022_v40  ;;  %v4191_v9 = vld [vmem:[%s6075_s24 + $0x60] sm:$0xf0] }
 0x29d   : > { %3283 = vmatmul.bf16.gmra.mxu3 %v5018_v41 }
 0x29e   : > { %3461 = vmatmul.bf16.gmra.mxu1 %v5026_v17  ;;  %v6879_v37 = vadd.f32 %v3419_v63, %v3331_v46 }
 0x29f   : > { %v3155_v36 = vpop.f32.mrf.mxu2 }
 0x2a0   : > { %v3244_v52 = vpop.f32.mrf.mxu3  ;;  %v3156_v51 = vadd.f32 %v3155_v36, %v6594_v29  ;;  %v4194_v29 = vor.u32 %v5498_v7, %v4191_v9  ;;  %v4255_v7 = vld [vmem:[%s6075_s24 + $0xd8] sm:$0xf0] }
 0x2a1   : > { %v3335_v31 = vpop.f32.mrf.mxu0 }
 0x2a2   : > { %v3245_v16 = vadd.f32 %v3244_v52, %v3156_v51  ;;  %v4245_v52 = vld [vmem:[%s6075_s24 + $0x98] sm:$0xf]  ;;  %v5519_v51 = vld [vmem:[%s6075_s24 + $0xcc] sm:$0xf0] }
 0x2a3   : > { %v3424_v48 = vpop.f32.mrf.mxu1  ;;  %v4246_v19 = vor.u32 %v5519_v51, %v4245_v52  ;;  %v5534_v52 = vld [vmem:[%s6075_s24 + $0x144] sm:$0xf0]  ;;  %v5527_v51 = vld [vmem:[%s6075_s24 + $0x114] sm:$0xf] }
 0x2a4   : > { %v3334_v5 = vadd.f32 %v3333_v49, %v3245_v16  ;;  %v5512_v16 = vld [vmem:[%s6075_s24 + $0x9c] sm:$0xf] }
 0x2a6   : > { %v6890_v62 = vadd.f32 %v3422_v50, %v3334_v5  ;;  %v4253_v5 = vld [vmem:[%s6075_s24 + $0xa0] sm:$0xf] }
 0x2a7   : > { %v3157_v63 = vpop.f32.mrf.mxu2  ;;  %v4254_v60 = vor.u32 %v5520_v14, %v4253_v5 }
 0x2a8   : > { %v3246_v20 = vpop.f32.mrf.mxu3  ;;  %v3158_v26 = vadd.f32 %v3157_v63, %v6603_v55  ;;  %v4258_v63 = vor.u32 %v5513_v61, %v4255_v7 }
 0x2a9   : > { %v3338_v11 = vpop.f32.mrf.mxu0 }
 0x2aa   : > { %v3247_v35 = vadd.f32 %v3246_v20, %v3158_v26 }
 0x2ab   : > { %v3427_v43 = vpop.f32.mrf.mxu1 }
 0x2ac   : > { %v3336_v41 = vadd.f32 %v3335_v31, %v3247_v35  ;;  %3475 = vmatmul.bf16.vlgmr.msrb.gmra.mxu2 %v4190_v34  ;;  %3653 = vmatmul.bf16.vlgmr.msrb.gmra.mxu0 %v4198_v13  ;;  %v4247_v31 = vld [vmem:[%s6075_s24 + $0xd0] sm:$0xf0] }
 0x2ad   : > { %3564 = vmatmul.bf16.vlgmr.msrb.gmra.mxu3 %v4194_v29 }
 0x2ae   : > { %5475 = vmatmul.msk.bf16.vlgmr.msrb.gmra.mxu1 %vm2528_vm0, %v4202_v10  ;;  %v6894_v55 = vadd.f32 %v3424_v48, %v3336_v41 }
 0x2af   : > { %v3160_v40 = vpop.f32.mrf.mxu2 }
 0x2b0   : > { %v3249_v17 = vpop.f32.mrf.mxu3  ;;  %v3161_v32 = vadd.f32 %v3160_v40, %v6617_v23  ;;  %v4250_v23 = vor.u32 %v5512_v16, %v4247_v31  ;;  %v4311_v16 = vld [vmem:[%s6075_s24 + $0x148] sm:$0xf0] }
 0x2b1   : > { %v3340_v50 = vpop.f32.mrf.mxu0 }
 0x2b2   : > { %v3250_v49 = vadd.f32 %v3249_v17, %v3161_v32  ;;  %v4301_v17 = vld [vmem:[%s6075_s24 + $0x108] sm:$0xf]  ;;  %v5533_v32 = vld [vmem:[%s6075_s24 + $0x13c] sm:$0xf0] }
 0x2b3   : > { %v3429_v46 = vpop.f32.mrf.mxu1  ;;  %v4302_v61 = vor.u32 %v5533_v32, %v4301_v17  ;;  %v5548_v17 = vld [vmem:[%s6075_s24 + $0x1b4] sm:$0xf0]  ;;  %v5541_v32 = vld [vmem:[%s6075_s24 + $0x184] sm:$0xf] }
 0x2b4   : > { %v3339_v36 = vadd.f32 %v3338_v11, %v3250_v49  ;;  %v5526_v49 = vld [vmem:[%s6075_s24 + $0x10c] sm:$0xf] }
 0x2b6   : > { %v6905_v9 = vadd.f32 %v3427_v43, %v3339_v36  ;;  %v4309_v36 = vld [vmem:[%s6075_s24 + $0x110] sm:$0xf] }
 0x2b7   : > { %v3162_v48 = vpop.f32.mrf.mxu2  ;;  %v4310_v7 = vor.u32 %v5534_v52, %v4309_v36 }
 0x2b8   : > { %v3251_v2 = vpop.f32.mrf.mxu3  ;;  %v3163_v3 = vadd.f32 %v3162_v48, %v6620_v54  ;;  %v4314_v48 = vor.u32 %v5527_v51, %v4311_v16 }
 0x2b9   : > { %v3343_v26 = vpop.f32.mrf.mxu0 }
 0x2ba   : > { %v3252_v20 = vadd.f32 %v3251_v2, %v3163_v3 }
 0x2bb   : > { %v3432_v34 = vpop.f32.mrf.mxu1 }
 0x2bc   : > { %v3341_v29 = vadd.f32 %v3340_v50, %v3252_v20  ;;  %3480 = vmatmul.bf16.gmra.mxu2 %v4246_v19  ;;  %3658 = vmatmul.bf16.gmra.mxu0 %v4254_v60  ;;  %v4303_v50 = vld [vmem:[%s6075_s24 + $0x140] sm:$0xf0] }
 0x2bd   : > { %3569 = vmatmul.bf16.gmra.mxu3 %v4250_v23 }
 0x2be   : > { %5476 = vmatmul.msk.bf16.gmra.mxu1 %vm2528_vm0, %v4258_v63  ;;  %v6909_v54 = vadd.f32 %v3429_v46, %v3341_v29 }
 0x2bf   : > { %v3165_v13 = vpop.f32.mrf.mxu2 }
 0x2c0   : > { %v3254_v10 = vpop.f32.mrf.mxu3  ;;  %v3166_v35 = vadd.f32 %v3165_v13, %v6631_v8  ;;  %v4306_v8 = vor.u32 %v5526_v49, %v4303_v50  ;;  %v4367_v49 = vld [vmem:[%s6075_s24 + $0x1b8] sm:$0xf0] }
 0x2c1   : > { %v3345_v43 = vpop.f32.mrf.mxu0 }
 0x2c2   : > { %v3255_v11 = vadd.f32 %v3254_v10, %v3166_v35  ;;  %v4357_v10 = vld [vmem:[%s6075_s24 + $0x178] sm:$0xf]  ;;  %v5547_v35 = vld [vmem:[%s6075_s24 + $0x1ac] sm:$0xf0] }
 0x2c3   : > { %v3434_v41 = vpop.f32.mrf.mxu1  ;;  %v4358_v51 = vor.u32 %v5547_v35, %v4357_v10  ;;  %v5562_v10 = vld [vmem:[%s6075_s24 + $0x224] sm:$0xf0]  ;;  %v5555_v35 = vld [vmem:[%s6075_s24 + $0x1f4] sm:$0xf] }
 0x2c4   : > { %v3344_v40 = vadd.f32 %v3343_v26, %v3255_v11  ;;  %v5540_v11 = vld [vmem:[%s6075_s24 + $0x17c] sm:$0xf] }
 0x2c6   : > { %v6920_v31 = vadd.f32 %v3432_v34, %v3344_v40  ;;  %v4365_v40 = vld [vmem:[%s6075_s24 + $0x180] sm:$0xf] }
 0x2c7   : > { %v3167_v46 = vpop.f32.mrf.mxu2  ;;  %v4366_v16 = vor.u32 %v5548_v17, %v4365_v40 }
 0x2c8   : > { %v3256_v5 = vpop.f32.mrf.mxu3  ;;  %v3168_v14 = vadd.f32 %v3167_v46, %v6640_v38  ;;  %v4370_v46 = vor.u32 %v5541_v32, %v4367_v49 }
 0x2c9   : > { %v3348_v3 = vpop.f32.mrf.mxu0 }
 0x2ca   : > { %v3257_v2 = vadd.f32 %v3256_v5, %v3168_v14 }
 0x2cb   : > { %v3437_v19 = vpop.f32.mrf.mxu1 }
 0x2cc   : > { %v3346_v23 = vadd.f32 %v3345_v43, %v3257_v2  ;;  %3485 = vmatmul.bf16.gmra.mxu2 %v4302_v61  ;;  %3663 = vmatmul.bf16.gmra.mxu0 %v4310_v7  ;;  %v4359_v43 = vld [vmem:[%s6075_s24 + $0x1b0] sm:$0xf0] }
 0x2cd   : > { %3574 = vmatmul.bf16.gmra.mxu3 %v4306_v8 }
 0x2ce   : > { %5477 = vmatmul.msk.bf16.gmra.mxu1 %vm2528_vm0, %v4314_v48  ;;  %v6924_v38 = vadd.f32 %v3434_v41, %v3346_v23 }
 0x2cf   : > { %v3170_v60 = vpop.f32.mrf.mxu2 }
 0x2d0   : > { %v3259_v63 = vpop.f32.mrf.mxu3  ;;  %v3171_v20 = vadd.f32 %v3170_v60, %v6654_v22  ;;  %v4362_v22 = vor.u32 %v5540_v11, %v4359_v43  ;;  %v4423_v11 = vld [vmem:[%s6075_s24 + $0x228] sm:$0xf0] }
 0x2d1   : > { %v3350_v34 = vpop.f32.mrf.mxu0 }
 0x2d2   : > { %v3260_v26 = vadd.f32 %v3259_v63, %v3171_v20  ;;  %v4413_v63 = vld [vmem:[%s6075_s24 + $0x1e8] sm:$0xf]  ;;  %v5561_v20 = vld [vmem:[%s6075_s24 + $0x21c] sm:$0xf0] }
 0x2d3   : > { %v3439_v29 = vpop.f32.mrf.mxu1  ;;  %v4414_v32 = vor.u32 %v5561_v20, %v4413_v63  ;;  %v5576_v63 = vld [vmem:[%s6075_s24 + $0x294] sm:$0xf0]  ;;  %v5569_v20 = vld [vmem:[%s6075_s24 + $0x264] sm:$0xf] }
 0x2d4   : > { %v3349_v13 = vadd.f32 %v3348_v3, %v3260_v26  ;;  %v5554_v26 = vld [vmem:[%s6075_s24 + $0x1ec] sm:$0xf] }
 0x2d6   : > { %v6935_v50 = vadd.f32 %v3437_v19, %v3349_v13  ;;  %v4421_v13 = vld [vmem:[%s6075_s24 + $0x1f0] sm:$0xf] }
 0x2d7   : > { %v3172_v41 = vpop.f32.mrf.mxu2  ;;  %v4422_v49 = vor.u32 %v5562_v10, %v4421_v13 }
 0x2d8   : > { %v3261_v36 = vpop.f32.mrf.mxu3  ;;  %v3173_v52 = vadd.f32 %v3172_v41, %v6660_v45  ;;  %v4426_v41 = vor.u32 %v5555_v35, %v4423_v11 }
 0x2d9   : > { %v3353_v14 = vpop.f32.mrf.mxu0 }
 0x2da   : > { %v3262_v5 = vadd.f32 %v3261_v36, %v3173_v52 }
 0x2db   : > { %v3442_v61 = vpop.f32.mrf.mxu1 }
 0x2dc   : > { %v3351_v8 = vadd.f32 %v3350_v34, %v3262_v5  ;;  %3490 = vmatmul.bf16.gmra.mxu2 %v4358_v51  ;;  %3668 = vmatmul.bf16.gmra.mxu0 %v4366_v16  ;;  %v4415_v34 = vld [vmem:[%s6075_s24 + $0x220] sm:$0xf0] }
 0x2dd   : > { %3579 = vmatmul.bf16.gmra.mxu3 %v4362_v22 }
 0x2de   : > { %5478 = vmatmul.msk.bf16.gmra.mxu1 %vm2528_vm0, %v4370_v46  ;;  %v6939_v45 = vadd.f32 %v3439_v29, %v3351_v8 }
 0x2df   : > { %v3175_v7 = vpop.f32.mrf.mxu2 }
 0x2e0   : > { %v3264_v48 = vpop.f32.mrf.mxu3  ;;  %v3176_v2 = vadd.f32 %v3175_v7, %v6671_v47  ;;  %v4418_v47 = vor.u32 %v5554_v26, %v4415_v34  ;;  %v4479_v26 = vld [vmem:[%s6075_s24 + $0x298] sm:$0xf0] }
 0x2e1   : > { %v3355_v19 = vpop.f32.mrf.mxu0 }
 0x2e2   : > { %v3265_v3 = vadd.f32 %v3264_v48, %v3176_v2  ;;  %v4469_v48 = vld [vmem:[%s6075_s24 + $0x258] sm:$0xf]  ;;  %v5575_v2 = vld [vmem:[%s6075_s24 + $0x28c] sm:$0xf0] }
 0x2e3   : > { %v3444_v23 = vpop.f32.mrf.mxu1  ;;  %v4470_v35 = vor.u32 %v5575_v2, %v4469_v48  ;;  %v5590_v48 = vld [vmem:[%s6075_s24 + $0x304] sm:$0xf0]  ;;  %v5583_v2 = vld [vmem:[%s6075_s24 + $0x2d4] sm:$0xf] }
 0x2e4   : > { %v3354_v60 = vadd.f32 %v3353_v14, %v3265_v3  ;;  %v5568_v3 = vld [vmem:[%s6075_s24 + $0x25c] sm:$0xf] }
 0x2e6   : > { %v6950_v43 = vadd.f32 %v3442_v61, %v3354_v60  ;;  %v4477_v60 = vld [vmem:[%s6075_s24 + $0x260] sm:$0xf] }
 0x2e7   : > { %v3177_v29 = vpop.f32.mrf.mxu2  ;;  %v4478_v11 = vor.u32 %v5576_v63, %v4477_v60 }
 0x2e8   : > { %v3266_v40 = vpop.f32.mrf.mxu3  ;;  %v3178_v17 = vadd.f32 %v3177_v29, %v6680_v1  ;;  %v4482_v29 = vor.u32 %v5569_v20, %v4479_v26 }
 0x2e9   : > { %v3358_v52 = vpop.f32.mrf.mxu0 }
 0x2ea   : > { %v3267_v36 = vadd.f32 %v3266_v40, %v3178_v17 }
 0x2eb   : > { %v3447_v51 = vpop.f32.mrf.mxu1 }
 0x2ec   : > { %v3356_v22 = vadd.f32 %v3355_v19, %v3267_v36  ;;  %3495 = vmatmul.bf16.gmra.mxu2 %v4414_v32  ;;  %3673 = vmatmul.bf16.gmra.mxu0 %v4422_v49  ;;  %v4471_v19 = vld [vmem:[%s6075_s24 + $0x290] sm:$0xf0] }
 0x2ed   : > { %3584 = vmatmul.bf16.gmra.mxu3 %v4418_v47 }
 0x2ee   : > { %5479 = vmatmul.msk.bf16.gmra.mxu1 %vm2528_vm0, %v4426_v41  ;;  %v6954_v1 = vadd.f32 %v3444_v23, %v3356_v22 }
 0x2ef   : > { %v3180_v16 = vpop.f32.mrf.mxu2 }
 0x2f0   : > { %v3269_v46 = vpop.f32.mrf.mxu3  ;;  %v3181_v5 = vadd.f32 %v3180_v16, %v6694_v58  ;;  %v4474_v58 = vor.u32 %v5568_v3, %v4471_v19  ;;  %v4535_v3 = vld [vmem:[%s6075_s24 + $0x308] sm:$0xf0] }
 0x2f1   : > { %v3360_v61 = vpop.f32.mrf.mxu0 }
 0x2f2   : > { %v3270_v14 = vadd.f32 %v3269_v46, %v3181_v5  ;;  %v4525_v46 = vld [vmem:[%s6075_s24 + $0x2c8] sm:$0xf]  ;;  %v5589_v5 = vld [vmem:[%s6075_s24 + $0x2fc] sm:$0xf0] }
 0x2f3   : > { %v3449_v8 = vpop.f32.mrf.mxu1  ;;  %v4526_v20 = vor.u32 %v5589_v5, %v4525_v46  ;;  %v5604_v46 = vld [vmem:[%s6075_s24 + $0x374] sm:$0xf0]  ;;  %v5597_v5 = vld [vmem:[%s6075_s24 + $0x344] sm:$0xf] }
 0x2f4   : > { %v3359_v7 = vadd.f32 %v3358_v52, %v3270_v14  ;;  %v5582_v14 = vld [vmem:[%s6075_s24 + $0x2cc] sm:$0xf] }
 0x2f6   : > { %v6965_v34 = vadd.f32 %v3447_v51, %v3359_v7  ;;  %v4533_v7 = vld [vmem:[%s6075_s24 + $0x2d0] sm:$0xf] }
 0x2f7   : > { %v3182_v23 = vpop.f32.mrf.mxu2  ;;  %v4534_v26 = vor.u32 %v5590_v48, %v4533_v7 }
 0x2f8   : > { %v3271_v13 = vpop.f32.mrf.mxu3  ;;  %v3183_v10 = vadd.f32 %v3182_v23, %v6697_v44  ;;  %v4538_v23 = vor.u32 %v5583_v2, %v4535_v3 }
 0x2f9   : > { %v3363_v17 = vpop.f32.mrf.mxu0 }
 0x2fa   : > { %v3272_v40 = vadd.f32 %v3271_v13, %v3183_v10 }
 0x2fb   : > { %v3452_v32 = vpop.f32.mrf.mxu1 }
 0x2fc   : > { %v3361_v47 = vadd.f32 %v3360_v61, %v3272_v40  ;;  %3500 = vmatmul.bf16.gmra.mxu2 %v4470_v35  ;;  %3678 = vmatmul.bf16.gmra.mxu0 %v4478_v11  ;;  %v4527_v61 = vld [vmem:[%s6075_s24 + $0x300] sm:$0xf0] }
 0x2fd   : > { %3589 = vmatmul.bf16.gmra.mxu3 %v4474_v58 }
 0x2fe   : > { %5480 = vmatmul.msk.bf16.gmra.mxu1 %vm2528_vm0, %v4482_v29  ;;  %v6969_v44 = vadd.f32 %v3449_v8, %v3361_v47 }
 0x2ff   : > { %v3185_v49 = vpop.f32.mrf.mxu2 }
 0x300   : > { %v3274_v41 = vpop.f32.mrf.mxu3  ;;  %v3186_v36 = vadd.f32 %v3185_v49, %v6708_v25  ;;  %v4530_v25 = vor.u32 %v5582_v14, %v4527_v61  ;;  %v4591_v14 = vld [vmem:[%s6075_s24 + $0x378] sm:$0xf0] }
 0x301   : > { %v3365_v51 = vpop.f32.mrf.mxu0 }
 0x302   : > { %v3275_v52 = vadd.f32 %v3274_v41, %v3186_v36  ;;  %v4581_v41 = vld [vmem:[%s6075_s24 + $0x338] sm:$0xf]  ;;  %v5603_v36 = vld [vmem:[%s6075_s24 + $0x36c] sm:$0xf0] }
 0x303   : > { %v3454_v22 = vpop.f32.mrf.mxu1  ;;  %v4582_v2 = vor.u32 %v5603_v36, %v4581_v41  ;;  %v5618_v41 = vld [vmem:[%s6075_s24 + $0x3e4] sm:$0xf0]  ;;  %v5611_v36 = vld [vmem:[%s6075_s24 + $0x3b4] sm:$0xf] }
 0x304   : > { %v3364_v16 = vadd.f32 %v3363_v17, %v3275_v52  ;;  %v5596_v52 = vld [vmem:[%s6075_s24 + $0x33c] sm:$0xf] }
 0x306   : > { %v6980_v19 = vadd.f32 %v3452_v32, %v3364_v16  ;;  %v4589_v16 = vld [vmem:[%s6075_s24 + $0x340] sm:$0xf] }
 0x307   : > { %v3187_v8 = vpop.f32.mrf.mxu2  ;;  %v4590_v3 = vor.u32 %v5604_v46, %v4589_v16 }
 0x308   : > { %v3276_v60 = vpop.f32.mrf.mxu3  ;;  %v3188_v63 = vadd.f32 %v3187_v8, %v6717_v0  ;;  %v4594_v8 = vor.u32 %v5597_v5, %v4591_v14 }
 0x309   : > { %v3368_v10 = vpop.f32.mrf.mxu0 }
 0x30a   : > { %v3277_v13 = vadd.f32 %v3276_v60, %v3188_v63 }
 0x30b   : > { %v3457_v35 = vpop.f32.mrf.mxu1 }
 0x30c   : > { %v3366_v58 = vadd.f32 %v3365_v51, %v3277_v13  ;;  %3505 = vmatmul.bf16.gmra.mxu2 %v4526_v20  ;;  %3683 = vmatmul.bf16.gmra.mxu0 %v4534_v26  ;;  %v4583_v51 = vld [vmem:[%s6075_s24 + $0x370] sm:$0xf0] }
 0x30d   : > { %3594 = vmatmul.bf16.gmra.mxu3 %v4530_v25 }
 0x30e   : > { %5481 = vmatmul.msk.bf16.gmra.mxu1 %vm2528_vm0, %v4538_v23  ;;  %v6984_v0 = vadd.f32 %v3454_v22, %v3366_v58 }
 0x30f   : > { %v3190_v11 = vpop.f32.mrf.mxu2 }
 0x310   : > { %v3279_v29 = vpop.f32.mrf.mxu3  ;;  %v3191_v40 = vadd.f32 %v3190_v11, %v6731_v6  ;;  %v4586_v6 = vor.u32 %v5596_v52, %v4583_v51  ;;  %v4647_v52 = vld [vmem:[%s6075_s24 + $0x3e8] sm:$0xf0] }
 0x311   : > { %v3370_v32 = vpop.f32.mrf.mxu0 }
 0x312   : > { %v3280_v17 = vadd.f32 %v3279_v29, %v3191_v40  ;;  %v4637_v29 = vld [vmem:[%s6075_s24 + $0x3a8] sm:$0xf]  ;;  %v5617_v40 = vld [vmem:[%s6075_s24 + $0x3dc] sm:$0xf0] }
 0x313   : > { %v3459_v47 = vpop.f32.mrf.mxu1  ;;  %v4638_v5 = vor.u32 %v5617_v40, %v4637_v29  ;;  %v5625_v29 = vld [vmem:[%s6075_s24 + $0x424] sm:$0xf]  ;;  %v4703_v40 = vld [vmem:[%s6075_s24 + $0x458] sm:$0xf0] }
 0x314   : > { %v3369_v49 = vadd.f32 %v3368_v10, %v3280_v17  ;;  %v5610_v17 = vld [vmem:[%s6075_s24 + $0x3ac] sm:$0xf] }
 0x316   : > { %v6995_v61 = vadd.f32 %v3457_v35, %v3369_v49  ;;  %v4645_v49 = vld [vmem:[%s6075_s24 + $0x3b0] sm:$0xf] }
 0x317   : > { %v3192_v22 = vpop.f32.mrf.mxu2  ;;  %v4646_v14 = vor.u32 %v5618_v41, %v4645_v49 }
 0x318   : > { %v3281_v7 = vpop.f32.mrf.mxu3  ;;  %v3193_v48 = vadd.f32 %v3192_v22, %v6737_v56  ;;  %v4650_v22 = vor.u32 %v5611_v36, %v4647_v52  ;;  %v4706_v52 = vor.u32 %v5625_v29, %v4703_v40 }
 0x319   : > { %v3373_v63 = vpop.f32.mrf.mxu0 }
 0x31a   : > { %v3282_v60 = vadd.f32 %v3281_v7, %v3193_v48 }
 0x31b   : > { %v3462_v20 = vpop.f32.mrf.mxu1 }
 0x31c   : > { %v3371_v25 = vadd.f32 %v3370_v32, %v3282_v60  ;;  %3510 = vmatmul.bf16.gmra.mxu2 %v4582_v2  ;;  %3688 = vmatmul.bf16.gmra.mxu0 %v4590_v3  ;;  %v4639_v32 = vld [vmem:[%s6075_s24 + $0x3e0] sm:$0xf0] }
 0x31d   : > { %3599 = vmatmul.bf16.gmra.mxu3 %v4586_v6 }
 0x31e   : > { %5482 = vmatmul.msk.bf16.gmra.mxu1 %vm2528_vm0, %v4594_v8  ;;  %v6999_v56 = vadd.f32 %v3459_v47, %v3371_v25 }
 0x31f   : > { %v3195_v26 = vpop.f32.mrf.mxu2 }
 0x320   : > { %v3284_v23 = vpop.f32.mrf.mxu3  ;;  %v3196_v13 = vadd.f32 %v3195_v26, %v6748_v21  ;;  %v4642_v21 = vor.u32 %v5610_v17, %v4639_v32  ;;  %v4693_v26 = vld [vmem:[%s6075_s24 + $0x418] sm:$0xf] }
 0x321   : > { %v3375_v35 = vpop.f32.mrf.mxu0 }
 0x322   : > { %v3285_v10 = vadd.f32 %v3284_v23, %v3196_v13  ;;  %v5631_v23 = vld [vmem:[%s6075_s24 + $0x44c] sm:$0xf0]  ;;  %v5624_v13 = vld [vmem:[%s6075_s24 + $0x41c] sm:$0xf] }
 0x323   : > { %v3464_v58 = vpop.f32.mrf.mxu1  ;;  %v4694_v41 = vor.u32 %v5631_v23, %v4693_v26  ;;  %v5638_v26 = vld [vmem:[%s6075_s24 + $0x48c] sm:$0xf]  ;;  %v4751_v23 = vld [vmem:[%s6075_s24 + $0x4c0] sm:$0xf0] }
 0x324   : > { %v3374_v11 = vadd.f32 %v3373_v63, %v3285_v10  ;;  %v4695_v10 = vld [vmem:[%s6075_s24 + $0x450] sm:$0xf0] }
 0x325   : > { %v4698_v36 = vor.u32 %v5624_v13, %v4695_v10  ;;  %v4757_v13 = vld [vmem:[%s6075_s24 + $0x490] sm:$0xf]  ;;  %v5646_v10 = vld [vmem:[%s6075_s24 + $0x4c4] sm:$0xf0] }
 0x326   : > { %v7010_v51 = vadd.f32 %v3462_v20, %v3374_v11  ;;  %v5632_v11 = vld [vmem:[%s6075_s24 + $0x454] sm:$0xf0] }
 0x327   : > { %v3197_v47 = vpop.f32.mrf.mxu2 }
 0x328   : > { %v3286_v16 = vpop.f32.mrf.mxu3  ;;  %v3198_v46 = vadd.f32 %v3197_v47, %v6757_v59 }
 0x329   : > { %v3654_v48 = vpop.f32.mrf.mxu0 }
 0x32a   : > { %v3287_v7 = vadd.f32 %v3286_v16, %v3198_v46 }
 0x32b   : > { %v3743_v2 = vpop.f32.mrf.mxu1 }
 0x32c   : > { %v3376_v6 = vadd.f32 %v3375_v35, %v3287_v7  ;;  %3515 = vmatmul.bf16.gmra.mxu2 %v4638_v5  ;;  %3693 = vmatmul.bf16.gmra.mxu0 %v4646_v14  ;;  %v4701_v35 = vld [vmem:[%s6075_s24 + $0x420] sm:$0xf] }
 0x32d   : > { %3604 = vmatmul.bf16.gmra.mxu3 %v4642_v21  ;;  %v7029_v21 = vld [vmem:[%s7181_s2] ss:$0 sm:$0xff] }
 0x32e   : > { %5483 = vmatmul.msk.bf16.gmra.mxu1 %vm2528_vm0, %v4650_v22  ;;  %v7014_v59 = vadd.f32 %v3464_v58, %v3376_v6 }
 0x32f   : > { %v3476_v3 = vpop.f32.mrf.mxu2 }
 0x330   : > { %v3565_v8 = vpop.f32.mrf.mxu3  ;;  %v3477_v60 = vadd.f32 %v3476_v3, %v6771_v39  ;;  %v4702_v39 = vor.u32 %v5632_v11, %v4701_v35  ;;  %v5639_v35 = vld [vmem:[%s6075_s24 + $0x494] sm:$0xf]  ;;  %v4759_v11 = vld [vmem:[%s6075_s24 + $0x4c8] sm:$0xf0] }
 0x331   : > { %v3656_v63 = vpop.f32.mrf.mxu0 }
 0x332   : > { %v3566_v25 = vadd.f32 %v3565_v8, %v3477_v60 }
 0x333   : > { %v3745_v20 = vpop.f32.mrf.mxu1 }
 0x334   : > { %v3655_v49 = vadd.f32 %v3654_v48, %v3566_v25  ;;  %v5645_v25 = vld [vmem:[%s6075_s24 + $0x4bc] sm:$0xf0] }
 0x336   : > { %v3744_v5 = vadd.f32 %v3743_v2, %v3655_v49  ;;  %v4754_v49 = vor.u32 %v5638_v26, %v4751_v23  ;;  %v5653_v26 = vld [vmem:[%s6075_s24 + $0x504] sm:$0xf]  ;;  %v4815_v23 = vld [vmem:[%s6075_s24 + $0x538] sm:$0xf0] }
 0x337   : > { %v3478_v17 = vpop.f32.mrf.mxu2 }
 0x338   : > { %v3567_v32 = vpop.f32.mrf.mxu3  ;;  %v3479_v58 = vadd.f32 %v3478_v17, %v6774_v42  ;;  %v3926_v48 = vadd.f32 %v7029_v21, %v3744_v5 }
 0x339   : > { %v3659_v16 = vpop.f32.mrf.mxu0 }
 0x33a   : > { %v3568_v47 = vadd.f32 %v3567_v32, %v3479_v58  ;;  %v4758_v58 = vor.u32 %v5646_v10, %v4757_v13 }
 0x33b   : > { %v3748_v46 = vpop.f32.mrf.mxu1 }
 0x33c   : > { %v3657_v14 = vadd.f32 %v3656_v63, %v3568_v47  ;;  %3520 = vmatmul.bf16.gmra.mxu2 %v4694_v41  ;;  %3698 = vmatmul.bf16.gmra.mxu0 %v4702_v39  ;;  %v4762_v41 = vor.u32 %v5639_v35, %v4759_v11 }
 0x33d   : > { %3609 = vmatmul.bf16.gmra.mxu3 %v4698_v36 }
 0x33e   : > { %5484 = vmatmul.msk.bf16.gmra.mxu1 %vm2528_vm0, %v4706_v52  ;;  %v3746_v42 = vadd.f32 %v3745_v20, %v3657_v14  ;;  %v4749_v20 = vld [vmem:[%s6075_s24 + $0x488] sm:$0xf] }
 0x33f   : > { %v3481_v22 = vpop.f32.mrf.mxu2  ;;  %v4750_v32 = vor.u32 %v5645_v25, %v4749_v20  ;;  %v4813_v20 = vld [vmem:[%s6075_s24 + $0x500] sm:$0xf]  ;;  %v5660_v25 = vld [vmem:[%s6075_s24 + $0x534] sm:$0xf0] }
 0x340   : > { %v3570_v7 = vpop.f32.mrf.mxu3  ;;  %v3927_v2 = vadd.f32 %v7029_v21, %v3746_v42  ;;  %v3482_v6 = vadd.f32 %v3481_v22, %v6785_v27 }
 0x341   : > { %v3661_v8 = vpop.f32.mrf.mxu0 }
 0x342   : > { %v5828_v3 = vpack.c.bf16 %v3927_v2, %v3926_v48  ;;  %v3571_v63 = vadd.f32 %v3570_v7, %v3482_v6 }
 0x343   : > { %v3750_v60 = vpop.f32.mrf.mxu1 }
 0x344   : > { %5829 = vst [vmem:[%s7039_s19] sm:$0xff] %v5828_v3   ;;  %v3660_v40 = vadd.f32 %v3659_v16, %v3571_v63  ;;  %v4805_v3 = vld [vmem:[%s6075_s24 + $0x4f8] sm:$0xf]  ;;  %v5652_v63 = vld [vmem:[%s6075_s24 + $0x4fc] sm:$0xf] }
 0x346   : > { %v3749_v47 = vadd.f32 %v3748_v46, %v3660_v40  ;;  %v4818_v40 = vor.u32 %v5653_v26, %v4815_v23 }
 0x347   : > { %v3483_v27 = vpop.f32.mrf.mxu2 }
 0x348   : > { %v3572_v29 = vpop.f32.mrf.mxu3  ;;  %v3484_v17 = vadd.f32 %v3483_v27, %v6794_v15  ;;  %v3928_v42 = vadd.f32 %v7029_v21, %v3749_v47 }
 0x349   : > { %v3664_v39 = vpop.f32.mrf.mxu0 }
 0x34a   : > { %v3573_v36 = vadd.f32 %v3572_v29, %v3484_v17  ;;  %v4814_v29 = vor.u32 %v5660_v25, %v4813_v20 }
 0x34b   : > { %v3753_v52 = vpop.f32.mrf.mxu1 }
 0x34c   : > { %v3662_v5 = vadd.f32 %v3661_v8, %v3573_v36  ;;  %3525 = vmatmul.bf16.gmra.mxu2 %v4750_v32  ;;  %3703 = vmatmul.bf16.gmra.mxu0 %v4758_v58  ;;  %v5659_v8 = vld [vmem:[%s6075_s24 + $0x52c] sm:$0xf0] }
 0x34d   : > { %3614 = vmatmul.bf16.gmra.mxu3 %v4754_v49  ;;  %v4806_v27 = vor.u32 %v5659_v8, %v4805_v3  ;;  %v5667_v3 = vld [vmem:[%s6075_s24 + $0x574] sm:$0xf]  ;;  %v4871_v8 = vld [vmem:[%s6075_s24 + $0x5a8] sm:$0xf0] }
 0x34e   : > { %5485 = vmatmul.msk.bf16.gmra.mxu1 %vm2528_vm0, %v4762_v41  ;;  %v3751_v15 = vadd.f32 %v3750_v60, %v3662_v5  ;;  %v4807_v60 = vld [vmem:[%s6075_s24 + $0x530] sm:$0xf0] }
 0x34f   : > { %v3486_v16 = vpop.f32.mrf.mxu2 }
 0x350   : > { %v3575_v14 = vpop.f32.mrf.mxu3  ;;  %v3929_v46 = vadd.f32 %v7029_v21, %v3751_v15  ;;  %v3487_v22 = vadd.f32 %v3486_v16, %v6808_v57  ;;  %v4810_v57 = vor.u32 %v5652_v63, %v4807_v60 }
 0x351   : > { %v3666_v48 = vpop.f32.mrf.mxu0 }
 0x352   : > { %v5833_v7 = vpack.c.bf16 %v3929_v46, %v3928_v42  ;;  %v3576_v6 = vadd.f32 %v3575_v14, %v3487_v22  ;;  %v4861_v46 = vld [vmem:[%s6075_s24 + $0x568] sm:$0xf]  ;;  %v5673_v22 = vld [vmem:[%s6075_s24 + $0x59c] sm:$0xf0] }
 0x353   : > { %v3755_v2 = vpop.f32.mrf.mxu1  ;;  %v4862_v26 = vor.u32 %v5673_v22, %v4861_v46 }
 0x354   : > { %5905 = vst [vmem:[%s7039_s19 + $0x8] sm:$0xff] %v5833_v7   ;;  %v3665_v35 = vadd.f32 %v3664_v39, %v3576_v6  ;;  %v5666_v7 = vld [vmem:[%s6075_s24 + $0x56c] sm:$0xf]  ;;  %v5674_v6 = vld [vmem:[%s6075_s24 + $0x5a4] sm:$0xf0] }
 0x356   : > { %v3754_v58 = vadd.f32 %v3753_v52, %v3665_v35 }
 0x357   : > { %v3488_v13 = vpop.f32.mrf.mxu2 }
 0x358   : > { %v3577_v10 = vpop.f32.mrf.mxu3  ;;  %v3489_v11 = vadd.f32 %v3488_v13, %v6814_v30  ;;  %v3930_v47 = vadd.f32 %v7029_v21, %v3754_v58  ;;  %v4874_v13 = vor.u32 %v5667_v3, %v4871_v8 }
 0x359   : > { %v3669_v32 = vpop.f32.mrf.mxu0 }
 0x35a   : > { %v3578_v17 = vadd.f32 %v3577_v10, %v3489_v11 }
 0x35b   : > { %v3758_v49 = vpop.f32.mrf.mxu1 }
 0x35c   : > { %v3667_v41 = vadd.f32 %v3666_v48, %v3578_v17  ;;  %3530 = vmatmul.bf16.gmra.mxu2 %v4806_v27  ;;  %3708 = vmatmul.bf16.gmra.mxu0 %v4814_v29  ;;  %v4863_v48 = vld [vmem:[%s6075_s24 + $0x5a0] sm:$0xf0] }
 0x35d   : > { %3619 = vmatmul.bf16.gmra.mxu3 %v4810_v57 }
 0x35e   : > { %5486 = vmatmul.msk.bf16.gmra.mxu1 %vm2528_vm0, %v4818_v40  ;;  %v3756_v30 = vadd.f32 %v3755_v2, %v3667_v41  ;;  %v4869_v2 = vld [vmem:[%s6075_s24 + $0x570] sm:$0xf] }
 0x35f   : > { %v3491_v36 = vpop.f32.mrf.mxu2  ;;  %v4870_v23 = vor.u32 %v5674_v6, %v4869_v2 }
 0x360   : > { %v3580_v39 = vpop.f32.mrf.mxu3  ;;  %v3931_v52 = vadd.f32 %v7029_v21, %v3756_v30  ;;  %v3492_v5 = vadd.f32 %v3491_v36, %v6825_v18  ;;  %v4866_v18 = vor.u32 %v5666_v7, %v4863_v48 }
 0x361   : > { %v3671_v16 = vpop.f32.mrf.mxu0 }
 0x362   : > { %v5838_v15 = vpack.c.bf16 %v3931_v52, %v3930_v47  ;;  %v3581_v42 = vadd.f32 %v3580_v39, %v3492_v5  ;;  %v4917_v39 = vld [vmem:[%s6075_s24 + $0x5d8] sm:$0xf]  ;;  %v5687_v47 = vld [vmem:[%s6075_s24 + $0x60c] sm:$0xf0]  ;;  %v5680_v52 = vld [vmem:[%s6075_s24 + $0x5dc] sm:$0xf] }
 0x363   : > { %v3760_v14 = vpop.f32.mrf.mxu1  ;;  %v4919_v5 = vld [vmem:[%s6075_s24 + $0x610] sm:$0xf0]  ;;  %v4918_v2 = vor.u32 %v5687_v47, %v4917_v39 }
 0x364   : > { %5906 = vst [vmem:[%s7039_s19 + $0x10] sm:$0xff] %v5838_v15   ;;  %v3670_v20 = vadd.f32 %v3669_v32, %v3581_v42  ;;  %v4925_v15 = vld [vmem:[%s6075_s24 + $0x5e0] sm:$0xf]  ;;  %v4927_v42 = vld [vmem:[%s6075_s24 + $0x618] sm:$0xf0] }
 0x366   : > { %v3759_v27 = vadd.f32 %v3758_v49, %v3670_v20 }
 0x367   : > { %v3493_v63 = vpop.f32.mrf.mxu2 }
 0x368   : > { %v3582_v60 = vpop.f32.mrf.mxu3  ;;  %v3494_v25 = vadd.f32 %v3493_v63, %v6834_v12  ;;  %v3932_v17 = vadd.f32 %v7029_v21, %v3759_v27 }
 0x369   : > { %v3674_v35 = vpop.f32.mrf.mxu0 }
 0x36a   : > { %v3583_v10 = vadd.f32 %v3582_v60, %v3494_v25 }
 0x36b   : > { %v3763_v11 = vpop.f32.mrf.mxu1 }
 0x36c   : > { %v3672_v57 = vadd.f32 %v3671_v16, %v3583_v10  ;;  %3535 = vmatmul.bf16.gmra.mxu2 %v4862_v26  ;;  %3713 = vmatmul.bf16.gmra.mxu0 %v4870_v23  ;;  %v5688_v16 = vld [vmem:[%s6075_s24 + $0x614] sm:$0xf0] }
 0x36d   : > { %3624 = vmatmul.bf16.gmra.mxu3 %v4866_v18  ;;  %v4926_v6 = vor.u32 %v5688_v16, %v4925_v15 }
 0x36e   : > { %5487 = vmatmul.msk.bf16.gmra.mxu1 %vm2528_vm0, %v4874_v13  ;;  %v3761_v12 = vadd.f32 %v3760_v14, %v3672_v57  ;;  %v5681_v14 = vld [vmem:[%s6075_s24 + $0x5e4] sm:$0xf] }
 0x36f   : > { %v3496_v29 = vpop.f32.mrf.mxu2  ;;  %v4930_v3 = vor.u32 %v5681_v14, %v4927_v42 }
 0x370   : > { %v3585_v40 = vpop.f32.mrf.mxu3  ;;  %v3933_v32 = vadd.f32 %v7029_v21, %v3761_v12  ;;  %v3497_v49 = vadd.f32 %v3496_v29, %v6848_v24  ;;  %v4922_v24 = vor.u32 %v5680_v52, %v4919_v5  ;;  %v4973_v12 = vld [vmem:[%s6075_s24 + $0x648] sm:$0xf]  ;;  %v5701_v29 = vld [vmem:[%s6075_s24 + $0x67c] sm:$0xf0] }
 0x371   : > { %v3676_v41 = vpop.f32.mrf.mxu0  ;;  %v4974_v52 = vor.u32 %v5701_v29, %v4973_v12 }
 0x372   : > { %v5843_v58 = vpack.c.bf16 %v3933_v32, %v3932_v17  ;;  %v3586_v36 = vadd.f32 %v3585_v40, %v3497_v49  ;;  %v5694_v40 = vld [vmem:[%s6075_s24 + $0x64c] sm:$0xf]  ;;  %v4975_v17 = vld [vmem:[%s6075_s24 + $0x680] sm:$0xf0]  ;;  %v4981_v32 = vld [vmem:[%s6075_s24 + $0x650] sm:$0xf] }
 0x373   : > { %v3765_v30 = vpop.f32.mrf.mxu1  ;;  %v5702_v49 = vld [vmem:[%s6075_s24 + $0x684] sm:$0xf0] }
 0x374   : > { %5907 = vst [vmem:[%s7039_s19 + $0x18] sm:$0xff] %v5843_v58   ;;  %v3675_v7 = vadd.f32 %v3674_v35, %v3586_v36  ;;  %v5695_v58 = vld [vmem:[%s6075_s24 + $0x654] sm:$0xf]  ;;  %v4982_v5 = vor.u32 %v5702_v49, %v4981_v32 }
 0x376   : > { %v3764_v20 = vadd.f32 %v3763_v11, %v3675_v7 }
 0x377   : > { %v3498_v46 = vpop.f32.mrf.mxu2 }
 0x378   : > { %v3587_v22 = vpop.f32.mrf.mxu3  ;;  %v3499_v48 = vadd.f32 %v3498_v46, %v6851_v28  ;;  %v3934_v23 = vadd.f32 %v7029_v21, %v3764_v20  ;;  %v5029_v20 = vld [vmem:[%s6075_s24 + $0x6b8] sm:$0xf] }
 0x379   : > { %v3679_v63 = vpop.f32.mrf.mxu0 }
 0x37a   : > { %v3588_v8 = vadd.f32 %v3587_v22, %v3499_v48 }
 0x37b   : > { %v3768_v60 = vpop.f32.mrf.mxu1 }
 0x37c   : > { %v3677_v25 = vadd.f32 %v3676_v41, %v3588_v8  ;;  %3540 = vmatmul.bf16.gmra.mxu2 %v4918_v2  ;;  %3718 = vmatmul.bf16.gmra.mxu0 %v4926_v6  ;;  %v4983_v41 = vld [vmem:[%s6075_s24 + $0x688] sm:$0xf0] }
 0x37d   : > { %3629 = vmatmul.bf16.gmra.mxu3 %v4922_v24  ;;  %v4986_v15 = vor.u32 %v5695_v58, %v4983_v41 }
 0x37e   : > { %5488 = vmatmul.msk.bf16.gmra.mxu1 %vm2528_vm0, %v4930_v3  ;;  %v3766_v28 = vadd.f32 %v3765_v30, %v3677_v25  ;;  %v5715_v25 = vld [vmem:[%s6075_s24 + $0x6ec] sm:$0xf0] }
 0x37f   : > { %v3501_v26 = vpop.f32.mrf.mxu2  ;;  %v5030_v12 = vor.u32 %v5715_v25, %v5029_v20 }
 0x380   : > { %v3590_v18 = vpop.f32.mrf.mxu3  ;;  %v3935_v13 = vadd.f32 %v7029_v21, %v3766_v28  ;;  %v3502_v10 = vadd.f32 %v3501_v26, %v6862_v33  ;;  %v4978_v33 = vor.u32 %v5694_v40, %v4975_v17  ;;  %v5708_v28 = vld [vmem:[%s6075_s24 + $0x6bc] sm:$0xf]  ;;  %v5031_v26 = vld [vmem:[%s6075_s24 + $0x6f0] sm:$0xf0] }
 0x381   : > { %v3681_v11 = vpop.f32.mrf.mxu0 }
 0x382   : > { %v5848_v35 = vpack.c.bf16 %v3935_v13, %v3934_v23  ;;  %v3591_v57 = vadd.f32 %v3590_v18, %v3502_v10  ;;  %v5037_v18 = vld [vmem:[%s6075_s24 + $0x6c0] sm:$0xf]  ;;  %v5716_v23 = vld [vmem:[%s6075_s24 + $0x6f4] sm:$0xf0]  ;;  %v5709_v13 = vld [vmem:[%s6075_s24 + $0x6c4] sm:$0xf] }
 0x383   : > { %v3770_v27 = vpop.f32.mrf.mxu1  ;;  %v5039_v10 = vld [vmem:[%s6075_s24 + $0x6f8] sm:$0xf0]  ;;  %v5038_v29 = vor.u32 %v5716_v23, %v5037_v18 }
 0x384   : > { %5908 = vst [vmem:[%s7039_s19 + $0x20] sm:$0xff] %v5848_v35   ;;  %v3680_v39 = vadd.f32 %v3679_v63, %v3591_v57  ;;  %v5042_v40 = vor.u32 %v5709_v13, %v5039_v10 }
 0x386   : > { %v3769_v46 = vadd.f32 %v3768_v60, %v3680_v39 }
 0x387   : > { %v3503_v30 = vpop.f32.mrf.mxu2 }
 0x388   : > { %v3592_v36 = vpop.f32.mrf.mxu3  ;;  %v3504_v47 = vadd.f32 %v3503_v30, %v6865_v53  ;;  %v3936_v2 = vadd.f32 %v7029_v21, %v3769_v46 }
 0x389   : > { %v3684_v14 = vpop.f32.mrf.mxu0 }
 0x38a   : > { %v3593_v16 = vadd.f32 %v3592_v36, %v3504_v47 }
 0x38b   : > { %v3773_v42 = vpop.f32.mrf.mxu1 }
 0x38c   : > { %v3682_v22 = vadd.f32 %v3681_v11, %v3593_v16  ;;  %3545 = vmatmul.bf16.gmra.mxu2 %v4974_v52  ;;  %3723 = vmatmul.bf16.gmra.mxu0 %v4982_v5 }
 0x38d   : > { %3634 = vmatmul.bf16.gmra.mxu3 %v4978_v33 }
 0x38e   : > { %5489 = vmatmul.msk.bf16.gmra.mxu1 %vm2528_vm0, %v4986_v15  ;;  %v3771_v53 = vadd.f32 %v3770_v27, %v3682_v22 }
 0x38f   : > { %v3506_v7 = vpop.f32.mrf.mxu2 }
 0x390   : > { %v3595_v48 = vpop.f32.mrf.mxu3  ;;  %v3937_v24 = vadd.f32 %v7029_v21, %v3771_v53  ;;  %v3507_v6 = vadd.f32 %v3506_v7, %v6876_v4  ;;  %v5034_v4 = vor.u32 %v5708_v28, %v5031_v26 }
 0x391   : > { %v3686_v8 = vpop.f32.mrf.mxu0 }
 0x392   : > { %v5853_v3 = vpack.c.bf16 %v3937_v24, %v3936_v2  ;;  %v3596_v60 = vadd.f32 %v3595_v48, %v3507_v6 }
 0x393   : > { %v3775_v63 = vpop.f32.mrf.mxu1 }
 0x394   : > { %5909 = vst [vmem:[%s7039_s19 + $0x28] sm:$0xff] %v5853_v3   ;;  %v3685_v27 = vadd.f32 %v3684_v14, %v3596_v60 }
 0x396   : > { %v3774_v58 = vadd.f32 %v3773_v42, %v3685_v27 }
 0x397   : > { %v3508_v35 = vpop.f32.mrf.mxu2 }
 0x398   : > { %v3597_v11 = vpop.f32.mrf.mxu3  ;;  %v3509_v57 = vadd.f32 %v3508_v35, %v6879_v37  ;;  %v3938_v37 = vadd.f32 %v7029_v21, %v3774_v58 }
 0x399   : > { %v3689_v32 = vpop.f32.mrf.mxu0 }
 0x39a   : > { %v3598_v17 = vadd.f32 %v3597_v11, %v3509_v57 }
 0x39b   : > { %v3778_v49 = vpop.f32.mrf.mxu1 }
 0x39c   : > { %v3687_v41 = vadd.f32 %v3686_v8, %v3598_v17  ;;  %3550 = vmatmul.bf16.gmra.mxu2 %v5030_v12  ;;  %3728 = vmatmul.bf16.gmra.mxu0 %v5038_v29 }
 0x39d   : > { %3639 = vmatmul.bf16.gmra.mxu3 %v5034_v4 }
 0x39e   : > { %5490 = vmatmul.msk.bf16.gmra.mxu1 %vm2528_vm0, %v5042_v40  ;;  %v3776_v30 = vadd.f32 %v3775_v63, %v3687_v41 }
 0x39f   : > { %v3511_v36 = vpop.f32.mrf.mxu2 }
 0x3a0   : > { %v3600_v39 = vpop.f32.mrf.mxu3  ;;  %v3939_v47 = vadd.f32 %v7029_v21, %v3776_v30  ;;  %v3512_v52 = vadd.f32 %v3511_v36, %v6890_v62 }
 0x3a1   : > { %v3691_v5 = vpop.f32.mrf.mxu0 }
 0x3a2   : > { %v5858_v33 = vpack.c.bf16 %v3939_v47, %v3938_v37  ;;  %v3601_v16 = vadd.f32 %v3600_v39, %v3512_v52 }
 0x3a3   : > { %v3780_v15 = vpop.f32.mrf.mxu1 }
 0x3a4   : > { %5910 = vst [vmem:[%s7039_s19 + $0x30] sm:$0xff] %v5858_v33   ;;  %v3690_v46 = vadd.f32 %v3689_v32, %v3601_v16 }
 0x3a6   : > { %v3779_v2 = vadd.f32 %v3778_v49, %v3690_v46 }
 0x3a7   : > { %v3513_v14 = vpop.f32.mrf.mxu2 }
 0x3a8   : > { %v3602_v42 = vpop.f32.mrf.mxu3  ;;  %v3514_v22 = vadd.f32 %v3513_v14, %v6894_v55  ;;  %v3940_v62 = vadd.f32 %v7029_v21, %v3779_v2 }
 0x3a9   : > { %v3694_v7 = vpop.f32.mrf.mxu0 }
 0x3aa   : > { %v3603_v53 = vadd.f32 %v3602_v42, %v3514_v22 }
 0x3ab   : > { %v3783_v48 = vpop.f32.mrf.mxu1 }
 0x3ac   : > { %v3692_v24 = vadd.f32 %v3691_v5, %v3603_v53 }
 0x3ae   : > { %v3781_v6 = vadd.f32 %v3780_v15, %v3692_v24 }
 0x3af   : > { %v3516_v3 = vpop.f32.mrf.mxu2 }
 0x3b0   : > { %v3605_v8 = vpop.f32.mrf.mxu3  ;;  %v3941_v63 = vadd.f32 %v7029_v21, %v3781_v6  ;;  %v3517_v60 = vadd.f32 %v3516_v3, %v6905_v9 }
 0x3b1   : > { %v3696_v25 = vpop.f32.mrf.mxu0 }
 0x3b2   : > { %v5863_v20 = vpack.c.bf16 %v3941_v63, %v3940_v62  ;;  %v3606_v26 = vadd.f32 %v3605_v8, %v3517_v60 }
 0x3b3   : > { %v3785_v28 = vpop.f32.mrf.mxu1 }
 0x3b4   : > { %5911 = vst [vmem:[%s7039_s19 + $0x38] sm:$0xff] %v5863_v20   ;;  %v3695_v23 = vadd.f32 %v3694_v7, %v3606_v26 }
 0x3b6   : > { %v3784_v27 = vadd.f32 %v3783_v48, %v3695_v23 }
 0x3b7   : > { %v3518_v55 = vpop.f32.mrf.mxu2 }
 0x3b8   : > { %v3607_v18 = vpop.f32.mrf.mxu3  ;;  %v3519_v13 = vadd.f32 %v3518_v55, %v6909_v54  ;;  %v3942_v9 = vadd.f32 %v7029_v21, %v3784_v27 }
 0x3b9   : > { %v3699_v35 = vpop.f32.mrf.mxu0 }
 0x3ba   : > { %v3608_v10 = vadd.f32 %v3607_v18, %v3519_v13 }
 0x3bb   : > { %v3788_v11 = vpop.f32.mrf.mxu1 }
 0x3bc   : > { %v3697_v57 = vadd.f32 %v3696_v25, %v3608_v10 }
 0x3be   : > { %v3786_v12 = vadd.f32 %v3785_v28, %v3697_v57 }
 0x3bf   : > { %v3521_v4 = vpop.f32.mrf.mxu2 }
 0x3c0   : > { %v3610_v29 = vpop.f32.mrf.mxu3  ;;  %v3943_v40 = vadd.f32 %v7029_v21, %v3786_v12  ;;  %v3522_v17 = vadd.f32 %v3521_v4, %v6920_v31 }
 0x3c1   : > { %v3701_v49 = vpop.f32.mrf.mxu0 }
 0x3c2   : > { %v5868_v32 = vpack.c.bf16 %v3943_v40, %v3942_v9  ;;  %v3611_v41 = vadd.f32 %v3610_v29, %v3522_v17 }
 0x3c3   : > { %v3790_v58 = vpop.f32.mrf.mxu1 }
 0x3c4   : > { %5912 = vst [vmem:[%s7039_s19 + $0x40] sm:$0xff] %v5868_v32   ;;  %v3700_v36 = vadd.f32 %v3699_v35, %v3611_v41 }
 0x3c6   : > { %v3789_v33 = vadd.f32 %v3788_v11, %v3700_v36 }
 0x3c7   : > { %v3523_v54 = vpop.f32.mrf.mxu2 }
 0x3c8   : > { %v3612_v30 = vpop.f32.mrf.mxu3  ;;  %v3524_v39 = vadd.f32 %v3523_v54, %v6924_v38  ;;  %v3944_v31 = vadd.f32 %v7029_v21, %v3789_v33 }
 0x3c9   : > { %v3704_v47 = vpop.f32.mrf.mxu0 }
 0x3ca   : > { %v3613_v37 = vadd.f32 %v3612_v30, %v3524_v39 }
 0x3cb   : > { %v3793_v52 = vpop.f32.mrf.mxu1 }
 0x3cc   : > { %v3702_v5 = vadd.f32 %v3701_v49, %v3613_v37 }
 0x3ce   : > { %v3791_v15 = vadd.f32 %v3790_v58, %v3702_v5 }
 0x3cf   : > { %v3526_v16 = vpop.f32.mrf.mxu2 }
 0x3d0   : > { %v3615_v14 = vpop.f32.mrf.mxu3  ;;  %v3945_v42 = vadd.f32 %v7029_v21, %v3791_v15  ;;  %v3527_v46 = vadd.f32 %v3526_v16, %v6935_v50 }
 0x3d1   : > { %v3706_v53 = vpop.f32.mrf.mxu0 }
 0x3d2   : > { %v5873_v22 = vpack.c.bf16 %v3945_v42, %v3944_v31  ;;  %v3616_v48 = vadd.f32 %v3615_v14, %v3527_v46 }
 0x3d3   : > { %v3795_v7 = vpop.f32.mrf.mxu1 }
 0x3d4   : > { %5913 = vst [vmem:[%s7039_s19 + $0x48] sm:$0xff] %v5873_v22   ;;  %v3705_v24 = vadd.f32 %v3704_v47, %v3616_v48 }
 0x3d6   : > { %v3794_v63 = vadd.f32 %v3793_v52, %v3705_v24 }
 0x3d7   : > { %v3528_v38 = vpop.f32.mrf.mxu2 }
 0x3d8   : > { %v3617_v2 = vpop.f32.mrf.mxu3  ;;  %v3529_v6 = vadd.f32 %v3528_v38, %v6939_v45  ;;  %v3946_v50 = vadd.f32 %v7029_v21, %v3794_v63 }
 0x3d9   : > { %v3709_v8 = vpop.f32.mrf.mxu0 }
 0x3da   : > { %v3618_v3 = vadd.f32 %v3617_v2, %v3529_v6 }
 0x3db   : > { %v3798_v62 = vpop.f32.mrf.mxu1 }
 0x3dc   : > { %v3707_v60 = vadd.f32 %v3706_v53, %v3618_v3 }
 0x3de   : > { %v3796_v20 = vadd.f32 %v3795_v7, %v3707_v60 }
 0x3df   : > { %v3531_v25 = vpop.f32.mrf.mxu2 }
 0x3e0   : > { %v3620_v28 = vpop.f32.mrf.mxu3  ;;  %v3947_v26 = vadd.f32 %v7029_v21, %v3796_v20  ;;  %v3532_v55 = vadd.f32 %v3531_v25, %v6950_v43 }
 0x3e1   : > { %v3711_v23 = vpop.f32.mrf.mxu0 }
 0x3e2   : > { %v5878_v18 = vpack.c.bf16 %v3947_v26, %v3946_v50  ;;  %v3621_v10 = vadd.f32 %v3620_v28, %v3532_v55 }
 0x3e3   : > { %v3800_v13 = vpop.f32.mrf.mxu1 }
 0x3e4   : > { %5914 = vst [vmem:[%s7039_s19 + $0x50] sm:$0xff] %v5878_v18   ;;  %v3710_v11 = vadd.f32 %v3709_v8, %v3621_v10 }
 0x3e6   : > { %v3799_v29 = vadd.f32 %v3798_v62, %v3710_v11 }
 0x3e7   : > { %v3533_v45 = vpop.f32.mrf.mxu2 }
 0x3e8   : > { %v3622_v35 = vpop.f32.mrf.mxu3  ;;  %v3534_v27 = vadd.f32 %v3533_v45, %v6954_v1  ;;  %v3948_v43 = vadd.f32 %v7029_v21, %v3799_v29 }
 0x3e9   : > { %v3714_v12 = vpop.f32.mrf.mxu0 }
 0x3ea   : > { %v3623_v57 = vadd.f32 %v3622_v35, %v3534_v27 }
 0x3eb   : > { %v3803_v4 = vpop.f32.mrf.mxu1 }
 0x3ec   : > { %v3712_v9 = vadd.f32 %v3711_v23, %v3623_v57 }
 0x3ee   : > { %v3801_v40 = vadd.f32 %v3800_v13, %v3712_v9 }
 0x3ef   : > { %v3536_v17 = vpop.f32.mrf.mxu2 }
 0x3f0   : > { %v3625_v32 = vpop.f32.mrf.mxu3  ;;  %v3949_v49 = vadd.f32 %v7029_v21, %v3801_v40  ;;  %v3537_v58 = vadd.f32 %v3536_v17, %v6965_v34 }
 0x3f1   : > { %v3716_v54 = vpop.f32.mrf.mxu0 }
 0x3f2   : > { %v5883_v41 = vpack.c.bf16 %v3949_v49, %v3948_v43  ;;  %v3626_v36 = vadd.f32 %v3625_v32, %v3537_v58 }
 0x3f3   : > { %v3805_v30 = vpop.f32.mrf.mxu1 }
 0x3f4   : > { %5915 = vst [vmem:[%s7039_s19 + $0x58] sm:$0xff] %v5883_v41   ;;  %v3715_v37 = vadd.f32 %v3714_v12, %v3626_v36 }
 0x3f6   : > { %v3804_v15 = vadd.f32 %v3803_v4, %v3715_v37 }
 0x3f7   : > { %v3538_v1 = vpop.f32.mrf.mxu2 }
 0x3f8   : > { %v3627_v39 = vpop.f32.mrf.mxu3  ;;  %v3539_v47 = vadd.f32 %v3538_v1, %v6969_v44  ;;  %v3950_v34 = vadd.f32 %v7029_v21, %v3804_v15 }
 0x3f9   : > { %v3719_v33 = vpop.f32.mrf.mxu0 }
 0x3fa   : > { %v3628_v52 = vadd.f32 %v3627_v39, %v3539_v47 }
 0x3fb   : > { %v3808_v5 = vpop.f32.mrf.mxu1 }
 0x3fc   : > { %v3717_v16 = vadd.f32 %v3716_v54, %v3628_v52 }
 0x3fe   : > { %v3806_v14 = vadd.f32 %v3805_v30, %v3717_v16 }
 0x3ff   : > { %v3541_v31 = vpop.f32.mrf.mxu2 }
 0x400   : > { %v3630_v42 = vpop.f32.mrf.mxu3  ;;  %v3951_v46 = vadd.f32 %v7029_v21, %v3806_v14  ;;  %v3542_v22 = vadd.f32 %v3541_v31, %v6980_v19 }
 0x401   : > { %v3721_v7 = vpop.f32.mrf.mxu0 }
 0x402   : > { %v5888_v53 = vpack.c.bf16 %v3951_v46, %v3950_v34  ;;  %v3631_v48 = vadd.f32 %v3630_v42, %v3542_v22 }
 0x403   : > { %v3810_v38 = vpop.f32.mrf.mxu1 }
 0x404   : > { %5916 = vst [vmem:[%s7039_s19 + $0x60] sm:$0xff] %v5888_v53   ;;  %v3720_v24 = vadd.f32 %v3719_v33, %v3631_v48 }
 0x406   : > { %v3809_v8 = vadd.f32 %v3808_v5, %v3720_v24 }
 0x407   : > { %v3543_v44 = vpop.f32.mrf.mxu2 }
 0x408   : > { %v3632_v2 = vpop.f32.mrf.mxu3  ;;  %v3544_v6 = vadd.f32 %v3543_v44, %v6984_v0  ;;  %v3952_v19 = vadd.f32 %v7029_v21, %v3809_v8 }
 0x409   : > { %v3724_v63 = vpop.f32.mrf.mxu0 }
 0x40a   : > { %v3633_v3 = vadd.f32 %v3632_v2, %v3544_v6 }
 0x40b   : > { %v3813_v20 = vpop.f32.mrf.mxu1 }
 0x40c   : > { %v3722_v62 = vadd.f32 %v3721_v7, %v3633_v3 }
 0x40e   : > { %v3811_v60 = vadd.f32 %v3810_v38, %v3722_v62 }
 0x40f   : > { %v3546_v25 = vpop.f32.mrf.mxu2 }
 0x410   : > { %v3635_v28 = vpop.f32.mrf.mxu3  ;;  %v3953_v50 = vadd.f32 %v7029_v21, %v3811_v60  ;;  %v3547_v26 = vadd.f32 %v3546_v25, %v6995_v61 }
 0x411   : > { %v3726_v23 = vpop.f32.mrf.mxu0 }
 0x412   : > { %v5893_v55 = vpack.c.bf16 %v3953_v50, %v3952_v19  ;;  %v3636_v18 = vadd.f32 %v3635_v28, %v3547_v26 }
 0x413   : > { %v3815_v35 = vpop.f32.mrf.mxu1 }
 0x414   : > { %5917 = vst [vmem:[%s7039_s19 + $0x68] sm:$0xff] %v5893_v55   ;;  %v3725_v10 = vadd.f32 %v3724_v63, %v3636_v18 }
 0x416   : > { %v3814_v27 = vadd.f32 %v3813_v20, %v3725_v10 }
 0x417   : > { %v3548_v13 = vpop.f32.mrf.mxu2 }
 0x418   : > { %v3637_v0 = vpop.f32.mrf.mxu3  ;;  %v3549_v45 = vadd.f32 %v3548_v13, %v6999_v56  ;;  %v3954_v9 = vadd.f32 %v7029_v21, %v3814_v27 }
 0x419   : > { %v3729_v17 = vpop.f32.mrf.mxu0 }
 0x41a   : > { %v3638_v11 = vadd.f32 %v3637_v0, %v3549_v45 }
 0x41b   : > { %v3818_v43 = vpop.f32.mrf.mxu1 }
 0x41c   : > { %v3727_v57 = vadd.f32 %v3726_v23, %v3638_v11 }
 0x41e   : > { %v3816_v12 = vadd.f32 %v3815_v35, %v3727_v57 }
 0x41f   : > { %v3551_v4 = vpop.f32.mrf.mxu2 }
 0x420   : > { %v3640_v29 = vpop.f32.mrf.mxu3  ;;  %v3955_v61 = vadd.f32 %v7029_v21, %v3816_v12  ;;  %v3552_v40 = vadd.f32 %v3551_v4, %v7010_v51 }
 0x421   : > { %v3731_v36 = vpop.f32.mrf.mxu0 }
 0x422   : > { %v5898_v32 = vpack.c.bf16 %v3955_v61, %v3954_v9  ;;  %v3641_v49 = vadd.f32 %v3640_v29, %v3552_v40 }
 0x423   : > { %v3820_v37 = vpop.f32.mrf.mxu1 }
 0x424   : > { %5918 = vst [vmem:[%s7039_s19 + $0x70] sm:$0xff] %v5898_v32   ;;  %v3730_v58 = vadd.f32 %v3729_v17, %v3641_v49 }
 0x426   : > { %v3819_v1 = vadd.f32 %v3818_v43, %v3730_v58 }
 0x427   : > { %v3553_v56 = vpop.f32.mrf.mxu2 }
 0x428   : > { %v3554_v41 = vadd.f32 %v3553_v56, %v7014_v59  ;;  %v3642_v54 = vpop.f32.mrf.mxu3  ;;  %v3956_v52 = vadd.f32 %v7029_v21, %v3819_v1 }
 0x42a   : > { %v3643_v30 = vadd.f32 %v3642_v54, %v3554_v41 }
 0x42c   : > { %v3732_v39 = vadd.f32 %v3731_v36, %v3643_v30 }
 0x42e   : > { %v3821_v47 = vadd.f32 %v3820_v37, %v3732_v39 }
 0x430   : > { %v3957_v51 = vadd.f32 %v7029_v21, %v3821_v47 }
 0x432   : > { %v5903_v33 = vpack.c.bf16 %v3957_v51, %v3956_v52 }
 0x434   : > { %5919 = vst [vmem:[%s7039_s19 + $0x78] sm:$0xff] %v5903_v33  }
 0x435 PF: > { %s13_s14 = sadd.s32 1, %s5984_s14   ;;  %s7183_s12 = smov %s5980_s13 }
 0x436   : > { %p10_p5 = scmp.ge.s32.totalorder %s13_s14, 4   ;;  %s7184_s13 = smov %s7186_s15 }
 0x438   :  { %12 = sbr.rel (!%p10_p5) target bundleno = 2 (0x2), region = 76 }

// kernel: resblock_down_forward.5
= control target key start
LH: loop header
LB: loop body
LE: loop exit
PB: predicated region body
PF: predicated region fallthrough
CT: control target
= control target key end

     0   :  { %s8266_s24 = smov 0   ;;  %s8268_s25 = smov 0   ;;  %s10181_s0 = inlined_call_operand.vmem [shape: bf16[2,10,288,192], index: 0, kind: input, shape index: {}, may-alias: {0,1,2}]   ;;  %s10182_s1 = inlined_call_operand.vmem [shape: bf16[2,10,288,192], index: 1, kind: input, shape index: {}, may-alias: {0,1,2}]   ;;  %s10183_s2 = inlined_call_operand.vmem [shape: bf16[2,10,288,192], index: 2, kind: input, shape index: {}, may-alias: {0,1,2}]   ;;  %s10184_s3 = inlined_call_operand.vmem [shape: bf16[9,192,64], index: 3, kind: input, shape index: {}]   ;;  %s10185_s4 = inlined_call_operand.vmem [shape: f32[1,64], index: 4, kind: input, shape index: {}]   ;;  %s10186_s5 = inlined_call_operand.vmem [shape: bf16[2,8,256,64], index: 5, kind: output, shape index: {0}]   ;;  %s10187_s6 = inlined_call_operand.vmem [shape: f32[2,8,1,64], index: 6, kind: output, shape index: {1}]   ;;  %s10188_s7 = inlined_call_operand.vmem [shape: f32[2,8,1,64], index: 7, kind: output, shape index: {2}]  }
   0x1   :  { %s8270_s26 = smov 0   ;;  %s8272_s27 = smov 0  }
   0x2   :  { %s8274_s28 = smov 0  }
   0x3 LB: > { %s33_s29 = sadd.s32 1, %s8216_s26  ;;  %s37_s30 = sadd.s32 1, %s8220_s27  ;;  %s8224_s28 = sphi %s8274_s28, %s18_s28   ;;  %s8220_s27 = sphi %s8272_s27, %s10236_s27   ;;  %s8216_s26 = sphi %s8270_s26, %s10235_s26   ;;  %s8212_s25 = sphi %s8268_s25, %s10234_s25   ;;  %s8208_s24 = sphi %s8266_s24, %s10233_s24  }
   0x4   : > { %p35_p0 = scmp.ge.s32.totalorder %s33_s29, 8  ;;  %p5805_p1 = scmp.ge.s32.totalorder %s8224_s28, 1 }
   0x5   : > { %p336_p2 = scmp.lt.s32.totalorder %s8224_s28, 17 }
   0x6   : > { %s10238_s29 = smov (%p35_p0, %s33_s29), 0  ;;  %s10240_s30 = smov (!%p35_p0, %s37_s30), %s8220_s27 }
   0x7   : > { %p337_p3 = pnand %p5805_p1, %p336_p2  ;;  %p39_p4 = scmp.ge.s32.totalorder %s10240_s30, 2 }
   0x9   : > { %s10242_s30 = smov (%p39_p4, %s10240_s30), 0  ;;  %340 = sbr.rel (%p337_p3) target bundleno = 1347 (0x543), region = 40 }
   0xe   : > { %v7775_v0 = vld [vmem:[%s10184_s3 + $0x38] sm:$0xff]  ;;  %p426_p5 = scmp.lt.s32.totalorder %s8212_s25, 1  ;;  %p428_p6 = scmp.lt.s32.totalorder %s8208_s24, 9  ;;  %v7774_v4 = vld [vmem:[%s10184_s3 + $0x30] sm:$0xff]  ;;  %v7773_v8 = vld [vmem:[%s10184_s3 + $0x28] sm:$0xff]  ;;  %vm774_vm0 = vcmask 523264  }
   0xf   : > { %v8304_v1 = vld [vmem:[%s10184_s3 + $0x58] sm:$0xff]  ;;  %823 = vmatpush.bf16.msra.mxu0 %v7775_v0  ;;  %v8322_v5 = vld [vmem:[%s10184_s3 + $0x50] sm:$0xff]  ;;  %v8346_v9 = vld [vmem:[%s10184_s3 + $0x48] sm:$0xff]  ;;  %s435_s21 = sadd.s32 1, %s8208_s24  ;;  %s446_s11 = sadd.s32 2, %s8208_s24  ;;  %vm5313_vm1 = vcmask 519168  }
  0x10   : > { %v7819_v2 = vld [vmem:[%s10184_s3 + $0x98] sm:$0xff]  ;;  %8132 = vmatpush.bf16.msra.mxu1 %v8304_v1  ;;  %s10244_s25 = smov (!%p426_p5, %s8212_s25), 1  ;;  %v7818_v6 = vld [vmem:[%s10184_s3 + $0x90] sm:$0xff]  ;;  %v7817_v10 = vld [vmem:[%s10184_s3 + $0x88] sm:$0xff]  ;;  %p438_p7 = scmp.lt.s32.totalorder %s435_s21, 9  ;;  %vm5415_vm2 = vcmask 516096  }
  0x11   : > { %v8313_v3 = vld [vmem:[%s10184_s3 + $0xb8] sm:$0xff]  ;;  %1354 = vmatpush.bf16.msra.mxu2 %v7819_v2  ;;  %v8333_v7 = vld [vmem:[%s10184_s3 + $0xb0] sm:$0xff]  ;;  %s429_s8 = scalar_select %p428_p6, %s8208_s24, 9  ;;  %v8355_v11 = vld [vmem:[%s10184_s3 + $0xa8] sm:$0xff] }
  0x12   : > { %8136 = vmatpush.bf16.msra.mxu3 %v8313_v3  ;;  %s8337_s9 = smul.u32 720, %s10244_s25  ;;  %v7772_v12 = vld [vmem:[%s10184_s3 + $0x20] sm:$0xff]  ;;  %v7867_v20 = vld [vmem:[%s10184_s3 + $0x118] sm:$0xff]  ;;  %v7862_v26 = vld [vmem:[%s10184_s3 + $0xf0] sm:$0xff]  ;;  %s10246_s21 = smov (!%p438_p7, %s435_s21), 9 }
  0x13   : > { %s8140_s10 = smul.u32 72, %s429_s8  ;;  %824 = vmatpush.bf16.msra.mxu0 %v7774_v4  ;;  %v8364_v13 = vld [vmem:[%s10184_s3 + $0x40] sm:$0xff]  ;;  %v7863_v21 = vld [vmem:[%s10184_s3 + $0xf8] sm:$0xff]  ;;  %v7770_v27 = vld [vmem:[%s10184_s3 + $0x10] sm:$0xff]  ;;  %p449_p8 = scmp.lt.s32.totalorder %s446_s11, 9 }
  0x14   : > { %8133 = vmatpush.bf16.msra.mxu1 %v8322_v5  ;;  %v7816_v14 = vld [vmem:[%s10184_s3 + $0x80] sm:$0xff]  ;;  %v7771_v24 = vld [vmem:[%s10184_s3 + $0x18] sm:$0xff]  ;;  %v7866_v28 = vld [vmem:[%s10184_s3 + $0x110] sm:$0xff]  ;;  %s8142_s8 = smul.u32 72, %s10246_s21  ;;  %p466_p9 = scmp.lt.s32.totalorder %s8208_s24, 7 }
  0x15   : > { %1355 = vmatpush.bf16.msra.mxu2 %v7818_v6  ;;  %s432_s19 = sadd.s32 %s8337_s9, %s8140_s10  ;;  %v8381_v17 = vld [vmem:[%s10184_s3 + $0xa0] sm:$0xff]  ;;  %v7815_v25 = vld [vmem:[%s10184_s3 + $0x78] sm:$0xff]  ;;  %v7814_v29 = vld [vmem:[%s10184_s3 + $0x70] sm:$0xff]  ;;  %s10248_s11 = smov (!%p449_p8, %s446_s11), 9 }
  0x16   : > { %8137 = vmatpush.bf16.msra.mxu3 %v8333_v7  ;;  %s5806_s20 = sshll.u32 %s432_s19, 2  ;;  %v7861_v30 = vld [vmem:[%s10184_s3 + $0xe8] sm:$0xff]  ;;  %v7768_v33 = vld [vmem:[%s10184_s3] sm:$0xff]  ;;  %v7859_v61 = vld [vmem:[%s10184_s3 + $0xd8] sm:$0xff]  ;;  %s442_s10 = sadd.s32 %s8142_s8, %s8337_s9 }
  0x17   : > { %s8369_s13 = scalar_lea.vmem %s10181_s0, %s5806_s20  ;;  %825 = vmatpush.bf16.msra.mxu0 %v7773_v8  ;;  %v7769_v31 = vld [vmem:[%s10184_s3 + $0x8] sm:$0xff]  ;;  %v7812_v34 = vld [vmem:[%s10184_s3 + $0x60] sm:$0xff]  ;;  %s5807_s16 = sshll.u32 %s442_s10, 2 }
  0x18   : > { %8134 = vmatpush.bf16.msra.mxu1 %v8346_v9  ;;  %v7750_v15 = vld [vmem:[%s8369_s13 + $0x74] sm:$0xf]  ;;  %v5874_v16 = vld [vmem:[%s8369_s13 + $0x78] sm:$0xf0]  ;;  %v7794_v18 = vld [vmem:[%s8369_s13 + $0x84] sm:$0xf]  ;;  %s9001_s19 = scalar_lea.vmem %s10182_s1, %s5807_s16 }
  0x19   : > { %1356 = vmatpush.bf16.msra.mxu2 %v7817_v10  ;;  %v6090_v19 = vld [vmem:[%s8369_s13 + $0x88] sm:$0xf0]  ;;  %v5877_v22 = vor.u32 %v7750_v15, %v5874_v16  ;;  %v5816_v35 = vld [vmem:[%s8369_s13] sm:$0xf]  ;;  %v7737_v36 = vld [vmem:[%s8369_s13 + $0x4] sm:$0xf0] }
  0x1a   : > { %8138 = vmatpush.bf16.msra.mxu3 %v8355_v11  ;;  %v6093_v23 = vor.u32 %v7794_v18, %v6090_v19  ;;  %v7813_v32 = vld [vmem:[%s10184_s3 + $0x68] sm:$0xff]  ;;  %v7752_v37 = vld [vmem:[%s8369_s13 + $0x84] sm:$0xf]  ;;  %v6032_v39 = vld [vmem:[%s8369_s13 + $0x10] sm:$0xf]  ;;  %v5817_v43 = vor.u32 %v7737_v36, %v5816_v35  ;;  %s8143_s18 = smul.u32 72, %s10248_s11 }
  0x1b   : > { %826 = vmatpush.bf16.msra.mxu0 %v7772_v12  ;;  %v5882_v38 = vld [vmem:[%s8369_s13 + $0x88] sm:$0xf0]  ;;  %v7781_v40 = vld [vmem:[%s8369_s13 + $0x14] sm:$0xf0]  ;;  %v7796_v41 = vld [vmem:[%s8369_s13 + $0x94] sm:$0xf] }
  0x1c   : > { %8135 = vmatpush.bf16.msra.mxu1 %v8364_v13  ;;  %v6098_v42 = vld [vmem:[%s8369_s13 + $0x98] sm:$0xf0]  ;;  %v5885_v44 = vor.u32 %v7752_v37, %v5882_v38  ;;  %v6033_v45 = vor.u32 %v7781_v40, %v6032_v39  ;;  %v7860_v47 = vld [vmem:[%s10184_s3 + $0xe0] sm:$0xff]  ;;  %v5824_v48 = vld [vmem:[%s8369_s13 + $0x10] sm:$0xf]  ;;  %s453_s20 = sadd.s32 %s8143_s18, %s8337_s9  ;;  %s10250_s24 = smov (!%p466_p9, %s8208_s24), 7 }
  0x1d   : > { %1357 = vmatpush.bf16.msra.mxu2 %v7816_v14  ;;  %v6101_v46 = vor.u32 %v7796_v41, %v6098_v42  ;;  %v7739_v49 = vld [vmem:[%s8369_s13 + $0x14] sm:$0xf0]  ;;  %v7754_v50 = vld [vmem:[%s8369_s13 + $0x94] sm:$0xf]  ;;  %v5890_v51 = vld [vmem:[%s8369_s13 + $0x98] sm:$0xf0] }
  0x1e   : > { %8139 = vmatpush.bf16.msra.mxu3 %v8381_v17  ;;  %v6040_v52 = vld [vmem:[%s8369_s13 + $0x20] sm:$0xf]  ;;  %v7783_v53 = vld [vmem:[%s8369_s13 + $0x24] sm:$0xf0]  ;;  %v7798_v54 = vld [vmem:[%s8369_s13 + $0xa4] sm:$0xf]  ;;  %v5825_v56 = vor.u32 %v7739_v49, %v5824_v48  ;;  %v5893_v57 = vor.u32 %v7754_v50, %v5890_v51 }
  0x1f   : > { %5997 = vmatmul.msk.bf16.vlgmr.msra.gmra.mxu1 %vm774_vm0, %v5877_v22  ;;  %827 = vmatpush.bf16.msra.mxu0 %v7771_v24  ;;  %v6106_v55 = vld [vmem:[%s8369_s13 + $0xa8] sm:$0xf0]  ;;  %v6041_v58 = vor.u32 %v7783_v53, %v6040_v52  ;;  %v5832_v62 = vld [vmem:[%s8369_s13 + $0x20] sm:$0xf]  ;;  %v7741_v63 = vld [vmem:[%s8369_s13 + $0x24] sm:$0xf0] }
  0x20   : > { %1885 = vmatpush.bf16.msrb.mxu1 %v7863_v21  ;;  %v6109_v59 = vor.u32 %v7798_v54, %v6106_v55  ;;  %v7865_v60 = vld [vmem:[%s10184_s3 + $0x108] sm:$0xff]  ;;  %v7756_v0 = vld [vmem:[%s8369_s13 + $0xa4] sm:$0xf]  ;;  %v6048_v2 = vld [vmem:[%s8369_s13 + $0x30] sm:$0xf]  ;;  %v5833_v6 = vor.u32 %v7741_v63, %v5832_v62  ;;  %s5808_s21 = sshll.u32 %s453_s20, 2 }
  0x21   : > { %6213 = vmatmul.msk.bf16.vlgmr.msra.gmra.mxu3 %vm774_vm0, %v6093_v23  ;;  %1358 = vmatpush.bf16.msra.mxu2 %v7815_v25  ;;  %v7800_v4 = vld [vmem:[%s8369_s13 + $0xb4] sm:$0xf]  ;;  %v5840_v10 = vld [vmem:[%s8369_s13 + $0x30] sm:$0xf]  ;;  %v6056_v14 = vld [vmem:[%s8369_s13 + $0x40] sm:$0xf]  ;;  %s9462_s9 = scalar_lea.vmem %s10183_s2, %s5808_s21 }
  0x22   : > { %1978 = vmatpush.bf16.msrb.mxu3 %v7867_v20  ;;  %v7758_v12 = vld [vmem:[%s8369_s13 + $0xb4] sm:$0xf]  ;;  %v7787_v15 = vld [vmem:[%s8369_s13 + $0x44] sm:$0xf0]  ;;  %v7802_v16 = vld [vmem:[%s8369_s13 + $0xc4] sm:$0xf] }
  0x23   : > { %828 = vmatpush.bf16.msra.mxu0 %v7770_v27  ;;  %v6057_v20 = vor.u32 %v7787_v15, %v6056_v14  ;;  %v7858_v22 = vld [vmem:[%s10184_s3 + $0xd0] sm:$0xff]  ;;  %v7864_v23 = vld [vmem:[%s10184_s3 + $0x100] sm:$0xff]  ;;  %v7745_v25 = vld [vmem:[%s8369_s13 + $0x44] sm:$0xf0]  ;;  %s5810_s22 = sshll.u32 %s10244_s25, 8 }
  0x24   : > { %1886 = vmatpush.bf16.msrb.mxu1 %v7862_v26  ;;  %v5848_v24 = vld [vmem:[%s8369_s13 + $0x40] sm:$0xf]  ;;  %v7760_v26 = vld [vmem:[%s8369_s13 + $0xc4] sm:$0xf]  ;;  %v5914_v27 = vld [vmem:[%s8369_s13 + $0xc8] sm:$0xf0] }
  0x25   : > { %1359 = vmatpush.bf16.msra.mxu2 %v7814_v29  ;;  %v7789_v29 = vld [vmem:[%s8369_s13 + $0x54] sm:$0xf0]  ;;  %v7857_v36 = vld [vmem:[%s10184_s3 + $0xc8] sm:$0xff]  ;;  %v5856_v37 = vld [vmem:[%s8369_s13 + $0x50] sm:$0xf] }
  0x26   : > { %1979 = vmatpush.bf16.msrb.mxu3 %v7866_v28  ;;  %v6064_v28 = vld [vmem:[%s8369_s13 + $0x50] sm:$0xf]  ;;  %v7747_v38 = vld [vmem:[%s8369_s13 + $0x54] sm:$0xf0]  ;;  %v7762_v39 = vld [vmem:[%s8369_s13 + $0xd4] sm:$0xf] }
  0x27   : > { %829 = vmatpush.bf16.msra.mxu0 %v7769_v31  ;;  %v6130_v31 = vld [vmem:[%s8369_s13 + $0xd8] sm:$0xf0]  ;;  %v6072_v41 = vld [vmem:[%s8369_s13 + $0x60] sm:$0xf]  ;;  %v7791_v42 = vld [vmem:[%s8369_s13 + $0x64] sm:$0xf0] }
  0x28   : > { %1887 = vmatpush.bf16.msrb.mxu1 %v7861_v30  ;;  %v7804_v30 = vld [vmem:[%s8369_s13 + $0xd4] sm:$0xf]  ;;  %v5922_v40 = vld [vmem:[%s8369_s13 + $0xd8] sm:$0xf0]  ;;  %v7856_v49 = vld [vmem:[%s10184_s3 + $0xc0] sm:$0xff] }
  0x29   : > { %1360 = vmatpush.bf16.msra.mxu2 %v7813_v32  ;;  %v5849_v32 = vor.u32 %v7745_v25, %v5848_v24  ;;  %v6133_v35 = vor.u32 %v7804_v30, %v6130_v31  ;;  %v5864_v50 = vld [vmem:[%s8369_s13 + $0x60] sm:$0xf]  ;;  %v7749_v51 = vld [vmem:[%s8369_s13 + $0x64] sm:$0xf0]  ;;  %v7764_v52 = vld [vmem:[%s8369_s13 + $0xe4] sm:$0xf] }
  0x2a   : > { %1980 = vmatpush.bf16.msrb.mxu3 %v7865_v60  ;;  %v5930_v53 = vld [vmem:[%s8369_s13 + $0xe8] sm:$0xf0]  ;;  %v6080_v54 = vld [vmem:[%s8369_s13 + $0x70] sm:$0xf]  ;;  %v7793_v55 = vld [vmem:[%s8369_s13 + $0x74] sm:$0xf0] }
  0x2b   : > { %830 = vmatpush.bf16.msra.mxu0 %v7768_v33  ;;  %v5917_v33 = vor.u32 %v7760_v26, %v5914_v27  ;;  %v6081_v60 = vor.u32 %v7793_v55, %v6080_v54  ;;  %v7955_v62 = vld [vmem:[%s10184_s3 + $0x1d8] sm:$0xff]  ;;  %v5880_v15 = vld [vmem:[%s8369_s13 + $0x80] sm:$0xf] }
  0x2c   : > { %1888 = vmatpush.bf16.msrb.mxu1 %v7860_v47  ;;  %v6073_v47 = vor.u32 %v7791_v42, %v6072_v41  ;;  %v7951_v63 = vld [vmem:[%s10184_s3 + $0x1b8] sm:$0xff]  ;;  %v7826_v41 = vld [vmem:[%s8369_s13 + $0x34] sm:$0xf]  ;;  %v5896_v55 = vld [vmem:[%s8369_s13 + $0xa0] sm:$0xf] }
  0x2d   : > { %1361 = vmatpush.bf16.msra.mxu2 %v7812_v34  ;;  %v6065_v34 = vor.u32 %v7789_v29, %v6064_v28  ;;  %v6258_v42 = vld [vmem:[%s8369_s13 + $0x38] sm:$0xf0] }
  0x2e   : > { %831 = vmatmul.bf16.vlgmr.msra.gmra.mxu0 %v5817_v43  ;;  %1981 = vmatpush.bf16.msrb.mxu3 %v7864_v23  ;;  %v7806_v43 = vld [vmem:[%s8369_s13 + $0xe4] sm:$0xf] }
  0x2f   : > { %916 = vmatpush.bf16.msrb.mxu0 %v8304_v1  ;;  %5998 = vmatmul.msk.bf16.gmra.mxu1 %vm774_vm0, %v5885_v44  ;;  %v5898_v1 = vld [vmem:[%s8369_s13 + $0xa8] sm:$0xf0] }
  0x30   : > { %1362 = vmatmul.bf16.vlgmr.msra.gmra.mxu2 %v6033_v45  ;;  %1889 = vmatpush.bf16.msrb.mxu1 %v7859_v61  ;;  %v6138_v44 = vld [vmem:[%s8369_s13 + $0xe8] sm:$0xf0]  ;;  %v5857_v45 = vor.u32 %v7747_v38, %v5856_v37  ;;  %v6104_v37 = vld [vmem:[%s8369_s13 + $0xa0] sm:$0xf]  ;;  %v6256_v38 = vld [vmem:[%s8369_s13 + $0x30] sm:$0xf] }
  0x31   : > { %1447 = vmatpush.bf16.msrb.mxu2 %v8313_v3  ;;  %6214 = vmatmul.msk.bf16.gmra.mxu3 %vm774_vm0, %v6101_v46  ;;  %v7785_v3 = vld [vmem:[%s8369_s13 + $0x34] sm:$0xf0]  ;;  %v5925_v46 = vor.u32 %v7762_v39, %v5922_v40  ;;  %v6141_v48 = vor.u32 %v7806_v43, %v6138_v44  ;;  %v7799_v40 = vld [vmem:[%s8369_s13 + $0xa4] sm:$0xf0] }
  0x32   : > { %v6049_v8 = vor.u32 %v7785_v3, %v6048_v2  ;;  %3040 = vmatpush.bf16.msra.mxu3 %v7955_v62  ;;  %v7766_v2 = vld [vmem:[%s8369_s13 + $0xf4] sm:$0xf]  ;;  %v5938_v3 = vld [vmem:[%s8369_s13 + $0xf8] sm:$0xf0]  ;;  %v7827_v39 = vld [vmem:[%s8369_s13 + $0x34] sm:$0xf0] }
  0x33   : > { %917 = vmatpush.bf16.msrb.mxu0 %v8322_v5  ;;  %v6114_v5 = vld [vmem:[%s8369_s13 + $0xb8] sm:$0xf0]  ;;  %v6266_v62 = vld [vmem:[%s8369_s13 + $0x48] sm:$0xf0] }
  0x34   : > { %1890 = vmatpush.bf16.msrb.mxu1 %v7858_v22  ;;  %v6250_v22 = vld [vmem:[%s8369_s13 + $0x28] sm:$0xf0] }
  0x35   : > { %1448 = vmatpush.bf16.msrb.mxu2 %v8333_v7  ;;  %v5901_v7 = vor.u32 %v7756_v0, %v5898_v1  ;;  %v5872_v0 = vld [vmem:[%s8369_s13 + $0x70] sm:$0xf]  ;;  %v7751_v1 = vld [vmem:[%s8369_s13 + $0x74] sm:$0xf0] }
  0x37   : > { %918 = vmatpush.bf16.msrb.mxu0 %v8346_v9  ;;  %v6117_v9 = vor.u32 %v7800_v4, %v6114_v5  ;;  %v6088_v4 = vld [vmem:[%s8369_s13 + $0x80] sm:$0xf]  ;;  %v7795_v5 = vld [vmem:[%s8369_s13 + $0x84] sm:$0xf0] }
  0x38   : > { %1891 = vmatpush.bf16.msrb.mxu1 %v7857_v36  ;;  %v7755_v36 = vld [vmem:[%s8369_s13 + $0x94] sm:$0xf0] }
  0x39   : > { %1449 = vmatpush.bf16.msrb.mxu2 %v8355_v11  ;;  %v7743_v11 = vld [vmem:[%s8369_s13 + $0x34] sm:$0xf0] }
  0x3a   : > { %v5841_v18 = vor.u32 %v7743_v11, %v5840_v10  ;;  %v6089_v11 = vor.u32 %v7795_v5, %v6088_v4 }
  0x3b   : > { %919 = vmatpush.bf16.msrb.mxu0 %v8364_v13  ;;  %v5906_v13 = vld [vmem:[%s8369_s13 + $0xb8] sm:$0xf0] }
  0x3c   : > { %v5909_v19 = vor.u32 %v7758_v12, %v5906_v13  ;;  %1892 = vmatpush.bf16.msrb.mxu1 %v7856_v49  ;;  %v6105_v49 = vor.u32 %v7799_v40, %v6104_v37 }
  0x3d   : > { %1450 = vmatpush.bf16.msrb.mxu2 %v8381_v17  ;;  %v6122_v17 = vld [vmem:[%s8369_s13 + $0xc8] sm:$0xf0] }
  0x3e   : > { %836 = vmatmul.bf16.gmra.mxu0 %v5825_v56  ;;  %v6125_v21 = vor.u32 %v7802_v16, %v6122_v17  ;;  %v7808_v56 = vld [vmem:[%s8369_s13 + $0xf4] sm:$0xf]  ;;  %v7753_v16 = vld [vmem:[%s8369_s13 + $0x84] sm:$0xf0]  ;;  %v6096_v17 = vld [vmem:[%s8369_s13 + $0x90] sm:$0xf] }
  0x3f   : > { %5999 = vmatmul.msk.bf16.gmra.mxu1 %vm774_vm0, %v5893_v57  ;;  %v6146_v57 = vld [vmem:[%s8369_s13 + $0xf8] sm:$0xf0]  ;;  %v5881_v24 = vor.u32 %v7753_v16, %v5880_v15  ;;  %v7949_v15 = vld [vmem:[%s10184_s3 + $0x1a8] sm:$0xff]  ;;  %v5904_v16 = vld [vmem:[%s8369_s13 + $0xb0] sm:$0xf] }
  0x40   : > { %1367 = vmatmul.bf16.gmra.mxu2 %v6041_v58  ;;  %v5865_v58 = vor.u32 %v7749_v51, %v5864_v50  ;;  %v6149_v61 = vor.u32 %v7808_v56, %v6146_v57  ;;  %2947 = vmatpush.bf16.msra.mxu1 %v7951_v63  ;;  %v6261_v50 = vor.u32 %v7826_v41, %v6258_v42  ;;  %v7757_v56 = vld [vmem:[%s8369_s13 + $0xa4] sm:$0xf0]  ;;  %v6112_v57 = vld [vmem:[%s8369_s13 + $0xb0] sm:$0xf] }
  0x41   : > { %6215 = vmatmul.msk.bf16.gmra.mxu3 %vm774_vm0, %v6109_v59  ;;  %v5933_v59 = vor.u32 %v7764_v52, %v5930_v53 }
  0x4e   : > { %841 = vmatmul.bf16.gmra.mxu0 %v5833_v6  ;;  %v7810_v6 = vld [vmem:[%s8369_s13 + $0x104] sm:$0xf] }
  0x4f   : > { %6000 = vmatmul.msk.bf16.gmra.mxu1 %vm774_vm0, %v5901_v7  ;;  %v6154_v7 = vld [vmem:[%s8369_s13 + $0x108] sm:$0xf0] }
  0x50   : > { %1372 = vmatmul.bf16.gmra.mxu2 %v6049_v8  ;;  %v5873_v8 = vor.u32 %v7751_v1, %v5872_v0  ;;  %v6157_v12 = vor.u32 %v7810_v6, %v6154_v7  ;;  %v5897_v1 = vor.u32 %v7757_v56, %v5896_v55  ;;  %v7954_v7 = vld [vmem:[%s10184_s3 + $0x1d0] sm:$0xff]  ;;  %v7833_v55 = vld [vmem:[%s8369_s13 + $0x64] sm:$0xf0]  ;;  %v7805_v56 = vld [vmem:[%s8369_s13 + $0xd4] sm:$0xf0] }
  0x51   : > { %6216 = vmatmul.msk.bf16.gmra.mxu3 %vm774_vm0, %v6117_v9  ;;  %v5941_v9 = vor.u32 %v7766_v2, %v5938_v3 }
  0x52   : > { %3041 = vmatpush.bf16.msra.mxu3 %v7954_v7 }
  0x5e   : > { %846 = vmatmul.bf16.gmra.mxu0 %v5841_v18  ;;  %v6248_v18 = vld [vmem:[%s8369_s13 + $0x20] sm:$0xf] }
  0x5f   : > { %6001 = vmatmul.msk.bf16.gmra.mxu1 %vm774_vm0, %v5909_v19  ;;  %v7825_v19 = vld [vmem:[%s8369_s13 + $0x24] sm:$0xf0] }
  0x60   : > { %1377 = vmatmul.bf16.gmra.mxu2 %v6057_v20  ;;  %v7797_v20 = vld [vmem:[%s8369_s13 + $0x94] sm:$0xf0]  ;;  %v6249_v25 = vor.u32 %v7825_v19, %v6248_v18  ;;  %v6120_v18 = vld [vmem:[%s8369_s13 + $0xc0] sm:$0xf]  ;;  %v6272_v19 = vld [vmem:[%s8369_s13 + $0x50] sm:$0xf] }
  0x61   : > { %6217 = vmatmul.msk.bf16.gmra.mxu3 %vm774_vm0, %v6125_v21  ;;  %v7824_v21 = vld [vmem:[%s8369_s13 + $0x24] sm:$0xf]  ;;  %v6097_v28 = vor.u32 %v7797_v20, %v6096_v17  ;;  %v7759_v17 = vld [vmem:[%s8369_s13 + $0xb4] sm:$0xf0] }
  0x62   : > { %v6253_v29 = vor.u32 %v7824_v21, %v6250_v22  ;;  %v7831_v20 = vld [vmem:[%s8369_s13 + $0x54] sm:$0xf0]  ;;  %v7803_v21 = vld [vmem:[%s8369_s13 + $0xc4] sm:$0xf0]  ;;  %v7830_v22 = vld [vmem:[%s8369_s13 + $0x54] sm:$0xf] }
  0x63   : > { %v6121_v37 = vor.u32 %v7803_v21, %v6120_v18  ;;  %v7948_v18 = vld [vmem:[%s10184_s3 + $0x1a0] sm:$0xff] }
  0x64   : > { %v6136_v21 = vld [vmem:[%s8369_s13 + $0xe0] sm:$0xf] }
  0x6e   : > { %851 = vmatmul.bf16.gmra.mxu0 %v5849_v32 }
  0x6f   : > { %6002 = vmatmul.msk.bf16.gmra.mxu1 %vm774_vm0, %v5917_v33 }
  0x70   : > { %1382 = vmatmul.bf16.gmra.mxu2 %v6065_v34  ;;  %v7950_v34 = vld [vmem:[%s10184_s3 + $0x1b0] sm:$0xff] }
  0x71   : > { %6218 = vmatmul.msk.bf16.gmra.mxu3 %vm774_vm0, %v6133_v35  ;;  %2948 = vmatpush.bf16.msra.mxu1 %v7950_v34  ;;  %v5888_v35 = vld [vmem:[%s8369_s13 + $0x90] sm:$0xf]  ;;  %v6273_v34 = vor.u32 %v7831_v20, %v6272_v19  ;;  %v7763_v20 = vld [vmem:[%s8369_s13 + $0xd4] sm:$0xf0] }
  0x72   : > { %v5920_v19 = vld [vmem:[%s8369_s13 + $0xd0] sm:$0xf] }
  0x75   : > { %2949 = vmatpush.bf16.msra.mxu1 %v7949_v15 }
  0x79   : > { %2950 = vmatpush.bf16.msra.mxu1 %v7948_v18  ;;  %v7765_v18 = vld [vmem:[%s8369_s13 + $0xe4] sm:$0xf0] }
  0x7e   : > { %856 = vmatmul.bf16.gmra.mxu0 %v5857_v45  ;;  %v5889_v45 = vor.u32 %v7755_v36, %v5888_v35 }
  0x7f   : > { %6003 = vmatmul.msk.bf16.gmra.mxu1 %vm774_vm0, %v5925_v46  ;;  %v6257_v46 = vor.u32 %v7827_v39, %v6256_v38 }
  0x80   : > { %1387 = vmatmul.bf16.gmra.mxu2 %v6073_v47 }
  0x81   : > { %6219 = vmatmul.msk.bf16.gmra.mxu3 %vm774_vm0, %v6141_v48 }
  0x8e   : > { %861 = vmatmul.bf16.gmra.mxu0 %v5865_v58  ;;  %v6264_v58 = vld [vmem:[%s8369_s13 + $0x40] sm:$0xf] }
  0x8f   : > { %6004 = vmatmul.msk.bf16.gmra.mxu1 %vm774_vm0, %v5933_v59  ;;  %v7829_v59 = vld [vmem:[%s8369_s13 + $0x44] sm:$0xf0] }
  0x90   : > { %1392 = vmatmul.bf16.gmra.mxu2 %v6081_v60  ;;  %v7801_v60 = vld [vmem:[%s8369_s13 + $0xb4] sm:$0xf0]  ;;  %v6265_v2 = vor.u32 %v7829_v59, %v6264_v58  ;;  %v6282_v58 = vld [vmem:[%s8369_s13 + $0x68] sm:$0xf0] }
  0x91   : > { %6220 = vmatmul.msk.bf16.gmra.mxu3 %vm774_vm0, %v6149_v61  ;;  %v7828_v61 = vld [vmem:[%s8369_s13 + $0x44] sm:$0xf]  ;;  %v6113_v5 = vor.u32 %v7801_v60, %v6112_v57 }
  0x92   : > { %v6269_v6 = vor.u32 %v7828_v61, %v6266_v62  ;;  %v7832_v57 = vld [vmem:[%s8369_s13 + $0x64] sm:$0xf] }
  0x9c   : > { %v8541_v10 = vpop.f32.mrf.mxu1 }
  0x9e   : > { %866 = vmatmul.bf16.gmra.mxu0 %v5873_v8 }
  0x9f   : > { %6005 = vmatmul.msk.bf16.gmra.mxu1 %vm774_vm0, %v5941_v9 }
  0xa0   : > { %1397 = vmatmul.bf16.gmra.mxu2 %v6089_v11 }
  0xa1   : > { %6221 = vmatmul.msk.bf16.gmra.mxu3 %vm774_vm0, %v6157_v12 }
  0xa4   : > { %v8545_v13 = vpop.f32.mrf.mxu3  ;;  %v8547_v14 = vpop.f32.mrf.mxu1 }
  0xab   : > { %v8559_v26 = vpop.f32.mrf.mxu0 }
  0xac   : > { %v8557_v23 = vpop.f32.mrf.mxu3  ;;  %v8561_v27 = vpop.f32.mrf.mxu1 }
  0xae   : > { %871 = vmatmul.bf16.gmra.mxu0 %v5881_v24  ;;  %v6274_v24 = vld [vmem:[%s8369_s13 + $0x58] sm:$0xf0] }
  0xaf   : > { %1893 = vmatmul.bf16.vlgmr.msrb.gmra.mxu1 %v6249_v25  ;;  %v6277_v38 = vor.u32 %v7830_v22, %v6274_v24  ;;  %v6288_v22 = vld [vmem:[%s8369_s13 + $0x70] sm:$0xf]  ;;  %v7835_v24 = vld [vmem:[%s8369_s13 + $0x74] sm:$0xf0] }
  0xb0   : > { %1402 = vmatmul.bf16.gmra.mxu2 %v6097_v28 }
  0xb1   : > { %6422 = vmatmul.msk.bf16.vlgmr.msrb.gmra.mxu3 %vm774_vm0, %v6253_v29  ;;  %v5905_v29 = vor.u32 %v7759_v17, %v5904_v16 }
  0xb3   : > { %v8564_v30 = vpop.f32.mrf.mxu2  ;;  %v8568_v32 = vpop.f32.mrf.mxu0 }
  0xb4   : > { %v8566_v31 = vpop.f32.mrf.mxu3  ;;  %v8570_v33 = vpop.f32.mrf.mxu1 }
  0xbb   : > { %v8583_v43 = vpop.f32.mrf.mxu2  ;;  %v8587_v47 = vpop.f32.mrf.mxu0 }
  0xbc   : > { %v8585_v44 = vpop.f32.mrf.mxu3  ;;  %v8589_v48 = vpop.f32.mrf.mxu1 }
  0xbe   : > { %876 = vmatmul.bf16.gmra.mxu0 %v5889_v45  ;;  %v5912_v45 = vld [vmem:[%s8369_s13 + $0xc0] sm:$0xf] }
  0xbf   : > { %1898 = vmatmul.bf16.gmra.mxu1 %v6257_v46  ;;  %v7761_v46 = vld [vmem:[%s8369_s13 + $0xc4] sm:$0xf0] }
  0xc0   : > { %1407 = vmatmul.bf16.gmra.mxu2 %v6105_v49  ;;  %v6128_v49 = vld [vmem:[%s8369_s13 + $0xd0] sm:$0xf]  ;;  %v5913_v61 = vor.u32 %v7761_v46, %v5912_v45  ;;  %v5921_v46 = vor.u32 %v7763_v20, %v5920_v19  ;;  %v6296_v20 = vld [vmem:[%s8369_s13 + $0x80] sm:$0xf] }
  0xc1   : > { %6423 = vmatmul.msk.bf16.gmra.mxu3 %vm774_vm0, %v6261_v50  ;;  %v6280_v50 = vld [vmem:[%s8369_s13 + $0x60] sm:$0xf]  ;;  %v6144_v19 = vld [vmem:[%s8369_s13 + $0xf0] sm:$0xf] }
  0xc2   : > { %v6281_v62 = vor.u32 %v7833_v55, %v6280_v50 }
  0xc3   : > { %v8592_v51 = vpop.f32.mrf.mxu2  ;;  %v8596_v53 = vpop.f32.mrf.mxu0 }
  0xc4   : > { %v8594_v52 = vpop.f32.mrf.mxu3  ;;  %10189 = vst [vmem:[#allocation2_spill] sm:$0xff] %v8596_v53  ;;  %v8598_v54 = vpop.f32.mrf.mxu1 }
  0xcb   : > { %v8608_v63 = vpop.f32.mrf.mxu2  ;;  %v8612_v3 = vpop.f32.mrf.mxu0 }
  0xcc   : > { %10190 = vst [vmem:[#allocation3_spill] sm:$0xff] %v8608_v63  ;;  %v8610_v0 = vpop.f32.mrf.mxu3  ;;  %v8614_v4 = vpop.f32.mrf.mxu1 }
  0xcd   : > { %10191 = vst [vmem:[#allocation4_spill] sm:$0xff] %v8612_v3 }
  0xce   : > { %881 = vmatmul.bf16.gmra.mxu0 %v5897_v1 }
  0xcf   : > { %1903 = vmatmul.bf16.gmra.mxu1 %v6265_v2 }
  0xd0   : > { %1412 = vmatmul.bf16.gmra.mxu2 %v6113_v5  ;;  %v6129_v5 = vor.u32 %v7805_v56, %v6128_v49  ;;  %v6289_v49 = vor.u32 %v7835_v24, %v6288_v22  ;;  %v7809_v22 = vld [vmem:[%s8369_s13 + $0xf4] sm:$0xf0]  ;;  %v7836_v24 = vld [vmem:[%s8369_s13 + $0x84] sm:$0xf] }
  0xd1   : > { %6424 = vmatmul.msk.bf16.gmra.mxu3 %vm774_vm0, %v6269_v6  ;;  %v6285_v6 = vor.u32 %v7832_v57, %v6282_v58 }
  0xd3   : > { %v8620_v8 = vpop.f32.mrf.mxu2  ;;  %v8624_v11 = vpop.f32.mrf.mxu0 }
  0xd4   : > { %10192 = vst [vmem:[#allocation5_spill] sm:$0xff] %v8620_v8  ;;  %v8622_v9 = vpop.f32.mrf.mxu3  ;;  %v8626_v12 = vpop.f32.mrf.mxu1 }
  0xd5   : > { %10193 = vst [vmem:[#allocation6_spill] sm:$0xff] %v8624_v11 }
  0xdb   : > { %v8639_v25 = vpop.f32.mrf.mxu2  ;;  %v8643_v35 = vpop.f32.mrf.mxu0 }
  0xdc   : > { %10194 = vst [vmem:[#allocation7_spill] sm:$0xff] %v8639_v25  ;;  %v8641_v28 = vpop.f32.mrf.mxu3  ;;  %v8645_v36 = vpop.f32.mrf.mxu1 }
  0xdd   : > { %10195 = vst [vmem:[#allocation8_spill] sm:$0xff] %v8643_v35 }
  0xde   : > { %886 = vmatmul.bf16.gmra.mxu0 %v5905_v29  ;;  %v7807_v29 = vld [vmem:[%s8369_s13 + $0xe4] sm:$0xf0] }
  0xdf   : > { %1908 = vmatmul.bf16.gmra.mxu1 %v6273_v34  ;;  %v7834_v34 = vld [vmem:[%s8369_s13 + $0x74] sm:$0xf]  ;;  %v6137_v56 = vor.u32 %v7807_v29, %v6136_v21  ;;  %v7837_v21 = vld [vmem:[%s8369_s13 + $0x84] sm:$0xf0]  ;;  %v6298_v29 = vld [vmem:[%s8369_s13 + $0x88] sm:$0xf0] }
  0xe0   : > { %1417 = vmatmul.bf16.gmra.mxu2 %v6121_v37  ;;  %v6290_v37 = vld [vmem:[%s8369_s13 + $0x78] sm:$0xf0] }
  0xe1   : > { %6425 = vmatmul.msk.bf16.gmra.mxu3 %vm774_vm0, %v6277_v38  ;;  %v6293_v57 = vor.u32 %v7834_v34, %v6290_v37 }
  0xe3   : > { %v8648_v39 = vpop.f32.mrf.mxu2  ;;  %v8652_v41 = vpop.f32.mrf.mxu0 }
  0xe4   : > { %10196 = vst [vmem:[#allocation9_spill] sm:$0xff] %v8648_v39  ;;  %v8650_v40 = vpop.f32.mrf.mxu3  ;;  %v8654_v42 = vpop.f32.mrf.mxu1 }
  0xe5   : > { %10197 = vst [vmem:[#allocation10_spill] sm:$0xff] %v8652_v41 }
  0xeb   : > { %v8664_v59 = vpop.f32.mrf.mxu2  ;;  %v8668_v1 = vpop.f32.mrf.mxu0 }
  0xec   : > { %10198 = vst [vmem:[#allocation11_spill] sm:$0xff] %v8664_v59  ;;  %v8666_v60 = vpop.f32.mrf.mxu3  ;;  %v8670_v2 = vpop.f32.mrf.mxu1  ;;  %v7911_v59 = vld [vmem:[%s10184_s3 + $0x178] sm:$0xff] }
  0xed   : > { %10199 = vst [vmem:[#allocation12_spill] sm:$0xff] %v8668_v1  ;;  %2509 = vmatpush.bf16.msra.mxu2 %v7911_v59  ;;  %v7736_v59 = vld [vmem:[%s8369_s13 + $0x4] sm:$0xf] }
  0xee   : > { %891 = vmatmul.bf16.gmra.mxu0 %v5913_v61 }
  0xef   : > { %1913 = vmatmul.bf16.gmra.mxu1 %v6281_v62 }
  0xf0   : > { %1422 = vmatmul.bf16.gmra.mxu2 %v6129_v5 }
  0xf1   : > { %6426 = vmatmul.msk.bf16.gmra.mxu3 %vm774_vm0, %v6285_v6  ;;  %v5928_v6 = vld [vmem:[%s8369_s13 + $0xe0] sm:$0xf] }
  0xf3   : > { %v8673_v7 = vpop.f32.mrf.mxu2  ;;  %v8677_v16 = vpop.f32.mrf.mxu0 }
  0xf4   : > { %10200 = vst [vmem:[#allocation13_spill] sm:$0xff] %v8673_v7  ;;  %v8675_v15 = vpop.f32.mrf.mxu3  ;;  %v8679_v17 = vpop.f32.mrf.mxu1 }
  0xf5   : > { %10201 = vst [vmem:[#allocation14_spill] sm:$0xff] %v8677_v16 }
  0xfb   : > { %v8692_v38 = vpop.f32.mrf.mxu2  ;;  %v8696_v50 = vpop.f32.mrf.mxu0 }
  0xfc   : > { %10202 = vst [vmem:[#allocation15_spill] sm:$0xff] %v8692_v38  ;;  %v8694_v45 = vpop.f32.mrf.mxu3  ;;  %v8698_v55 = vpop.f32.mrf.mxu1 }
  0xfd   : > { %10203 = vst [vmem:[#allocation16_spill] sm:$0xff] %v8696_v50 }
  0xfe   : > { %896 = vmatmul.bf16.gmra.mxu0 %v5921_v46  ;;  %v5929_v46 = vor.u32 %v7765_v18, %v5928_v6  ;;  %v7953_v6 = vld [vmem:[%s10184_s3 + $0x1c8] sm:$0xff] }
  0xff   : > { %1918 = vmatmul.bf16.gmra.mxu1 %v6289_v49  ;;  %v6297_v49 = vor.u32 %v7837_v21, %v6296_v20  ;;  %3042 = vmatpush.bf16.msra.mxu3 %v7953_v6  ;;  %v6306_v6 = vld [vmem:[%s8369_s13 + $0x98] sm:$0xf0] }
 0x100   : > { %1427 = vmatmul.bf16.gmra.mxu2 %v6137_v56 }
 0x101   : > { %6427 = vmatmul.msk.bf16.gmra.mxu3 %vm774_vm0, %v6293_v57 }
 0x103   : > { %v8701_v58 = vpop.f32.mrf.mxu2  ;;  %v8705_v62 = vpop.f32.mrf.mxu0 }
 0x104   : > { %10204 = vst [vmem:[#allocation17_spill] sm:$0xff] %v8701_v58  ;;  %v8703_v61 = vpop.f32.mrf.mxu3  ;;  %v8707_v5 = vpop.f32.mrf.mxu1  ;;  %v6301_v58 = vor.u32 %v7836_v24, %v6298_v29  ;;  %v7767_v24 = vld [vmem:[%s8369_s13 + $0xf4] sm:$0xf0]  ;;  %v6304_v29 = vld [vmem:[%s8369_s13 + $0x90] sm:$0xf] }
 0x105   : > { %10205 = vst [vmem:[#allocation18_spill] sm:$0xff] %v8705_v62  ;;  %v6145_v62 = vor.u32 %v7809_v22, %v6144_v19  ;;  %v5936_v22 = vld [vmem:[%s8369_s13 + $0xf0] sm:$0xf] }
 0x10b   : > { %v8717_v34 = vpop.f32.mrf.mxu2  ;;  %v8721_v56 = vpop.f32.mrf.mxu0 }
 0x10c   : > { %10206 = vst [vmem:[#allocation19_spill] sm:$0xff] %v8717_v34  ;;  %v8719_v37 = vpop.f32.mrf.mxu3  ;;  %v8723_v57 = vpop.f32.mrf.mxu1 }
 0x10d   : > { %10207 = vst [vmem:[#allocation20_spill] sm:$0xff] %v8721_v56  ;;  %v7838_v56 = vld [vmem:[%s8369_s13 + $0x94] sm:$0xf] }
 0x10e   : > { %901 = vmatmul.bf16.gmra.mxu0 %v5929_v46  ;;  %v7839_v46 = vld [vmem:[%s8369_s13 + $0x94] sm:$0xf0]  ;;  %v6309_v1 = vor.u32 %v7838_v56, %v6306_v6  ;;  %v7841_v6 = vld [vmem:[%s8369_s13 + $0xa4] sm:$0xf0] }
 0x10f   : > { %1923 = vmatmul.bf16.gmra.mxu1 %v6297_v49  ;;  %v7811_v49 = vld [vmem:[%s8369_s13 + $0x104] sm:$0xf0]  ;;  %v6305_v50 = vor.u32 %v7839_v46, %v6304_v29  ;;  %v7780_v46 = vld [vmem:[%s8369_s13 + $0x14] sm:$0xf] }
 0x110   : > { %1432 = vmatmul.bf16.gmra.mxu2 %v6145_v62  ;;  %v7947_v62 = vld [vmem:[%s10184_s3 + $0x198] sm:$0xff] }
 0x111   : > { %6428 = vmatmul.msk.bf16.gmra.mxu3 %vm774_vm0, %v6301_v58  ;;  %v6152_v58 = vld [vmem:[%s8369_s13 + $0x100] sm:$0xf]  ;;  %2951 = vmatpush.bf16.msra.mxu1 %v7947_v62 }
 0x112   : > { %v6153_v7 = vor.u32 %v7811_v49, %v6152_v58  ;;  %v8760_v62 = vld [vmem:[%s10185_s4] ss:$0 sm:$0xff] }
 0x113   : > { %v8729_v18 = vpop.f32.mrf.mxu2  ;;  %v8733_v19 = vpop.f32.mrf.mxu0  ;;  %v6312_v49 = vld [vmem:[%s8369_s13 + $0xa0] sm:$0xf] }
 0x114   : > { %10208 = vst [vmem:[#allocation21_spill] sm:$0xff] %v8729_v18  ;;  %v8731_v20 = vpop.f32.mrf.mxu3  ;;  %v8735_v21 = vpop.f32.mrf.mxu1 }
 0x115   : > { %10209 = vst [vmem:[#allocation22_spill] sm:$0xff] %v8733_v19  ;;  %v5937_v19 = vor.u32 %v7767_v24, %v5936_v22 }
 0x11b   : > { %v8748_v18 = vpop.f32.mrf.mxu2  ;;  %v867_v38 = vpop.f32.mrf.mxu0 }
 0x11c   : > { %10210 = vst [vmem:[#allocation23_spill] sm:$0xff] %v8748_v18  ;;  %v8750_v34 = vpop.f32.mrf.mxu3  ;;  %v8752_v16 = vpop.f32.mrf.mxu1  ;;  %v957_v22 = vadd.f32 %v8541_v10, %v867_v38  ;;  %v7840_v18 = vld [vmem:[%s8369_s13 + $0xa4] sm:$0xf] }
 0x11e   : > { %906 = vmatmul.bf16.gmra.mxu0 %v5937_v19  ;;  %v1015_v19 = vadd.f32 %v8760_v62, %v957_v22  ;;  %v6034_v22 = vld [vmem:[%s8369_s13 + $0x18] sm:$0xf0] }
 0x11f   : > { %1928 = vmatmul.bf16.gmra.mxu1 %v6305_v50  ;;  %v6037_v8 = vor.u32 %v7780_v46, %v6034_v22  ;;  %v5826_v46 = vld [vmem:[%s8369_s13 + $0x18] sm:$0xf0]  ;;  %v7910_v22 = vld [vmem:[%s10184_s3 + $0x170] sm:$0xff] }
 0x120   : > { %1437 = vmatmul.bf16.gmra.mxu2 %v6153_v7  ;;  %v5818_v7 = vld [vmem:[%s8369_s13 + $0x8] sm:$0xf0] }
 0x121   : > { %6429 = vmatmul.msk.bf16.gmra.mxu3 %vm774_vm0, %v6309_v1  ;;  %v7907_v1 = vld [vmem:[%s10184_s3 + $0x158] sm:$0xff]  ;;  %2510 = vmatpush.bf16.msra.mxu2 %v7910_v22 }
 0x122   : > { %2416 = vmatpush.bf16.msra.mxu0 %v7907_v1 }
 0x123   : > { %v1398_v50 = vpop.f32.mrf.mxu2  ;;  %v869_v58 = vpop.f32.mrf.mxu0 }
 0x124   : > { %v8764_v56 = vpop.f32.mrf.mxu3  ;;  %v1488_v24 = vadd.f32 %v8545_v13, %v1398_v50  ;;  %v8768_v29 = vpop.f32.mrf.mxu1  ;;  %v959_v38 = vadd.f32 %v8547_v14, %v869_v58  ;;  %v6314_v13 = vld [vmem:[%s8369_s13 + $0xa8] sm:$0xf0] }
 0x125   : > { %v6317_v14 = vor.u32 %v7840_v18, %v6314_v13 }
 0x126   : > { %v8770_v10 = vadd.f32 %v1488_v24, %v1015_v19  ;;  %v5821_v19 = vor.u32 %v7736_v59, %v5818_v7  ;;  %v6313_v24 = vor.u32 %v7841_v6, %v6312_v49  ;;  %v1016_v39 = vadd.f32 %v8760_v62, %v959_v38  ;;  %v7738_v38 = vld [vmem:[%s8369_s13 + $0x14] sm:$0xf]  ;;  %v7782_v49 = vld [vmem:[%s8369_s13 + $0x24] sm:$0xf] }
 0x127   : > { %v7946_v6 = vld [vmem:[%s10184_s3 + $0x190] sm:$0xff] }
 0x128   : > { %2952 = vmatpush.bf16.msra.mxu1 %v7946_v6 }
 0x12b   : > { %v1400_v50 = vpop.f32.mrf.mxu2  ;;  %v872_v25 = vpop.f32.mrf.mxu0 }
 0x12c   : > { %v8784_v41 = vpop.f32.mrf.mxu3  ;;  %v1490_v35 = vadd.f32 %v8557_v23, %v1400_v50  ;;  %v1894_v11 = vpop.f32.mrf.mxu1  ;;  %v962_v1 = vadd.f32 %v8561_v27, %v872_v25  ;;  %v7906_v23 = vld [vmem:[%s10184_s3 + $0x150] sm:$0xff]  ;;  %v7843_v50 = vld [vmem:[%s8369_s13 + $0xb4] sm:$0xf0] }
 0x12d   : > { %2417 = vmatpush.bf16.msra.mxu0 %v7906_v23  ;;  %v5829_v23 = vor.u32 %v7738_v38, %v5826_v46 }
 0x12e   : > { %v8788_v58 = vadd.f32 %v1490_v35, %v1016_v39  ;;  %5990 = vmatmul.msk.bf16.vlgmr.msrb.gmra.mxu0 %vm774_vm0, %v5821_v19  ;;  %v1017_v18 = vadd.f32 %v8760_v62, %v962_v1  ;;  %v7842_v19 = vld [vmem:[%s8369_s13 + $0xb4] sm:$0xf] }
 0x12f   : > { %1933 = vmatmul.bf16.gmra.mxu1 %v6313_v24  ;;  %v6322_v24 = vld [vmem:[%s8369_s13 + $0xb8] sm:$0xf0] }
 0x130   : > { %6206 = vmatmul.msk.bf16.vlgmr.msrb.gmra.mxu2 %vm774_vm0, %v6037_v8 }
 0x131   : > { %6430 = vmatmul.msk.bf16.gmra.mxu3 %vm774_vm0, %v6317_v14 }
 0x133   : > { %v1403_v35 = vpop.f32.mrf.mxu2  ;;  %v874_v8 = vpop.f32.mrf.mxu0 }
 0x134   : > { %v1983_v39 = vpop.f32.mrf.mxu3  ;;  %v1493_v27 = vadd.f32 %v8566_v31, %v1403_v35  ;;  %v1896_v59 = vpop.f32.mrf.mxu1  ;;  %v964_v13 = vadd.f32 %v8570_v33, %v874_v8  ;;  %v6042_v31 = vld [vmem:[%s8369_s13 + $0x28] sm:$0xf0]  ;;  %v6325_v8 = vor.u32 %v7842_v19, %v6322_v24  ;;  %v6050_v24 = vld [vmem:[%s8369_s13 + $0x38] sm:$0xf0] }
 0x135   : > { %v8799_v25 = vadd.f32 %v1983_v39, %v1894_v11  ;;  %v6320_v11 = vld [vmem:[%s8369_s13 + $0xb0] sm:$0xf]  ;;  %v6045_v35 = vor.u32 %v7782_v49, %v6042_v31  ;;  %v7740_v31 = vld [vmem:[%s8369_s13 + $0x24] sm:$0xf] }
 0x136   : > { %v8801_v7 = vadd.f32 %v1493_v27, %v1017_v18  ;;  %v6321_v39 = vor.u32 %v7843_v50, %v6320_v11  ;;  %v1018_v18 = vadd.f32 %v8760_v62, %v964_v13  ;;  %v5834_v11 = vld [vmem:[%s8369_s13 + $0x28] sm:$0xf0]  ;;  %v7784_v50 = vld [vmem:[%s8369_s13 + $0x34] sm:$0xf] }
 0x13b   : > { %v1405_v14 = vpop.f32.mrf.mxu2  ;;  %v877_v63 = vpop.f32.mrf.mxu0 }
 0x13c   : > { %v1985_v1 = vpop.f32.mrf.mxu3  ;;  %v1495_v27 = vadd.f32 %v8585_v44, %v1405_v14  ;;  %v1899_v33 = vpop.f32.mrf.mxu1  ;;  %v967_v38 = vadd.f32 %v8589_v48, %v877_v63  ;;  %v7905_v44 = vld [vmem:[%s10184_s3 + $0x148] sm:$0xff]  ;;  %v6328_v14 = vld [vmem:[%s8369_s13 + $0xc0] sm:$0xf] }
 0x13d   : > { %v8820_v3 = vadd.f32 %v1985_v1, %v1896_v59  ;;  %2418 = vmatpush.bf16.msra.mxu0 %v7905_v44  ;;  %v7845_v1 = vld [vmem:[%s8369_s13 + $0xc4] sm:$0xf0] }
 0x13e   : > { %v8822_v53 = vadd.f32 %v1495_v27, %v1018_v18  ;;  %5991 = vmatmul.msk.bf16.gmra.mxu0 %vm774_vm0, %v5829_v23  ;;  %v1019_v49 = vadd.f32 %v8760_v62, %v967_v38  ;;  %v7844_v23 = vld [vmem:[%s8369_s13 + $0xc4] sm:$0xf]  ;;  %v5837_v27 = vor.u32 %v7740_v31, %v5834_v11 }
 0x13f   : > { %1938 = vmatmul.bf16.gmra.mxu1 %v6321_v39 }
 0x140   : > { %6207 = vmatmul.msk.bf16.gmra.mxu2 %vm774_vm0, %v6045_v35  ;;  %v6330_v35 = vld [vmem:[%s8369_s13 + $0xc8] sm:$0xf0] }
 0x141   : > { %6431 = vmatmul.msk.bf16.gmra.mxu3 %vm774_vm0, %v6325_v8 }
 0x143   : > { %v1408_v59 = vpop.f32.mrf.mxu2  ;;  %v879_v6 = vpop.f32.mrf.mxu0 }
 0x144   : > { %v1988_v46 = vpop.f32.mrf.mxu3  ;;  %v1498_v48 = vadd.f32 %v8594_v52, %v1408_v59  ;;  %v1901_v22 = vpop.f32.mrf.mxu1  ;;  %v969_v19 = vadd.f32 %v8598_v54, %v879_v6  ;;  %v6053_v52 = vor.u32 %v7784_v50, %v6050_v24 }
 0x145   : > { %v8833_v63 = vadd.f32 %v1988_v46, %v1899_v33  ;;  %v6329_v33 = vor.u32 %v7845_v1, %v6328_v14  ;;  %v7742_v1 = vld [vmem:[%s8369_s13 + $0x34] sm:$0xf] }
 0x146   : > { %v8835_v13 = vadd.f32 %v1498_v48, %v1019_v49  ;;  %v1020_v8 = vadd.f32 %v8760_v62, %v969_v19  ;;  %v6333_v49 = vor.u32 %v7844_v23, %v6330_v35  ;;  %v7904_v48 = vld [vmem:[%s10184_s3 + $0x140] sm:$0xff]  ;;  %v5842_v23 = vld [vmem:[%s8369_s13 + $0x38] sm:$0xf0] }
 0x147   : > { %2419 = vmatpush.bf16.msra.mxu0 %v7904_v48  ;;  %v7786_v35 = vld [vmem:[%s8369_s13 + $0x44] sm:$0xf] }
 0x14b   : > { %v1410_v39 = vpop.f32.mrf.mxu2  ;;  %v882_v59 = vpop.f32.mrf.mxu0 }
 0x14c   : > { %v1990_v18 = vpop.f32.mrf.mxu3  ;;  %v1500_v38 = vadd.f32 %v8610_v0, %v1410_v39  ;;  %v1904_v46 = vpop.f32.mrf.mxu1  ;;  %v972_v6 = vadd.f32 %v8614_v4, %v882_v59  ;;  %v7952_v0 = vld [vmem:[%s10184_s3 + $0x1c0] sm:$0xff]  ;;  %v7909_v39 = vld [vmem:[%s10184_s3 + $0x168] sm:$0xff] }
 0x14d   : > { %v8848_v44 = vadd.f32 %v1990_v18, %v1901_v22  ;;  %3043 = vmatpush.bf16.msra.mxu3 %v7952_v0  ;;  %v7945_v18 = vld [vmem:[%s10184_s3 + $0x188] sm:$0xff]  ;;  %2511 = vmatpush.bf16.msra.mxu2 %v7909_v39  ;;  %v7903_v39 = vld [vmem:[%s10184_s3 + $0x138] sm:$0xff] }
 0x14e   : > { %v8850_v54 = vadd.f32 %v1500_v38, %v1020_v8  ;;  %5992 = vmatmul.msk.bf16.gmra.mxu0 %vm774_vm0, %v5837_v27  ;;  %v1021_v11 = vadd.f32 %v8760_v62, %v972_v6  ;;  %v7846_v8 = vld [vmem:[%s8369_s13 + $0xd4] sm:$0xf]  ;;  %v6338_v38 = vld [vmem:[%s8369_s13 + $0xd8] sm:$0xf0]  ;;  %2953 = vmatpush.bf16.msra.mxu1 %v7945_v18 }
 0x14f   : > { %1943 = vmatmul.bf16.gmra.mxu1 %v6329_v33  ;;  %v7847_v33 = vld [vmem:[%s8369_s13 + $0xd4] sm:$0xf0]  ;;  %2420 = vmatpush.bf16.msra.mxu0 %v7903_v39 }
 0x150   : > { %6208 = vmatmul.msk.bf16.gmra.mxu2 %vm774_vm0, %v6053_v52  ;;  %v6336_v52 = vld [vmem:[%s8369_s13 + $0xd0] sm:$0xf] }
 0x151   : > { %6432 = vmatmul.msk.bf16.gmra.mxu3 %vm774_vm0, %v6333_v49  ;;  %v5845_v49 = vor.u32 %v7742_v1, %v5842_v23  ;;  %v6337_v6 = vor.u32 %v7847_v33, %v6336_v52  ;;  %v7744_v52 = vld [vmem:[%s8369_s13 + $0x44] sm:$0xf]  ;;  %v5850_v33 = vld [vmem:[%s8369_s13 + $0x48] sm:$0xf0] }
 0x153   : > { %v1413_v22 = vpop.f32.mrf.mxu2  ;;  %v884_v19 = vpop.f32.mrf.mxu0 }
 0x154   : > { %v1993_v31 = vpop.f32.mrf.mxu3  ;;  %v1503_v4 = vadd.f32 %v8622_v9, %v1413_v22  ;;  %v1906_v24 = vpop.f32.mrf.mxu1  ;;  %v974_v27 = vadd.f32 %v8626_v12, %v884_v19  ;;  %v6058_v9 = vld [vmem:[%s8369_s13 + $0x48] sm:$0xf0] }
 0x155   : > { %v8864_v50 = vadd.f32 %v1993_v31, %v1904_v46  ;;  %v6061_v48 = vor.u32 %v7786_v35, %v6058_v9 }
 0x156   : > { %v8866_v14 = vadd.f32 %v1503_v4, %v1021_v11  ;;  %v1022_v0 = vadd.f32 %v8760_v62, %v974_v27  ;;  %v6341_v4 = vor.u32 %v7846_v8, %v6338_v38  ;;  %v7788_v8 = vld [vmem:[%s8369_s13 + $0x54] sm:$0xf] }
 0x157   : > { %v7902_v38 = vld [vmem:[%s10184_s3 + $0x130] sm:$0xff] }
 0x158   : > { %2421 = vmatpush.bf16.msra.mxu0 %v7902_v38 }
 0x15b   : > { %v1415_v59 = vpop.f32.mrf.mxu2  ;;  %v887_v11 = vpop.f32.mrf.mxu0 }
 0x15c   : > { %v1995_v46 = vpop.f32.mrf.mxu3  ;;  %v1505_v22 = vadd.f32 %v8641_v28, %v1415_v59  ;;  %v1909_v12 = vpop.f32.mrf.mxu1  ;;  %v977_v1 = vadd.f32 %v8645_v36, %v887_v11  ;;  %v5853_v11 = vor.u32 %v7744_v52, %v5850_v33 }
 0x15d   : > { %v8885_v31 = vadd.f32 %v1995_v46, %v1906_v24  ;;  %v6066_v46 = vld [vmem:[%s8369_s13 + $0x58] sm:$0xf0] }
 0x15e   : > { %v8887_v19 = vadd.f32 %v1505_v22, %v1022_v0  ;;  %5993 = vmatmul.msk.bf16.gmra.mxu0 %vm774_vm0, %v5845_v49  ;;  %v1023_v23 = vadd.f32 %v8760_v62, %v977_v1  ;;  %v6344_v49 = vld [vmem:[%s8369_s13 + $0xe0] sm:$0xf] }
 0x15f   : > { %1948 = vmatmul.bf16.gmra.mxu1 %v6337_v6  ;;  %v7848_v6 = vld [vmem:[%s8369_s13 + $0xe4] sm:$0xf] }
 0x160   : > { %6209 = vmatmul.msk.bf16.gmra.mxu2 %vm774_vm0, %v6061_v48  ;;  %v7849_v48 = vld [vmem:[%s8369_s13 + $0xe4] sm:$0xf0] }
 0x161   : > { %6433 = vmatmul.msk.bf16.gmra.mxu3 %vm774_vm0, %v6341_v4  ;;  %v6345_v4 = vor.u32 %v7849_v48, %v6344_v49  ;;  %v7746_v49 = vld [vmem:[%s8369_s13 + $0x54] sm:$0xf]  ;;  %v5858_v48 = vld [vmem:[%s8369_s13 + $0x58] sm:$0xf0] }
 0x163   : > { %v1418_v28 = vpop.f32.mrf.mxu2  ;;  %v889_v27 = vpop.f32.mrf.mxu0 }
 0x164   : > { %v1998_v24 = vpop.f32.mrf.mxu3  ;;  %v1508_v35 = vadd.f32 %v8650_v40, %v1418_v28  ;;  %v1911_v36 = vpop.f32.mrf.mxu1  ;;  %v979_v59 = vadd.f32 %v8654_v42, %v889_v27  ;;  %v6346_v40 = vld [vmem:[%s8369_s13 + $0xe8] sm:$0xf0] }
 0x165   : > { %v8898_v18 = vadd.f32 %v1998_v24, %v1909_v12  ;;  %v6069_v12 = vor.u32 %v7788_v8, %v6066_v46  ;;  %v6349_v42 = vor.u32 %v7848_v6, %v6346_v40  ;;  %v7790_v6 = vld [vmem:[%s8369_s13 + $0x64] sm:$0xf] }
 0x166   : > { %v8900_v9 = vadd.f32 %v1508_v35, %v1023_v23  ;;  %v1024_v39 = vadd.f32 %v8760_v62, %v979_v59  ;;  %v7944_v40 = vld [vmem:[%s10184_s3 + $0x180] sm:$0xff] }
 0x167   : > { %2954 = vmatpush.bf16.msra.mxu1 %v7944_v40 }
 0x16b   : > { %v1420_v0 = vpop.f32.mrf.mxu2  ;;  %v892_v24 = vpop.f32.mrf.mxu0 }
 0x16c   : > { %v2000_v22 = vpop.f32.mrf.mxu3  ;;  %v1510_v1 = vadd.f32 %v8666_v60, %v1420_v0  ;;  %v1914_v23 = vpop.f32.mrf.mxu1  ;;  %v982_v27 = vadd.f32 %v8670_v2, %v892_v24  ;;  %v7908_v60 = vld [vmem:[%s10184_s3 + $0x160] sm:$0xff]  ;;  %v7901_v0 = vld [vmem:[%s10184_s3 + $0x128] sm:$0xff] }
 0x16d   : > { %v8916_v28 = vadd.f32 %v2000_v22, %v1911_v36  ;;  %2512 = vmatpush.bf16.msra.mxu2 %v7908_v60  ;;  %2422 = vmatpush.bf16.msra.mxu0 %v7901_v0 }
 0x16e   : > { %v8918_v35 = vadd.f32 %v1510_v1, %v1024_v39  ;;  %5994 = vmatmul.msk.bf16.gmra.mxu0 %vm774_vm0, %v5853_v11  ;;  %v1025_v33 = vadd.f32 %v8760_v62, %v982_v27  ;;  %v6352_v11 = vld [vmem:[%s8369_s13 + $0xf0] sm:$0xf]  ;;  %v6354_v39 = vld [vmem:[%s8369_s13 + $0xf8] sm:$0xf0] }
 0x16f   : > { %1953 = vmatmul.bf16.gmra.mxu1 %v6345_v4  ;;  %v7850_v4 = vld [vmem:[%s8369_s13 + $0xf4] sm:$0xf] }
 0x170   : > { %6210 = vmatmul.msk.bf16.gmra.mxu2 %vm774_vm0, %v6069_v12  ;;  %v7851_v12 = vld [vmem:[%s8369_s13 + $0xf4] sm:$0xf0] }
 0x171   : > { %6434 = vmatmul.msk.bf16.gmra.mxu3 %vm774_vm0, %v6349_v42  ;;  %v6353_v27 = vor.u32 %v7851_v12, %v6352_v11  ;;  %v7748_v11 = vld [vmem:[%s8369_s13 + $0x64] sm:$0xf]  ;;  %v5866_v12 = vld [vmem:[%s8369_s13 + $0x68] sm:$0xf0] }
 0x173   : > { %v1423_v36 = vpop.f32.mrf.mxu2  ;;  %v894_v38 = vpop.f32.mrf.mxu0 }
 0x174   : > { %v2003_v52 = vpop.f32.mrf.mxu3  ;;  %v1513_v2 = vadd.f32 %v8675_v15, %v1423_v36  ;;  %v1916_v59 = vpop.f32.mrf.mxu1  ;;  %v984_v22 = vadd.f32 %v8679_v17, %v894_v38  ;;  %v6074_v15 = vld [vmem:[%s8369_s13 + $0x68] sm:$0xf0] }
 0x175   : > { %v8929_v8 = vadd.f32 %v2003_v52, %v1914_v23  ;;  %v5861_v23 = vor.u32 %v7746_v49, %v5858_v48  ;;  %v6077_v42 = vor.u32 %v7790_v6, %v6074_v15 }
 0x176   : > { %v8931_v46 = vadd.f32 %v1513_v2, %v1025_v33  ;;  %v1026_v60 = vadd.f32 %v8760_v62, %v984_v22  ;;  %v6357_v2 = vor.u32 %v7850_v4, %v6354_v39  ;;  %v7792_v4 = vld [vmem:[%s8369_s13 + $0x74] sm:$0xf] }
 0x17b   : > { %v1425_v1 = vpop.f32.mrf.mxu2  ;;  %v897_v17 = vpop.f32.mrf.mxu0 }
 0x17c   : > { %v2005_v24 = vpop.f32.mrf.mxu3  ;;  %v1515_v36 = vadd.f32 %v8694_v45, %v1425_v1  ;;  %v1919_v33 = vpop.f32.mrf.mxu1  ;;  %v987_v49 = vadd.f32 %v8698_v55, %v897_v17  ;;  %v7900_v45 = vld [vmem:[%s10184_s3 + $0x120] sm:$0xff]  ;;  %v6082_v1 = vld [vmem:[%s8369_s13 + $0x78] sm:$0xf0] }
 0x17d   : > { %v8950_v52 = vadd.f32 %v2005_v24, %v1916_v59  ;;  %2423 = vmatpush.bf16.msra.mxu0 %v7900_v45  ;;  %v6360_v24 = vld [vmem:[%s8369_s13 + $0x100] sm:$0xf]  ;;  %v6085_v17 = vor.u32 %v7792_v4, %v6082_v1 }
 0x17e   : > { %v8952_v38 = vadd.f32 %v1515_v36, %v1026_v60  ;;  %5995 = vmatmul.msk.bf16.gmra.mxu0 %vm774_vm0, %v5861_v23  ;;  %v1027_v55 = vadd.f32 %v8760_v62, %v987_v49  ;;  %v7853_v23 = vld [vmem:[%s8369_s13 + $0x104] sm:$0xf0]  ;;  %v5869_v36 = vor.u32 %v7748_v11, %v5866_v12 }
 0x17f   : > { %1958 = vmatmul.bf16.gmra.mxu1 %v6353_v27  ;;  %v6362_v27 = vld [vmem:[%s8369_s13 + $0x108] sm:$0xf0] }
 0x180   : > { %6211 = vmatmul.msk.bf16.gmra.mxu2 %vm774_vm0, %v6077_v42  ;;  %v7852_v42 = vld [vmem:[%s8369_s13 + $0x104] sm:$0xf] }
 0x181   : > { %6435 = vmatmul.msk.bf16.gmra.mxu3 %vm774_vm0, %v6357_v2 }
 0x183   : > { %v1428_v59 = vpop.f32.mrf.mxu2  ;;  %v899_v0 = vpop.f32.mrf.mxu0 }
 0x184   : > { %v2008_v48 = vpop.f32.mrf.mxu3  ;;  %v1518_v6 = vadd.f32 %v8703_v61, %v1428_v59  ;;  %v1921_v22 = vpop.f32.mrf.mxu1  ;;  %v989_v39 = vadd.f32 %v8707_v5, %v899_v0 }
 0x185   : > { %v8964_v40 = vadd.f32 %v2008_v48, %v1919_v33  ;;  %v6361_v33 = vor.u32 %v7853_v23, %v6360_v24  ;;  %v6365_v48 = vor.u32 %v7852_v42, %v6362_v27  ;;  %v6368_v23 = vld [vmem:[%s8369_s13 + $0x110] sm:$0xf]  ;;  %v7855_v42 = vld [vmem:[%s8369_s13 + $0x114] sm:$0xf0]  ;;  %v7854_v27 = vld [vmem:[%s8369_s13 + $0x114] sm:$0xf] }
 0x186   : > { %v8966_v15 = vadd.f32 %v1518_v6, %v1027_v55  ;;  %v1028_v2 = vadd.f32 %v8760_v62, %v989_v39  ;;  %v7999_v6 = vld [vmem:[%s10184_s3 + $0x238] sm:$0xff] }
 0x187   : > { %3571 = vmatpush.bf16.msrb.mxu2 %v7999_v6 }
 0x18b   : > { %v1430_v60 = vpop.f32.mrf.mxu2  ;;  %v902_v59 = vpop.f32.mrf.mxu0 }
 0x18c   : > { %v2010_v61 = vpop.f32.mrf.mxu3  ;;  %v1520_v49 = vadd.f32 %v8719_v37, %v1430_v60  ;;  %v1924_v5 = vpop.f32.mrf.mxu1  ;;  %v992_v0 = vadd.f32 %v8723_v57, %v902_v59  ;;  %v8043_v37 = vld [vmem:[%s10184_s3 + $0x298] sm:$0xff] }
 0x18d   : > { %v8979_v45 = vadd.f32 %v2010_v61, %v1921_v22  ;;  %4102 = vmatpush.bf16.msrb.mxu3 %v8043_v37  ;;  %v8039_v60 = vld [vmem:[%s10184_s3 + $0x278] sm:$0xff] }
 0x18e   : > { %v8981_v55 = vadd.f32 %v1520_v49, %v1028_v2  ;;  %5996 = vmatmul.msk.bf16.gmra.mxu0 %vm774_vm0, %v5869_v36  ;;  %v1029_v12 = vadd.f32 %v8760_v62, %v992_v0  ;;  %v6370_v36 = vld [vmem:[%s8369_s13 + $0x118] sm:$0xf0]  ;;  %v7868_v2 = vld [vmem:[%s9001_s19 + $0x4] sm:$0xf]  ;;  %v6466_v49 = vld [vmem:[%s9001_s19 + $0x8] sm:$0xf0]  ;;  %4009 = vmatpush.bf16.msrb.mxu1 %v8039_v60 }
 0x18f   : > { %1963 = vmatmul.bf16.gmra.mxu1 %v6361_v33  ;;  %v7869_v33 = vld [vmem:[%s9001_s19 + $0x4] sm:$0xf0]  ;;  %v6373_v6 = vor.u32 %v7854_v27, %v6370_v36 }
 0x190   : > { %6212 = vmatmul.msk.bf16.gmra.mxu2 %vm774_vm0, %v6085_v17  ;;  %v6464_v17 = vld [vmem:[%s9001_s19] sm:$0xf] }
 0x191   : > { %6436 = vmatmul.msk.bf16.gmra.mxu3 %vm774_vm0, %v6365_v48  ;;  %v6369_v48 = vor.u32 %v7855_v42, %v6368_v23  ;;  %v6465_v0 = vor.u32 %v7869_v33, %v6464_v17  ;;  %v7870_v17 = vld [vmem:[%s9001_s19 + $0x14] sm:$0xf]  ;;  %v6474_v33 = vld [vmem:[%s9001_s19 + $0x18] sm:$0xf0] }
 0x193   : > { %v1433_v22 = vpop.f32.mrf.mxu2  ;;  %v904_v39 = vpop.f32.mrf.mxu0 }
 0x194   : > { %v2013_v11 = vpop.f32.mrf.mxu3  ;;  %v1523_v57 = vadd.f32 %v8731_v20, %v1433_v22  ;;  %v1926_v1 = vpop.f32.mrf.mxu1  ;;  %v7995_v20 = vld [vmem:[%s10184_s3 + $0x218] sm:$0xff]  ;;  %v994_v61 = vadd.f32 %v8735_v21, %v904_v39 }
 0x195   : > { %v8996_v4 = vadd.f32 %v2013_v11, %v1924_v5  ;;  %3478 = vmatpush.bf16.msrb.mxu0 %v7995_v20 }
 0x196   : > { %v9003_v24 = vadd.f32 %v1523_v57, %v1029_v12  ;;  %v1030_v37 = vadd.f32 %v8760_v62, %v994_v61  ;;  %v6469_v57 = vor.u32 %v7868_v2, %v6466_v49  ;;  %v6680_v2 = vld [vmem:[%s9001_s19 + $0x10] sm:$0xf] }
 0x19b   : > { %v1435_v59 = vpop.f32.mrf.mxu2  ;;  %v907_v12 = vpop.f32.mrf.mxu0 }
 0x19c   : > { %v2015_v5 = vpop.f32.mrf.mxu3  ;;  %v1525_v22 = vadd.f32 %v8750_v34, %v1435_v59  ;;  %v1929_v21 = vpop.f32.mrf.mxu1  ;;  %v997_v23 = vadd.f32 %v8752_v16, %v907_v12  ;;  %v7913_v59 = vld [vmem:[%s9001_s19 + $0x14] sm:$0xf0] }
 0x19d   : > { %v9022_v11 = vadd.f32 %v2015_v5, %v1926_v1  ;;  %v6472_v5 = vld [vmem:[%s9001_s19 + $0x10] sm:$0xf]  ;;  %v6681_v12 = vor.u32 %v7913_v59, %v6680_v2  ;;  %v7872_v59 = vld [vmem:[%s9001_s19 + $0x24] sm:$0xf] }
 0x19e   : > { %v9024_v39 = vadd.f32 %v1525_v22, %v1030_v37  ;;  %2424 = vmatmul.bf16.vlgmr.msra.gmra.mxu0 %v6465_v0  ;;  %v1031_v20 = vadd.f32 %v8760_v62, %v997_v23  ;;  %v6682_v0 = vld [vmem:[%s9001_s19 + $0x18] sm:$0xf0]  ;;  %v6477_v22 = vor.u32 %v7870_v17, %v6474_v33 }
 0x19f   : > { %1968 = vmatmul.bf16.gmra.mxu1 %v6369_v48  ;;  %v7871_v48 = vld [vmem:[%s9001_s19 + $0x14] sm:$0xf0] }
 0x1a0   : > { %6638 = vmatmul.msk.bf16.vlgmr.msra.gmra.mxu2 %vm774_vm0, %v6469_v57 }
 0x1a1   : > { %6437 = vmatmul.msk.bf16.gmra.mxu3 %vm774_vm0, %v6373_v6  ;;  %v7912_v6 = vld [vmem:[%s9001_s19 + $0x14] sm:$0xf] }
 0x1a3   : > { %v1438_v34 = vpop.f32.mrf.mxu2  ;;  %v909_v60 = vpop.f32.mrf.mxu0 }
 0x1a4   : > { %v2018_v1 = vpop.f32.mrf.mxu3  ;;  %v1528_v42 = vadd.f32 %v8764_v56, %v1438_v34  ;;  %v1931_v61 = vpop.f32.mrf.mxu1  ;;  %v999_v49 = vadd.f32 %v8768_v29, %v909_v60 }
 0x1a5   : > { %v2019_v27 = vadd.f32 %v2018_v1, %v1929_v21  ;;  %v6473_v21 = vor.u32 %v7871_v48, %v6472_v5  ;;  %v7994_v5 = vld [vmem:[%s10184_s3 + $0x210] sm:$0xff]  ;;  %v6482_v48 = vld [vmem:[%s9001_s19 + $0x28] sm:$0xf0] }
 0x1a6   : > { %v9031_v36 = vadd.f32 %v1528_v42, %v1031_v20  ;;  %v1032_v57 = vadd.f32 %v8760_v62, %v999_v49  ;;  %v6685_v20 = vor.u32 %v7912_v6, %v6682_v0  ;;  %v6688_v6 = vld [vmem:[%s9001_s19 + $0x20] sm:$0xf]  ;;  %3479 = vmatpush.bf16.msrb.mxu0 %v7994_v5 }
 0x1a7   : > { %v9034_v16 = vadd.f32 %v2019_v27, %v8770_v10 }
 0x1ab   : > { %v1440_v37 = vpop.f32.mrf.mxu2  ;;  %v921_v34 = vpop.f32.mrf.mxu0 }
 0x1ac   : > { %v2020_v56 = vpop.f32.mrf.mxu3  ;;  %v1530_v10 = vadd.f32 %v8784_v41, %v1440_v37  ;;  %v1934_v1 = vpop.f32.mrf.mxu1  ;;  %v922_v27 = vadd.f32 %v921_v34, %v8559_v26  ;;  %v7915_v37 = vld [vmem:[%s9001_s19 + $0x24] sm:$0xf0] }
 0x1ad   : > { %v2021_v23 = vadd.f32 %v2020_v56, %v1931_v61  ;;  %v6480_v56 = vld [vmem:[%s9001_s19 + $0x20] sm:$0xf]  ;;  %v6689_v34 = vor.u32 %v7915_v37, %v6688_v6 }
 0x1ae   : > { %v9047_v42 = vadd.f32 %v1530_v10, %v1032_v57  ;;  %2429 = vmatmul.bf16.gmra.mxu0 %v6473_v21  ;;  %v1001_v61 = vadd.f32 %v8760_v62, %v922_v27  ;;  %v6690_v21 = vld [vmem:[%s9001_s19 + $0x28] sm:$0xf0]  ;;  %v10211_v37 = vld [vmem:[#allocation2_spill] sm:$0xff] }
 0x1af   : > { %v9050_v29 = vadd.f32 %v2021_v23, %v8788_v58  ;;  %2955 = vmatmul.bf16.vlgmr.msra.gmra.mxu1 %v6681_v12  ;;  %v7914_v12 = vld [vmem:[%s9001_s19 + $0x24] sm:$0xf]  ;;  %v6485_v23 = vor.u32 %v7872_v59, %v6482_v48 }
 0x1b0   : > { %6639 = vmatmul.msk.bf16.gmra.mxu2 %vm774_vm0, %v6477_v22  ;;  %v7873_v22 = vld [vmem:[%s9001_s19 + $0x24] sm:$0xf0] }
 0x1b1   : > { %6854 = vmatmul.msk.bf16.vlgmr.msra.gmra.mxu3 %vm774_vm0, %v6685_v20 }
 0x1b3   : > { %v1452_v41 = vpop.f32.mrf.mxu2  ;;  %v923_v33 = vpop.f32.mrf.mxu0 }
 0x1b4   : > { %v2023_v60 = vpop.f32.mrf.mxu3  ;;  %v1453_v58 = vadd.f32 %v1452_v41, %v8564_v30  ;;  %v1936_v2 = vpop.f32.mrf.mxu1  ;;  %v8038_v30 = vld [vmem:[%s10184_s3 + $0x270] sm:$0xff]  ;;  %v924_v0 = vadd.f32 %v923_v33, %v8568_v32 }
 0x1b5   : > { %v2024_v17 = vadd.f32 %v2023_v60, %v1934_v1  ;;  %4010 = vmatpush.bf16.msrb.mxu1 %v8038_v30  ;;  %v6481_v1 = vor.u32 %v7873_v22, %v6480_v56  ;;  %v7874_v30 = vld [vmem:[%s9001_s19 + $0x34] sm:$0xf]  ;;  %v7917_v22 = vld [vmem:[%s9001_s19 + $0x34] sm:$0xf0] }
 0x1b6   : > { %v1532_v49 = vadd.f32 %v1453_v58, %v1001_v61  ;;  %v1002_v20 = vadd.f32 %v8760_v62, %v924_v0  ;;  %v6693_v61 = vor.u32 %v7914_v12, %v6690_v21  ;;  %v6490_v0 = vld [vmem:[%s9001_s19 + $0x38] sm:$0xf0]  ;;  %v6488_v12 = vld [vmem:[%s9001_s19 + $0x30] sm:$0xf]  ;;  %v7875_v21 = vld [vmem:[%s9001_s19 + $0x34] sm:$0xf0] }
 0x1b7   : > { %v9058_v26 = vadd.f32 %v2024_v17, %v8801_v7 }
 0x1b8   : > { %v9074_v7 = vadd.f32 %v8799_v25, %v1532_v49 }
 0x1bb   : > { %v1454_v57 = vpop.f32.mrf.mxu2  ;;  %v926_v41 = vpop.f32.mrf.mxu0 }
 0x1bc   : > { %v2025_v10 = vpop.f32.mrf.mxu3  ;;  %v1455_v27 = vadd.f32 %v1454_v57, %v8583_v43  ;;  %v1939_v60 = vpop.f32.mrf.mxu1  ;;  %v927_v17 = vadd.f32 %v926_v41, %v8587_v47 }
 0x1bd   : > { %v2026_v32 = vadd.f32 %v2025_v10, %v1936_v2  ;;  %v7916_v10 = vld [vmem:[%s9001_s19 + $0x34] sm:$0xf] }
 0x1be   : > { %v1533_v58 = vadd.f32 %v1455_v27, %v1002_v20  ;;  %2434 = vmatmul.bf16.gmra.mxu0 %v6481_v1  ;;  %v1003_v2 = vadd.f32 %v8760_v62, %v927_v17  ;;  %v6493_v1 = vor.u32 %v7874_v30, %v6490_v0  ;;  %v6489_v27 = vor.u32 %v7875_v21, %v6488_v12  ;;  %v10214_v30 = vld [vmem:[#allocation5_spill] sm:$0xff]  ;;  %v7876_v12 = vld [vmem:[%s9001_s19 + $0x44] sm:$0xf]  ;;  %v7993_v21 = vld [vmem:[%s10184_s3 + $0x208] sm:$0xff] }
 0x1bf   : > { %v9081_v25 = vadd.f32 %v2026_v32, %v8822_v53  ;;  %2960 = vmatmul.bf16.gmra.mxu1 %v6689_v34  ;;  %v10212_v32 = vld [vmem:[#allocation3_spill] sm:$0xff]  ;;  %3480 = vmatpush.bf16.msrb.mxu0 %v7993_v21 }
 0x1c0   : > { %6640 = vmatmul.msk.bf16.gmra.mxu2 %vm774_vm0, %v6485_v23  ;;  %v9087_v43 = vadd.f32 %v8820_v3, %v1533_v58  ;;  %v6696_v3 = vld [vmem:[%s9001_s19 + $0x30] sm:$0xf] }
 0x1c1   : > { %6855 = vmatmul.msk.bf16.gmra.mxu3 %vm774_vm0, %v6693_v61  ;;  %v6697_v20 = vor.u32 %v7917_v22, %v6696_v3 }
 0x1c3   : > { %v1457_v33 = vpop.f32.mrf.mxu2  ;;  %v928_v47 = vpop.f32.mrf.mxu0 }
 0x1c4   : > { %v2028_v53 = vpop.f32.mrf.mxu3  ;;  %v1458_v49 = vadd.f32 %v1457_v33, %v8592_v51  ;;  %v1941_v5 = vpop.f32.mrf.mxu1  ;;  %v929_v56 = vadd.f32 %v928_v47, %v10211_v37  ;;  %v6698_v51 = vld [vmem:[%s9001_s19 + $0x38] sm:$0xf0] }
 0x1c5   : > { %v2029_v59 = vadd.f32 %v2028_v53, %v1939_v60  ;;  %v6701_v17 = vor.u32 %v7916_v10, %v6698_v51  ;;  %v6498_v10 = vld [vmem:[%s9001_s19 + $0x48] sm:$0xf0]  ;;  %v6704_v51 = vld [vmem:[%s9001_s19 + $0x40] sm:$0xf] }
 0x1c6   : > { %v1534_v48 = vadd.f32 %v1458_v49, %v1003_v2  ;;  %v10213_v2 = vld [vmem:[#allocation4_spill] sm:$0xff] }
 0x1c7   : > { %v9092_v6 = vadd.f32 %v2029_v59, %v8835_v13  ;;  %v1004_v13 = vadd.f32 %v8760_v62, %v929_v56  ;;  %v8042_v59 = vld [vmem:[%s10184_s3 + $0x290] sm:$0xff] }
 0x1c8   : > { %v9102_v57 = vadd.f32 %v8833_v63, %v1534_v48  ;;  %v7998_v63 = vld [vmem:[%s10184_s3 + $0x230] sm:$0xff]  ;;  %4103 = vmatpush.bf16.msrb.mxu3 %v8042_v59 }
 0x1c9   : > { %3572 = vmatpush.bf16.msrb.mxu2 %v7998_v63 }
 0x1cb   : > { %v1459_v23 = vpop.f32.mrf.mxu2  ;;  %v931_v61 = vpop.f32.mrf.mxu0 }
 0x1cc   : > { %v2030_v34 = vpop.f32.mrf.mxu3  ;;  %v1460_v41 = vadd.f32 %v1459_v23, %v10212_v32  ;;  %v1944_v58 = vpop.f32.mrf.mxu1  ;;  %v932_v49 = vadd.f32 %v931_v61, %v10213_v2  ;;  %v8037_v23 = vld [vmem:[%s10184_s3 + $0x268] sm:$0xff]  ;;  %v7918_v32 = vld [vmem:[%s9001_s19 + $0x44] sm:$0xf] }
 0x1cd   : > { %v2031_v60 = vadd.f32 %v2030_v34, %v1941_v5  ;;  %v10215_v34 = vld [vmem:[#allocation6_spill] sm:$0xff]  ;;  %4011 = vmatpush.bf16.msrb.mxu1 %v8037_v23  ;;  %v10216_v2 = vld [vmem:[#allocation7_spill] sm:$0xff] }
 0x1ce   : > { %v1535_v33 = vadd.f32 %v1460_v41, %v1004_v13  ;;  %2439 = vmatmul.bf16.gmra.mxu0 %v6489_v27  ;;  %v1005_v48 = vadd.f32 %v8760_v62, %v932_v49  ;;  %v6496_v27 = vld [vmem:[%s9001_s19 + $0x40] sm:$0xf]  ;;  %v7877_v13 = vld [vmem:[%s9001_s19 + $0x44] sm:$0xf0]  ;;  %v6706_v41 = vld [vmem:[%s9001_s19 + $0x48] sm:$0xf0] }
 0x1cf   : > { %v9109_v53 = vadd.f32 %v2031_v60, %v8850_v54  ;;  %2965 = vmatmul.bf16.gmra.mxu1 %v6697_v20  ;;  %v7919_v20 = vld [vmem:[%s9001_s19 + $0x44] sm:$0xf0] }
 0x1d0   : > { %6641 = vmatmul.msk.bf16.gmra.mxu2 %vm774_vm0, %v6493_v1  ;;  %v9121_v54 = vadd.f32 %v8848_v44, %v1535_v33  ;;  %v6497_v33 = vor.u32 %v7877_v13, %v6496_v27  ;;  %v6506_v27 = vld [vmem:[%s9001_s19 + $0x58] sm:$0xf0]  ;;  %v10219_v13 = vld [vmem:[#allocation10_spill] sm:$0xff] }
 0x1d1   : > { %6856 = vmatmul.msk.bf16.gmra.mxu3 %vm774_vm0, %v6701_v17  ;;  %v6705_v17 = vor.u32 %v7919_v20, %v6704_v51  ;;  %v7878_v20 = vld [vmem:[%s9001_s19 + $0x54] sm:$0xf] }
 0x1d3   : > { %v1462_v47 = vpop.f32.mrf.mxu2  ;;  %v933_v37 = vpop.f32.mrf.mxu0 }
 0x1d4   : > { %v2033_v5 = vpop.f32.mrf.mxu3  ;;  %v1463_v0 = vadd.f32 %v1462_v47, %v10214_v30  ;;  %v1946_v56 = vpop.f32.mrf.mxu1  ;;  %v934_v1 = vadd.f32 %v933_v37, %v10215_v34 }
 0x1d5   : > { %v2034_v3 = vadd.f32 %v2033_v5, %v1944_v58  ;;  %v6501_v58 = vor.u32 %v7876_v12, %v6498_v10  ;;  %v10218_v12 = vld [vmem:[#allocation9_spill] sm:$0xff] }
 0x1d6   : > { %v1536_v22 = vadd.f32 %v1463_v0, %v1005_v48  ;;  %v1006_v63 = vadd.f32 %v8760_v62, %v934_v1  ;;  %v6709_v48 = vor.u32 %v7918_v32, %v6706_v41  ;;  %v10217_v0 = vld [vmem:[#allocation8_spill] sm:$0xff]  ;;  %v7921_v41 = vld [vmem:[%s9001_s19 + $0x54] sm:$0xf0] }
 0x1d7   : > { %v9126_v44 = vadd.f32 %v2034_v3, %v8866_v14 }
 0x1d8   : > { %v9142_v14 = vadd.f32 %v8864_v50, %v1536_v22 }
 0x1db   : > { %v1464_v60 = vpop.f32.mrf.mxu2  ;;  %v936_v47 = vpop.f32.mrf.mxu0 }
 0x1dc   : > { %v2035_v61 = vpop.f32.mrf.mxu3  ;;  %v1465_v49 = vadd.f32 %v1464_v60, %v10216_v2  ;;  %v1949_v5 = vpop.f32.mrf.mxu1  ;;  %v937_v3 = vadd.f32 %v936_v47, %v10217_v0  ;;  %v6504_v60 = vld [vmem:[%s9001_s19 + $0x50] sm:$0xf] }
 0x1dd   : > { %v2036_v59 = vadd.f32 %v2035_v61, %v1946_v56  ;;  %v7879_v61 = vld [vmem:[%s9001_s19 + $0x54] sm:$0xf0] }
 0x1de   : > { %v1537_v30 = vadd.f32 %v1465_v49, %v1006_v63  ;;  %2444 = vmatmul.bf16.gmra.mxu0 %v6497_v33  ;;  %v1007_v22 = vadd.f32 %v8760_v62, %v937_v3  ;;  %v6714_v33 = vld [vmem:[%s9001_s19 + $0x58] sm:$0xf0]  ;;  %v6509_v49 = vor.u32 %v7878_v20, %v6506_v27  ;;  %v6505_v47 = vor.u32 %v7879_v61, %v6504_v60  ;;  %v6514_v60 = vld [vmem:[%s9001_s19 + $0x68] sm:$0xf0]  ;;  %v6720_v61 = vld [vmem:[%s9001_s19 + $0x60] sm:$0xf] }
 0x1df   : > { %v9149_v50 = vadd.f32 %v2036_v59, %v8887_v19  ;;  %2970 = vmatmul.bf16.gmra.mxu1 %v6705_v17  ;;  %v7920_v17 = vld [vmem:[%s9001_s19 + $0x54] sm:$0xf] }
 0x1e0   : > { %6642 = vmatmul.msk.bf16.gmra.mxu2 %vm774_vm0, %v6501_v58  ;;  %v9155_v37 = vadd.f32 %v8885_v31, %v1537_v30  ;;  %v6712_v31 = vld [vmem:[%s9001_s19 + $0x50] sm:$0xf] }
 0x1e1   : > { %6857 = vmatmul.msk.bf16.gmra.mxu3 %vm774_vm0, %v6709_v48  ;;  %v6713_v59 = vor.u32 %v7921_v41, %v6712_v31  ;;  %v7992_v41 = vld [vmem:[%s10184_s3 + $0x200] sm:$0xff] }
 0x1e2   : > { %3481 = vmatpush.bf16.msrb.mxu0 %v7992_v41 }
 0x1e3   : > { %v1467_v56 = vpop.f32.mrf.mxu2  ;;  %v938_v51 = vpop.f32.mrf.mxu0 }
 0x1e4   : > { %v2038_v19 = vpop.f32.mrf.mxu3  ;;  %v1468_v21 = vadd.f32 %v1467_v56, %v10218_v12  ;;  %v1951_v23 = vpop.f32.mrf.mxu1  ;;  %v939_v32 = vadd.f32 %v938_v51, %v10219_v13  ;;  %v6717_v56 = vor.u32 %v7920_v17, %v6714_v33  ;;  %v8036_v17 = vld [vmem:[%s10184_s3 + $0x260] sm:$0xff] }
 0x1e5   : > { %v2039_v10 = vadd.f32 %v2038_v19, %v1949_v5  ;;  %v10220_v5 = vld [vmem:[#allocation11_spill] sm:$0xff]  ;;  %v10223_v33 = vld [vmem:[#allocation14_spill] sm:$0xff]  ;;  %4012 = vmatpush.bf16.msrb.mxu1 %v8036_v17 }
 0x1e6   : > { %v1538_v34 = vadd.f32 %v1468_v21, %v1007_v22 }
 0x1e7   : > { %v9160_v1 = vadd.f32 %v2039_v10, %v8900_v9  ;;  %v1008_v9 = vadd.f32 %v8760_v62, %v939_v32  ;;  %v7880_v32 = vld [vmem:[%s9001_s19 + $0x64] sm:$0xf] }
 0x1e8   : > { %v9170_v58 = vadd.f32 %v8898_v18, %v1538_v34  ;;  %v10221_v18 = vld [vmem:[#allocation12_spill] sm:$0xff] }
 0x1eb   : > { %v1469_v63 = vpop.f32.mrf.mxu2  ;;  %v941_v0 = vpop.f32.mrf.mxu0 }
 0x1ec   : > { %v2040_v2 = vpop.f32.mrf.mxu3  ;;  %v1470_v48 = vadd.f32 %v1469_v63, %v10220_v5  ;;  %v1954_v3 = vpop.f32.mrf.mxu1  ;;  %v942_v12 = vadd.f32 %v941_v0, %v10221_v18 }
 0x1ed   : > { %v2041_v30 = vadd.f32 %v2040_v2, %v1951_v23  ;;  %v10222_v23 = vld [vmem:[#allocation13_spill] sm:$0xff]  ;;  %v7923_v2 = vld [vmem:[%s9001_s19 + $0x64] sm:$0xf0] }
 0x1ee   : > { %v1539_v19 = vadd.f32 %v1470_v48, %v1008_v9  ;;  %2449 = vmatmul.bf16.gmra.mxu0 %v6505_v47  ;;  %v7922_v47 = vld [vmem:[%s9001_s19 + $0x64] sm:$0xf]  ;;  %v6722_v9 = vld [vmem:[%s9001_s19 + $0x68] sm:$0xf0]  ;;  %v6721_v0 = vor.u32 %v7923_v2, %v6720_v61  ;;  %v7882_v2 = vld [vmem:[%s9001_s19 + $0x74] sm:$0xf] }
 0x1ef   : > { %v9177_v22 = vadd.f32 %v2041_v30, %v8918_v35  ;;  %2975 = vmatmul.bf16.gmra.mxu1 %v6713_v59  ;;  %v9188_v35 = vld [vmem:[%s10185_s4] ss:$0 sm:$0xff]  ;;  %v7881_v59 = vld [vmem:[%s9001_s19 + $0x64] sm:$0xf0]  ;;  %v6517_v30 = vor.u32 %v7880_v32, %v6514_v60  ;;  %v10226_v32 = vld [vmem:[#allocation17_spill] sm:$0xff] }
 0x1f0   : > { %6643 = vmatmul.msk.bf16.gmra.mxu2 %vm774_vm0, %v6509_v49  ;;  %v9183_v62 = vadd.f32 %v8916_v28, %v1539_v19  ;;  %v1009_v51 = vadd.f32 %v9188_v35, %v942_v12  ;;  %v6512_v49 = vld [vmem:[%s9001_s19 + $0x60] sm:$0xf]  ;;  %v10224_v19 = vld [vmem:[#allocation15_spill] sm:$0xff] }
 0x1f1   : > { %6858 = vmatmul.msk.bf16.gmra.mxu3 %vm774_vm0, %v6717_v56 }
 0x1f3   : > { %v1472_v21 = vpop.f32.mrf.mxu2  ;;  %v943_v27 = vpop.f32.mrf.mxu0 }
 0x1f4   : > { %v2043_v10 = vpop.f32.mrf.mxu3  ;;  %v1473_v34 = vadd.f32 %v1472_v21, %v10222_v23  ;;  %v1956_v28 = vpop.f32.mrf.mxu1  ;;  %v944_v63 = vadd.f32 %v943_v27, %v10223_v33 }
 0x1f5   : > { %v2044_v20 = vadd.f32 %v2043_v10, %v1954_v3  ;;  %v6513_v3 = vor.u32 %v7881_v59, %v6512_v49  ;;  %v6522_v49 = vld [vmem:[%s9001_s19 + $0x78] sm:$0xf0]  ;;  %v10227_v59 = vld [vmem:[#allocation18_spill] sm:$0xff] }
 0x1f6   : > { %v1540_v31 = vadd.f32 %v1473_v34, %v1009_v51  ;;  %v1010_v56 = vadd.f32 %v9188_v35, %v944_v63  ;;  %v6725_v51 = vor.u32 %v7922_v47, %v6722_v9  ;;  %v10225_v34 = vld [vmem:[#allocation16_spill] sm:$0xff]  ;;  %v7925_v9 = vld [vmem:[%s9001_s19 + $0x74] sm:$0xf0] }
 0x1f7   : > { %v9193_v13 = vadd.f32 %v2044_v20, %v8931_v46 }
 0x1f8   : > { %v9209_v46 = vadd.f32 %v8929_v8, %v1540_v31 }
 0x1fb   : > { %v1474_v5 = vpop.f32.mrf.mxu2  ;;  %v946_v21 = vpop.f32.mrf.mxu0 }
 0x1fc   : > { %v2045_v48 = vpop.f32.mrf.mxu3  ;;  %v1475_v18 = vadd.f32 %v1474_v5, %v10224_v19  ;;  %v1959_v10 = vpop.f32.mrf.mxu1  ;;  %v947_v20 = vadd.f32 %v946_v21, %v10225_v34  ;;  %v6520_v5 = vld [vmem:[%s9001_s19 + $0x70] sm:$0xf] }
 0x1fd   : > { %v2046_v12 = vadd.f32 %v2045_v48, %v1956_v28  ;;  %v7883_v48 = vld [vmem:[%s9001_s19 + $0x74] sm:$0xf0] }
 0x1fe   : > { %v1541_v23 = vadd.f32 %v1475_v18, %v1010_v56  ;;  %2454 = vmatmul.bf16.gmra.mxu0 %v6513_v3  ;;  %v1011_v31 = vadd.f32 %v9188_v35, %v947_v20  ;;  %v6730_v3 = vld [vmem:[%s9001_s19 + $0x78] sm:$0xf0]  ;;  %v6525_v18 = vor.u32 %v7882_v2, %v6522_v49  ;;  %v6521_v21 = vor.u32 %v7883_v48, %v6520_v5 }
 0x1ff   : > { %v9216_v8 = vadd.f32 %v2046_v12, %v8952_v38  ;;  %2980 = vmatmul.bf16.gmra.mxu1 %v6721_v0  ;;  %v7924_v0 = vld [vmem:[%s9001_s19 + $0x74] sm:$0xf]  ;;  %v10230_v2 = vld [vmem:[#allocation21_spill] sm:$0xff] }
 0x200   : > { %6644 = vmatmul.msk.bf16.gmra.mxu2 %vm774_vm0, %v6517_v30  ;;  %v9222_v27 = vadd.f32 %v8950_v52, %v1541_v23  ;;  %v6728_v52 = vld [vmem:[%s9001_s19 + $0x70] sm:$0xf]  ;;  %v7991_v5 = vld [vmem:[%s10184_s3 + $0x1f8] sm:$0xff] }
 0x201   : > { %6859 = vmatmul.msk.bf16.gmra.mxu3 %vm774_vm0, %v6725_v51  ;;  %v6729_v12 = vor.u32 %v7925_v9, %v6728_v52  ;;  %v8035_v48 = vld [vmem:[%s10184_s3 + $0x258] sm:$0xff]  ;;  %3482 = vmatpush.bf16.msrb.mxu0 %v7991_v5 }
 0x202   : > { %4013 = vmatpush.bf16.msrb.mxu1 %v8035_v48 }
 0x203   : > { %v1477_v28 = vpop.f32.mrf.mxu2  ;;  %v948_v61 = vpop.f32.mrf.mxu0 }
 0x204   : > { %v2048_v38 = vpop.f32.mrf.mxu3  ;;  %v1478_v41 = vadd.f32 %v1477_v28, %v10226_v32  ;;  %v1961_v17 = vpop.f32.mrf.mxu1  ;;  %v949_v47 = vadd.f32 %v948_v61, %v10227_v59  ;;  %v6733_v28 = vor.u32 %v7924_v0, %v6730_v3  ;;  %v10229_v32 = vld [vmem:[#allocation20_spill] sm:$0xff]  ;;  %v7884_v0 = vld [vmem:[%s9001_s19 + $0x84] sm:$0xf]  ;;  %v6530_v3 = vld [vmem:[%s9001_s19 + $0x88] sm:$0xf0] }
 0x205   : > { %v2049_v60 = vadd.f32 %v2048_v38, %v1959_v10  ;;  %v10228_v10 = vld [vmem:[#allocation19_spill] sm:$0xff] }
 0x206   : > { %v1542_v33 = vadd.f32 %v1478_v41, %v1011_v31 }
 0x207   : > { %v9227_v63 = vadd.f32 %v2049_v60, %v8966_v15  ;;  %v1012_v15 = vadd.f32 %v9188_v35, %v949_v47  ;;  %v8041_v60 = vld [vmem:[%s10184_s3 + $0x288] sm:$0xff] }
 0x208   : > { %v9237_v30 = vadd.f32 %v8964_v40, %v1542_v33  ;;  %v7997_v40 = vld [vmem:[%s10184_s3 + $0x228] sm:$0xff]  ;;  %4104 = vmatpush.bf16.msrb.mxu3 %v8041_v60 }
 0x209   : > { %3573 = vmatpush.bf16.msrb.mxu2 %v7997_v40 }
 0x20b   : > { %v1479_v56 = vpop.f32.mrf.mxu2  ;;  %v951_v34 = vpop.f32.mrf.mxu0 }
 0x20c   : > { %v2050_v19 = vpop.f32.mrf.mxu3  ;;  %v1480_v51 = vadd.f32 %v1479_v56, %v10228_v10  ;;  %v1964_v20 = vpop.f32.mrf.mxu1  ;;  %v952_v41 = vadd.f32 %v951_v34, %v10229_v32  ;;  %v6736_v56 = vld [vmem:[%s9001_s19 + $0x80] sm:$0xf]  ;;  %v7926_v10 = vld [vmem:[%s9001_s19 + $0x84] sm:$0xf]  ;;  %v10232_v32 = vld [vmem:[#allocation23_spill] sm:$0xff] }
 0x20d   : > { %v2051_v23 = vadd.f32 %v2050_v19, %v1961_v17  ;;  %v10231_v19 = vld [vmem:[#allocation22_spill] sm:$0xff] }
 0x20e   : > { %v1543_v38 = vadd.f32 %v1480_v51, %v1012_v15  ;;  %2459 = vmatmul.bf16.gmra.mxu0 %v6521_v21  ;;  %v1013_v33 = vadd.f32 %v9188_v35, %v952_v41  ;;  %v6528_v21 = vld [vmem:[%s9001_s19 + $0x80] sm:$0xf]  ;;  %v7885_v15 = vld [vmem:[%s9001_s19 + $0x84] sm:$0xf0]  ;;  %v6738_v51 = vld [vmem:[%s9001_s19 + $0x88] sm:$0xf0] }
 0x20f   : > { %v9244_v31 = vadd.f32 %v2051_v23, %v8981_v55  ;;  %2985 = vmatmul.bf16.gmra.mxu1 %v6729_v12  ;;  %v7927_v12 = vld [vmem:[%s9001_s19 + $0x84] sm:$0xf0] }
 0x210   : > { %6645 = vmatmul.msk.bf16.gmra.mxu2 %vm774_vm0, %v6525_v18  ;;  %v9256_v55 = vadd.f32 %v8979_v45, %v1543_v38  ;;  %v6529_v38 = vor.u32 %v7885_v15, %v6528_v21  ;;  %v6746_v21 = vld [vmem:[%s9001_s19 + $0x98] sm:$0xf0] }
 0x211   : > { %6860 = vmatmul.msk.bf16.gmra.mxu3 %vm774_vm0, %v6733_v28  ;;  %v6737_v28 = vor.u32 %v7927_v12, %v6736_v56  ;;  %v7929_v56 = vld [vmem:[%s9001_s19 + $0x94] sm:$0xf0]  ;;  %v6538_v12 = vld [vmem:[%s9001_s19 + $0x98] sm:$0xf0] }
 0x213   : > { %v1482_v61 = vpop.f32.mrf.mxu2  ;;  %v953_v59 = vpop.f32.mrf.mxu0 }
 0x214   : > { %v2053_v17 = vpop.f32.mrf.mxu3  ;;  %v1483_v49 = vadd.f32 %v1482_v61, %v10230_v2  ;;  %v1966_v47 = vpop.f32.mrf.mxu1  ;;  %v954_v18 = vadd.f32 %v953_v59, %v10231_v19  ;;  %v6536_v19 = vld [vmem:[%s9001_s19 + $0x90] sm:$0xf] }
 0x215   : > { %v2054_v52 = vadd.f32 %v2053_v17, %v1964_v20  ;;  %v6533_v20 = vor.u32 %v7884_v0, %v6530_v3  ;;  %v6741_v17 = vor.u32 %v7926_v10, %v6738_v51  ;;  %v7886_v0 = vld [vmem:[%s9001_s19 + $0x94] sm:$0xf]  ;;  %v6744_v3 = vld [vmem:[%s9001_s19 + $0x90] sm:$0xf] }
 0x216   : > { %v1544_v9 = vadd.f32 %v1483_v49, %v1013_v33  ;;  %v1014_v40 = vadd.f32 %v9188_v35, %v954_v18  ;;  %v7887_v18 = vld [vmem:[%s9001_s19 + $0x94] sm:$0xf0]  ;;  %v6745_v51 = vor.u32 %v7929_v56, %v6744_v3  ;;  %v6546_v3 = vld [vmem:[%s9001_s19 + $0xa8] sm:$0xf0]  ;;  %v7930_v56 = vld [vmem:[%s9001_s19 + $0xa4] sm:$0xf] }
 0x217   : > { %v9261_v45 = vadd.f32 %v2054_v52, %v9003_v24 }
 0x218   : > { %v9277_v24 = vadd.f32 %v8996_v4, %v1544_v9 }
 0x21b   : > { %v1484_v23 = vpop.f32.mrf.mxu2  ;;  %v2425_v33 = vpop.f32.mrf.mxu0 }
 0x21c   : > { %v2055_v34 = vpop.f32.mrf.mxu3  ;;  %v1485_v41 = vadd.f32 %v1484_v23, %v10232_v32  ;;  %v1969_v61 = vpop.f32.mrf.mxu1  ;;  %v6537_v23 = vor.u32 %v7887_v18, %v6536_v19 }
 0x21d   : > { %v2056_v60 = vadd.f32 %v2055_v34, %v1966_v47 }
 0x21e   : > { %v1545_v2 = vadd.f32 %v1485_v41, %v1014_v40  ;;  %2464 = vmatmul.bf16.gmra.mxu0 %v6529_v38  ;;  %v6541_v38 = vor.u32 %v7886_v0, %v6538_v12  ;;  %v7889_v0 = vld [vmem:[%s9001_s19 + $0xa4] sm:$0xf0] }
 0x21f   : > { %v9284_v4 = vadd.f32 %v2056_v60, %v9024_v39  ;;  %2990 = vmatmul.bf16.gmra.mxu1 %v6737_v28 }
 0x220   : > { %6646 = vmatmul.msk.bf16.gmra.mxu2 %vm774_vm0, %v6533_v20  ;;  %v9289_v35 = vadd.f32 %v9022_v11, %v1545_v2  ;;  %v7928_v11 = vld [vmem:[%s9001_s19 + $0x94] sm:$0xf] }
 0x221   : > { %6861 = vmatmul.msk.bf16.gmra.mxu3 %vm774_vm0, %v6741_v17 }
 0x223   : > { %v2514_v52 = vpop.f32.mrf.mxu2  ;;  %v2427_v9 = vpop.f32.mrf.mxu0 }
 0x224   : > { %v2058_v49 = vpop.f32.mrf.mxu3  ;;  %v2515_v39 = vadd.f32 %v2514_v52, %v2425_v33  ;;  %v1971_v47 = vpop.f32.mrf.mxu1  ;;  %v8034_v52 = vld [vmem:[%s10184_s3 + $0x250] sm:$0xff] }
 0x225   : > { %v2059_v59 = vadd.f32 %v2058_v49, %v1969_v61  ;;  %v7990_v49 = vld [vmem:[%s10184_s3 + $0x1f0] sm:$0xff]  ;;  %4014 = vmatpush.bf16.msrb.mxu1 %v8034_v52  ;;  %v6554_v52 = vld [vmem:[%s9001_s19 + $0xb8] sm:$0xf0] }
 0x226   : > { %v2594_v48 = vadd.f32 %v2515_v39, %v9074_v7  ;;  %v6752_v39 = vld [vmem:[%s9001_s19 + $0xa0] sm:$0xf]  ;;  %3483 = vmatpush.bf16.msrb.mxu0 %v7990_v49  ;;  %v7891_v49 = vld [vmem:[%s9001_s19 + $0xb4] sm:$0xf0] }
 0x227   : > { %v9292_v5 = vadd.f32 %v2059_v59, %v9031_v36  ;;  %v6749_v36 = vor.u32 %v7928_v11, %v6746_v21  ;;  %v7888_v59 = vld [vmem:[%s9001_s19 + $0xa4] sm:$0xf] }
 0x22b   : > { %v2516_v10 = vpop.f32.mrf.mxu2  ;;  %v2430_v40 = vpop.f32.mrf.mxu0 }
 0x22c   : > { %v2060_v15 = vpop.f32.mrf.mxu3  ;;  %v2517_v20 = vadd.f32 %v2516_v10, %v2427_v9  ;;  %v2956_v28 = vpop.f32.mrf.mxu1  ;;  %v6544_v9 = vld [vmem:[%s9001_s19 + $0xa0] sm:$0xf]  ;;  %v6549_v10 = vor.u32 %v7888_v59, %v6546_v3  ;;  %v7932_v59 = vld [vmem:[%s9001_s19 + $0xb4] sm:$0xf] }
 0x22d   : > { %v2061_v34 = vadd.f32 %v2060_v15, %v1971_v47  ;;  %v7931_v47 = vld [vmem:[%s9001_s19 + $0xa4] sm:$0xf0]  ;;  %v6545_v12 = vor.u32 %v7889_v0, %v6544_v9 }
 0x22e   : > { %v2595_v32 = vadd.f32 %v2517_v20, %v9087_v43  ;;  %2469 = vmatmul.bf16.gmra.mxu0 %v6537_v23  ;;  %v6753_v18 = vor.u32 %v7931_v47, %v6752_v39  ;;  %v6762_v39 = vld [vmem:[%s9001_s19 + $0xb8] sm:$0xf0] }
 0x22f   : > { %v9304_v7 = vadd.f32 %v2061_v34, %v9047_v42  ;;  %2995 = vmatmul.bf16.gmra.mxu1 %v6745_v51 }
 0x230   : > { %6647 = vmatmul.msk.bf16.gmra.mxu2 %vm774_vm0, %v6541_v38 }
 0x231   : > { %6862 = vmatmul.msk.bf16.gmra.mxu3 %vm774_vm0, %v6749_v36 }
 0x233   : > { %v2519_v41 = vpop.f32.mrf.mxu2  ;;  %v2432_v33 = vpop.f32.mrf.mxu0 }
 0x234   : > { %v3045_v60 = vpop.f32.mrf.mxu3  ;;  %v2520_v61 = vadd.f32 %v2519_v41, %v2430_v40  ;;  %v2958_v17 = vpop.f32.mrf.mxu1 }
 0x235   : > { %v3046_v42 = vadd.f32 %v3045_v60, %v2956_v28 }
 0x236   : > { %v2596_v43 = vadd.f32 %v2520_v61, %v9102_v57  ;;  %v6754_v57 = vld [vmem:[%s9001_s19 + $0xa8] sm:$0xf0]  ;;  %v7890_v61 = vld [vmem:[%s9001_s19 + $0xb4] sm:$0xf] }
 0x237   : > { %v9310_v2 = vadd.f32 %v3046_v42, %v2594_v48  ;;  %v6757_v51 = vor.u32 %v7930_v56, %v6754_v57  ;;  %v6760_v42 = vld [vmem:[%s9001_s19 + $0xb0] sm:$0xf] }
 0x23b   : > { %v2521_v48 = vpop.f32.mrf.mxu2  ;;  %v2435_v23 = vpop.f32.mrf.mxu0 }
 0x23c   : > { %v3047_v19 = vpop.f32.mrf.mxu3  ;;  %v2522_v11 = vadd.f32 %v2521_v48, %v2432_v33  ;;  %v2961_v15 = vpop.f32.mrf.mxu1  ;;  %v6552_v33 = vld [vmem:[%s9001_s19 + $0xb0] sm:$0xf] }
 0x23d   : > { %v3048_v21 = vadd.f32 %v3047_v19, %v2958_v17  ;;  %v7933_v17 = vld [vmem:[%s9001_s19 + $0xb4] sm:$0xf0]  ;;  %v6553_v3 = vor.u32 %v7891_v49, %v6552_v33  ;;  %v6557_v19 = vor.u32 %v7890_v61, %v6554_v52  ;;  %v7935_v61 = vld [vmem:[%s9001_s19 + $0xc4] sm:$0xf0]  ;;  %v6562_v33 = vld [vmem:[%s9001_s19 + $0xc8] sm:$0xf0] }
 0x23e   : > { %v2597_v34 = vadd.f32 %v2522_v11, %v9121_v54  ;;  %2474 = vmatmul.bf16.gmra.mxu0 %v6545_v12  ;;  %v6761_v0 = vor.u32 %v7933_v17, %v6760_v42  ;;  %v7996_v11 = vld [vmem:[%s10184_s3 + $0x220] sm:$0xff]  ;;  %v7893_v17 = vld [vmem:[%s9001_s19 + $0xc4] sm:$0xf0] }
 0x23f   : > { %v9327_v20 = vadd.f32 %v3048_v21, %v2595_v32  ;;  %3000 = vmatmul.bf16.gmra.mxu1 %v6753_v18  ;;  %v6765_v18 = vor.u32 %v7932_v59, %v6762_v39  ;;  %v8040_v21 = vld [vmem:[%s10184_s3 + $0x280] sm:$0xff]  ;;  %3574 = vmatpush.bf16.msrb.mxu2 %v7996_v11 }
 0x240   : > { %6648 = vmatmul.msk.bf16.gmra.mxu2 %vm774_vm0, %v6549_v10  ;;  %4105 = vmatpush.bf16.msrb.mxu3 %v8040_v21  ;;  %v6560_v42 = vld [vmem:[%s9001_s19 + $0xc0] sm:$0xf]  ;;  %v7934_v49 = vld [vmem:[%s9001_s19 + $0xc4] sm:$0xf] }
 0x241   : > { %6863 = vmatmul.msk.bf16.gmra.mxu3 %vm774_vm0, %v6757_v51  ;;  %v6561_v39 = vor.u32 %v7893_v17, %v6560_v42 }
 0x243   : > { %v2524_v28 = vpop.f32.mrf.mxu2  ;;  %v2437_v54 = vpop.f32.mrf.mxu0 }
 0x244   : > { %v3050_v38 = vpop.f32.mrf.mxu3  ;;  %v2525_v36 = vadd.f32 %v2524_v28, %v2435_v23  ;;  %v2963_v41 = vpop.f32.mrf.mxu1 }
 0x245   : > { %v3051_v40 = vadd.f32 %v3050_v38, %v2961_v15 }
 0x246   : > { %v2598_v32 = vadd.f32 %v2525_v36, %v9142_v14  ;;  %v7989_v36 = vld [vmem:[%s10184_s3 + $0x1e8] sm:$0xff] }
 0x247   : > { %v9332_v60 = vadd.f32 %v3051_v40, %v2596_v43  ;;  %v8033_v40 = vld [vmem:[%s10184_s3 + $0x248] sm:$0xff]  ;;  %3484 = vmatpush.bf16.msrb.mxu0 %v7989_v36  ;;  %v7895_v36 = vld [vmem:[%s9001_s19 + $0xd4] sm:$0xf0] }
 0x248   : > { %4015 = vmatpush.bf16.msrb.mxu1 %v8033_v40  ;;  %v6570_v40 = vld [vmem:[%s9001_s19 + $0xd8] sm:$0xf0] }
 0x24b   : > { %v2526_v47 = vpop.f32.mrf.mxu2  ;;  %v2440_v14 = vpop.f32.mrf.mxu0 }
 0x24c   : > { %v3052_v9 = vpop.f32.mrf.mxu3  ;;  %v2527_v56 = vadd.f32 %v2526_v47, %v2437_v54  ;;  %v2966_v48 = vpop.f32.mrf.mxu1  ;;  %v6768_v54 = vld [vmem:[%s9001_s19 + $0xc0] sm:$0xf] }
 0x24d   : > { %v3053_v57 = vadd.f32 %v3052_v9, %v2963_v41  ;;  %v7892_v41 = vld [vmem:[%s9001_s19 + $0xc4] sm:$0xf]  ;;  %v6769_v59 = vor.u32 %v7935_v61, %v6768_v54  ;;  %v6778_v54 = vld [vmem:[%s9001_s19 + $0xd8] sm:$0xf0] }
 0x24e   : > { %v2599_v43 = vadd.f32 %v2527_v56, %v9155_v37  ;;  %2479 = vmatmul.bf16.gmra.mxu0 %v6553_v3  ;;  %v6565_v3 = vor.u32 %v7892_v41, %v6562_v33  ;;  %v7936_v41 = vld [vmem:[%s9001_s19 + $0xd4] sm:$0xf] }
 0x24f   : > { %v9343_v12 = vadd.f32 %v3053_v57, %v2597_v34  ;;  %3005 = vmatmul.bf16.gmra.mxu1 %v6761_v0 }
 0x250   : > { %6649 = vmatmul.msk.bf16.gmra.mxu2 %vm774_vm0, %v6557_v19 }
 0x251   : > { %6864 = vmatmul.msk.bf16.gmra.mxu3 %vm774_vm0, %v6765_v18 }
 0x253   : > { %v2529_v37 = vpop.f32.mrf.mxu2  ;;  %v2442_v34 = vpop.f32.mrf.mxu0 }
 0x254   : > { %v3055_v15 = vpop.f32.mrf.mxu3  ;;  %v2530_v10 = vadd.f32 %v2529_v37, %v2440_v14  ;;  %v2968_v23 = vpop.f32.mrf.mxu1 }
 0x255   : > { %v3056_v51 = vadd.f32 %v3055_v15, %v2966_v48 }
 0x256   : > { %v2600_v28 = vadd.f32 %v2530_v10, %v9170_v58  ;;  %v6770_v58 = vld [vmem:[%s9001_s19 + $0xc8] sm:$0xf0]  ;;  %v7894_v10 = vld [vmem:[%s9001_s19 + $0xd4] sm:$0xf] }
 0x257   : > { %v9354_v38 = vadd.f32 %v3056_v51, %v2598_v32  ;;  %v6773_v56 = vor.u32 %v7934_v49, %v6770_v58  ;;  %v6776_v51 = vld [vmem:[%s9001_s19 + $0xd0] sm:$0xf] }
 0x25b   : > { %v2531_v32 = vpop.f32.mrf.mxu2  ;;  %v2445_v57 = vpop.f32.mrf.mxu0 }
 0x25c   : > { %v3057_v52 = vpop.f32.mrf.mxu3  ;;  %v2532_v47 = vadd.f32 %v2531_v32, %v2442_v34  ;;  %v2971_v0 = vpop.f32.mrf.mxu1  ;;  %v6568_v34 = vld [vmem:[%s9001_s19 + $0xd0] sm:$0xf] }
 0x25d   : > { %v3058_v9 = vadd.f32 %v3057_v52, %v2968_v23  ;;  %v7937_v23 = vld [vmem:[%s9001_s19 + $0xd4] sm:$0xf0]  ;;  %v6569_v33 = vor.u32 %v7895_v36, %v6568_v34  ;;  %v6573_v52 = vor.u32 %v7894_v10, %v6570_v40  ;;  %v7897_v10 = vld [vmem:[%s9001_s19 + $0xe4] sm:$0xf0] }
 0x25e   : > { %v2601_v48 = vadd.f32 %v2532_v47, %v9183_v62  ;;  %2484 = vmatmul.bf16.gmra.mxu0 %v6561_v39  ;;  %v6777_v17 = vor.u32 %v7937_v23, %v6776_v51  ;;  %v6578_v51 = vld [vmem:[%s9001_s19 + $0xe8] sm:$0xf0]  ;;  %v7938_v23 = vld [vmem:[%s9001_s19 + $0xe4] sm:$0xf] }
 0x25f   : > { %v9371_v19 = vadd.f32 %v3058_v9, %v2599_v43  ;;  %3010 = vmatmul.bf16.gmra.mxu1 %v6769_v59  ;;  %v6781_v59 = vor.u32 %v7936_v41, %v6778_v54 }
 0x260   : > { %6650 = vmatmul.msk.bf16.gmra.mxu2 %vm774_vm0, %v6565_v3 }
 0x261   : > { %6865 = vmatmul.msk.bf16.gmra.mxu3 %vm774_vm0, %v6773_v56 }
 0x263   : > { %v2534_v18 = vpop.f32.mrf.mxu2  ;;  %v2447_v62 = vpop.f32.mrf.mxu0 }
 0x264   : > { %v3060_v14 = vpop.f32.mrf.mxu3  ;;  %v2535_v11 = vadd.f32 %v2534_v18, %v2445_v57  ;;  %v2973_v37 = vpop.f32.mrf.mxu1  ;;  %v7988_v18 = vld [vmem:[%s10184_s3 + $0x1e0] sm:$0xff] }
 0x265   : > { %v3061_v21 = vadd.f32 %v3060_v14, %v2971_v0  ;;  %v8032_v14 = vld [vmem:[%s10184_s3 + $0x240] sm:$0xff]  ;;  %3485 = vmatpush.bf16.msrb.mxu0 %v7988_v18  ;;  %v7899_v18 = vld [vmem:[%s9001_s19 + $0xf4] sm:$0xf0] }
 0x266   : > { %v2602_v43 = vadd.f32 %v2535_v11, %v9209_v46  ;;  %v7896_v11 = vld [vmem:[%s9001_s19 + $0xe4] sm:$0xf]  ;;  %4016 = vmatpush.bf16.msrb.mxu1 %v8032_v14  ;;  %v6586_v14 = vld [vmem:[%s9001_s19 + $0xf8] sm:$0xf0] }
 0x267   : > { %v9376_v15 = vadd.f32 %v3061_v21, %v2600_v28  ;;  %v6784_v21 = vld [vmem:[%s9001_s19 + $0xe0] sm:$0xf] }
 0x26b   : > { %v2536_v61 = vpop.f32.mrf.mxu2  ;;  %v2450_v46 = vpop.f32.mrf.mxu0 }
 0x26c   : > { %v3062_v42 = vpop.f32.mrf.mxu3  ;;  %v2537_v49 = vadd.f32 %v2536_v61, %v2447_v62  ;;  %v2976_v32 = vpop.f32.mrf.mxu1  ;;  %v6576_v62 = vld [vmem:[%s9001_s19 + $0xe0] sm:$0xf] }
 0x26d   : > { %v3063_v58 = vadd.f32 %v3062_v42, %v2973_v37  ;;  %v7939_v37 = vld [vmem:[%s9001_s19 + $0xe4] sm:$0xf0]  ;;  %v6577_v40 = vor.u32 %v7897_v10, %v6576_v62  ;;  %v6581_v42 = vor.u32 %v7896_v11, %v6578_v51  ;;  %v7940_v11 = vld [vmem:[%s9001_s19 + $0xf4] sm:$0xf] }
 0x26e   : > { %v2603_v28 = vadd.f32 %v2537_v49, %v9222_v27  ;;  %2489 = vmatmul.bf16.gmra.mxu0 %v6569_v33  ;;  %v6785_v36 = vor.u32 %v7939_v37, %v6784_v21  ;;  %v6794_v21 = vld [vmem:[%s9001_s19 + $0xf8] sm:$0xf0] }
 0x26f   : > { %v9387_v39 = vadd.f32 %v3063_v58, %v2601_v48  ;;  %3015 = vmatmul.bf16.gmra.mxu1 %v6777_v17 }
 0x270   : > { %6651 = vmatmul.msk.bf16.gmra.mxu2 %vm774_vm0, %v6573_v52 }
 0x271   : > { %6866 = vmatmul.msk.bf16.gmra.mxu3 %vm774_vm0, %v6781_v59 }
 0x273   : > { %v2539_v47 = vpop.f32.mrf.mxu2  ;;  %v2452_v56 = vpop.f32.mrf.mxu0 }
 0x274   : > { %v3065_v9 = vpop.f32.mrf.mxu3  ;;  %v2540_v0 = vadd.f32 %v2539_v47, %v2450_v46  ;;  %v2978_v27 = vpop.f32.mrf.mxu1 }
 0x275   : > { %v3066_v3 = vadd.f32 %v3065_v9, %v2976_v32 }
 0x276   : > { %v2604_v57 = vadd.f32 %v2540_v0, %v9237_v30  ;;  %v6786_v30 = vld [vmem:[%s9001_s19 + $0xe8] sm:$0xf0]  ;;  %v7898_v0 = vld [vmem:[%s9001_s19 + $0xf4] sm:$0xf] }
 0x277   : > { %v9392_v48 = vadd.f32 %v3066_v3, %v2602_v43  ;;  %v6789_v17 = vor.u32 %v7938_v23, %v6786_v30  ;;  %v6792_v3 = vld [vmem:[%s9001_s19 + $0xf0] sm:$0xf] }
 0x27b   : > { %v2541_v43 = vpop.f32.mrf.mxu2  ;;  %v2455_v33 = vpop.f32.mrf.mxu0 }
 0x27c   : > { %v3067_v34 = vpop.f32.mrf.mxu3  ;;  %v2542_v41 = vadd.f32 %v2541_v43, %v2452_v56  ;;  %v2981_v61 = vpop.f32.mrf.mxu1  ;;  %v6584_v56 = vld [vmem:[%s9001_s19 + $0xf0] sm:$0xf] }
 0x27d   : > { %v3068_v54 = vadd.f32 %v3067_v34, %v2978_v27  ;;  %v7941_v27 = vld [vmem:[%s9001_s19 + $0xf4] sm:$0xf0]  ;;  %v6585_v51 = vor.u32 %v7899_v18, %v6584_v56  ;;  %v6589_v34 = vor.u32 %v7898_v0, %v6586_v14  ;;  %v7942_v0 = vld [vmem:[%s9001_s19 + $0x104] sm:$0xf]  ;;  %v6802_v56 = vld [vmem:[%s9001_s19 + $0x108] sm:$0xf0] }
 0x27e   : > { %v2605_v49 = vadd.f32 %v2542_v41, %v9256_v55  ;;  %2494 = vmatmul.bf16.gmra.mxu0 %v6577_v40  ;;  %v6793_v10 = vor.u32 %v7941_v27, %v6792_v3  ;;  %v8087_v41 = vld [vmem:[%s10184_s3 + $0x2f8] sm:$0xff]  ;;  %v6896_v3 = vld [vmem:[%s9001_s19 + $0x20] sm:$0xf]  ;;  %v7957_v27 = vld [vmem:[%s9001_s19 + $0x24] sm:$0xf0] }
 0x27f   : > { %v9409_v58 = vadd.f32 %v3068_v54, %v2603_v28  ;;  %3020 = vmatmul.bf16.gmra.mxu1 %v6785_v36  ;;  %v8131_v54 = vld [vmem:[%s10184_s3 + $0x358] sm:$0xff]  ;;  %4633 = vmatpush.bf16.msra.mxu2 %v8087_v41 }
 0x280   : > { %6652 = vmatmul.msk.bf16.gmra.mxu2 %vm774_vm0, %v6581_v42  ;;  %5164 = vmatpush.bf16.msra.mxu3 %v8131_v54 }
 0x281   : > { %6867 = vmatmul.msk.bf16.gmra.mxu3 %vm774_vm0, %v6789_v17 }
 0x283   : > { %v2544_v32 = vpop.f32.mrf.mxu2  ;;  %v2457_v55 = vpop.f32.mrf.mxu0 }
 0x284   : > { %v3070_v52 = vpop.f32.mrf.mxu3  ;;  %v2545_v59 = vadd.f32 %v2544_v32, %v2455_v33  ;;  %v2983_v47 = vpop.f32.mrf.mxu1 }
 0x285   : > { %v3071_v46 = vadd.f32 %v3070_v52, %v2981_v61 }
 0x286   : > { %v2606_v28 = vadd.f32 %v2545_v59, %v9277_v24  ;;  %v6797_v24 = vor.u32 %v7940_v11, %v6794_v21  ;;  %v8083_v59 = vld [vmem:[%s10184_s3 + $0x2d8] sm:$0xff]  ;;  %v6897_v21 = vor.u32 %v7957_v27, %v6896_v3 }
 0x287   : > { %v9414_v9 = vadd.f32 %v3071_v46, %v2604_v57  ;;  %v8127_v46 = vld [vmem:[%s10184_s3 + $0x338] sm:$0xff]  ;;  %4540 = vmatpush.bf16.msra.mxu0 %v8083_v59 }
 0x288   : > { %5071 = vmatpush.bf16.msra.mxu1 %v8127_v46  ;;  %v7959_v59 = vld [vmem:[%s9001_s19 + $0x34] sm:$0xf0]  ;;  %v6906_v46 = vld [vmem:[%s9001_s19 + $0x38] sm:$0xf0] }
 0x28b   : > { %v2546_v37 = vpop.f32.mrf.mxu2  ;;  %v2460_v57 = vpop.f32.mrf.mxu0 }
 0x28c   : > { %v3072_v62 = vpop.f32.mrf.mxu3  ;;  %v2547_v23 = vadd.f32 %v2546_v37, %v2457_v55  ;;  %v2986_v43 = vpop.f32.mrf.mxu1  ;;  %v7943_v55 = vld [vmem:[%s9001_s19 + $0x104] sm:$0xf0] }
 0x28d   : > { %v3073_v30 = vadd.f32 %v3072_v62, %v2983_v47  ;;  %v6800_v47 = vld [vmem:[%s9001_s19 + $0x100] sm:$0xf] }
 0x28e   : > { %v2607_v36 = vadd.f32 %v2547_v23, %v9289_v35  ;;  %2499 = vmatmul.bf16.gmra.mxu0 %v6585_v51  ;;  %v6801_v11 = vor.u32 %v7943_v55, %v6800_v47  ;;  %v6805_v51 = vor.u32 %v7942_v0, %v6802_v56  ;;  %v8000_v47 = vld [vmem:[%s9462_s9 + $0x4] sm:$0xf]  ;;  %v7114_v55 = vld [vmem:[%s9462_s9 + $0x8] sm:$0xf0] }
 0x28f   : > { %v9425_v40 = vadd.f32 %v3073_v30, %v2605_v49  ;;  %3025 = vmatmul.bf16.gmra.mxu1 %v6793_v10 }
 0x290   : > { %6653 = vmatmul.msk.bf16.gmra.mxu2 %vm774_vm0, %v6589_v34 }
 0x291   : > { %6868 = vmatmul.msk.bf16.gmra.mxu3 %vm774_vm0, %v6797_v24 }
 0x293   : > { %v2549_v35 = vpop.f32.mrf.mxu2  ;;  %v2462_v49 = vpop.f32.mrf.mxu0 }
 0x294   : > { %v3075_v61 = vpop.f32.mrf.mxu3  ;;  %v2550_v42 = vadd.f32 %v2549_v35, %v2460_v57  ;;  %v2988_v33 = vpop.f32.mrf.mxu1 }
 0x295   : > { %v3076_v17 = vadd.f32 %v3075_v61, %v2986_v43 }
 0x296   : > { %v2608_v32 = vadd.f32 %v2550_v42, %v9034_v16  ;;  %v7956_v16 = vld [vmem:[%s9001_s19 + $0x24] sm:$0xf]  ;;  %v7958_v42 = vld [vmem:[%s9001_s19 + $0x34] sm:$0xf] }
 0x297   : > { %v9437_v52 = vadd.f32 %v3076_v17, %v2606_v28  ;;  %v6898_v28 = vld [vmem:[%s9001_s19 + $0x28] sm:$0xf0]  ;;  %v7112_v17 = vld [vmem:[%s9462_s9] sm:$0xf] }
 0x298   : > { %v6901_v23 = vor.u32 %v7956_v16, %v6898_v28 }
 0x29b   : > { %v2551_v18 = vpop.f32.mrf.mxu2  ;;  %v2465_v30 = vpop.f32.mrf.mxu0 }
 0x29c   : > { %v3077_v14 = vpop.f32.mrf.mxu3  ;;  %v2552_v37 = vadd.f32 %v2551_v18, %v2462_v49  ;;  %v2991_v10 = vpop.f32.mrf.mxu1  ;;  %v6904_v49 = vld [vmem:[%s9001_s19 + $0x30] sm:$0xf] }
 0x29d   : > { %v3078_v62 = vadd.f32 %v3077_v14, %v2988_v33  ;;  %v8001_v33 = vld [vmem:[%s9462_s9 + $0x4] sm:$0xf0]  ;;  %v6905_v56 = vor.u32 %v7959_v59, %v6904_v49  ;;  %v6909_v14 = vor.u32 %v7958_v42, %v6906_v46 }
 0x29e   : > { %v2609_v43 = vadd.f32 %v2552_v37, %v9050_v29  ;;  %3486 = vmatmul.bf16.vlgmr.msrb.gmra.mxu0 %v6897_v21  ;;  %v7113_v27 = vor.u32 %v8001_v33, %v7112_v17  ;;  %v7961_v42 = vld [vmem:[%s9001_s19 + $0x44] sm:$0xf0]  ;;  %v6914_v17 = vld [vmem:[%s9001_s19 + $0x48] sm:$0xf0]  ;;  %v8002_v33 = vld [vmem:[%s9462_s9 + $0x14] sm:$0xf] }
 0x29f   : > { %v9454_v34 = vadd.f32 %v3078_v62, %v2607_v36  ;;  %3030 = vmatmul.bf16.gmra.mxu1 %v6801_v11  ;;  %v7117_v11 = vor.u32 %v8000_v47, %v7114_v55 }
 0x2a0   : > { %7070 = vmatmul.msk.bf16.vlgmr.msrb.gmra.mxu2 %vm774_vm0, %v6901_v23 }
 0x2a1   : > { %6869 = vmatmul.msk.bf16.gmra.mxu3 %vm774_vm0, %v6805_v51 }
 0x2a3   : > { %v2554_v24 = vpop.f32.mrf.mxu2  ;;  %v2467_v29 = vpop.f32.mrf.mxu0 }
 0x2a4   : > { %v3080_v57 = vpop.f32.mrf.mxu3  ;;  %v2555_v41 = vadd.f32 %v2554_v24, %v2465_v30  ;;  %v2993_v35 = vpop.f32.mrf.mxu1  ;;  %v8082_v24 = vld [vmem:[%s10184_s3 + $0x2d0] sm:$0xff] }
 0x2a5   : > { %v3081_v54 = vadd.f32 %v3080_v57, %v2991_v10  ;;  %v8126_v57 = vld [vmem:[%s10184_s3 + $0x330] sm:$0xff]  ;;  %4541 = vmatpush.bf16.msra.mxu0 %v8082_v24  ;;  %v7963_v24 = vld [vmem:[%s9001_s19 + $0x54] sm:$0xf0] }
 0x2a6   : > { %v2610_v36 = vadd.f32 %v2555_v41, %v9058_v26  ;;  %v7960_v41 = vld [vmem:[%s9001_s19 + $0x44] sm:$0xf]  ;;  %5072 = vmatpush.bf16.msra.mxu1 %v8126_v57  ;;  %v6922_v57 = vld [vmem:[%s9001_s19 + $0x58] sm:$0xf0] }
 0x2a7   : > { %v9465_v61 = vadd.f32 %v3081_v54, %v2608_v32  ;;  %v7120_v54 = vld [vmem:[%s9462_s9 + $0x10] sm:$0xf] }
 0x2ab   : > { %v2556_v0 = vpop.f32.mrf.mxu2  ;;  %v2470_v26 = vpop.f32.mrf.mxu0 }
 0x2ac   : > { %v3082_v3 = vpop.f32.mrf.mxu3  ;;  %v2557_v16 = vadd.f32 %v2556_v0, %v2467_v29  ;;  %v2996_v18 = vpop.f32.mrf.mxu1  ;;  %v6912_v29 = vld [vmem:[%s9001_s19 + $0x40] sm:$0xf] }
 0x2ad   : > { %v3083_v28 = vadd.f32 %v3082_v3, %v2993_v35  ;;  %v8003_v35 = vld [vmem:[%s9462_s9 + $0x14] sm:$0xf0]  ;;  %v6913_v46 = vor.u32 %v7961_v42, %v6912_v29  ;;  %v6917_v3 = vor.u32 %v7960_v41, %v6914_v17  ;;  %v8004_v41 = vld [vmem:[%s9462_s9 + $0x24] sm:$0xf] }
 0x2ae   : > { %v2611_v32 = vadd.f32 %v2557_v16, %v9081_v25  ;;  %3491 = vmatmul.bf16.gmra.mxu0 %v6905_v56  ;;  %v7121_v59 = vor.u32 %v8003_v35, %v7120_v54  ;;  %v7130_v54 = vld [vmem:[%s9462_s9 + $0x28] sm:$0xf0] }
 0x2af   : > { %v9476_v21 = vadd.f32 %v3083_v28, %v2609_v43  ;;  %4017 = vmatmul.bf16.vlgmr.msrb.gmra.mxu1 %v7113_v27 }
 0x2b0   : > { %7071 = vmatmul.msk.bf16.gmra.mxu2 %vm774_vm0, %v6909_v14 }
 0x2b1   : > { %7286 = vmatmul.msk.bf16.vlgmr.msrb.gmra.mxu3 %vm774_vm0, %v7117_v11 }
 0x2b3   : > { %v2559_v37 = vpop.f32.mrf.mxu2  ;;  %v2472_v23 = vpop.f32.mrf.mxu0 }
 0x2b4   : > { %v3085_v62 = vpop.f32.mrf.mxu3  ;;  %v2560_v10 = vadd.f32 %v2559_v37, %v2470_v26  ;;  %v2998_v25 = vpop.f32.mrf.mxu1 }
 0x2b5   : > { %v3086_v51 = vadd.f32 %v3085_v62, %v2996_v18 }
 0x2b6   : > { %v2612_v30 = vadd.f32 %v2560_v10, %v9092_v6  ;;  %v7122_v6 = vld [vmem:[%s9462_s9 + $0x18] sm:$0xf0]  ;;  %v7962_v10 = vld [vmem:[%s9001_s19 + $0x54] sm:$0xf] }
 0x2b7   : > { %v9481_v43 = vadd.f32 %v3086_v51, %v2610_v36  ;;  %v7125_v27 = vor.u32 %v8002_v33, %v7122_v6  ;;  %v7128_v51 = vld [vmem:[%s9462_s9 + $0x20] sm:$0xf] }
 0x2bb   : > { %v2561_v36 = vpop.f32.mrf.mxu2  ;;  %v2475_v56 = vpop.f32.mrf.mxu0 }
 0x2bc   : > { %v3087_v49 = vpop.f32.mrf.mxu3  ;;  %v2562_v47 = vadd.f32 %v2561_v36, %v2472_v23  ;;  %v3001_v0 = vpop.f32.mrf.mxu1  ;;  %v6920_v23 = vld [vmem:[%s9001_s19 + $0x50] sm:$0xf] }
 0x2bd   : > { %v3088_v55 = vadd.f32 %v3087_v49, %v2998_v25  ;;  %v8005_v25 = vld [vmem:[%s9462_s9 + $0x24] sm:$0xf0]  ;;  %v6921_v17 = vor.u32 %v7963_v24, %v6920_v23  ;;  %v6925_v49 = vor.u32 %v7962_v10, %v6922_v57  ;;  %v8007_v10 = vld [vmem:[%s9462_s9 + $0x34] sm:$0xf0]  ;;  %v6930_v23 = vld [vmem:[%s9001_s19 + $0x68] sm:$0xf0] }
 0x2be   : > { %v2613_v16 = vadd.f32 %v2562_v47, %v9109_v53  ;;  %3496 = vmatmul.bf16.gmra.mxu0 %v6913_v46  ;;  %v7129_v42 = vor.u32 %v8005_v25, %v7128_v51  ;;  %v8086_v47 = vld [vmem:[%s10184_s3 + $0x2f0] sm:$0xff]  ;;  %v6928_v51 = vld [vmem:[%s9001_s19 + $0x60] sm:$0xf]  ;;  %v7965_v25 = vld [vmem:[%s9001_s19 + $0x64] sm:$0xf0] }
 0x2bf   : > { %v9498_v28 = vadd.f32 %v3088_v55, %v2611_v32  ;;  %4022 = vmatmul.bf16.gmra.mxu1 %v7121_v59  ;;  %v7133_v59 = vor.u32 %v8004_v41, %v7130_v54  ;;  %v8130_v55 = vld [vmem:[%s10184_s3 + $0x350] sm:$0xff]  ;;  %4634 = vmatpush.bf16.msra.mxu2 %v8086_v47  ;;  %v6929_v54 = vor.u32 %v7965_v25, %v6928_v51 }
 0x2c0   : > { %7072 = vmatmul.msk.bf16.gmra.mxu2 %vm774_vm0, %v6917_v3  ;;  %5165 = vmatpush.bf16.msra.mxu3 %v8130_v55  ;;  %v8006_v24 = vld [vmem:[%s9462_s9 + $0x34] sm:$0xf] }
 0x2c1   : > { %7287 = vmatmul.msk.bf16.gmra.mxu3 %vm774_vm0, %v7125_v27 }
 0x2c3   : > { %v2564_v18 = vpop.f32.mrf.mxu2  ;;  %v2477_v53 = vpop.f32.mrf.mxu0 }
 0x2c4   : > { %v3090_v14 = vpop.f32.mrf.mxu3  ;;  %v2565_v11 = vadd.f32 %v2564_v18, %v2475_v56  ;;  %v3003_v37 = vpop.f32.mrf.mxu1 }
 0x2c5   : > { %v3091_v26 = vadd.f32 %v3090_v14, %v3001_v0 }
 0x2c6   : > { %v2614_v32 = vadd.f32 %v2565_v11, %v9126_v44  ;;  %v8081_v11 = vld [vmem:[%s10184_s3 + $0x2c8] sm:$0xff] }
 0x2c7   : > { %v9503_v62 = vadd.f32 %v3091_v26, %v2612_v30  ;;  %v8125_v26 = vld [vmem:[%s10184_s3 + $0x328] sm:$0xff]  ;;  %4542 = vmatpush.bf16.msra.mxu0 %v8081_v11  ;;  %v7967_v11 = vld [vmem:[%s9001_s19 + $0x74] sm:$0xf0] }
 0x2c8   : > { %5073 = vmatpush.bf16.msra.mxu1 %v8125_v26  ;;  %v6938_v26 = vld [vmem:[%s9001_s19 + $0x78] sm:$0xf0] }
 0x2cb   : > { %v2566_v35 = vpop.f32.mrf.mxu2  ;;  %v2480_v44 = vpop.f32.mrf.mxu0 }
 0x2cc   : > { %v3092_v29 = vpop.f32.mrf.mxu3  ;;  %v2567_v33 = vadd.f32 %v2566_v35, %v2477_v53  ;;  %v3006_v36 = vpop.f32.mrf.mxu1  ;;  %v7136_v53 = vld [vmem:[%s9462_s9 + $0x30] sm:$0xf] }
 0x2cd   : > { %v3093_v6 = vadd.f32 %v3092_v29, %v3003_v37  ;;  %v7964_v37 = vld [vmem:[%s9001_s19 + $0x64] sm:$0xf]  ;;  %v7137_v41 = vor.u32 %v8007_v10, %v7136_v53  ;;  %v7146_v53 = vld [vmem:[%s9462_s9 + $0x48] sm:$0xf0] }
 0x2ce   : > { %v2615_v30 = vadd.f32 %v2567_v33, %v9149_v50  ;;  %3501 = vmatmul.bf16.gmra.mxu0 %v6921_v17  ;;  %v6933_v17 = vor.u32 %v7964_v37, %v6930_v23  ;;  %v8008_v37 = vld [vmem:[%s9462_s9 + $0x44] sm:$0xf] }
 0x2cf   : > { %v9514_v46 = vadd.f32 %v3093_v6, %v2613_v16  ;;  %4027 = vmatmul.bf16.gmra.mxu1 %v7129_v42 }
 0x2d0   : > { %7073 = vmatmul.msk.bf16.gmra.mxu2 %vm774_vm0, %v6925_v49 }
 0x2d1   : > { %7288 = vmatmul.msk.bf16.gmra.mxu3 %vm774_vm0, %v7133_v59 }
 0x2d3   : > { %v2569_v50 = vpop.f32.mrf.mxu2  ;;  %v2482_v16 = vpop.f32.mrf.mxu0 }
 0x2d4   : > { %v3095_v0 = vpop.f32.mrf.mxu3  ;;  %v2570_v3 = vadd.f32 %v2569_v50, %v2480_v44  ;;  %v3008_v56 = vpop.f32.mrf.mxu1 }
 0x2d5   : > { %v3096_v27 = vadd.f32 %v3095_v0, %v3006_v36 }
 0x2d6   : > { %v2616_v18 = vadd.f32 %v2570_v3, %v9160_v1  ;;  %v7138_v1 = vld [vmem:[%s9462_s9 + $0x38] sm:$0xf0]  ;;  %v7966_v3 = vld [vmem:[%s9001_s19 + $0x74] sm:$0xf] }
 0x2d7   : > { %v9525_v14 = vadd.f32 %v3096_v27, %v2614_v32  ;;  %v7141_v33 = vor.u32 %v8006_v24, %v7138_v1  ;;  %v7144_v27 = vld [vmem:[%s9462_s9 + $0x40] sm:$0xf] }
 0x2db   : > { %v2571_v32 = vpop.f32.mrf.mxu2  ;;  %v2485_v6 = vpop.f32.mrf.mxu0 }
 0x2dc   : > { %v3097_v57 = vpop.f32.mrf.mxu3  ;;  %v2572_v35 = vadd.f32 %v2571_v32, %v2482_v16  ;;  %v3011_v42 = vpop.f32.mrf.mxu1  ;;  %v6936_v16 = vld [vmem:[%s9001_s19 + $0x70] sm:$0xf] }
 0x2dd   : > { %v3098_v29 = vadd.f32 %v3097_v57, %v3008_v56  ;;  %v8009_v56 = vld [vmem:[%s9462_s9 + $0x44] sm:$0xf0]  ;;  %v6937_v23 = vor.u32 %v7967_v11, %v6936_v16  ;;  %v6941_v57 = vor.u32 %v7966_v3, %v6938_v26 }
 0x2de   : > { %v2617_v36 = vadd.f32 %v2572_v35, %v9177_v22  ;;  %3506 = vmatmul.bf16.gmra.mxu0 %v6929_v54  ;;  %v7145_v25 = vor.u32 %v8009_v56, %v7144_v27  ;;  %v7969_v3 = vld [vmem:[%s9001_s19 + $0x84] sm:$0xf0]  ;;  %v6946_v27 = vld [vmem:[%s9001_s19 + $0x88] sm:$0xf0]  ;;  %v8010_v56 = vld [vmem:[%s9462_s9 + $0x54] sm:$0xf] }
 0x2df   : > { %v9542_v49 = vadd.f32 %v3098_v29, %v2615_v30  ;;  %4032 = vmatmul.bf16.gmra.mxu1 %v7137_v41  ;;  %v7149_v41 = vor.u32 %v8008_v37, %v7146_v53 }
 0x2e0   : > { %7074 = vmatmul.msk.bf16.gmra.mxu2 %vm774_vm0, %v6933_v17 }
 0x2e1   : > { %7289 = vmatmul.msk.bf16.gmra.mxu3 %vm774_vm0, %v7141_v33 }
 0x2e3   : > { %v2574_v59 = vpop.f32.mrf.mxu2  ;;  %v2487_v22 = vpop.f32.mrf.mxu0 }
 0x2e4   : > { %v3100_v44 = vpop.f32.mrf.mxu3  ;;  %v2575_v47 = vadd.f32 %v2574_v59, %v2485_v6  ;;  %v3013_v50 = vpop.f32.mrf.mxu1  ;;  %v8080_v59 = vld [vmem:[%s10184_s3 + $0x2c0] sm:$0xff] }
 0x2e5   : > { %v3101_v55 = vadd.f32 %v3100_v44, %v3011_v42  ;;  %v8124_v44 = vld [vmem:[%s10184_s3 + $0x320] sm:$0xff]  ;;  %4543 = vmatpush.bf16.msra.mxu0 %v8080_v59  ;;  %v7971_v59 = vld [vmem:[%s9001_s19 + $0x94] sm:$0xf0] }
 0x2e6   : > { %v2618_v30 = vadd.f32 %v2575_v47, %v9193_v13  ;;  %v7968_v47 = vld [vmem:[%s9001_s19 + $0x84] sm:$0xf]  ;;  %5074 = vmatpush.bf16.msra.mxu1 %v8124_v44  ;;  %v6954_v44 = vld [vmem:[%s9001_s19 + $0x98] sm:$0xf0] }
 0x2e7   : > { %v9547_v0 = vadd.f32 %v3101_v55, %v2616_v18  ;;  %v7152_v55 = vld [vmem:[%s9462_s9 + $0x50] sm:$0xf] }
 0x2eb   : > { %v2576_v10 = vpop.f32.mrf.mxu2  ;;  %v2490_v13 = vpop.f32.mrf.mxu0 }
 0x2ec   : > { %v3102_v51 = vpop.f32.mrf.mxu3  ;;  %v2577_v24 = vadd.f32 %v2576_v10, %v2487_v22  ;;  %v3016_v32 = vpop.f32.mrf.mxu1  ;;  %v6944_v22 = vld [vmem:[%s9001_s19 + $0x80] sm:$0xf] }
 0x2ed   : > { %v3103_v1 = vadd.f32 %v3102_v51, %v3013_v50  ;;  %v8011_v50 = vld [vmem:[%s9462_s9 + $0x54] sm:$0xf0]  ;;  %v6945_v26 = vor.u32 %v7969_v3, %v6944_v22  ;;  %v6949_v51 = vor.u32 %v7968_v47, %v6946_v27  ;;  %v8012_v47 = vld [vmem:[%s9462_s9 + $0x64] sm:$0xf] }
 0x2ee   : > { %v2619_v18 = vadd.f32 %v2577_v24, %v9216_v8  ;;  %3511 = vmatmul.bf16.gmra.mxu0 %v6937_v23  ;;  %v7153_v11 = vor.u32 %v8011_v50, %v7152_v55  ;;  %v7162_v55 = vld [vmem:[%s9462_s9 + $0x68] sm:$0xf0] }
 0x2ef   : > { %v9558_v54 = vadd.f32 %v3103_v1, %v2617_v36  ;;  %4037 = vmatmul.bf16.gmra.mxu1 %v7145_v25 }
 0x2f0   : > { %7075 = vmatmul.msk.bf16.gmra.mxu2 %vm774_vm0, %v6941_v57 }
 0x2f1   : > { %7290 = vmatmul.msk.bf16.gmra.mxu3 %vm774_vm0, %v7149_v41 }
 0x2f3   : > { %v2579_v35 = vpop.f32.mrf.mxu2  ;;  %v2492_v33 = vpop.f32.mrf.mxu0 }
 0x2f4   : > { %v3105_v29 = vpop.f32.mrf.mxu3  ;;  %v2580_v42 = vadd.f32 %v2579_v35, %v2490_v13  ;;  %v3018_v8 = vpop.f32.mrf.mxu1 }
 0x2f5   : > { %v3106_v17 = vadd.f32 %v3105_v29, %v3016_v32 }
 0x2f6   : > { %v2620_v6 = vadd.f32 %v2580_v42, %v9227_v63  ;;  %v7154_v63 = vld [vmem:[%s9462_s9 + $0x58] sm:$0xf0]  ;;  %v7970_v42 = vld [vmem:[%s9001_s19 + $0x94] sm:$0xf] }
 0x2f7   : > { %v9563_v36 = vadd.f32 %v3106_v17, %v2618_v30  ;;  %v7157_v25 = vor.u32 %v8010_v56, %v7154_v63  ;;  %v7160_v17 = vld [vmem:[%s9462_s9 + $0x60] sm:$0xf] }
 0x2fb   : > { %v2581_v30 = vpop.f32.mrf.mxu2  ;;  %v2495_v23 = vpop.f32.mrf.mxu0 }
 0x2fc   : > { %v3107_v16 = vpop.f32.mrf.mxu3  ;;  %v2582_v37 = vadd.f32 %v2581_v30, %v2492_v33  ;;  %v3021_v10 = vpop.f32.mrf.mxu1  ;;  %v6952_v33 = vld [vmem:[%s9001_s19 + $0x90] sm:$0xf] }
 0x2fd   : > { %v3108_v53 = vadd.f32 %v3107_v16, %v3018_v8  ;;  %v8013_v8 = vld [vmem:[%s9462_s9 + $0x64] sm:$0xf0]  ;;  %v6953_v27 = vor.u32 %v7971_v59, %v6952_v33  ;;  %v6957_v16 = vor.u32 %v7970_v42, %v6954_v44  ;;  %v8015_v42 = vld [vmem:[%s9462_s9 + $0x74] sm:$0xf0]  ;;  %v6962_v33 = vld [vmem:[%s9001_s19 + $0xa8] sm:$0xf0] }
 0x2fe   : > { %v2621_v24 = vadd.f32 %v2582_v37, %v9244_v31  ;;  %3516 = vmatmul.bf16.gmra.mxu0 %v6945_v26  ;;  %v7161_v3 = vor.u32 %v8013_v8, %v7160_v17  ;;  %v8085_v37 = vld [vmem:[%s10184_s3 + $0x2e8] sm:$0xff]  ;;  %v6960_v17 = vld [vmem:[%s9001_s19 + $0xa0] sm:$0xf]  ;;  %v8014_v59 = vld [vmem:[%s9462_s9 + $0x74] sm:$0xf] }
 0x2ff   : > { %v9580_v1 = vadd.f32 %v3108_v53, %v2619_v18  ;;  %4042 = vmatmul.bf16.gmra.mxu1 %v7153_v11  ;;  %v7165_v11 = vor.u32 %v8012_v47, %v7162_v55  ;;  %v8129_v53 = vld [vmem:[%s10184_s3 + $0x348] sm:$0xff]  ;;  %4635 = vmatpush.bf16.msra.mxu2 %v8085_v37 }
 0x300   : > { %7076 = vmatmul.msk.bf16.gmra.mxu2 %vm774_vm0, %v6949_v51  ;;  %5166 = vmatpush.bf16.msra.mxu3 %v8129_v53  ;;  %v7973_v8 = vld [vmem:[%s9001_s19 + $0xa4] sm:$0xf0] }
 0x301   : > { %7291 = vmatmul.msk.bf16.gmra.mxu3 %vm774_vm0, %v7157_v25  ;;  %v6961_v55 = vor.u32 %v7973_v8, %v6960_v17 }
 0x303   : > { %v2584_v32 = vpop.f32.mrf.mxu2  ;;  %v2497_v31 = vpop.f32.mrf.mxu0 }
 0x304   : > { %v3110_v57 = vpop.f32.mrf.mxu3  ;;  %v2585_v41 = vadd.f32 %v2584_v32, %v2495_v23  ;;  %v3023_v35 = vpop.f32.mrf.mxu1 }
 0x305   : > { %v3111_v13 = vadd.f32 %v3110_v57, %v3021_v10 }
 0x306   : > { %v2622_v18 = vadd.f32 %v2585_v41, %v9261_v45  ;;  %v8079_v41 = vld [vmem:[%s10184_s3 + $0x2b8] sm:$0xff] }
 0x307   : > { %v9585_v29 = vadd.f32 %v3111_v13, %v2620_v6  ;;  %v8123_v13 = vld [vmem:[%s10184_s3 + $0x318] sm:$0xff]  ;;  %4544 = vmatpush.bf16.msra.mxu0 %v8079_v41 }
 0x308   : > { %5075 = vmatpush.bf16.msra.mxu1 %v8123_v13  ;;  %v7975_v41 = vld [vmem:[%s9001_s19 + $0xb4] sm:$0xf0]  ;;  %v6970_v13 = vld [vmem:[%s9001_s19 + $0xb8] sm:$0xf0] }
 0x30b   : > { %v2586_v50 = vpop.f32.mrf.mxu2  ;;  %v2500_v45 = vpop.f32.mrf.mxu0 }
 0x30c   : > { %v3112_v22 = vpop.f32.mrf.mxu3  ;;  %v2587_v56 = vadd.f32 %v2586_v50, %v2497_v31  ;;  %v3026_v30 = vpop.f32.mrf.mxu1  ;;  %v7168_v31 = vld [vmem:[%s9462_s9 + $0x70] sm:$0xf] }
 0x30d   : > { %v3113_v63 = vadd.f32 %v3112_v22, %v3023_v35  ;;  %v7972_v35 = vld [vmem:[%s9001_s19 + $0xa4] sm:$0xf]  ;;  %v7169_v47 = vor.u32 %v8015_v42, %v7168_v31  ;;  %v7178_v31 = vld [vmem:[%s9462_s9 + $0x88] sm:$0xf0] }
 0x30e   : > { %v2623_v6 = vadd.f32 %v2587_v56, %v9284_v4  ;;  %3521 = vmatmul.bf16.gmra.mxu0 %v6953_v27  ;;  %v6965_v27 = vor.u32 %v7972_v35, %v6962_v33  ;;  %v8016_v35 = vld [vmem:[%s9462_s9 + $0x84] sm:$0xf] }
 0x30f   : > { %v9596_v26 = vadd.f32 %v3113_v63, %v2621_v24  ;;  %4047 = vmatmul.bf16.gmra.mxu1 %v7161_v3 }
 0x310   : > { %7077 = vmatmul.msk.bf16.gmra.mxu2 %vm774_vm0, %v6957_v16 }
 0x311   : > { %7292 = vmatmul.msk.bf16.gmra.mxu3 %vm774_vm0, %v7165_v11 }
 0x313   : > { %v2589_v4 = vpop.f32.mrf.mxu2  ;;  %v2502_v24 = vpop.f32.mrf.mxu0 }
 0x314   : > { %v3115_v10 = vpop.f32.mrf.mxu3  ;;  %v2590_v51 = vadd.f32 %v2589_v4, %v2500_v45  ;;  %v3028_v23 = vpop.f32.mrf.mxu1 }
 0x315   : > { %v3116_v25 = vadd.f32 %v3115_v10, %v3026_v30 }
 0x316   : > { %v2624_v32 = vadd.f32 %v2590_v51, %v9292_v5  ;;  %v7170_v5 = vld [vmem:[%s9462_s9 + $0x78] sm:$0xf0]  ;;  %v7974_v51 = vld [vmem:[%s9001_s19 + $0xb4] sm:$0xf] }
 0x317   : > { %v9607_v57 = vadd.f32 %v3116_v25, %v2622_v18  ;;  %v7173_v56 = vor.u32 %v8014_v59, %v7170_v5  ;;  %v7176_v25 = vld [vmem:[%s9462_s9 + $0x80] sm:$0xf] }
 0x31b   : > { %v2591_v18 = vpop.f32.mrf.mxu2  ;;  %v3487_v63 = vpop.f32.mrf.mxu0 }
 0x31c   : > { %v3117_v44 = vpop.f32.mrf.mxu3  ;;  %v2592_v50 = vadd.f32 %v2591_v18, %v2502_v24  ;;  %v3031_v3 = vpop.f32.mrf.mxu1  ;;  %v6968_v24 = vld [vmem:[%s9001_s19 + $0xb0] sm:$0xf] }
 0x31d   : > { %v3118_v22 = vadd.f32 %v3117_v44, %v3028_v23  ;;  %v8017_v23 = vld [vmem:[%s9462_s9 + $0x84] sm:$0xf0]  ;;  %v6969_v33 = vor.u32 %v7975_v41, %v6968_v24  ;;  %v6973_v44 = vor.u32 %v7974_v51, %v6970_v13 }
 0x31e   : > { %v2625_v30 = vadd.f32 %v2592_v50, %v9304_v7  ;;  %3526 = vmatmul.bf16.gmra.mxu0 %v6961_v55  ;;  %v7177_v8 = vor.u32 %v8017_v23, %v7176_v25  ;;  %v7977_v51 = vld [vmem:[%s9001_s19 + $0xc4] sm:$0xf0]  ;;  %v6978_v25 = vld [vmem:[%s9001_s19 + $0xc8] sm:$0xf0]  ;;  %v8018_v23 = vld [vmem:[%s9462_s9 + $0x94] sm:$0xf] }
 0x31f   : > { %v9624_v16 = vadd.f32 %v3118_v22, %v2623_v6  ;;  %4052 = vmatmul.bf16.gmra.mxu1 %v7169_v47 }
 0x320   : > { %7078 = vmatmul.msk.bf16.gmra.mxu2 %vm774_vm0, %v6965_v27 }
 0x321   : > { %7293 = vmatmul.msk.bf16.gmra.mxu3 %vm774_vm0, %v7173_v56 }
 0x323   : > { %v3576_v45 = vpop.f32.mrf.mxu2  ;;  %v3489_v7 = vpop.f32.mrf.mxu0 }
 0x324   : > { %v3120_v11 = vpop.f32.mrf.mxu3  ;;  %v3577_v53 = vadd.f32 %v3576_v45, %v3487_v63  ;;  %v3033_v4 = vpop.f32.mrf.mxu1  ;;  %v8122_v45 = vld [vmem:[%s10184_s3 + $0x310] sm:$0xff] }
 0x325   : > { %v3121_v37 = vadd.f32 %v3120_v11, %v3031_v3  ;;  %v8078_v11 = vld [vmem:[%s10184_s3 + $0x2b0] sm:$0xff]  ;;  %5076 = vmatpush.bf16.msra.mxu1 %v8122_v45  ;;  %v6986_v45 = vld [vmem:[%s9001_s19 + $0xd8] sm:$0xf0] }
 0x326   : > { %v3656_v6 = vadd.f32 %v3577_v53, %v9310_v2  ;;  %v7184_v53 = vld [vmem:[%s9462_s9 + $0x90] sm:$0xf]  ;;  %4545 = vmatpush.bf16.msra.mxu0 %v8078_v11  ;;  %v7979_v11 = vld [vmem:[%s9001_s19 + $0xd4] sm:$0xf0] }
 0x327   : > { %v9628_v10 = vadd.f32 %v3121_v37, %v2624_v32  ;;  %v7181_v32 = vor.u32 %v8016_v35, %v7178_v31  ;;  %v7976_v37 = vld [vmem:[%s9001_s19 + $0xc4] sm:$0xf] }
 0x32b   : > { %v3578_v17 = vpop.f32.mrf.mxu2  ;;  %v3492_v47 = vpop.f32.mrf.mxu0 }
 0x32c   : > { %v3122_v42 = vpop.f32.mrf.mxu3  ;;  %v3579_v5 = vadd.f32 %v3578_v17, %v3489_v7  ;;  %v4018_v18 = vpop.f32.mrf.mxu1  ;;  %v6976_v7 = vld [vmem:[%s9001_s19 + $0xc0] sm:$0xf]  ;;  %v6981_v17 = vor.u32 %v7976_v37, %v6978_v25  ;;  %v8020_v37 = vld [vmem:[%s9462_s9 + $0xa4] sm:$0xf] }
 0x32d   : > { %v3123_v59 = vadd.f32 %v3122_v42, %v3033_v4  ;;  %v8019_v4 = vld [vmem:[%s9462_s9 + $0x94] sm:$0xf0]  ;;  %v6977_v13 = vor.u32 %v7977_v51, %v6976_v7 }
 0x32e   : > { %v3657_v2 = vadd.f32 %v3579_v5, %v9327_v20  ;;  %3531 = vmatmul.bf16.gmra.mxu0 %v6969_v33  ;;  %v7185_v41 = vor.u32 %v8019_v4, %v7184_v53  ;;  %v7194_v53 = vld [vmem:[%s9462_s9 + $0xa8] sm:$0xf0] }
 0x32f   : > { %v9639_v55 = vadd.f32 %v3123_v59, %v2625_v30  ;;  %4057 = vmatmul.bf16.gmra.mxu1 %v7177_v8 }
 0x330   : > { %7079 = vmatmul.msk.bf16.gmra.mxu2 %vm774_vm0, %v6973_v44 }
 0x331   : > { %7294 = vmatmul.msk.bf16.gmra.mxu3 %vm774_vm0, %v7181_v32 }
 0x333   : > { %v3581_v50 = vpop.f32.mrf.mxu2  ;;  %v3494_v63 = vpop.f32.mrf.mxu0 }
 0x334   : > { %v4107_v22 = vpop.f32.mrf.mxu3  ;;  %v3582_v3 = vadd.f32 %v3581_v50, %v3492_v47  ;;  %v4020_v56 = vpop.f32.mrf.mxu1 }
 0x335   : > { %v4108_v27 = vadd.f32 %v4107_v22, %v4018_v18 }
 0x336   : > { %v3658_v20 = vadd.f32 %v3582_v3, %v9332_v60  ;;  %v7186_v60 = vld [vmem:[%s9462_s9 + $0x98] sm:$0xf0]  ;;  %v7978_v3 = vld [vmem:[%s9001_s19 + $0xd4] sm:$0xf] }
 0x337   : > { %v9645_v30 = vadd.f32 %v4108_v27, %v3656_v6  ;;  %v7189_v8 = vor.u32 %v8018_v23, %v7186_v60  ;;  %v7192_v27 = vld [vmem:[%s9462_s9 + $0xa0] sm:$0xf] }
 0x33b   : > { %v3583_v6 = vpop.f32.mrf.mxu2  ;;  %v3497_v33 = vpop.f32.mrf.mxu0 }
 0x33c   : > { %v4109_v24 = vpop.f32.mrf.mxu3  ;;  %v3584_v35 = vadd.f32 %v3583_v6, %v3494_v63  ;;  %v4023_v42 = vpop.f32.mrf.mxu1  ;;  %v6984_v63 = vld [vmem:[%s9001_s19 + $0xd0] sm:$0xf] }
 0x33d   : > { %v4110_v31 = vadd.f32 %v4109_v24, %v4020_v56  ;;  %v8021_v56 = vld [vmem:[%s9462_s9 + $0xa4] sm:$0xf0]  ;;  %v6985_v25 = vor.u32 %v7979_v11, %v6984_v63  ;;  %v6989_v24 = vor.u32 %v7978_v3, %v6986_v45  ;;  %v8023_v3 = vld [vmem:[%s9462_s9 + $0xb4] sm:$0xf0]  ;;  %v6994_v63 = vld [vmem:[%s9001_s19 + $0xe8] sm:$0xf0] }
 0x33e   : > { %v3659_v59 = vadd.f32 %v3584_v35, %v9343_v12  ;;  %3536 = vmatmul.bf16.gmra.mxu0 %v6977_v13  ;;  %v7193_v51 = vor.u32 %v8021_v56, %v7192_v27  ;;  %v8084_v35 = vld [vmem:[%s10184_s3 + $0x2e0] sm:$0xff]  ;;  %v7981_v56 = vld [vmem:[%s9001_s19 + $0xe4] sm:$0xf0]  ;;  %v8022_v11 = vld [vmem:[%s9462_s9 + $0xb4] sm:$0xf] }
 0x33f   : > { %v9662_v5 = vadd.f32 %v4110_v31, %v3657_v2  ;;  %4062 = vmatmul.bf16.gmra.mxu1 %v7185_v41  ;;  %v7197_v41 = vor.u32 %v8020_v37, %v7194_v53  ;;  %v8128_v31 = vld [vmem:[%s10184_s3 + $0x340] sm:$0xff]  ;;  %4636 = vmatpush.bf16.msra.mxu2 %v8084_v35 }
 0x340   : > { %7080 = vmatmul.msk.bf16.gmra.mxu2 %vm774_vm0, %v6981_v17  ;;  %5167 = vmatpush.bf16.msra.mxu3 %v8128_v31  ;;  %v6992_v27 = vld [vmem:[%s9001_s19 + $0xe0] sm:$0xf] }
 0x341   : > { %7295 = vmatmul.msk.bf16.gmra.mxu3 %vm774_vm0, %v7189_v8  ;;  %v6993_v53 = vor.u32 %v7981_v56, %v6992_v27 }
 0x343   : > { %v3586_v18 = vpop.f32.mrf.mxu2  ;;  %v3499_v12 = vpop.f32.mrf.mxu0 }
 0x344   : > { %v4112_v44 = vpop.f32.mrf.mxu3  ;;  %v3587_v32 = vadd.f32 %v3586_v18, %v3497_v33  ;;  %v4025_v50 = vpop.f32.mrf.mxu1 }
 0x345   : > { %v4113_v47 = vadd.f32 %v4112_v44, %v4023_v42 }
 0x346   : > { %v3660_v2 = vadd.f32 %v3587_v32, %v9354_v38  ;;  %v8077_v32 = vld [vmem:[%s10184_s3 + $0x2a8] sm:$0xff] }
 0x347   : > { %v9667_v22 = vadd.f32 %v4113_v47, %v3658_v20  ;;  %v8121_v47 = vld [vmem:[%s10184_s3 + $0x308] sm:$0xff]  ;;  %4546 = vmatpush.bf16.msra.mxu0 %v8077_v32  ;;  %v7983_v32 = vld [vmem:[%s9001_s19 + $0xf4] sm:$0xf0] }
 0x348   : > { %5077 = vmatpush.bf16.msra.mxu1 %v8121_v47  ;;  %v7002_v47 = vld [vmem:[%s9001_s19 + $0xf8] sm:$0xf0] }
 0x34b   : > { %v3588_v4 = vpop.f32.mrf.mxu2  ;;  %v3502_v38 = vpop.f32.mrf.mxu0 }
 0x34c   : > { %v4114_v7 = vpop.f32.mrf.mxu3  ;;  %v3589_v23 = vadd.f32 %v3588_v4, %v3499_v12  ;;  %v4028_v6 = vpop.f32.mrf.mxu1  ;;  %v7200_v12 = vld [vmem:[%s9462_s9 + $0xb0] sm:$0xf] }
 0x34d   : > { %v4115_v60 = vadd.f32 %v4114_v7, %v4025_v50  ;;  %v7980_v50 = vld [vmem:[%s9001_s19 + $0xe4] sm:$0xf]  ;;  %v7201_v37 = vor.u32 %v8023_v3, %v7200_v12  ;;  %v7210_v12 = vld [vmem:[%s9462_s9 + $0xc8] sm:$0xf0] }
 0x34e   : > { %v3661_v20 = vadd.f32 %v3589_v23, %v9371_v19  ;;  %3541 = vmatmul.bf16.gmra.mxu0 %v6985_v25  ;;  %v6997_v25 = vor.u32 %v7980_v50, %v6994_v63  ;;  %v8024_v50 = vld [vmem:[%s9462_s9 + $0xc4] sm:$0xf] }
 0x34f   : > { %v9678_v13 = vadd.f32 %v4115_v60, %v3659_v59  ;;  %4067 = vmatmul.bf16.gmra.mxu1 %v7193_v51 }
 0x350   : > { %7081 = vmatmul.msk.bf16.gmra.mxu2 %vm774_vm0, %v6989_v24 }
 0x351   : > { %7296 = vmatmul.msk.bf16.gmra.mxu3 %vm774_vm0, %v7197_v41 }
 0x353   : > { %v3591_v19 = vpop.f32.mrf.mxu2  ;;  %v3504_v59 = vpop.f32.mrf.mxu0 }
 0x354   : > { %v4117_v42 = vpop.f32.mrf.mxu3  ;;  %v3592_v17 = vadd.f32 %v3591_v19, %v3502_v38  ;;  %v4030_v33 = vpop.f32.mrf.mxu1 }
 0x355   : > { %v4118_v8 = vadd.f32 %v4117_v42, %v4028_v6 }
 0x356   : > { %v3662_v18 = vadd.f32 %v3592_v17, %v9376_v15  ;;  %v7202_v15 = vld [vmem:[%s9462_s9 + $0xb8] sm:$0xf0]  ;;  %v7982_v17 = vld [vmem:[%s9001_s19 + $0xf4] sm:$0xf] }
 0x357   : > { %v9689_v44 = vadd.f32 %v4118_v8, %v3660_v2  ;;  %v7205_v23 = vor.u32 %v8022_v11, %v7202_v15  ;;  %v7208_v8 = vld [vmem:[%s9462_s9 + $0xc0] sm:$0xf] }
 0x35b   : > { %v3593_v2 = vpop.f32.mrf.mxu2  ;;  %v3507_v60 = vpop.f32.mrf.mxu0 }
 0x35c   : > { %v4119_v45 = vpop.f32.mrf.mxu3  ;;  %v3594_v4 = vadd.f32 %v3593_v2, %v3504_v59  ;;  %v4033_v51 = vpop.f32.mrf.mxu1  ;;  %v7000_v59 = vld [vmem:[%s9001_s19 + $0xf0] sm:$0xf] }
 0x35d   : > { %v4120_v7 = vadd.f32 %v4119_v45, %v4030_v33  ;;  %v8025_v33 = vld [vmem:[%s9462_s9 + $0xc4] sm:$0xf0]  ;;  %v7001_v63 = vor.u32 %v7983_v32, %v7000_v59  ;;  %v7005_v45 = vor.u32 %v7982_v17, %v7002_v47 }
 0x35e   : > { %v3663_v6 = vadd.f32 %v3594_v4, %v9387_v39  ;;  %3546 = vmatmul.bf16.gmra.mxu0 %v6993_v53  ;;  %v7209_v56 = vor.u32 %v8025_v33, %v7208_v8  ;;  %v7985_v17 = vld [vmem:[%s9001_s19 + $0x104] sm:$0xf0]  ;;  %v7010_v8 = vld [vmem:[%s9001_s19 + $0x108] sm:$0xf0]  ;;  %v8026_v33 = vld [vmem:[%s9462_s9 + $0xd4] sm:$0xf] }
 0x35f   : > { %v9706_v24 = vadd.f32 %v4120_v7, %v3661_v20  ;;  %4072 = vmatmul.bf16.gmra.mxu1 %v7201_v37  ;;  %v7213_v37 = vor.u32 %v8024_v50, %v7210_v12 }
 0x360   : > { %7082 = vmatmul.msk.bf16.gmra.mxu2 %vm774_vm0, %v6997_v25 }
 0x361   : > { %7297 = vmatmul.msk.bf16.gmra.mxu3 %vm774_vm0, %v7205_v23 }
 0x363   : > { %v3596_v41 = vpop.f32.mrf.mxu2  ;;  %v3509_v39 = vpop.f32.mrf.mxu0 }
 0x364   : > { %v4122_v38 = vpop.f32.mrf.mxu3  ;;  %v3597_v35 = vadd.f32 %v3596_v41, %v3507_v60  ;;  %v4035_v19 = vpop.f32.mrf.mxu1  ;;  %v8076_v41 = vld [vmem:[%s10184_s3 + $0x2a0] sm:$0xff] }
 0x365   : > { %v4123_v31 = vadd.f32 %v4122_v38, %v4033_v51  ;;  %v8120_v38 = vld [vmem:[%s10184_s3 + $0x300] sm:$0xff]  ;;  %4547 = vmatpush.bf16.msra.mxu0 %v8076_v41  ;;  %v7987_v41 = vld [vmem:[%s9001_s19 + $0x114] sm:$0xf0] }
 0x366   : > { %v3664_v20 = vadd.f32 %v3597_v35, %v9392_v48  ;;  %v7984_v35 = vld [vmem:[%s9001_s19 + $0x104] sm:$0xf]  ;;  %5078 = vmatpush.bf16.msra.mxu1 %v8120_v38  ;;  %v7018_v38 = vld [vmem:[%s9001_s19 + $0x118] sm:$0xf0] }
 0x367   : > { %v9711_v42 = vadd.f32 %v4123_v31, %v3662_v18  ;;  %v7216_v31 = vld [vmem:[%s9462_s9 + $0xd0] sm:$0xf] }
 0x36b   : > { %v3598_v3 = vpop.f32.mrf.mxu2  ;;  %v3512_v48 = vpop.f32.mrf.mxu0 }
 0x36c   : > { %v4124_v27 = vpop.f32.mrf.mxu3  ;;  %v3599_v11 = vadd.f32 %v3598_v3, %v3509_v39  ;;  %v4038_v2 = vpop.f32.mrf.mxu1  ;;  %v7008_v39 = vld [vmem:[%s9001_s19 + $0x100] sm:$0xf] }
 0x36d   : > { %v4125_v15 = vadd.f32 %v4124_v27, %v4035_v19  ;;  %v8027_v19 = vld [vmem:[%s9462_s9 + $0xd4] sm:$0xf0]  ;;  %v7009_v47 = vor.u32 %v7985_v17, %v7008_v39  ;;  %v7013_v27 = vor.u32 %v7984_v35, %v7010_v8  ;;  %v8028_v35 = vld [vmem:[%s9462_s9 + $0xe4] sm:$0xf] }
 0x36e   : > { %v3665_v18 = vadd.f32 %v3599_v11, %v9409_v58  ;;  %3551 = vmatmul.bf16.gmra.mxu0 %v7001_v63  ;;  %v7217_v32 = vor.u32 %v8027_v19, %v7216_v31  ;;  %v7226_v31 = vld [vmem:[%s9462_s9 + $0xe8] sm:$0xf0] }
 0x36f   : > { %v9722_v53 = vadd.f32 %v4125_v15, %v3663_v6  ;;  %4077 = vmatmul.bf16.gmra.mxu1 %v7209_v56 }
 0x370   : > { %7083 = vmatmul.msk.bf16.gmra.mxu2 %vm774_vm0, %v7005_v45 }
 0x371   : > { %7298 = vmatmul.msk.bf16.gmra.mxu3 %vm774_vm0, %v7213_v37 }
 0x373   : > { %v3601_v4 = vpop.f32.mrf.mxu2  ;;  %v3514_v23 = vpop.f32.mrf.mxu0 }
 0x374   : > { %v4127_v7 = vpop.f32.mrf.mxu3  ;;  %v3602_v51 = vadd.f32 %v3601_v4, %v3512_v48  ;;  %v4040_v58 = vpop.f32.mrf.mxu1 }
 0x375   : > { %v4128_v25 = vadd.f32 %v4127_v7, %v4038_v2 }
 0x376   : > { %v3666_v60 = vadd.f32 %v3602_v51, %v9414_v9  ;;  %v7218_v9 = vld [vmem:[%s9462_s9 + $0xd8] sm:$0xf0]  ;;  %v7986_v51 = vld [vmem:[%s9001_s19 + $0x114] sm:$0xf] }
 0x377   : > { %v9727_v6 = vadd.f32 %v4128_v25, %v3664_v20  ;;  %v7221_v56 = vor.u32 %v8026_v33, %v7218_v9  ;;  %v7224_v25 = vld [vmem:[%s9462_s9 + $0xe0] sm:$0xf] }
 0x37b   : > { %v3603_v20 = vpop.f32.mrf.mxu2  ;;  %v3517_v63 = vpop.f32.mrf.mxu0 }
 0x37c   : > { %v4129_v59 = vpop.f32.mrf.mxu3  ;;  %v3604_v50 = vadd.f32 %v3603_v20, %v3514_v23  ;;  %v4043_v3 = vpop.f32.mrf.mxu1  ;;  %v7016_v23 = vld [vmem:[%s9001_s19 + $0x110] sm:$0xf]  ;;  %s5809_s19 = sshll.u32 %s10250_s24, 5 }
 0x37d   : > { %v4130_v12 = vadd.f32 %v4129_v59, %v4040_v58  ;;  %v8029_v58 = vld [vmem:[%s9462_s9 + $0xe4] sm:$0xf0]  ;;  %v7017_v8 = vor.u32 %v7987_v41, %v7016_v23  ;;  %v7021_v59 = vor.u32 %v7986_v51, %v7018_v38  ;;  %v8044_v51 = vld [vmem:[%s9462_s9 + $0x14] sm:$0xf]  ;;  %s473_s23 = sadd.s32 %s5810_s22, %s5809_s19 }
 0x37e   : > { %v3667_v11 = vadd.f32 %v3604_v50, %v9425_v40  ;;  %3556 = vmatmul.bf16.gmra.mxu0 %v7009_v47  ;;  %v7225_v17 = vor.u32 %v8029_v58, %v7224_v25  ;;  %v7330_v25 = vld [vmem:[%s9462_s9 + $0x18] sm:$0xf0]  ;;  %s5811_s13 = sshll.u32 %s473_s23, 2 }
 0x37f   : > { %v9744_v15 = vadd.f32 %v4130_v12, %v3665_v18  ;;  %4082 = vmatmul.bf16.gmra.mxu1 %v7217_v32  ;;  %v7229_v32 = vor.u32 %v8028_v35, %v7226_v31  ;;  %s9932_s12 = scalar_lea.vmem %s10186_s5, %s5811_s13 }
 0x380   : > { %7084 = vmatmul.msk.bf16.gmra.mxu2 %vm774_vm0, %v7013_v27 }
 0x381   : > { %7299 = vmatmul.msk.bf16.gmra.mxu3 %vm774_vm0, %v7221_v56 }
 0x383   : > { %v3606_v2 = vpop.f32.mrf.mxu2  ;;  %v3519_v40 = vpop.f32.mrf.mxu0 }
 0x384   : > { %v4132_v45 = vpop.f32.mrf.mxu3  ;;  %v3607_v37 = vadd.f32 %v3606_v2, %v3517_v63  ;;  %v4045_v4 = vpop.f32.mrf.mxu1  ;;  %v7232_v2 = vld [vmem:[%s9462_s9 + $0xf0] sm:$0xf] }
 0x385   : > { %v4133_v48 = vadd.f32 %v4132_v45, %v4043_v3  ;;  %v8031_v45 = vld [vmem:[%s9462_s9 + $0xf4] sm:$0xf0] }
 0x386   : > { %v3668_v18 = vadd.f32 %v3607_v37, %v9437_v52  ;;  %v8030_v37 = vld [vmem:[%s9462_s9 + $0xf4] sm:$0xf]  ;;  %v7233_v41 = vor.u32 %v8031_v45, %v7232_v2  ;;  %v8088_v2 = vld [vmem:[%s9462_s9 + $0x24] sm:$0xf]  ;;  %v7546_v45 = vld [vmem:[%s9462_s9 + $0x28] sm:$0xf0] }
 0x387   : > { %v9749_v7 = vadd.f32 %v4133_v48, %v3666_v60  ;;  %v7328_v48 = vld [vmem:[%s9462_s9 + $0x10] sm:$0xf] }
 0x38b   : > { %v3608_v19 = vpop.f32.mrf.mxu2  ;;  %v3522_v52 = vpop.f32.mrf.mxu0 }
 0x38c   : > { %v4134_v39 = vpop.f32.mrf.mxu3  ;;  %v3609_v33 = vadd.f32 %v3608_v19, %v3519_v40  ;;  %v4048_v20 = vpop.f32.mrf.mxu1  ;;  %v7234_v40 = vld [vmem:[%s9462_s9 + $0xf8] sm:$0xf0] }
 0x38d   : > { %v4135_v9 = vadd.f32 %v4134_v39, %v4045_v4  ;;  %v8045_v4 = vld [vmem:[%s9462_s9 + $0x14] sm:$0xf0]  ;;  %v7237_v39 = vor.u32 %v8030_v37, %v7234_v40 }
 0x38e   : > { %v3669_v60 = vadd.f32 %v3609_v33, %v9454_v34  ;;  %3561 = vmatmul.bf16.gmra.mxu0 %v7017_v8  ;;  %v7329_v38 = vor.u32 %v8045_v4, %v7328_v48 }
 0x38f   : > { %v9760_v47 = vadd.f32 %v4135_v9, %v3667_v11  ;;  %4087 = vmatmul.bf16.gmra.mxu1 %v7225_v17  ;;  %v7333_v17 = vor.u32 %v8044_v51, %v7330_v25 }
 0x390   : > { %7085 = vmatmul.msk.bf16.gmra.mxu2 %vm774_vm0, %v7021_v59 }
 0x391   : > { %7300 = vmatmul.msk.bf16.gmra.mxu3 %vm774_vm0, %v7229_v32 }
 0x393   : > { %v3611_v50 = vpop.f32.mrf.mxu2  ;;  %v3524_v34 = vpop.f32.mrf.mxu0 }
 0x394   : > { %v4137_v12 = vpop.f32.mrf.mxu3  ;;  %v3612_v3 = vadd.f32 %v3611_v50, %v3522_v52  ;;  %v4050_v56 = vpop.f32.mrf.mxu1  ;;  %v8046_v50 = vld [vmem:[%s9462_s9 + $0x24] sm:$0xf] }
 0x395   : > { %v4138_v27 = vadd.f32 %v4137_v12, %v4048_v20  ;;  %v7544_v12 = vld [vmem:[%s9462_s9 + $0x20] sm:$0xf] }
 0x396   : > { %v3670_v63 = vadd.f32 %v3612_v3, %v9465_v61  ;;  %v8089_v3 = vld [vmem:[%s9462_s9 + $0x24] sm:$0xf0] }
 0x397   : > { %v9765_v11 = vadd.f32 %v4138_v27, %v3668_v18  ;;  %v7336_v27 = vld [vmem:[%s9462_s9 + $0x20] sm:$0xf]  ;;  %v7545_v4 = vor.u32 %v8089_v3, %v7544_v12  ;;  %v7554_v12 = vld [vmem:[%s9462_s9 + $0x38] sm:$0xf0] }
 0x39b   : > { %v3613_v58 = vpop.f32.mrf.mxu2  ;;  %v3527_v61 = vpop.f32.mrf.mxu0 }
 0x39c   : > { %v4139_v23 = vpop.f32.mrf.mxu3  ;;  %v3614_v35 = vadd.f32 %v3613_v58, %v3524_v34  ;;  %v4053_v19 = vpop.f32.mrf.mxu1  ;;  %v7338_v34 = vld [vmem:[%s9462_s9 + $0x28] sm:$0xf0] }
 0x39d   : > { %v4140_v31 = vadd.f32 %v4139_v23, %v4050_v56  ;;  %v8047_v56 = vld [vmem:[%s9462_s9 + $0x24] sm:$0xf0]  ;;  %v7341_v23 = vor.u32 %v8046_v50, %v7338_v34  ;;  %v8090_v50 = vld [vmem:[%s9462_s9 + $0x34] sm:$0xf] }
 0x39e   : > { %v3671_v18 = vadd.f32 %v3614_v35, %v9476_v21  ;;  %4548 = vmatmul.bf16.vlgmr.msra.gmra.mxu0 %v7329_v38  ;;  %v7337_v40 = vor.u32 %v8047_v56, %v7336_v27 }
 0x39f   : > { %v9776_v8 = vadd.f32 %v4140_v31, %v3669_v60  ;;  %4092 = vmatmul.bf16.gmra.mxu1 %v7233_v41  ;;  %v7549_v41 = vor.u32 %v8088_v2, %v7546_v45 }
 0x3a0   : > { %7502 = vmatmul.msk.bf16.vlgmr.msra.gmra.mxu2 %vm774_vm0, %v7333_v17 }
 0x3a1   : > { %7301 = vmatmul.msk.bf16.gmra.mxu3 %vm774_vm0, %v7237_v39 }
 0x3a3   : > { %v3616_v33 = vpop.f32.mrf.mxu2  ;;  %v3529_v21 = vpop.f32.mrf.mxu0 }
 0x3a4   : > { %v4142_v9 = vpop.f32.mrf.mxu3  ;;  %v3617_v20 = vadd.f32 %v3616_v33, %v3527_v61  ;;  %v4055_v32 = vpop.f32.mrf.mxu1  ;;  %v8048_v33 = vld [vmem:[%s9462_s9 + $0x34] sm:$0xf] }
 0x3a5   : > { %v4143_v59 = vadd.f32 %v4142_v9, %v4053_v19  ;;  %v7552_v9 = vld [vmem:[%s9462_s9 + $0x30] sm:$0xf] }
 0x3a6   : > { %v3672_v52 = vadd.f32 %v3617_v20, %v9481_v43  ;;  %v8091_v20 = vld [vmem:[%s9462_s9 + $0x34] sm:$0xf0] }
 0x3a7   : > { %v9781_v60 = vadd.f32 %v4143_v59, %v3670_v63  ;;  %v7344_v59 = vld [vmem:[%s9462_s9 + $0x30] sm:$0xf]  ;;  %v7553_v56 = vor.u32 %v8091_v20, %v7552_v9  ;;  %v7562_v9 = vld [vmem:[%s9462_s9 + $0x48] sm:$0xf0] }
 0x3ab   : > { %v3618_v37 = vpop.f32.mrf.mxu2  ;;  %v3532_v43 = vpop.f32.mrf.mxu0 }
 0x3ac   : > { %v4144_v48 = vpop.f32.mrf.mxu3  ;;  %v3619_v51 = vadd.f32 %v3618_v37, %v3529_v21  ;;  %v4058_v58 = vpop.f32.mrf.mxu1  ;;  %v7346_v21 = vld [vmem:[%s9462_s9 + $0x38] sm:$0xf0] }
 0x3ad   : > { %v4145_v25 = vadd.f32 %v4144_v48, %v4055_v32  ;;  %v8049_v32 = vld [vmem:[%s9462_s9 + $0x34] sm:$0xf0]  ;;  %v7349_v48 = vor.u32 %v8048_v33, %v7346_v21  ;;  %v8092_v33 = vld [vmem:[%s9462_s9 + $0x44] sm:$0xf] }
 0x3ae   : > { %v3673_v63 = vadd.f32 %v3619_v51, %v9498_v28  ;;  %4553 = vmatmul.bf16.gmra.mxu0 %v7337_v40  ;;  %v7345_v34 = vor.u32 %v8049_v32, %v7344_v59 }
 0x3af   : > { %v9792_v38 = vadd.f32 %v4145_v25, %v3671_v18  ;;  %5079 = vmatmul.bf16.vlgmr.msra.gmra.mxu1 %v7545_v4  ;;  %v7557_v4 = vor.u32 %v8090_v50, %v7554_v12 }
 0x3b0   : > { %7503 = vmatmul.msk.bf16.gmra.mxu2 %vm774_vm0, %v7341_v23 }
 0x3b1   : > { %7718 = vmatmul.msk.bf16.vlgmr.msra.gmra.mxu3 %vm774_vm0, %v7549_v41 }
 0x3b3   : > { %v3621_v35 = vpop.f32.mrf.mxu2  ;;  %v3534_v28 = vpop.f32.mrf.mxu0 }
 0x3b4   : > { %v4147_v31 = vpop.f32.mrf.mxu3  ;;  %v3622_v19 = vadd.f32 %v3621_v35, %v3532_v43  ;;  %v4060_v17 = vpop.f32.mrf.mxu1  ;;  %v8050_v35 = vld [vmem:[%s9462_s9 + $0x44] sm:$0xf] }
 0x3b5   : > { %v4148_v39 = vadd.f32 %v4147_v31, %v4058_v58  ;;  %v7560_v31 = vld [vmem:[%s9462_s9 + $0x40] sm:$0xf] }
 0x3b6   : > { %v3674_v61 = vadd.f32 %v3622_v19, %v9503_v62  ;;  %v8093_v19 = vld [vmem:[%s9462_s9 + $0x44] sm:$0xf0] }
 0x3b7   : > { %v9797_v18 = vadd.f32 %v4148_v39, %v3672_v52  ;;  %v7352_v39 = vld [vmem:[%s9462_s9 + $0x40] sm:$0xf]  ;;  %v7561_v32 = vor.u32 %v8093_v19, %v7560_v31  ;;  %v7570_v31 = vld [vmem:[%s9462_s9 + $0x58] sm:$0xf0] }
 0x3bb   : > { %v3623_v3 = vpop.f32.mrf.mxu2  ;;  %v3537_v62 = vpop.f32.mrf.mxu0 }
 0x3bc   : > { %v4149_v27 = vpop.f32.mrf.mxu3  ;;  %v3624_v2 = vadd.f32 %v3623_v3, %v3534_v28  ;;  %v4063_v37 = vpop.f32.mrf.mxu1  ;;  %v7354_v28 = vld [vmem:[%s9462_s9 + $0x48] sm:$0xf0] }
 0x3bd   : > { %v4150_v45 = vadd.f32 %v4149_v27, %v4060_v17  ;;  %v8051_v17 = vld [vmem:[%s9462_s9 + $0x44] sm:$0xf0]  ;;  %v7357_v27 = vor.u32 %v8050_v35, %v7354_v28  ;;  %v8094_v35 = vld [vmem:[%s9462_s9 + $0x54] sm:$0xf] }
 0x3be   : > { %v3675_v52 = vadd.f32 %v3624_v2, %v9514_v46  ;;  %4558 = vmatmul.bf16.gmra.mxu0 %v7345_v34  ;;  %v7353_v21 = vor.u32 %v8051_v17, %v7352_v39 }
 0x3bf   : > { %v9808_v40 = vadd.f32 %v4150_v45, %v3673_v63  ;;  %5084 = vmatmul.bf16.gmra.mxu1 %v7553_v56  ;;  %v7565_v56 = vor.u32 %v8092_v33, %v7562_v9 }
 0x3c0   : > { %7504 = vmatmul.msk.bf16.gmra.mxu2 %vm774_vm0, %v7349_v48 }
 0x3c1   : > { %7719 = vmatmul.msk.bf16.gmra.mxu3 %vm774_vm0, %v7557_v4 }
 0x3c3   : > { %v3626_v51 = vpop.f32.mrf.mxu2  ;;  %v3539_v46 = vpop.f32.mrf.mxu0 }
 0x3c4   : > { %v4152_v25 = vpop.f32.mrf.mxu3  ;;  %v3627_v58 = vadd.f32 %v3626_v51, %v3537_v62  ;;  %v4065_v41 = vpop.f32.mrf.mxu1  ;;  %v8052_v51 = vld [vmem:[%s9462_s9 + $0x54] sm:$0xf] }
 0x3c5   : > { %v4153_v23 = vadd.f32 %v4152_v25, %v4063_v37  ;;  %v7568_v25 = vld [vmem:[%s9462_s9 + $0x50] sm:$0xf] }
 0x3c6   : > { %v3676_v43 = vadd.f32 %v3627_v58, %v9525_v14  ;;  %v8095_v58 = vld [vmem:[%s9462_s9 + $0x54] sm:$0xf0] }
 0x3c7   : > { %v9813_v63 = vadd.f32 %v4153_v23, %v3674_v61  ;;  %v7360_v23 = vld [vmem:[%s9462_s9 + $0x50] sm:$0xf]  ;;  %v7569_v17 = vor.u32 %v8095_v58, %v7568_v25  ;;  %v7578_v25 = vld [vmem:[%s9462_s9 + $0x68] sm:$0xf0] }
 0x3cb   : > { %v3628_v20 = vpop.f32.mrf.mxu2  ;;  %v3542_v14 = vpop.f32.mrf.mxu0 }
 0x3cc   : > { %v4154_v59 = vpop.f32.mrf.mxu3  ;;  %v3629_v50 = vadd.f32 %v3628_v20, %v3539_v46  ;;  %v4068_v3 = vpop.f32.mrf.mxu1  ;;  %v7362_v46 = vld [vmem:[%s9462_s9 + $0x58] sm:$0xf0] }
 0x3cd   : > { %v4155_v12 = vadd.f32 %v4154_v59, %v4065_v41  ;;  %v8053_v41 = vld [vmem:[%s9462_s9 + $0x54] sm:$0xf0]  ;;  %v7365_v59 = vor.u32 %v8052_v51, %v7362_v46  ;;  %v8096_v51 = vld [vmem:[%s9462_s9 + $0x64] sm:$0xf] }
 0x3ce   : > { %v3677_v61 = vadd.f32 %v3629_v50, %v9542_v49  ;;  %4563 = vmatmul.bf16.gmra.mxu0 %v7353_v21  ;;  %v7361_v28 = vor.u32 %v8053_v41, %v7360_v23 }
 0x3cf   : > { %v9824_v34 = vadd.f32 %v4155_v12, %v3675_v52  ;;  %5089 = vmatmul.bf16.gmra.mxu1 %v7561_v32  ;;  %v7573_v32 = vor.u32 %v8094_v35, %v7570_v31 }
 0x3d0   : > { %7505 = vmatmul.msk.bf16.gmra.mxu2 %vm774_vm0, %v7357_v27 }
 0x3d1   : > { %7720 = vmatmul.msk.bf16.gmra.mxu3 %vm774_vm0, %v7565_v56 }
 0x3d3   : > { %v3631_v2 = vpop.f32.mrf.mxu2  ;;  %v3544_v49 = vpop.f32.mrf.mxu0 }
 0x3d4   : > { %v4157_v45 = vpop.f32.mrf.mxu3  ;;  %v3632_v37 = vadd.f32 %v3631_v2, %v3542_v14  ;;  %v4070_v4 = vpop.f32.mrf.mxu1  ;;  %v8054_v2 = vld [vmem:[%s9462_s9 + $0x64] sm:$0xf] }
 0x3d5   : > { %v4158_v48 = vadd.f32 %v4157_v45, %v4068_v3  ;;  %v7576_v45 = vld [vmem:[%s9462_s9 + $0x60] sm:$0xf] }
 0x3d6   : > { %v3678_v62 = vadd.f32 %v3632_v37, %v9547_v0  ;;  %v8097_v37 = vld [vmem:[%s9462_s9 + $0x64] sm:$0xf0] }
 0x3d7   : > { %v9829_v52 = vadd.f32 %v4158_v48, %v3676_v43  ;;  %v7368_v48 = vld [vmem:[%s9462_s9 + $0x60] sm:$0xf]  ;;  %v7577_v41 = vor.u32 %v8097_v37, %v7576_v45  ;;  %v7586_v45 = vld [vmem:[%s9462_s9 + $0x78] sm:$0xf0] }
 0x3db   : > { %v3633_v19 = vpop.f32.mrf.mxu2  ;;  %v3547_v0 = vpop.f32.mrf.mxu0 }
 0x3dc   : > { %v4159_v39 = vpop.f32.mrf.mxu3  ;;  %v3634_v33 = vadd.f32 %v3633_v19, %v3544_v49  ;;  %v4073_v20 = vpop.f32.mrf.mxu1  ;;  %v7370_v49 = vld [vmem:[%s9462_s9 + $0x68] sm:$0xf0] }
 0x3dd   : > { %v4160_v9 = vadd.f32 %v4159_v39, %v4070_v4  ;;  %v8055_v4 = vld [vmem:[%s9462_s9 + $0x64] sm:$0xf0]  ;;  %v7373_v39 = vor.u32 %v8054_v2, %v7370_v49  ;;  %v8098_v2 = vld [vmem:[%s9462_s9 + $0x74] sm:$0xf] }
 0x3de   : > { %v3679_v43 = vadd.f32 %v3634_v33, %v9558_v54  ;;  %4568 = vmatmul.bf16.gmra.mxu0 %v7361_v28  ;;  %v7369_v46 = vor.u32 %v8055_v4, %v7368_v48 }
 0x3df   : > { %v9840_v21 = vadd.f32 %v4160_v9, %v3677_v61  ;;  %5094 = vmatmul.bf16.gmra.mxu1 %v7569_v17  ;;  %v7581_v17 = vor.u32 %v8096_v51, %v7578_v25 }
 0x3e0   : > { %7506 = vmatmul.msk.bf16.gmra.mxu2 %vm774_vm0, %v7365_v59 }
 0x3e1   : > { %7721 = vmatmul.msk.bf16.gmra.mxu3 %vm774_vm0, %v7573_v32 }
 0x3e3   : > { %v3636_v50 = vpop.f32.mrf.mxu2  ;;  %v3549_v54 = vpop.f32.mrf.mxu0 }
 0x3e4   : > { %v4162_v12 = vpop.f32.mrf.mxu3  ;;  %v3637_v3 = vadd.f32 %v3636_v50, %v3547_v0  ;;  %v4075_v56 = vpop.f32.mrf.mxu1  ;;  %v8056_v50 = vld [vmem:[%s9462_s9 + $0x74] sm:$0xf] }
 0x3e5   : > { %v4163_v27 = vadd.f32 %v4162_v12, %v4073_v20  ;;  %v7584_v12 = vld [vmem:[%s9462_s9 + $0x70] sm:$0xf] }
 0x3e6   : > { %v3680_v14 = vadd.f32 %v3637_v3, %v9563_v36  ;;  %v8099_v3 = vld [vmem:[%s9462_s9 + $0x74] sm:$0xf0] }
 0x3e7   : > { %v9845_v61 = vadd.f32 %v4163_v27, %v3678_v62  ;;  %v7376_v27 = vld [vmem:[%s9462_s9 + $0x70] sm:$0xf]  ;;  %v7585_v4 = vor.u32 %v8099_v3, %v7584_v12  ;;  %v7594_v12 = vld [vmem:[%s9462_s9 + $0x88] sm:$0xf0] }
 0x3eb   : > { %v3638_v58 = vpop.f32.mrf.mxu2  ;;  %v3552_v36 = vpop.f32.mrf.mxu0 }
 0x3ec   : > { %v4164_v23 = vpop.f32.mrf.mxu3  ;;  %v3639_v35 = vadd.f32 %v3638_v58, %v3549_v54  ;;  %v4078_v19 = vpop.f32.mrf.mxu1  ;;  %v7378_v54 = vld [vmem:[%s9462_s9 + $0x78] sm:$0xf0] }
 0x3ed   : > { %v4165_v31 = vadd.f32 %v4164_v23, %v4075_v56  ;;  %v8057_v56 = vld [vmem:[%s9462_s9 + $0x74] sm:$0xf0]  ;;  %v7381_v23 = vor.u32 %v8056_v50, %v7378_v54  ;;  %v8100_v50 = vld [vmem:[%s9462_s9 + $0x84] sm:$0xf] }
 0x3ee   : > { %v3681_v62 = vadd.f32 %v3639_v35, %v9580_v1  ;;  %4573 = vmatmul.bf16.gmra.mxu0 %v7369_v46  ;;  %v7377_v49 = vor.u32 %v8057_v56, %v7376_v27 }
 0x3ef   : > { %v9856_v28 = vadd.f32 %v4165_v31, %v3679_v43  ;;  %5099 = vmatmul.bf16.gmra.mxu1 %v7577_v41  ;;  %v7589_v41 = vor.u32 %v8098_v2, %v7586_v45 }
 0x3f0   : > { %7507 = vmatmul.msk.bf16.gmra.mxu2 %vm774_vm0, %v7373_v39 }
 0x3f1   : > { %7722 = vmatmul.msk.bf16.gmra.mxu3 %vm774_vm0, %v7581_v17 }
 0x3f3   : > { %v3641_v33 = vpop.f32.mrf.mxu2  ;;  %v3554_v1 = vpop.f32.mrf.mxu0 }
 0x3f4   : > { %v4167_v9 = vpop.f32.mrf.mxu3  ;;  %v3642_v20 = vadd.f32 %v3641_v33, %v3552_v36  ;;  %v4080_v32 = vpop.f32.mrf.mxu1  ;;  %v8058_v33 = vld [vmem:[%s9462_s9 + $0x84] sm:$0xf] }
 0x3f5   : > { %v4168_v59 = vadd.f32 %v4167_v9, %v4078_v19  ;;  %v7592_v9 = vld [vmem:[%s9462_s9 + $0x80] sm:$0xf] }
 0x3f6   : > { %v3682_v0 = vadd.f32 %v3642_v20, %v9585_v29  ;;  %v8101_v20 = vld [vmem:[%s9462_s9 + $0x84] sm:$0xf0] }
 0x3f7   : > { %v9861_v43 = vadd.f32 %v4168_v59, %v3680_v14  ;;  %v7384_v59 = vld [vmem:[%s9462_s9 + $0x80] sm:$0xf]  ;;  %v7593_v56 = vor.u32 %v8101_v20, %v7592_v9  ;;  %v7602_v9 = vld [vmem:[%s9462_s9 + $0x98] sm:$0xf0] }
 0x3fb   : > { %v3643_v37 = vpop.f32.mrf.mxu2  ;;  %v3557_v29 = vpop.f32.mrf.mxu0 }
 0x3fc   : > { %v4169_v48 = vpop.f32.mrf.mxu3  ;;  %v3644_v51 = vadd.f32 %v3643_v37, %v3554_v1  ;;  %v4083_v58 = vpop.f32.mrf.mxu1  ;;  %v7386_v1 = vld [vmem:[%s9462_s9 + $0x88] sm:$0xf0] }
 0x3fd   : > { %v4170_v25 = vadd.f32 %v4169_v48, %v4080_v32  ;;  %v8059_v32 = vld [vmem:[%s9462_s9 + $0x84] sm:$0xf0]  ;;  %v7389_v48 = vor.u32 %v8058_v33, %v7386_v1  ;;  %v8102_v33 = vld [vmem:[%s9462_s9 + $0x94] sm:$0xf] }
 0x3fe   : > { %v3683_v14 = vadd.f32 %v3644_v51, %v9596_v26  ;;  %4578 = vmatmul.bf16.gmra.mxu0 %v7377_v49  ;;  %v7385_v54 = vor.u32 %v8059_v32, %v7384_v59 }
 0x3ff   : > { %v9872_v46 = vadd.f32 %v4170_v25, %v3681_v62  ;;  %5104 = vmatmul.bf16.gmra.mxu1 %v7585_v4  ;;  %v7597_v4 = vor.u32 %v8100_v50, %v7594_v12 }
 0x400   : > { %7508 = vmatmul.msk.bf16.gmra.mxu2 %vm774_vm0, %v7381_v23 }
 0x401   : > { %7723 = vmatmul.msk.bf16.gmra.mxu3 %vm774_vm0, %v7589_v41 }
 0x403   : > { %v3646_v35 = vpop.f32.mrf.mxu2  ;;  %v3559_v26 = vpop.f32.mrf.mxu0 }
 0x404   : > { %v4172_v31 = vpop.f32.mrf.mxu3  ;;  %v3647_v19 = vadd.f32 %v3646_v35, %v3557_v29  ;;  %v4085_v17 = vpop.f32.mrf.mxu1  ;;  %v8060_v35 = vld [vmem:[%s9462_s9 + $0x94] sm:$0xf] }
 0x405   : > { %v4173_v39 = vadd.f32 %v4172_v31, %v4083_v58  ;;  %v7600_v31 = vld [vmem:[%s9462_s9 + $0x90] sm:$0xf] }
 0x406   : > { %v3684_v36 = vadd.f32 %v3647_v19, %v9607_v57  ;;  %v8103_v19 = vld [vmem:[%s9462_s9 + $0x94] sm:$0xf0] }
 0x407   : > { %v9877_v62 = vadd.f32 %v4173_v39, %v3682_v0  ;;  %v7392_v39 = vld [vmem:[%s9462_s9 + $0x90] sm:$0xf]  ;;  %v7601_v32 = vor.u32 %v8103_v19, %v7600_v31 }
 0x40b   : > { %v3648_v3 = vpop.f32.mrf.mxu2  ;;  %v3562_v57 = vpop.f32.mrf.mxu0 }
 0x40c   : > { %v4174_v27 = vpop.f32.mrf.mxu3  ;;  %v3649_v2 = vadd.f32 %v3648_v3, %v3559_v26  ;;  %v4088_v37 = vpop.f32.mrf.mxu1  ;;  %v7394_v26 = vld [vmem:[%s9462_s9 + $0x98] sm:$0xf0] }
 0x40d   : > { %v4175_v45 = vadd.f32 %v4174_v27, %v4085_v17  ;;  %v8061_v17 = vld [vmem:[%s9462_s9 + $0x94] sm:$0xf0]  ;;  %v7397_v27 = vor.u32 %v8060_v35, %v7394_v26 }
 0x40e   : > { %v3685_v0 = vadd.f32 %v3649_v2, %v9624_v16  ;;  %4583 = vmatmul.bf16.gmra.mxu0 %v7385_v54  ;;  %v7393_v1 = vor.u32 %v8061_v17, %v7392_v39 }
 0x40f   : > { %v9888_v49 = vadd.f32 %v4175_v45, %v3683_v14  ;;  %5109 = vmatmul.bf16.gmra.mxu1 %v7593_v56 }
 0x410   : > { %7509 = vmatmul.msk.bf16.gmra.mxu2 %vm774_vm0, %v7389_v48 }
 0x411   : > { %7724 = vmatmul.msk.bf16.gmra.mxu3 %vm774_vm0, %v7597_v4 }
 0x413   : > { %v3651_v51 = vpop.f32.mrf.mxu2  ;;  %v3564_v16 = vpop.f32.mrf.mxu0 }
 0x414   : > { %v4177_v25 = vpop.f32.mrf.mxu3  ;;  %v3652_v58 = vadd.f32 %v3651_v51, %v3562_v57  ;;  %v4090_v41 = vpop.f32.mrf.mxu1  ;;  %v8062_v57 = vld [vmem:[%s9462_s9 + $0xa4] sm:$0xf]  ;;  %v8105_v51 = vld [vmem:[%s9462_s9 + $0xa4] sm:$0xf0] }
 0x415   : > { %v4178_v23 = vadd.f32 %v4177_v25, %v4088_v37  ;;  %v7400_v25 = vld [vmem:[%s9462_s9 + $0xa0] sm:$0xf] }
 0x416   : > { %v3686_v29 = vadd.f32 %v3652_v58, %v9628_v10  ;;  %v7605_v10 = vor.u32 %v8102_v33, %v7602_v9  ;;  %v8063_v58 = vld [vmem:[%s9462_s9 + $0xa4] sm:$0xf0] }
 0x417   : > { %v9893_v14 = vadd.f32 %v4178_v23, %v3684_v36  ;;  %v7402_v23 = vld [vmem:[%s9462_s9 + $0xa8] sm:$0xf0]  ;;  %v7401_v39 = vor.u32 %v8063_v58, %v7400_v25 }
 0x418   : > { %v7405_v26 = vor.u32 %v8062_v57, %v7402_v23  ;;  %v7410_v57 = vld [vmem:[%s9462_s9 + $0xb8] sm:$0xf0] }
 0x41b   : > { %v3653_v20 = vpop.f32.mrf.mxu2  ;;  %v4549_v36 = vpop.f32.mrf.mxu0 }
 0x41c   : > { %v4179_v59 = vpop.f32.mrf.mxu3  ;;  %v3654_v50 = vadd.f32 %v3653_v20, %v3564_v16  ;;  %v4093_v3 = vpop.f32.mrf.mxu1  ;;  %v7610_v16 = vld [vmem:[%s9462_s9 + $0xa8] sm:$0xf0] }
 0x41d   : > { %v4180_v12 = vadd.f32 %v4179_v59, %v4090_v41  ;;  %v8104_v41 = vld [vmem:[%s9462_s9 + $0xa4] sm:$0xf] }
 0x41e   : > { %v3687_v56 = vadd.f32 %v3654_v50, %v9639_v55  ;;  %4588 = vmatmul.bf16.gmra.mxu0 %v7393_v1  ;;  %v7613_v33 = vor.u32 %v8104_v41, %v7610_v16 }
 0x41f   : > { %v9904_v54 = vadd.f32 %v4180_v12, %v3685_v0  ;;  %5114 = vmatmul.bf16.gmra.mxu1 %v7601_v32  ;;  %v7608_v0 = vld [vmem:[%s9462_s9 + $0xa0] sm:$0xf] }
 0x420   : > { %7510 = vmatmul.msk.bf16.gmra.mxu2 %vm774_vm0, %v7397_v27  ;;  %v7609_v19 = vor.u32 %v8105_v51, %v7608_v0  ;;  %v8106_v0 = vld [vmem:[%s9462_s9 + $0xb4] sm:$0xf]  ;;  %v7618_v51 = vld [vmem:[%s9462_s9 + $0xb8] sm:$0xf0] }
 0x421   : > { %7725 = vmatmul.msk.bf16.gmra.mxu3 %vm774_vm0, %v7605_v10 }
 0x423   : > { %v4638_v45 = vpop.f32.mrf.mxu2  ;;  %v4551_v4 = vpop.f32.mrf.mxu0 }
 0x424   : > { %v4182_v2 = vpop.f32.mrf.mxu3  ;;  %v4095_v48 = vpop.f32.mrf.mxu1  ;;  %v4639_v59 = vadd.f32 %v4638_v45, %v4549_v36  ;;  %v8064_v36 = vld [vmem:[%s9462_s9 + $0xb4] sm:$0xf] }
 0x425   : > { %v4183_v37 = vadd.f32 %v4182_v2, %v4093_v3 }
 0x426   : > { %v4718_v50 = vadd.f32 %v4639_v59, %v9645_v30  ;;  %v7408_v30 = vld [vmem:[%s9462_s9 + $0xb0] sm:$0xf] }
 0x427   : > { %v9908_v55 = vadd.f32 %v4183_v37, %v3686_v29  ;;  %v8107_v37 = vld [vmem:[%s9462_s9 + $0xb4] sm:$0xf0] }
 0x42b   : > { %v4640_v31 = vpop.f32.mrf.mxu2  ;;  %v4554_v9 = vpop.f32.mrf.mxu0 }
 0x42c   : > { %v4184_v35 = vpop.f32.mrf.mxu3  ;;  %v5080_v29 = vpop.f32.mrf.mxu1  ;;  %v4641_v2 = vadd.f32 %v4640_v31, %v4551_v4  ;;  %v7621_v4 = vor.u32 %v8106_v0, %v7618_v51 }
 0x42d   : > { %v4185_v17 = vadd.f32 %v4184_v35, %v4095_v48  ;;  %v8065_v48 = vld [vmem:[%s9462_s9 + $0xb4] sm:$0xf0] }
 0x42e   : > { %4593 = vmatmul.bf16.gmra.mxu0 %v7401_v39  ;;  %v7409_v41 = vor.u32 %v8065_v48, %v7408_v30  ;;  %v4719_v16 = vadd.f32 %v4641_v2, %v9662_v5  ;;  %v7413_v39 = vor.u32 %v8064_v36, %v7410_v57  ;;  %v8066_v30 = vld [vmem:[%s9462_s9 + $0xc4] sm:$0xf]  ;;  %v7624_v48 = vld [vmem:[%s9462_s9 + $0xc0] sm:$0xf]  ;;  %v8109_v57 = vld [vmem:[%s9462_s9 + $0xc4] sm:$0xf0] }
 0x42f   : > { %v9922_v20 = vadd.f32 %v4185_v17, %v3687_v56  ;;  %5119 = vmatmul.bf16.gmra.mxu1 %v7609_v19  ;;  %v7616_v56 = vld [vmem:[%s9462_s9 + $0xb0] sm:$0xf] }
 0x430   : > { %7511 = vmatmul.msk.bf16.gmra.mxu2 %vm774_vm0, %v7405_v26  ;;  %v7617_v23 = vor.u32 %v8107_v37, %v7616_v56 }
 0x431   : > { %7726 = vmatmul.msk.bf16.gmra.mxu3 %vm774_vm0, %v7613_v33 }
 0x433   : > { %v4643_v32 = vpop.f32.mrf.mxu2  ;;  %v4556_v27 = vpop.f32.mrf.mxu0 }
 0x434   : > { %v5169_v1 = vpop.f32.mrf.mxu3  ;;  %v5082_v3 = vpop.f32.mrf.mxu1  ;;  %v4644_v26 = vadd.f32 %v4643_v32, %v4554_v9 }
 0x435   : > { %v5170_v12 = vadd.f32 %v5169_v1, %v5080_v29 }
 0x436   : > { %v4720_v36 = vadd.f32 %v4644_v26, %v9667_v22  ;;  %v8108_v22 = vld [vmem:[%s9462_s9 + $0xc4] sm:$0xf] }
 0x437   : > { %v5249_v10 = vadd.f32 %v5170_v12, %v4718_v50 }
 0x439   : > { %v5281_v45 = vpack.c.bf16 %v5249_v10, %v5249_v10  ;;  %v5417_v17 = vmul.f32 %v5249_v10, %v5249_v10  ;;  %v5346_v33 = vsel %vm774_vm0, %v5249_v10, 0.0 }
 0x43b   : > { %5314 = vst.msk [vmem:[%s9932_s12] sm:$0xf] %vm5313_vm1, %v5281_v45  ;;  %v4645_v25 = vpop.f32.mrf.mxu2  ;;  %v4559_v31 = vpop.f32.mrf.mxu0  ;;  %v5449_v12 = vsel %vm774_vm0, %v5417_v17, 0.0 }
 0x43c   : > { %v5171_v58 = vpop.f32.mrf.mxu3  ;;  %v5085_v19 = vpop.f32.mrf.mxu1  ;;  %v4646_v0 = vadd.f32 %v4645_v25, %v4556_v27 }
 0x43d   : > { %v5172_v35 = vadd.f32 %v5171_v58, %v5082_v3 }
 0x43e   : > { %4598 = vmatmul.bf16.gmra.mxu0 %v7409_v41  ;;  %v7416_v41 = vld [vmem:[%s9462_s9 + $0xc0] sm:$0xf]  ;;  %v4721_v27 = vadd.f32 %v4646_v0, %v9678_v13 }
 0x43f   : > { %v5250_v29 = vadd.f32 %v5172_v35, %v4719_v16  ;;  %5124 = vmatmul.bf16.gmra.mxu1 %v7617_v23  ;;  %v8067_v16 = vld [vmem:[%s9462_s9 + $0xc4] sm:$0xf0] }
 0x440   : > { %7512 = vmatmul.msk.bf16.gmra.mxu2 %vm774_vm0, %v7413_v39  ;;  %v7418_v39 = vld [vmem:[%s9462_s9 + $0xc8] sm:$0xf0] }
 0x441   : > { %v5282_v59 = vpack.c.bf16 %v5250_v29, %v5250_v29  ;;  %v5347_v1 = vsel %vm774_vm0, %v5250_v29, 0.0  ;;  %v5418_v50 = vmul.f32 %v5250_v29, %v5250_v29  ;;  %7727 = vmatmul.msk.bf16.gmra.mxu3 %vm774_vm0, %v7621_v4  ;;  %v7626_v4 = vld [vmem:[%s9462_s9 + $0xc8] sm:$0xf0] }
 0x442   : > { %v5348_v5 = vadd.f32 %v5347_v1, %v5346_v33  ;;  %v7625_v33 = vor.u32 %v8109_v57, %v7624_v48 }
 0x443   : > { %5315 = vst.msk [vmem:[%s9932_s12 + $0x4] sm:$0xf] %vm5313_vm1, %v5282_v59  ;;  %v5450_v9 = vsel %vm774_vm0, %v5418_v50, 0.0  ;;  %v4648_v3 = vpop.f32.mrf.mxu2  ;;  %v4561_v45 = vpop.f32.mrf.mxu0  ;;  %v7417_v59 = vor.u32 %v8067_v16, %v7416_v41  ;;  %v7421_v50 = vor.u32 %v8066_v30, %v7418_v39  ;;  %v8111_v41 = vld [vmem:[%s9462_s9 + $0xd4] sm:$0xf0] }
 0x444   : > { %v5451_v32 = vadd.f32 %v5450_v9, %v5449_v12  ;;  %v5174_v10 = vpop.f32.mrf.mxu3  ;;  %v5087_v2 = vpop.f32.mrf.mxu1  ;;  %v7629_v12 = vor.u32 %v8108_v22, %v7626_v4  ;;  %v7424_v4 = vld [vmem:[%s9462_s9 + $0xd0] sm:$0xf] }
 0x445   : > { %v5175_v56 = vadd.f32 %v5174_v10, %v5085_v19  ;;  %v4649_v10 = vadd.f32 %v4648_v3, %v4559_v31 }
 0x447   : > { %v5251_v37 = vadd.f32 %v5175_v56, %v4720_v36  ;;  %v4722_v30 = vadd.f32 %v4649_v10, %v9689_v44  ;;  %v8110_v44 = vld [vmem:[%s9462_s9 + $0xd4] sm:$0xf] }
 0x449   : > { %v5283_v51 = vpack.c.bf16 %v5251_v37, %v5251_v37  ;;  %v5349_v58 = vsel %vm774_vm0, %v5251_v37, 0.0  ;;  %v5419_v23 = vmul.f32 %v5251_v37, %v5251_v37 }
 0x44a   : > { %v5350_v35 = vadd.f32 %v5349_v58, %v5348_v5  ;;  %v8068_v58 = vld [vmem:[%s9462_s9 + $0xd4] sm:$0xf] }
 0x44b   : > { %5316 = vst.msk [vmem:[%s9932_s12 + $0x8] sm:$0xf] %vm5313_vm1, %v5283_v51  ;;  %v5452_v19 = vsel %vm774_vm0, %v5419_v23, 0.0  ;;  %v4650_v29 = vpop.f32.mrf.mxu2  ;;  %v4564_v5 = vpop.f32.mrf.mxu0  ;;  %v7632_v23 = vld [vmem:[%s9462_s9 + $0xd0] sm:$0xf] }
 0x44c   : > { %v5453_v17 = vadd.f32 %v5452_v19, %v5451_v32  ;;  %v5176_v26 = vpop.f32.mrf.mxu3  ;;  %v5090_v1 = vpop.f32.mrf.mxu1  ;;  %v4651_v16 = vadd.f32 %v4650_v29, %v4561_v45  ;;  %v8069_v19 = vld [vmem:[%s9462_s9 + $0xd4] sm:$0xf0] }
 0x44d   : > { %v5177_v25 = vadd.f32 %v5176_v26, %v5087_v2  ;;  %v7426_v26 = vld [vmem:[%s9462_s9 + $0xd8] sm:$0xf0] }
 0x44e   : > { %4603 = vmatmul.bf16.gmra.mxu0 %v7417_v59  ;;  %v4723_v45 = vadd.f32 %v4651_v16, %v9706_v24  ;;  %v7429_v10 = vor.u32 %v8068_v58, %v7426_v26  ;;  %v8070_v16 = vld [vmem:[%s9462_s9 + $0xe4] sm:$0xf]  ;;  %v7432_v26 = vld [vmem:[%s9462_s9 + $0xe0] sm:$0xf] }
 0x44f   : > { %v5252_v9 = vadd.f32 %v5177_v25, %v4721_v27  ;;  %5129 = vmatmul.bf16.gmra.mxu1 %v7625_v33  ;;  %v7634_v33 = vld [vmem:[%s9462_s9 + $0xd8] sm:$0xf0] }
 0x450   : > { %7513 = vmatmul.msk.bf16.gmra.mxu2 %vm774_vm0, %v7421_v50  ;;  %v7633_v50 = vor.u32 %v8111_v41, %v7632_v23 }
 0x451   : > { %v5284_v36 = vpack.c.bf16 %v5252_v9, %v5252_v9  ;;  %v5351_v32 = vsel %vm774_vm0, %v5252_v9, 0.0  ;;  %v5420_v56 = vmul.f32 %v5252_v9, %v5252_v9  ;;  %7728 = vmatmul.msk.bf16.gmra.mxu3 %vm774_vm0, %v7629_v12  ;;  %v7425_v12 = vor.u32 %v8069_v19, %v7424_v4 }
 0x452   : > { %v5352_v13 = vadd.f32 %v5351_v32, %v5350_v35 }
 0x453   : > { %5317 = vst.msk [vmem:[%s9932_s12 + $0xc] sm:$0xf] %vm5313_vm1, %v5284_v36  ;;  %v5454_v2 = vsel %vm774_vm0, %v5420_v56, 0.0  ;;  %v4653_v31 = vpop.f32.mrf.mxu2  ;;  %v4566_v0 = vpop.f32.mrf.mxu0  ;;  %v7637_v36 = vor.u32 %v8110_v44, %v7634_v33  ;;  %v8071_v44 = vld [vmem:[%s9462_s9 + $0xe4] sm:$0xf0] }
 0x454   : > { %v5455_v37 = vadd.f32 %v5454_v2, %v5453_v17  ;;  %v5179_v3 = vpop.f32.mrf.mxu3  ;;  %v5092_v57 = vpop.f32.mrf.mxu1 }
 0x455   : > { %v5180_v48 = vadd.f32 %v5179_v3, %v5090_v1 }
 0x457   : > { %v5253_v51 = vadd.f32 %v5180_v48, %v4722_v30 }
 0x459   : > { %v5285_v35 = vpack.c.bf16 %v5253_v51, %v5253_v51  ;;  %v5353_v39 = vsel %vm774_vm0, %v5253_v51, 0.0  ;;  %v5421_v22 = vmul.f32 %v5253_v51, %v5253_v51 }
 0x45a   : > { %v5354_v17 = vadd.f32 %v5353_v39, %v5352_v13  ;;  %v4654_v13 = vadd.f32 %v4653_v31, %v4564_v5  ;;  %v8113_v39 = vld [vmem:[%s9462_s9 + $0xe4] sm:$0xf0] }
 0x45b   : > { %5318 = vst.msk [vmem:[%s9932_s12 + $0x10] sm:$0xf] %vm5313_vm1, %v5285_v35  ;;  %v5456_v59 = vsel %vm774_vm0, %v5421_v22, 0.0  ;;  %v4655_v25 = vpop.f32.mrf.mxu2  ;;  %v4569_v32 = vpop.f32.mrf.mxu0  ;;  %v7640_v35 = vld [vmem:[%s9462_s9 + $0xe0] sm:$0xf] }
 0x45c   : > { %v5457_v27 = vadd.f32 %v5456_v59, %v5455_v37  ;;  %v5181_v1 = vpop.f32.mrf.mxu3  ;;  %v5095_v9 = vpop.f32.mrf.mxu1  ;;  %v4656_v22 = vadd.f32 %v4655_v25, %v4566_v0  ;;  %v7434_v59 = vld [vmem:[%s9462_s9 + $0xe8] sm:$0xf0] }
 0x45d   : > { %v5182_v29 = vadd.f32 %v5181_v1, %v5092_v57  ;;  %v4724_v57 = vadd.f32 %v4654_v13, %v9711_v42  ;;  %v8112_v42 = vld [vmem:[%s9462_s9 + $0xe4] sm:$0xf] }
 0x45e   : > { %4608 = vmatmul.bf16.gmra.mxu0 %v7425_v12  ;;  %v4725_v0 = vadd.f32 %v4656_v22, %v9722_v53  ;;  %v8115_v22 = vld [vmem:[%s9462_s9 + $0xf4] sm:$0xf0] }
 0x45f   : > { %v5254_v56 = vadd.f32 %v5182_v29, %v4723_v45  ;;  %5134 = vmatmul.bf16.gmra.mxu1 %v7633_v50  ;;  %v7641_v29 = vor.u32 %v8113_v39, %v7640_v35  ;;  %v8072_v35 = vld [vmem:[%s9462_s9 + $0xf4] sm:$0xf]  ;;  %v7648_v39 = vld [vmem:[%s9462_s9 + $0xf0] sm:$0xf] }
 0x460   : > { %7514 = vmatmul.msk.bf16.gmra.mxu2 %vm774_vm0, %v7429_v10 }
 0x461   : > { %v5286_v2 = vpack.c.bf16 %v5254_v56, %v5254_v56  ;;  %v5355_v37 = vsel %vm774_vm0, %v5254_v56, 0.0  ;;  %v5422_v3 = vmul.f32 %v5254_v56, %v5254_v56  ;;  %7729 = vmatmul.msk.bf16.gmra.mxu3 %vm774_vm0, %v7637_v36  ;;  %v7437_v36 = vor.u32 %v8070_v16, %v7434_v59 }
 0x462   : > { %v5356_v24 = vadd.f32 %v5355_v37, %v5354_v17 }
 0x463   : > { %5319 = vst.msk [vmem:[%s9932_s12 + $0x14] sm:$0xf] %vm5313_vm1, %v5286_v2  ;;  %v5458_v30 = vsel %vm774_vm0, %v5422_v3, 0.0  ;;  %v4658_v5 = vpop.f32.mrf.mxu2  ;;  %v4571_v23 = vpop.f32.mrf.mxu0 }
 0x464   : > { %v5459_v48 = vadd.f32 %v5458_v30, %v5457_v27  ;;  %v5184_v31 = vpop.f32.mrf.mxu3  ;;  %v5097_v58 = vpop.f32.mrf.mxu1  ;;  %v7642_v27 = vld [vmem:[%s9462_s9 + $0xe8] sm:$0xf0]  ;;  %v4659_v37 = vadd.f32 %v4658_v5, %v4569_v32 }
 0x465   : > { %v5185_v51 = vadd.f32 %v5184_v31, %v5095_v9  ;;  %v7433_v9 = vor.u32 %v8071_v44, %v7432_v26  ;;  %v7645_v56 = vor.u32 %v8112_v42, %v7642_v27  ;;  %v7440_v44 = vld [vmem:[%s9462_s9 + $0xf0] sm:$0xf]  ;;  %v7442_v42 = vld [vmem:[%s9462_s9 + $0xf8] sm:$0xf0] }
 0x466   : > { %v7650_v27 = vld [vmem:[%s9462_s9 + $0xf8] sm:$0xf0] }
 0x467   : > { %v5255_v41 = vadd.f32 %v5185_v51, %v4724_v57  ;;  %v4726_v57 = vadd.f32 %v4659_v37, %v9727_v6  ;;  %v8114_v6 = vld [vmem:[%s9462_s9 + $0xf4] sm:$0xf] }
 0x469   : > { %v5287_v4 = vpack.c.bf16 %v5255_v41, %v5255_v41  ;;  %v5357_v19 = vsel %vm774_vm0, %v5255_v41, 0.0  ;;  %v5423_v17 = vmul.f32 %v5255_v41, %v5255_v41 }
 0x46a   : > { %v5358_v33 = vadd.f32 %v5357_v19, %v5356_v24 }
 0x46b   : > { %5320 = vst.msk [vmem:[%s9932_s12 + $0x18] sm:$0xf] %vm5313_vm1, %v5287_v4  ;;  %v5460_v1 = vsel %vm774_vm0, %v5423_v17, 0.0  ;;  %v4660_v12 = vpop.f32.mrf.mxu2  ;;  %v4574_v13 = vpop.f32.mrf.mxu0 }
 0x46c   : > { %v5461_v50 = vadd.f32 %v5460_v1, %v5459_v48  ;;  %v5186_v45 = vpop.f32.mrf.mxu3  ;;  %v5100_v10 = vpop.f32.mrf.mxu1  ;;  %v4661_v4 = vadd.f32 %v4660_v12, %v4571_v23 }
 0x46d   : > { %v5187_v25 = vadd.f32 %v5186_v45, %v5097_v58 }
 0x46e   : > { %4613 = vmatmul.bf16.gmra.mxu0 %v7433_v9  ;;  %v7649_v9 = vor.u32 %v8115_v22, %v7648_v39  ;;  %v4727_v23 = vadd.f32 %v4661_v4, %v9744_v15  ;;  %v8117_v39 = vld [vmem:[%s9462_s9 + $0x104] sm:$0xf0] }
 0x46f   : > { %v5256_v2 = vadd.f32 %v5187_v25, %v4725_v0  ;;  %5139 = vmatmul.bf16.gmra.mxu1 %v7641_v29 }
 0x470   : > { %7515 = vmatmul.msk.bf16.gmra.mxu2 %vm774_vm0, %v7437_v36  ;;  %v7653_v36 = vor.u32 %v8114_v6, %v7650_v27 }
 0x471   : > { %v5288_v3 = vpack.c.bf16 %v5256_v2, %v5256_v2  ;;  %v5359_v24 = vsel %vm774_vm0, %v5256_v2, 0.0  ;;  %v5424_v30 = vmul.f32 %v5256_v2, %v5256_v2  ;;  %7730 = vmatmul.msk.bf16.gmra.mxu3 %vm774_vm0, %v7645_v56 }
 0x472   : > { %v5360_v53 = vadd.f32 %v5359_v24, %v5358_v33  ;;  %v8073_v33 = vld [vmem:[%s9462_s9 + $0xf4] sm:$0xf0] }
 0x473   : > { %5321 = vst.msk [vmem:[%s9932_s12 + $0x1c] sm:$0xf] %vm5313_vm1, %v5288_v3  ;;  %v5462_v48 = vsel %vm774_vm0, %v5424_v30, 0.0  ;;  %v4663_v32 = vpop.f32.mrf.mxu2  ;;  %v4576_v41 = vpop.f32.mrf.mxu0  ;;  %v7441_v0 = vor.u32 %v8073_v33, %v7440_v44  ;;  %v8075_v44 = vld [vmem:[%s9462_s9 + $0x104] sm:$0xf0] }
 0x474   : > { %v5463_v31 = vadd.f32 %v5462_v48, %v5461_v50  ;;  %v5189_v5 = vpop.f32.mrf.mxu3  ;;  %v5102_v58 = vpop.f32.mrf.mxu1  ;;  %v4664_v37 = vadd.f32 %v4663_v32, %v4574_v13 }
 0x475   : > { %v5190_v51 = vadd.f32 %v5189_v5, %v5100_v10  ;;  %v7445_v10 = vor.u32 %v8072_v35, %v7442_v42  ;;  %v7656_v35 = vld [vmem:[%s9462_s9 + $0x100] sm:$0xf]  ;;  %v7658_v42 = vld [vmem:[%s9462_s9 + $0x108] sm:$0xf0] }
 0x476   : > { %v4728_v32 = vadd.f32 %v4664_v37, %v9749_v7  ;;  %v8116_v7 = vld [vmem:[%s9462_s9 + $0x104] sm:$0xf] }
 0x477   : > { %v5257_v16 = vadd.f32 %v5190_v51, %v4726_v57 }
 0x479   : > { %v5289_v19 = vpack.c.bf16 %v5257_v16, %v5257_v16  ;;  %v5361_v17 = vsel %vm774_vm0, %v5257_v16, 0.0  ;;  %v5425_v26 = vmul.f32 %v5257_v16, %v5257_v16  ;;  %v8074_v16 = vld [vmem:[%s9462_s9 + $0x104] sm:$0xf] }
 0x47a   : > { %v5362_v59 = vadd.f32 %v5361_v17, %v5360_v53 }
 0x47b   : > { %5322 = vst.msk [vmem:[%s9932_s12 + $0x20] sm:$0xf] %vm5313_vm1, %v5289_v19  ;;  %v5464_v1 = vsel %vm774_vm0, %v5425_v26, 0.0  ;;  %v4665_v45 = vpop.f32.mrf.mxu2  ;;  %v4579_v56 = vpop.f32.mrf.mxu0  ;;  %v7448_v26 = vld [vmem:[%s9462_s9 + $0x100] sm:$0xf] }
 0x47c   : > { %v5465_v50 = vadd.f32 %v5464_v1, %v5463_v31  ;;  %v5191_v29 = vpop.f32.mrf.mxu3  ;;  %v5105_v25 = vpop.f32.mrf.mxu1  ;;  %v4666_v22 = vadd.f32 %v4665_v45, %v4576_v41 }
 0x47d   : > { %v5192_v12 = vadd.f32 %v5191_v29, %v5102_v58  ;;  %v7657_v29 = vor.u32 %v8117_v39, %v7656_v35  ;;  %v7664_v35 = vld [vmem:[%s9462_s9 + $0x110] sm:$0xf]  ;;  %v8119_v39 = vld [vmem:[%s9462_s9 + $0x114] sm:$0xf0] }
 0x47e   : > { %4618 = vmatmul.bf16.gmra.mxu0 %v7441_v0  ;;  %v4729_v41 = vadd.f32 %v4666_v22, %v9760_v47 }
 0x47f   : > { %v5258_v2 = vadd.f32 %v5192_v12, %v4727_v23  ;;  %5144 = vmatmul.bf16.gmra.mxu1 %v7649_v9  ;;  %v7449_v9 = vor.u32 %v8075_v44, %v7448_v26  ;;  %v7661_v12 = vor.u32 %v8116_v7, %v7658_v42 }
 0x480   : > { %7516 = vmatmul.msk.bf16.gmra.mxu2 %vm774_vm0, %v7445_v10 }
 0x481   : > { %v5290_v3 = vpack.c.bf16 %v5258_v2, %v5258_v2  ;;  %v5363_v24 = vsel %vm774_vm0, %v5258_v2, 0.0  ;;  %v5426_v30 = vmul.f32 %v5258_v2, %v5258_v2  ;;  %7731 = vmatmul.msk.bf16.gmra.mxu3 %vm774_vm0, %v7653_v36 }
 0x482   : > { %v5364_v15 = vadd.f32 %v5363_v24, %v5362_v59  ;;  %v7450_v59 = vld [vmem:[%s9462_s9 + $0x108] sm:$0xf0] }
 0x483   : > { %5323 = vst.msk [vmem:[%s9932_s12 + $0x24] sm:$0xf] %vm5313_vm1, %v5290_v3  ;;  %v5466_v53 = vsel %vm774_vm0, %v5426_v30, 0.0  ;;  %v4668_v13 = vpop.f32.mrf.mxu2  ;;  %v4581_v51 = vpop.f32.mrf.mxu0  ;;  %v7453_v23 = vor.u32 %v8074_v16, %v7450_v59 }
 0x484   : > { %v5467_v48 = vadd.f32 %v5466_v53, %v5465_v50  ;;  %v5194_v31 = vpop.f32.mrf.mxu3  ;;  %v5107_v57 = vpop.f32.mrf.mxu1  ;;  %v4669_v36 = vadd.f32 %v4668_v13, %v4579_v56 }
 0x485   : > { %v5195_v5 = vadd.f32 %v5194_v31, %v5105_v25 }
 0x486   : > { %v4730_v53 = vadd.f32 %v4669_v36, %v9765_v11 }
 0x487   : > { %v5259_v58 = vadd.f32 %v5195_v5, %v4728_v32 }
 0x489   : > { %v5291_v4 = vpack.c.bf16 %v5259_v58, %v5259_v58  ;;  %v5365_v19 = vsel %vm774_vm0, %v5259_v58, 0.0  ;;  %v5427_v17 = vmul.f32 %v5259_v58, %v5259_v58 }
 0x48a   : > { %v5366_v33 = vadd.f32 %v5365_v19, %v5364_v15  ;;  %v7666_v19 = vld [vmem:[%s9462_s9 + $0x118] sm:$0xf0] }
 0x48b   : > { %5324 = vst.msk [vmem:[%s9932_s12 + $0x28] sm:$0xf] %vm5313_vm1, %v5291_v4  ;;  %v5468_v6 = vsel %vm774_vm0, %v5427_v17, 0.0  ;;  %v4670_v1 = vpop.f32.mrf.mxu2  ;;  %v4584_v25 = vpop.f32.mrf.mxu0  ;;  %v8118_v4 = vld [vmem:[%s9462_s9 + $0x114] sm:$0xf]  ;;  %s5812_s9 = sshll.u32 %s10244_s25, 3 }
 0x48c   : > { %v5469_v27 = vadd.f32 %v5468_v6, %v5467_v48  ;;  %v5196_v50 = vpop.f32.mrf.mxu3  ;;  %v5110_v0 = vpop.f32.mrf.mxu1  ;;  %v4671_v5 = vadd.f32 %v4670_v1, %v4581_v51  ;;  %v7669_v42 = vor.u32 %v8118_v4, %v7666_v19  ;;  %s484_s10 = sadd.s32 %s5812_s9, %s10250_s24 }
 0x48d   : > { %v5197_v45 = vadd.f32 %v5196_v50, %v5107_v57  ;;  %s485_s16 = scalar_lea.vmem %s10187_s6, %s484_s10  ;;  %s495_s20 = scalar_lea.vmem %s10188_s7, %s484_s10 }
 0x48e   : > { %4623 = vmatmul.bf16.gmra.mxu0 %v7449_v9  ;;  %v4731_v51 = vadd.f32 %v4671_v5, %v9776_v8 }
 0x48f   : > { %v5260_v10 = vadd.f32 %v5197_v45, %v4729_v41  ;;  %5149 = vmatmul.bf16.gmra.mxu1 %v7657_v29 }
 0x490   : > { %7517 = vmatmul.msk.bf16.gmra.mxu2 %vm774_vm0, %v7453_v23 }
 0x491   : > { %v5292_v2 = vpack.c.bf16 %v5260_v10, %v5260_v10  ;;  %v5367_v37 = vsel %vm774_vm0, %v5260_v10, 0.0  ;;  %v5428_v3 = vmul.f32 %v5260_v10, %v5260_v10  ;;  %7732 = vmatmul.msk.bf16.gmra.mxu3 %vm774_vm0, %v7661_v12 }
 0x492   : > { %v5368_v47 = vadd.f32 %v5367_v37, %v5366_v33  ;;  %v7665_v33 = vor.u32 %v8119_v39, %v7664_v35 }
 0x493   : > { %5325 = vst.msk [vmem:[%s9932_s12 + $0x2c] sm:$0xf] %vm5313_vm1, %v5292_v2  ;;  %v5470_v24 = vsel %vm774_vm0, %v5428_v3, 0.0  ;;  %v4673_v15 = vpop.f32.mrf.mxu2  ;;  %v4586_v31 = vpop.f32.mrf.mxu0 }
 0x494   : > { %v5471_v30 = vadd.f32 %v5470_v24, %v5469_v27  ;;  %v5199_v56 = vpop.f32.mrf.mxu3  ;;  %v5112_v13 = vpop.f32.mrf.mxu1  ;;  %v4674_v1 = vadd.f32 %v4673_v15, %v4584_v25 }
 0x495   : > { %v5200_v48 = vadd.f32 %v5199_v56, %v5110_v0 }
 0x496   : > { %v4732_v12 = vadd.f32 %v4674_v1, %v9781_v60 }
 0x497   : > { %v5261_v32 = vadd.f32 %v5200_v48, %v4730_v53 }
 0x499   : > { %v5293_v57 = vpack.c.bf16 %v5261_v32, %v5261_v32  ;;  %v5369_v58 = vsel %vm774_vm0, %v5261_v32, 0.0  ;;  %v5429_v16 = vmul.f32 %v5261_v32, %v5261_v32 }
 0x49a   : > { %v5370_v22 = vadd.f32 %v5369_v58, %v5368_v47 }
 0x49b   : > { %5326 = vst.msk [vmem:[%s9932_s12 + $0x30] sm:$0xf] %vm5313_vm1, %v5293_v57  ;;  %v5472_v17 = vsel %vm774_vm0, %v5429_v16, 0.0  ;;  %v4675_v11 = vpop.f32.mrf.mxu2  ;;  %v4589_v6 = vpop.f32.mrf.mxu0 }
 0x49c   : > { %v5473_v26 = vadd.f32 %v5472_v17, %v5471_v30  ;;  %v5201_v44 = vpop.f32.mrf.mxu3  ;;  %v5115_v7 = vpop.f32.mrf.mxu1  ;;  %v4676_v37 = vadd.f32 %v4675_v11, %v4586_v31 }
 0x49d   : > { %v5202_v59 = vadd.f32 %v5201_v44, %v5112_v13 }
 0x49e   : > { %v4733_v60 = vadd.f32 %v4676_v37, %v9792_v38 }
 0x49f   : > { %v5262_v27 = vadd.f32 %v5202_v59, %v4731_v51  ;;  %5154 = vmatmul.bf16.gmra.mxu1 %v7665_v33 }
 0x4a1   : > { %v5294_v50 = vpack.c.bf16 %v5262_v27, %v5262_v27  ;;  %v5371_v29 = vsel %vm774_vm0, %v5262_v27, 0.0  ;;  %v5430_v9 = vmul.f32 %v5262_v27, %v5262_v27  ;;  %7733 = vmatmul.msk.bf16.gmra.mxu3 %vm774_vm0, %v7669_v42 }
 0x4a2   : > { %v5372_v41 = vadd.f32 %v5371_v29, %v5370_v22 }
 0x4a3   : > { %5327 = vst.msk [vmem:[%s9932_s12 + $0x34] sm:$0xf] %vm5313_vm1, %v5294_v50  ;;  %v5474_v45 = vsel %vm774_vm0, %v5430_v9, 0.0  ;;  %v4678_v0 = vpop.f32.mrf.mxu2  ;;  %v4591_v25 = vpop.f32.mrf.mxu0 }
 0x4a4   : > { %v5475_v8 = vadd.f32 %v5474_v45, %v5473_v26  ;;  %v5204_v23 = vpop.f32.mrf.mxu3  ;;  %v5117_v36 = vpop.f32.mrf.mxu1  ;;  %v4679_v31 = vadd.f32 %v4678_v0, %v4589_v6 }
 0x4a5   : > { %v5205_v10 = vadd.f32 %v5204_v23, %v5115_v7 }
 0x4a6   : > { %v4734_v38 = vadd.f32 %v4679_v31, %v9797_v18 }
 0x4a7   : > { %v5263_v2 = vadd.f32 %v5205_v10, %v4732_v12 }
 0x4a9   : > { %v5295_v3 = vpack.c.bf16 %v5263_v2, %v5263_v2  ;;  %v5373_v47 = vsel %vm774_vm0, %v5263_v2, 0.0  ;;  %v5431_v24 = vmul.f32 %v5263_v2, %v5263_v2 }
 0x4aa   : > { %v5374_v30 = vadd.f32 %v5373_v47, %v5372_v41 }
 0x4ab   : > { %5328 = vst.msk [vmem:[%s9932_s12 + $0x38] sm:$0xf] %vm5313_vm1, %v5295_v3  ;;  %v5476_v15 = vsel %vm774_vm0, %v5431_v24, 0.0  ;;  %v4680_v53 = vpop.f32.mrf.mxu2  ;;  %v4594_v5 = vpop.f32.mrf.mxu0 }
 0x4ac   : > { %v5477_v56 = vadd.f32 %v5476_v15, %v5475_v8  ;;  %v5206_v48 = vpop.f32.mrf.mxu3  ;;  %v5120_v32 = vpop.f32.mrf.mxu1  ;;  %v4681_v51 = vadd.f32 %v4680_v53, %v4591_v25 }
 0x4ad   : > { %v5207_v13 = vadd.f32 %v5206_v48, %v5117_v36 }
 0x4ae   : > { %v4735_v18 = vadd.f32 %v4681_v51, %v9808_v40 }
 0x4af   : > { %v5264_v57 = vadd.f32 %v5207_v13, %v4733_v60 }
 0x4b1   : > { %v5296_v58 = vpack.c.bf16 %v5264_v57, %v5264_v57  ;;  %v5375_v16 = vsel %vm774_vm0, %v5264_v57, 0.0  ;;  %v5432_v35 = vmul.f32 %v5264_v57, %v5264_v57 }
 0x4b2   : > { %v5376_v39 = vadd.f32 %v5375_v16, %v5374_v30 }
 0x4b3   : > { %5329 = vst.msk [vmem:[%s9932_s12 + $0x3c] sm:$0xf] %vm5313_vm1, %v5296_v58  ;;  %v5478_v22 = vsel %vm774_vm0, %v5432_v35, 0.0  ;;  %v4683_v19 = vpop.f32.mrf.mxu2  ;;  %v4596_v44 = vpop.f32.mrf.mxu0 }
 0x4b4   : > { %v5479_v4 = vadd.f32 %v5478_v22, %v5477_v56  ;;  %v5209_v17 = vpop.f32.mrf.mxu3  ;;  %v5122_v11 = vpop.f32.mrf.mxu1  ;;  %v4684_v0 = vadd.f32 %v4683_v19, %v4594_v5 }
 0x4b5   : > { %v5210_v26 = vadd.f32 %v5209_v17, %v5120_v32 }
 0x4b6   : > { %v4736_v40 = vadd.f32 %v4684_v0, %v9813_v63 }
 0x4b7   : > { %v5265_v33 = vadd.f32 %v5210_v26, %v4734_v38 }
 0x4b9   : > { %v5297_v59 = vpack.c.bf16 %v5265_v33, %v5265_v33  ;;  %v5377_v7 = vsel %vm774_vm0, %v5265_v33, 0.0  ;;  %v5433_v42 = vmul.f32 %v5265_v33, %v5265_v33 }
 0x4ba   : > { %v5378_v6 = vadd.f32 %v5377_v7, %v5376_v39 }
 0x4bb   : > { %5330 = vst.msk [vmem:[%s9932_s12 + $0x40] sm:$0xf] %vm5313_vm1, %v5297_v59  ;;  %v5480_v27 = vsel %vm774_vm0, %v5433_v42, 0.0  ;;  %v4685_v50 = vpop.f32.mrf.mxu2  ;;  %v4599_v45 = vpop.f32.mrf.mxu0 }
 0x4bc   : > { %v5481_v1 = vadd.f32 %v5480_v27, %v5479_v4  ;;  %v5211_v29 = vpop.f32.mrf.mxu3  ;;  %v5125_v41 = vpop.f32.mrf.mxu1  ;;  %v4686_v56 = vadd.f32 %v4685_v50, %v4596_v44 }
 0x4bd   : > { %v5212_v9 = vadd.f32 %v5211_v29, %v5122_v11 }
 0x4be   : > { %v4737_v63 = vadd.f32 %v4686_v56, %v9824_v34 }
 0x4bf   : > { %v5266_v8 = vadd.f32 %v5212_v9, %v4735_v18 }
 0x4c1   : > { %v5298_v23 = vpack.c.bf16 %v5266_v8, %v5266_v8  ;;  %v5379_v12 = vsel %vm774_vm0, %v5266_v8, 0.0  ;;  %v5434_v10 = vmul.f32 %v5266_v8, %v5266_v8 }
 0x4c2   : > { %v5380_v36 = vadd.f32 %v5379_v12, %v5378_v6 }
 0x4c3   : > { %5331 = vst.msk [vmem:[%s9932_s12 + $0x44] sm:$0xf] %vm5313_vm1, %v5298_v23  ;;  %v5482_v25 = vsel %vm774_vm0, %v5434_v10, 0.0  ;;  %v4688_v37 = vpop.f32.mrf.mxu2  ;;  %v4601_v30 = vpop.f32.mrf.mxu0 }
 0x4c4   : > { %v5483_v2 = vadd.f32 %v5482_v25, %v5481_v1  ;;  %v5214_v3 = vpop.f32.mrf.mxu3  ;;  %v5127_v24 = vpop.f32.mrf.mxu1  ;;  %v4689_v22 = vadd.f32 %v4688_v37, %v4599_v45 }
 0x4c5   : > { %v5215_v47 = vadd.f32 %v5214_v3, %v5125_v41 }
 0x4c6   : > { %v4738_v34 = vadd.f32 %v4689_v22, %v9829_v52 }
 0x4c7   : > { %v5267_v15 = vadd.f32 %v5215_v47, %v4736_v40 }
 0x4c9   : > { %v5299_v53 = vpack.c.bf16 %v5267_v15, %v5267_v15  ;;  %v5381_v48 = vsel %vm774_vm0, %v5267_v15, 0.0  ;;  %v5435_v60 = vmul.f32 %v5267_v15, %v5267_v15 }
 0x4ca   : > { %v5382_v13 = vadd.f32 %v5381_v48, %v5380_v36 }
 0x4cb   : > { %5332 = vst.msk [vmem:[%s9932_s12 + $0x48] sm:$0xf] %vm5313_vm1, %v5299_v53  ;;  %v5484_v32 = vsel %vm774_vm0, %v5435_v60, 0.0  ;;  %v4690_v57 = vpop.f32.mrf.mxu2  ;;  %v4604_v35 = vpop.f32.mrf.mxu0 }
 0x4cc   : > { %v5485_v5 = vadd.f32 %v5484_v32, %v5483_v2  ;;  %v5216_v31 = vpop.f32.mrf.mxu3  ;;  %v5130_v16 = vpop.f32.mrf.mxu1  ;;  %v4691_v6 = vadd.f32 %v4690_v57, %v4601_v30 }
 0x4cd   : > { %v5217_v58 = vadd.f32 %v5216_v31, %v5127_v24 }
 0x4ce   : > { %v4739_v52 = vadd.f32 %v4691_v6, %v9840_v21 }
 0x4cf   : > { %v5268_v39 = vadd.f32 %v5217_v58, %v4737_v63 }
 0x4d1   : > { %v5300_v4 = vpack.c.bf16 %v5268_v39, %v5268_v39  ;;  %v5383_v19 = vsel %vm774_vm0, %v5268_v39, 0.0  ;;  %v5436_v17 = vmul.f32 %v5268_v39, %v5268_v39 }
 0x4d2   : > { %v5384_v38 = vadd.f32 %v5383_v19, %v5382_v13 }
 0x4d3   : > { %5333 = vst.msk [vmem:[%s9932_s12 + $0x4c] sm:$0xf] %vm5313_vm1, %v5300_v4  ;;  %v5486_v26 = vsel %vm774_vm0, %v5436_v17, 0.0  ;;  %v4693_v44 = vpop.f32.mrf.mxu2  ;;  %v4606_v7 = vpop.f32.mrf.mxu0 }
 0x4d4   : > { %v5487_v11 = vadd.f32 %v5486_v26, %v5485_v5  ;;  %v5219_v33 = vpop.f32.mrf.mxu3  ;;  %v5132_v59 = vpop.f32.mrf.mxu1  ;;  %v4694_v10 = vadd.f32 %v4693_v44, %v4604_v35 }
 0x4d5   : > { %v5220_v51 = vadd.f32 %v5219_v33, %v5130_v16 }
 0x4d6   : > { %v4740_v21 = vadd.f32 %v4694_v10, %v9845_v61 }
 0x4d7   : > { %v5269_v42 = vadd.f32 %v5220_v51, %v4738_v34 }
 0x4d9   : > { %v5301_v27 = vpack.c.bf16 %v5269_v42, %v5269_v42  ;;  %v5385_v1 = vsel %vm774_vm0, %v5269_v42, 0.0  ;;  %v5437_v50 = vmul.f32 %v5269_v42, %v5269_v42 }
 0x4da   : > { %v5386_v29 = vadd.f32 %v5385_v1, %v5384_v38 }
 0x4db   : > { %5334 = vst.msk [vmem:[%s9932_s12 + $0x50] sm:$0xf] %vm5313_vm1, %v5301_v27  ;;  %v5488_v18 = vsel %vm774_vm0, %v5437_v50, 0.0  ;;  %v4695_v41 = vpop.f32.mrf.mxu2  ;;  %v4609_v12 = vpop.f32.mrf.mxu0 }
 0x4dc   : > { %v5489_v9 = vadd.f32 %v5488_v18, %v5487_v11  ;;  %v5221_v45 = vpop.f32.mrf.mxu3  ;;  %v5135_v0 = vpop.f32.mrf.mxu1  ;;  %v4696_v53 = vadd.f32 %v4695_v41, %v4606_v7 }
 0x4dd   : > { %v5222_v8 = vadd.f32 %v5221_v45, %v5132_v59 }
 0x4de   : > { %v4741_v61 = vadd.f32 %v4696_v53, %v9856_v28 }
 0x4df   : > { %v5270_v23 = vadd.f32 %v5222_v8, %v4739_v52 }
 0x4e1   : > { %v5302_v36 = vpack.c.bf16 %v5270_v23, %v5270_v23  ;;  %v5387_v25 = vsel %vm774_vm0, %v5270_v23, 0.0  ;;  %v5438_v2 = vmul.f32 %v5270_v23, %v5270_v23 }
 0x4e2   : > { %v5388_v37 = vadd.f32 %v5387_v25, %v5386_v29 }
 0x4e3   : > { %5335 = vst.msk [vmem:[%s9932_s12 + $0x54] sm:$0xf] %vm5313_vm1, %v5302_v36  ;;  %v5490_v3 = vsel %vm774_vm0, %v5438_v2, 0.0  ;;  %v4698_v47 = vpop.f32.mrf.mxu2  ;;  %v4611_v32 = vpop.f32.mrf.mxu0 }
 0x4e4   : > { %v5491_v40 = vadd.f32 %v5490_v3, %v5489_v9  ;;  %v5224_v24 = vpop.f32.mrf.mxu3  ;;  %v5137_v15 = vpop.f32.mrf.mxu1  ;;  %v4699_v22 = vadd.f32 %v4698_v47, %v4609_v12 }
 0x4e5   : > { %v5225_v30 = vadd.f32 %v5224_v24, %v5135_v0 }
 0x4e6   : > { %v4742_v28 = vadd.f32 %v4699_v22, %v9861_v43 }
 0x4e7   : > { %v5271_v56 = vadd.f32 %v5225_v30, %v4740_v21 }
 0x4e9   : > { %v5303_v48 = vpack.c.bf16 %v5271_v56, %v5271_v56  ;;  %v5389_v60 = vsel %vm774_vm0, %v5271_v56, 0.0  ;;  %v5439_v13 = vmul.f32 %v5271_v56, %v5271_v56 }
 0x4ea   : > { %v5390_v5 = vadd.f32 %v5389_v60, %v5388_v37 }
 0x4eb   : > { %5336 = vst.msk [vmem:[%s9932_s12 + $0x58] sm:$0xf] %vm5313_vm1, %v5303_v48  ;;  %v5492_v57 = vsel %vm774_vm0, %v5439_v13, 0.0  ;;  %v4700_v63 = vpop.f32.mrf.mxu2  ;;  %v4614_v11 = vpop.f32.mrf.mxu0 }
 0x4ec   : > { %v5493_v31 = vadd.f32 %v5492_v57, %v5491_v40  ;;  %v5226_v58 = vpop.f32.mrf.mxu3  ;;  %v5140_v35 = vpop.f32.mrf.mxu1  ;;  %v4701_v42 = vadd.f32 %v4700_v63, %v4611_v32 }
 0x4ed   : > { %v5227_v16 = vadd.f32 %v5226_v58, %v5137_v15 }
 0x4ee   : > { %v4743_v41 = vadd.f32 %v4701_v42, %v9872_v46 }
 0x4ef   : > { %v5272_v39 = vadd.f32 %v5227_v16, %v4741_v61 }
 0x4f1   : > { %v5304_v4 = vpack.c.bf16 %v5272_v39, %v5272_v39  ;;  %v5391_v19 = vsel %vm774_vm0, %v5272_v39, 0.0  ;;  %v5440_v17 = vmul.f32 %v5272_v39, %v5272_v39 }
 0x4f2   : > { %v5392_v38 = vadd.f32 %v5391_v19, %v5390_v5 }
 0x4f3   : > { %5337 = vst.msk [vmem:[%s9932_s12 + $0x5c] sm:$0xf] %vm5313_vm1, %v5304_v4  ;;  %v5494_v26 = vsel %vm774_vm0, %v5440_v17, 0.0  ;;  %v4703_v33 = vpop.f32.mrf.mxu2  ;;  %v4616_v45 = vpop.f32.mrf.mxu0 }
 0x4f4   : > { %v5495_v44 = vadd.f32 %v5494_v26, %v5493_v31  ;;  %v5229_v34 = vpop.f32.mrf.mxu3  ;;  %v5142_v59 = vpop.f32.mrf.mxu1  ;;  %v4704_v23 = vadd.f32 %v4703_v33, %v4614_v11 }
 0x4f5   : > { %v5230_v51 = vadd.f32 %v5229_v34, %v5140_v35 }
 0x4f6   : > { %v4744_v46 = vadd.f32 %v4704_v23, %v9877_v62 }
 0x4f7   : > { %v5273_v7 = vadd.f32 %v5230_v51, %v4742_v28 }
 0x4f9   : > { %v5305_v6 = vpack.c.bf16 %v5273_v7, %v5273_v7  ;;  %v5393_v27 = vsel %vm774_vm0, %v5273_v7, 0.0  ;;  %v5441_v1 = vmul.f32 %v5273_v7, %v5273_v7 }
 0x4fa   : > { %v5394_v50 = vadd.f32 %v5393_v27, %v5392_v38 }
 0x4fb   : > { %5338 = vst.msk [vmem:[%s9932_s12 + $0x60] sm:$0xf] %vm5313_vm1, %v5305_v6  ;;  %v5496_v29 = vsel %vm774_vm0, %v5441_v1, 0.0  ;;  %v4705_v8 = vpop.f32.mrf.mxu2  ;;  %v4619_v24 = vpop.f32.mrf.mxu0 }
 0x4fc   : > { %v5497_v18 = vadd.f32 %v5496_v29, %v5495_v44  ;;  %v5231_v9 = vpop.f32.mrf.mxu3  ;;  %v5145_v52 = vpop.f32.mrf.mxu1  ;;  %v4706_v15 = vadd.f32 %v4705_v8, %v4616_v45 }
 0x4fd   : > { %v5232_v43 = vadd.f32 %v5231_v9, %v5142_v59 }
 0x4fe   : > { %v4745_v62 = vadd.f32 %v4706_v15, %v9888_v49 }
 0x4ff   : > { %v5274_v0 = vadd.f32 %v5232_v43, %v4743_v41 }
 0x501   : > { %v5306_v12 = vpack.c.bf16 %v5274_v0, %v5274_v0  ;;  %v5395_v10 = vsel %vm774_vm0, %v5274_v0, 0.0  ;;  %v5442_v36 = vmul.f32 %v5274_v0, %v5274_v0 }
 0x502   : > { %v5396_v25 = vadd.f32 %v5395_v10, %v5394_v50 }
 0x503   : > { %5339 = vst.msk [vmem:[%s9932_s12 + $0x64] sm:$0xf] %vm5313_vm1, %v5306_v12  ;;  %v5498_v2 = vsel %vm774_vm0, %v5442_v36, 0.0  ;;  %v4708_v30 = vpop.f32.mrf.mxu2  ;;  %v4621_v61 = vpop.f32.mrf.mxu0 }
 0x504   : > { %v5499_v37 = vadd.f32 %v5498_v2, %v5497_v18  ;;  %v5234_v3 = vpop.f32.mrf.mxu3  ;;  %v5147_v47 = vpop.f32.mrf.mxu1  ;;  %v4709_v58 = vadd.f32 %v4708_v30, %v4619_v24 }
 0x505   : > { %v5235_v40 = vadd.f32 %v5234_v3, %v5145_v52 }
 0x506   : > { %v4746_v49 = vadd.f32 %v4709_v58, %v9893_v14 }
 0x507   : > { %v5275_v21 = vadd.f32 %v5235_v40, %v4744_v46 }
 0x509   : > { %v5307_v56 = vpack.c.bf16 %v5275_v21, %v5275_v21  ;;  %v5397_v53 = vsel %vm774_vm0, %v5275_v21, 0.0  ;;  %v5443_v48 = vmul.f32 %v5275_v21, %v5275_v21 }
 0x50a   : > { %v5398_v60 = vadd.f32 %v5397_v53, %v5396_v25 }
 0x50b   : > { %5340 = vst.msk [vmem:[%s9932_s12 + $0x68] sm:$0xf] %vm5313_vm1, %v5307_v56  ;;  %v5500_v13 = vsel %vm774_vm0, %v5443_v48, 0.0  ;;  %v4710_v22 = vpop.f32.mrf.mxu2  ;;  %v4624_v7 = vpop.f32.mrf.mxu0 }
 0x50c   : > { %v5501_v32 = vadd.f32 %v5500_v13, %v5499_v37  ;;  %v5236_v5 = vpop.f32.mrf.mxu3  ;;  %v5150_v31 = vpop.f32.mrf.mxu1  ;;  %v4711_v33 = vadd.f32 %v4710_v22, %v4621_v61 }
 0x50d   : > { %v5237_v57 = vadd.f32 %v5236_v5, %v5147_v47 }
 0x50e   : > { %v4747_v14 = vadd.f32 %v4711_v33, %v9904_v54 }
 0x50f   : > { %v5276_v63 = vadd.f32 %v5237_v57, %v4745_v62 }
 0x511   : > { %v5308_v16 = vpack.c.bf16 %v5276_v63, %v5276_v63  ;;  %v5399_v35 = vsel %vm774_vm0, %v5276_v63, 0.0  ;;  %v5444_v39 = vmul.f32 %v5276_v63, %v5276_v63 }
 0x512   : > { %v5400_v4 = vadd.f32 %v5399_v35, %v5398_v60 }
 0x513   : > { %5341 = vst.msk [vmem:[%s9932_s12 + $0x6c] sm:$0xf] %vm5313_vm1, %v5308_v16  ;;  %v5502_v19 = vsel %vm774_vm0, %v5444_v39, 0.0  ;;  %v4713_v6 = vpop.f32.mrf.mxu2  ;;  %v4626_v54 = vpop.f32.mrf.mxu0 }
 0x514   : > { %v5503_v17 = vadd.f32 %v5502_v19, %v5501_v32  ;;  %v5239_v38 = vpop.f32.mrf.mxu3  ;;  %v5152_v44 = vpop.f32.mrf.mxu1  ;;  %v4714_v18 = vadd.f32 %v4713_v6, %v4624_v7 }
 0x515   : > { %v5240_v26 = vadd.f32 %v5239_v38, %v5150_v31 }
 0x516   : > { %v4748_v12 = vadd.f32 %v4714_v18, %v9908_v55 }
 0x517   : > { %v5277_v11 = vadd.f32 %v5240_v26, %v4746_v49 }
 0x519   : > { %v5309_v34 = vpack.c.bf16 %v5277_v11, %v5277_v11  ;;  %v5401_v28 = vsel %vm774_vm0, %v5277_v11, 0.0  ;;  %v5445_v51 = vmul.f32 %v5277_v11, %v5277_v11 }
 0x51a   : > { %v5402_v59 = vadd.f32 %v5401_v28, %v5400_v4 }
 0x51b   : > { %5342 = vst.msk [vmem:[%s9932_s12 + $0x70] sm:$0xf] %vm5313_vm1, %v5309_v34  ;;  %v5504_v42 = vsel %vm774_vm0, %v5445_v51, 0.0  ;;  %v4715_v36 = vpop.f32.mrf.mxu2 }
 0x51c   : > { %v5505_v27 = vadd.f32 %v5504_v42, %v5503_v17  ;;  %v5241_v1 = vpop.f32.mrf.mxu3  ;;  %v5155_v52 = vpop.f32.mrf.mxu1  ;;  %v4716_v2 = vadd.f32 %v4715_v36, %v4626_v54 }
 0x51d   : > { %v5242_v50 = vadd.f32 %v5241_v1, %v5152_v44 }
 0x51e   : > { %v4749_v55 = vadd.f32 %v4716_v2, %v9922_v20 }
 0x51f   : > { %v5278_v29 = vadd.f32 %v5242_v50, %v4747_v14 }
 0x521   : > { %v5310_v9 = vpack.c.bf16 %v5278_v29, %v5278_v29  ;;  %v5403_v41 = vsel %vm774_vm0, %v5278_v29, 0.0  ;;  %v5446_v45 = vmul.f32 %v5278_v29, %v5278_v29 }
 0x522   : > { %v5404_v43 = vadd.f32 %v5403_v41, %v5402_v59 }
 0x523   : > { %5343 = vst.msk [vmem:[%s9932_s12 + $0x74] sm:$0xf] %vm5313_vm1, %v5310_v9  ;;  %v5506_v8 = vsel %vm774_vm0, %v5446_v45, 0.0 }
 0x524   : > { %v5507_v0 = vadd.f32 %v5506_v8, %v5505_v27  ;;  %v5244_v23 = vpop.f32.mrf.mxu3  ;;  %v5157_v21 = vpop.f32.mrf.mxu1 }
 0x525   : > { %v5245_v10 = vadd.f32 %v5244_v23, %v5155_v52 }
 0x527   : > { %v5279_v25 = vadd.f32 %v5245_v10, %v4748_v12 }
 0x529   : > { %v5311_v37 = vpack.c.bf16 %v5279_v25, %v5279_v25  ;;  %v5405_v3 = vsel %vm774_vm0, %v5279_v25, 0.0  ;;  %v5447_v46 = vmul.f32 %v5279_v25, %v5279_v25 }
 0x52a   : > { %v5406_v40 = vadd.f32 %v5405_v3, %v5404_v43 }
 0x52b   : > { %5344 = vst.msk [vmem:[%s9932_s12 + $0x78] sm:$0xf] %vm5313_vm1, %v5311_v37  ;;  %v5508_v47 = vsel %vm774_vm0, %v5447_v46, 0.0 }
 0x52c   : > { %v5509_v24 = vadd.f32 %v5508_v47, %v5507_v0  ;;  %v5246_v30 = vpop.f32.mrf.mxu3 }
 0x52d   : > { %v5247_v15 = vadd.f32 %v5246_v30, %v5157_v21 }
 0x52f   : > { %v5280_v56 = vadd.f32 %v5247_v15, %v4749_v55 }
 0x531   : > { %v5312_v53 = vpack.c.bf16 %v5280_v56, %v5280_v56  ;;  %v5407_v48 = vsel %vm774_vm0, %v5280_v56, 0.0  ;;  %v5448_v60 = vmul.f32 %v5280_v56, %v5280_v56 }
 0x532   : > { %v5408_v13 = vadd.f32 %v5407_v48, %v5406_v40 }
 0x533   : > { %5345 = vst.msk [vmem:[%s9932_s12 + $0x7c] sm:$0xf] %vm5313_vm1, %v5312_v53  ;;  %v5510_v32 = vsel %vm774_vm0, %v5448_v60, 0.0 }
 0x534   : > { %v5409_v5 = vrot.slane %v5408_v13, 4  ;;  %v5511_v62 = vadd.f32 %v5510_v32, %v5509_v24 }
 0x536   : > { %v5410_v57 = vadd.f32 %v5409_v5, %v5408_v13  ;;  %v5512_v31 = vrot.slane %v5511_v62, 4 }
 0x538   : > { %v5411_v63 = vrot.slane %v5410_v57, 2  ;;  %v5513_v58 = vadd.f32 %v5512_v31, %v5511_v62 }
 0x53a   : > { %v5412_v20 = vadd.f32 %v5411_v63, %v5410_v57  ;;  %v5514_v61 = vrot.slane %v5513_v58, 2 }
 0x53c   : > { %v5413_v16 = vrot.slane %v5412_v20, 1  ;;  %v5515_v35 = vadd.f32 %v5514_v61, %v5513_v58 }
 0x53e   : > { %v5414_v39 = vadd.f32 %v5413_v16, %v5412_v20  ;;  %v5516_v22 = vrot.slane %v5515_v35, 1 }
 0x540   : > { %5416 = vst.msk [vmem:[%s485_s16] sm:$0x1] %vm5415_vm2, %v5414_v39  ;;  %v5517_v4 = vadd.f32 %v5516_v22, %v5515_v35 }
 0x542   : > { %5518 = vst.msk [vmem:[%s495_s20] sm:$0x1] %vm5415_vm2, %v5517_v4 }
 0x543 PF: > { %s18_s28 = sadd.s32 1, %s8224_s28   ;;  %s10233_s24 = smov %s8216_s26 }
 0x544   : > { %p15_p10 = scmp.ge.s32.totalorder %s18_s28, 18   ;;  %s10234_s25 = smov %s8220_s27 }
 0x545   : > { %s10235_s26 = smov %s10238_s29  ;;  %s10236_s27 = smov %s10242_s30 }
 0x546   :  { %17 = sbr.rel (!%p15_p10) target bundleno = 3 (0x3), region = 114 }

// kernel: resblock_down_forward.6
= control target key start
LH: loop header
LB: loop body
LE: loop exit
PB: predicated region body
PF: predicated region fallthrough
CT: control target
= control target key end

     0   :  { %s1528_s18 = smov 0   ;;  %s1530_s19 = smov 0   ;;  %s1768_s0 = inlined_call_operand.vmem [shape: bf16[2,8,128,128], index: 0, kind: input, shape index: {}, may-alias: {0,1,2}]   ;;  %s1769_s1 = inlined_call_operand.vmem [shape: bf16[2,8,128,128], index: 1, kind: input, shape index: {}, may-alias: {0,1,2}]   ;;  %s1770_s2 = inlined_call_operand.vmem [shape: bf16[2,8,128,128], index: 2, kind: input, shape index: {}, may-alias: {0,1,2}]   ;;  %s1771_s3 = inlined_call_operand.vmem [shape: f32[2,1,1,128], index: 3, kind: input, shape index: {}]   ;;  %s1772_s4 = inlined_call_operand.vmem [shape: f32[2,1,1,128], index: 4, kind: input, shape index: {}]   ;;  %s1773_s5 = inlined_call_operand.vmem [shape: bf16[2,4,128,128], index: 5, kind: output, shape index: {}]  }
   0x1   :  { %s1532_s20 = smov 0   ;;  %s1534_s21 = smov 0  }
   0x2   :  { %s1536_s22 = smov 0  }
   0x3 LB: > { %s30_s23 = sadd.s32 1, %s1488_s20  ;;  %s34_s24 = sadd.s32 1, %s1492_s21  ;;  %s1496_s22 = sphi %s1536_s22, %s15_s22   ;;  %s1492_s21 = sphi %s1534_s21, %s1777_s21   ;;  %s1488_s20 = sphi %s1532_s20, %s1776_s20   ;;  %s1484_s19 = sphi %s1530_s19, %s1775_s19   ;;  %s1480_s18 = sphi %s1528_s18, %s1774_s18  }
   0x4   : > { %p32_p0 = scmp.ge.s32.totalorder %s30_s23, 4  ;;  %p1233_p1 = scmp.ge.s32.totalorder %s1496_s22, 1 }
   0x5   : > { %p377_p2 = scmp.lt.s32.totalorder %s1496_s22, 9 }
   0x6   : > { %s1779_s23 = smov (%p32_p0, %s30_s23), 0  ;;  %s1781_s24 = smov (!%p32_p0, %s34_s24), %s1492_s21 }
   0x7   : > { %p378_p3 = pnand %p1233_p1, %p377_p2  ;;  %p36_p4 = scmp.ge.s32.totalorder %s1781_s24, 2 }
   0x8   : > { %s1234_s25 = sshll.u32 (!%p378_p3), %s1480_s18, 1  ;;  %p485_p5 = scmp.lt.s32.totalorder (!%p378_p3), %s1484_s19, 1 }
   0x9   : > { %s1783_s24 = smov (%p36_p4, %s1781_s24), 0  ;;  %381 = sbr.rel (%p378_p3) target bundleno = 128 (0x80), region = 40 }
   0xa   : > { %s1235_s26 = sadd.s32 (!%p378_p3), 4294967295, %s1234_s25  ;;  %s507_s27 = sshra.s32 (!%p378_p3), %s1234_s25, 31 }
   0xb   : > { %s478_s28 = sshra.s32 (!%p378_p3), %s1235_s26, 31  ;;  %s508_s29 = sadd.s32 (!%p378_p3), %s1234_s25, %s507_s27 }
   0xc   : > { %s479_s30 = sadd.s32 (!%p378_p3), %s1235_s26, %s478_s28  ;;  %s509_s6 = sxor.u32 (!%p378_p3), %s508_s29, %s507_s27 }
   0xd   : > { %s480_s7 = sxor.u32 (!%p378_p3), %s479_s30, %s478_s28  ;;  %p510_p6 = scmp.gt.s32.totalorder (!%p378_p3), %s509_s6, 7 }
   0xe   : > { %p481_p7 = scmp.gt.s32.totalorder %s480_s7, 7  ;;  %s482_s8 = ssub.s32 14, %s480_s7 }
   0xf   : > { %s1785_s19 = smov (!%p485_p5, %s1484_s19), 1  ;;  %s511_s10 = ssub.s32 14, %s509_s6 }
  0x10   : > { %s1787_s8 = smov (!%p481_p7, %s482_s8), %s480_s7  ;;  %s1564_s9 = sshll.u32 %s1785_s19, 7 }
  0x11   : > { %p487_p8 = scmp.lt.s32.totalorder %s1787_s8, 7  ;;  %s535_s11 = sadd.s32 1, %s1234_s25 }
  0x12   : > { %s1789_s10 = smov (!%p510_p6, %s511_s10), %s509_s6  ;;  %s536_s12 = sshra.s32 %s535_s11, 31 }
  0x13   : > { %s1791_s8 = smov (!%p487_p8, %s1787_s8), 7  ;;  %p516_p9 = scmp.lt.s32.totalorder %s1789_s10, 7 }
  0x14   : > { %s1236_s13 = sshll.u32 %s1791_s8, 4  ;;  %s537_s14 = sadd.s32 %s536_s12, %s535_s11 }
  0x15   : > { %s494_s15 = sadd.s32 %s1564_s9, %s1236_s13  ;;  %s538_s16 = sxor.u32 %s537_s14, %s536_s12 }
  0x16   : > { %s1238_s17 = sshll.u32 %s494_s15, 2  ;;  %p539_p10 = scmp.gt.s32.totalorder %s538_s16, 7 }
  0x17   : > { %s1570_s28 = scalar_lea.vmem %s1768_s0, %s1238_s17  ;;  %s540_s25 = ssub.s32 14, %s538_s16 }
  0x18   : > { %s1793_s10 = smov (!%p516_p9, %s1789_s10), 7  ;;  %v1253_v0 = vld [vmem:[%s1570_s28] sm:$0xff]   ;;  %v1388_v1 = vld [vmem:[%s1570_s28 + $0x8] sm:$0xff]   ;;  %v1389_v2 = vld [vmem:[%s1570_s28 + $0x10] sm:$0xff]   ;;  %s1795_s25 = smov (!%p539_p10, %s540_s25), %s538_s16 }
  0x19   : > { %v1254_v3 = vunpack.c.l.bf16 %v1253_v0  ;;  %v1255_v4 = vunpack.c.h.bf16 %v1253_v0  ;;  %v1258_v5 = vunpack.c.l.bf16 %v1388_v1  ;;  %v1259_v6 = vunpack.c.h.bf16 %v1388_v1  ;;  %v1390_v7 = vld [vmem:[%s1570_s28 + $0x18] sm:$0xff]   ;;  %s1240_s29 = sshll.u32 %s1793_s10, 4  ;;  %s566_s7 = scalar_lea.vmem %s1771_s3, %s1785_s19 }
  0x1a   : > { %v1262_v8 = vunpack.c.l.bf16 %v1389_v2  ;;  %v1263_v9 = vunpack.c.h.bf16 %v1389_v2  ;;  %v1266_v10 = vunpack.c.l.bf16 %v1390_v7  ;;  %v1267_v11 = vunpack.c.h.bf16 %v1390_v7  ;;  %s523_s8 = sadd.s32 %s1240_s29, %s1564_s9  ;;  %p545_p11 = scmp.lt.s32.totalorder %s1795_s25, 7  ;;  %v1581_v12 = vld [vmem:[%s566_s7] ss:$0 sm:$0xff] }
  0x1b   : > { %s1242_s11 = sshll.u32 %s523_s8, 2  ;;  %s569_s14 = scalar_lea.vmem %s1772_s4, %s1785_s19  ;;  %v621_v13 = vmul.f32 %v1581_v12, %v1254_v3  ;;  %v622_v14 = vmul.f32 %v1581_v12, %v1255_v4  ;;  %v623_v16 = vmul.f32 %v1581_v12, %v1258_v5  ;;  %v624_v17 = vmul.f32 %v1581_v12, %v1259_v6 }
  0x1c   : > { %s1590_s10 = scalar_lea.vmem %s1769_s1, %s1242_s11  ;;  %v1594_v15 = vld [vmem:[%s569_s14] ss:$0 sm:$0xff]  ;;  %s1797_s25 = smov (!%p545_p11, %s1795_s25), 7  ;;  %v1601_v20 = vmul.f32 %v1581_v12, %v1262_v8  ;;  %v1604_v21 = vmul.f32 %v1581_v12, %v1263_v9  ;;  %v1607_v22 = vmul.f32 %v1581_v12, %v1266_v10  ;;  %v1610_v23 = vmul.f32 %v1581_v12, %v1267_v11 }
  0x1d   : > { %v1285_v18 = vld [vmem:[%s1590_s10] sm:$0xff]   ;;  %v1395_v19 = vld [vmem:[%s1590_s10 + $0x8] sm:$0xff]   ;;  %v640_v24 = vadd.f32 %v1594_v15, %v621_v13  ;;  %v641_v25 = vadd.f32 %v1594_v15, %v622_v14  ;;  %s1244_s17 = sshll.u32 %s1797_s25, 4  ;;  %v642_v28 = vadd.f32 %v1594_v15, %v623_v16  ;;  %v643_v29 = vadd.f32 %v1594_v15, %v624_v17  ;;  %p573_p12 = scmp.lt.s32.totalorder %s1480_s18, 3 }
  0x1e   : > { %v1286_v26 = vunpack.c.l.bf16 %v1285_v18  ;;  %v1287_v27 = vunpack.c.h.bf16 %v1285_v18  ;;  %v1290_v30 = vunpack.c.l.bf16 %v1395_v19  ;;  %v1291_v31 = vunpack.c.h.bf16 %v1395_v19  ;;  %s552_s26 = sadd.s32 %s1244_s17, %s1564_s9  ;;  %s1248_s6 = sshll.u32 %s1785_s19, 6 }
  0x1f   : > { %vm656_vm0 = vcmp.ge.f32.partialorder %v640_v24, 0.0  ;;  %vm657_vm1 = vcmp.ge.f32.partialorder %v641_v25, 0.0  ;;  %v672_v32 = vmul.f32 0.2, %v640_v24  ;;  %s1246_s27 = sshll.u32 %s552_s26, 2  ;;  %vm658_vm2 = vcmp.ge.f32.partialorder %v642_v28, 0.0 }
  0x20   : > { %v752_v33 = vmul.f32 %v1581_v12, %v1286_v26  ;;  %v673_v34 = vmul.f32 0.2, %v641_v25  ;;  %v753_v35 = vmul.f32 %v1581_v12, %v1287_v27  ;;  %vm659_vm3 = vcmp.ge.f32.partialorder %v643_v29, 0.0  ;;  %s1623_s30 = scalar_lea.vmem %s1770_s2, %s1246_s27  ;;  %s1799_s18 = smov (!%p573_p12, %s1480_s18), 3 }
  0x21   : > { %v688_v36 = vsel %vm656_vm0, %v640_v24, %v672_v32  ;;  %v674_v38 = vmul.f32 0.2, %v642_v28  ;;  %v675_v39 = vmul.f32 0.2, %v643_v29  ;;  %v1317_v43 = vld [vmem:[%s1623_s30] sm:$0xff]   ;;  %v754_v44 = vmul.f32 %v1581_v12, %v1290_v30  ;;  %v1402_v55 = vld [vmem:[%s1623_s30 + $0x8] sm:$0xff]  }
  0x22   : > { %v768_v37 = vadd.f32 %v1594_v15, %v752_v33  ;;  %v689_v40 = vsel %vm657_vm1, %v641_v25, %v673_v34  ;;  %v704_v41 = vmul.f32 0.25, %v688_v36  ;;  %v769_v42 = vadd.f32 %v1594_v15, %v753_v35  ;;  %s1247_s9 = sshll.u32 %s1799_s18, 4  ;;  %v1396_v36 = vld [vmem:[%s1590_s10 + $0x10] sm:$0xff]  }
  0x23   : > { %v705_v45 = vmul.f32 0.25, %v689_v40  ;;  %v1318_v47 = vunpack.c.l.bf16 %v1317_v43  ;;  %v1319_v49 = vunpack.c.h.bf16 %v1317_v43  ;;  %v690_v50 = vsel %vm658_vm2, %v642_v28, %v674_v38  ;;  %s580_s7 = sadd.s32 %s1248_s6, %s1247_s9 }
  0x24   : > { %vm784_vm4 = vcmp.ge.f32.partialorder %v768_v37, 0.0  ;;  %v800_v46 = vmul.f32 0.2, %v768_v37  ;;  %vm785_vm5 = vcmp.ge.f32.partialorder %v769_v42, 0.0  ;;  %v801_v48 = vmul.f32 0.2, %v769_v42 }
  0x25   : > { %v896_v52 = vmul.f32 %v1581_v12, %v1318_v47  ;;  %v691_v53 = vsel %vm659_vm3, %v643_v29, %v675_v39  ;;  %v706_v54 = vmul.f32 0.25, %v690_v50  ;;  %v897_v58 = vmul.f32 %v1581_v12, %v1319_v49  ;;  %s1249_s18 = sshll.u32 %s580_s7, 2  ;;  %v1403_v39 = vld [vmem:[%s1623_s30 + $0x10] sm:$0xff]   ;;  %v1397_v50 = vld [vmem:[%s1590_s10 + $0x18] sm:$0xff]  }
  0x26   : > { %v816_v51 = vsel %vm784_vm4, %v768_v37, %v800_v46  ;;  %v817_v56 = vsel %vm785_vm5, %v769_v42, %v801_v48  ;;  %v707_v59 = vmul.f32 0.25, %v691_v53  ;;  %v755_v62 = vmul.f32 %v1581_v12, %v1291_v31  ;;  %s1655_s11 = scalar_lea.vmem %s1773_s5, %s1249_s18 }
  0x27   : > { %v832_v57 = vmul.f32 0.5, %v816_v51  ;;  %v833_v60 = vmul.f32 0.5, %v817_v56  ;;  %v912_v61 = vadd.f32 %v1594_v15, %v896_v52  ;;  %v770_v63 = vadd.f32 %v1594_v15, %v754_v44 }
  0x28   : > { %v913_v1 = vadd.f32 %v1594_v15, %v897_v58  ;;  %v1322_v2 = vunpack.c.l.bf16 %v1402_v55  ;;  %v1323_v3 = vunpack.c.h.bf16 %v1402_v55  ;;  %v771_v6 = vadd.f32 %v1594_v15, %v755_v62 }
  0x29   : > { %v848_v0 = vadd.f32 %v832_v57, %v704_v41  ;;  %v849_v4 = vadd.f32 %v833_v60, %v705_v45  ;;  %vm928_vm6 = vcmp.ge.f32.partialorder %v912_v61, 0.0  ;;  %v944_v5 = vmul.f32 0.2, %v912_v61 }
  0x2a   : > { %vm929_vm7 = vcmp.ge.f32.partialorder %v913_v1, 0.0  ;;  %v945_v7 = vmul.f32 0.2, %v913_v1  ;;  %vm786_vm8 = vcmp.ge.f32.partialorder %v770_v63, 0.0  ;;  %v802_v8 = vmul.f32 0.2, %v770_v63 }
  0x2b   : > { %v960_v9 = vsel %vm928_vm6, %v912_v61, %v944_v5  ;;  %vm787_vm9 = vcmp.ge.f32.partialorder %v771_v6, 0.0  ;;  %v803_v10 = vmul.f32 0.2, %v771_v6  ;;  %v898_v11 = vmul.f32 %v1581_v12, %v1322_v2 }
  0x2c   : > { %v961_v13 = vsel %vm929_vm7, %v913_v1, %v945_v7  ;;  %v976_v14 = vmul.f32 0.25, %v960_v9  ;;  %v818_v16 = vsel %vm786_vm8, %v770_v63, %v802_v8  ;;  %v899_v17 = vmul.f32 %v1581_v12, %v1323_v3 }
  0x2d   : > { %v977_v18 = vmul.f32 0.25, %v961_v13  ;;  %v819_v19 = vsel %vm787_vm9, %v771_v6, %v803_v10  ;;  %v834_v24 = vmul.f32 0.5, %v818_v16  ;;  %v914_v25 = vadd.f32 %v1594_v15, %v898_v11 }
  0x2e   : > { %v992_v26 = vadd.f32 %v976_v14, %v848_v0  ;;  %v835_v27 = vmul.f32 0.5, %v819_v19  ;;  %v915_v28 = vadd.f32 %v1594_v15, %v899_v17  ;;  %v644_v29 = vadd.f32 %v1594_v15, %v1601_v20  ;;  %v1404_v17 = vld [vmem:[%s1623_s30 + $0x18] sm:$0xff]  }
  0x2f   : > { %v993_v30 = vadd.f32 %v977_v18, %v849_v4  ;;  %v850_v31 = vadd.f32 %v834_v24, %v706_v54  ;;  %vm930_vm10 = vcmp.ge.f32.partialorder %v914_v25, 0.0  ;;  %v946_v32 = vmul.f32 0.2, %v914_v25 }
  0x30   : > { %v851_v33 = vadd.f32 %v835_v27, %v707_v59  ;;  %vm931_vm11 = vcmp.ge.f32.partialorder %v915_v28, 0.0  ;;  %v947_v34 = vmul.f32 0.2, %v915_v28  ;;  %v645_v35 = vadd.f32 %v1594_v15, %v1604_v21 }
  0x31   : > { %v1351_v37 = vpack.c.bf16 %v993_v30, %v992_v26  ;;  %v962_v38 = vsel %vm930_vm10, %v914_v25, %v946_v32  ;;  %vm660_vm12 = vcmp.ge.f32.partialorder %v644_v29, 0.0  ;;  %v676_v20 = vmul.f32 0.2, %v644_v29  ;;  %v1391_v26 = vld [vmem:[%s1570_s28 + $0x20] sm:$0xff]  }
  0x32   : > { %v963_v40 = vsel %vm931_vm11, %v915_v28, %v947_v34  ;;  %v978_v41 = vmul.f32 0.25, %v962_v38  ;;  %vm661_vm13 = vcmp.ge.f32.partialorder %v645_v35, 0.0  ;;  %v677_v42 = vmul.f32 0.2, %v645_v35 }
  0x33   : > { %1352 = vst [vmem:[%s1655_s11] sm:$0xff] %v1351_v37   ;;  %v979_v43 = vmul.f32 0.25, %v963_v40  ;;  %v692_v44 = vsel %vm660_vm12, %v644_v29, %v676_v20  ;;  %v1294_v45 = vunpack.c.l.bf16 %v1396_v36  ;;  %v1295_v46 = vunpack.c.h.bf16 %v1396_v36 }
  0x34   : > { %v994_v47 = vadd.f32 %v978_v41, %v850_v31  ;;  %v693_v48 = vsel %vm661_vm13, %v645_v35, %v677_v42  ;;  %v708_v49 = vmul.f32 0.25, %v692_v44  ;;  %v1326_v21 = vunpack.c.l.bf16 %v1403_v39  ;;  %v1398_v41 = vld [vmem:[%s1590_s10 + $0x20] sm:$0xff]  }
  0x35   : > { %v995_v51 = vadd.f32 %v979_v43, %v851_v33  ;;  %v709_v52 = vmul.f32 0.25, %v693_v48  ;;  %v756_v53 = vmul.f32 %v1581_v12, %v1294_v45  ;;  %v757_v54 = vmul.f32 %v1581_v12, %v1295_v46 }
  0x36   : > { %v1327_v55 = vunpack.c.h.bf16 %v1403_v39  ;;  %v900_v56 = vmul.f32 %v1581_v12, %v1326_v21  ;;  %v646_v57 = vadd.f32 %v1594_v15, %v1607_v22  ;;  %v647_v58 = vadd.f32 %v1594_v15, %v1610_v23 }
  0x37   : > { %v1356_v59 = vpack.c.bf16 %v995_v51, %v994_v47  ;;  %v772_v60 = vadd.f32 %v1594_v15, %v756_v53  ;;  %v773_v61 = vadd.f32 %v1594_v15, %v757_v54  ;;  %v1298_v62 = vunpack.c.l.bf16 %v1397_v50 }
  0x38   : > { %v901_v63 = vmul.f32 %v1581_v12, %v1327_v55  ;;  %v916_v0 = vadd.f32 %v1594_v15, %v900_v56  ;;  %vm662_vm14 = vcmp.ge.f32.partialorder %v646_v57, 0.0  ;;  %vm663_vm15 = vcmp.ge.f32.partialorder %v647_v58, 0.0 }
  0x39   : > { %1409 = vst [vmem:[%s1655_s11 + $0x8] sm:$0xff] %v1356_v59   ;;  %vm788_vm0 = vcmp.ge.f32.partialorder %v772_v60, 0.0  ;;  %vm789_vm1 = vcmp.ge.f32.partialorder %v773_v61, 0.0  ;;  %v804_v1 = vmul.f32 0.2, %v772_v60  ;;  %v1299_v22 = vunpack.c.h.bf16 %v1397_v50 }
  0x3a   : > { %v805_v2 = vmul.f32 0.2, %v773_v61  ;;  %v917_v23 = vadd.f32 %v1594_v15, %v901_v63  ;;  %vm932_vm2 = vcmp.ge.f32.partialorder %v916_v0, 0.0  ;;  %v948_v3 = vmul.f32 0.2, %v916_v0 }
  0x3b   : > { %v820_v4 = vsel %vm788_vm0, %v772_v60, %v804_v1  ;;  %v678_v5 = vmul.f32 0.2, %v646_v57  ;;  %v679_v6 = vmul.f32 0.2, %v647_v58  ;;  %v758_v7 = vmul.f32 %v1581_v12, %v1298_v62 }
  0x3c   : > { %v821_v8 = vsel %vm789_vm1, %v773_v61, %v805_v2  ;;  %v836_v9 = vmul.f32 0.5, %v820_v4  ;;  %vm933_vm3 = vcmp.ge.f32.partialorder %v917_v23, 0.0  ;;  %v949_v10 = vmul.f32 0.2, %v917_v23  ;;  %v1405_v61 = vld [vmem:[%s1623_s30 + $0x20] sm:$0xff]  }
  0x3d   : > { %v837_v11 = vmul.f32 0.5, %v821_v8  ;;  %v964_v13 = vsel %vm932_vm2, %v916_v0, %v948_v3  ;;  %v694_v14 = vsel %vm662_vm14, %v646_v57, %v678_v5  ;;  %v695_v16 = vsel %vm663_vm15, %v647_v58, %v679_v6  ;;  %v1392_v3 = vld [vmem:[%s1570_s28 + $0x28] sm:$0xff]  }
  0x3e   : > { %v852_v18 = vadd.f32 %v836_v9, %v708_v49  ;;  %v965_v19 = vsel %vm933_vm3, %v917_v23, %v949_v10  ;;  %v980_v24 = vmul.f32 0.25, %v964_v13  ;;  %v710_v25 = vmul.f32 0.25, %v694_v14 }
  0x3f   : > { %v853_v27 = vadd.f32 %v837_v11, %v709_v52  ;;  %v981_v28 = vmul.f32 0.25, %v965_v19  ;;  %v711_v29 = vmul.f32 0.25, %v695_v16  ;;  %v759_v30 = vmul.f32 %v1581_v12, %v1299_v22 }
  0x40   : > { %v996_v31 = vadd.f32 %v980_v24, %v852_v18  ;;  %v774_v32 = vadd.f32 %v1594_v15, %v758_v7  ;;  %v1330_v33 = vunpack.c.l.bf16 %v1404_v17  ;;  %v1331_v34 = vunpack.c.h.bf16 %v1404_v17  ;;  %v1399_v18 = vld [vmem:[%s1590_s10 + $0x28] sm:$0xff]  }
  0x41   : > { %v997_v35 = vadd.f32 %v981_v28, %v853_v27  ;;  %v775_v36 = vadd.f32 %v1594_v15, %v759_v30  ;;  %v1270_v37 = vunpack.c.l.bf16 %v1391_v26  ;;  %v1271_v38 = vunpack.c.h.bf16 %v1391_v26 }
  0x42   : > { %vm790_vm4 = vcmp.ge.f32.partialorder %v774_v32, 0.0  ;;  %v806_v20 = vmul.f32 0.2, %v774_v32  ;;  %v902_v39 = vmul.f32 %v1581_v12, %v1330_v33  ;;  %v903_v40 = vmul.f32 %v1581_v12, %v1331_v34 }
  0x43   : > { %v1361_v42 = vpack.c.bf16 %v997_v35, %v996_v31  ;;  %vm791_vm5 = vcmp.ge.f32.partialorder %v775_v36, 0.0  ;;  %v807_v43 = vmul.f32 0.2, %v775_v36  ;;  %v629_v44 = vmul.f32 %v1581_v12, %v1270_v37 }
  0x44   : > { %v822_v45 = vsel %vm790_vm4, %v774_v32, %v806_v20  ;;  %v918_v46 = vadd.f32 %v1594_v15, %v902_v39  ;;  %v919_v47 = vadd.f32 %v1594_v15, %v903_v40  ;;  %v630_v48 = vmul.f32 %v1581_v12, %v1271_v38 }
  0x45   : > { %1410 = vst [vmem:[%s1655_s11 + $0x10] sm:$0xff] %v1361_v42   ;;  %v823_v49 = vsel %vm791_vm5, %v775_v36, %v807_v43  ;;  %v838_v21 = vmul.f32 0.5, %v822_v45  ;;  %v648_v50 = vadd.f32 %v1594_v15, %v629_v44  ;;  %v1302_v51 = vunpack.c.l.bf16 %v1398_v41  ;;  %v1406_v42 = vld [vmem:[%s1623_s30 + $0x28] sm:$0xff]  }
  0x46   : > { %v839_v52 = vmul.f32 0.5, %v823_v49  ;;  %vm934_vm6 = vcmp.ge.f32.partialorder %v918_v46, 0.0  ;;  %vm935_vm7 = vcmp.ge.f32.partialorder %v919_v47, 0.0  ;;  %v950_v53 = vmul.f32 0.2, %v918_v46 }
  0x47   : > { %v854_v54 = vadd.f32 %v838_v21, %v710_v25  ;;  %v951_v55 = vmul.f32 0.2, %v919_v47  ;;  %v649_v56 = vadd.f32 %v1594_v15, %v630_v48  ;;  %vm664_vm8 = vcmp.ge.f32.partialorder %v648_v50, 0.0 }
  0x48   : > { %v855_v57 = vadd.f32 %v839_v52, %v711_v29  ;;  %v966_v58 = vsel %vm934_vm6, %v918_v46, %v950_v53  ;;  %v680_v59 = vmul.f32 0.2, %v648_v50  ;;  %v1303_v60 = vunpack.c.h.bf16 %v1398_v41 }
  0x49   : > { %v967_v62 = vsel %vm935_vm7, %v919_v47, %v951_v55  ;;  %v982_v63 = vmul.f32 0.25, %v966_v58  ;;  %vm665_vm9 = vcmp.ge.f32.partialorder %v649_v56, 0.0  ;;  %v681_v0 = vmul.f32 0.2, %v649_v56 }
  0x4a   : > { %v983_v1 = vmul.f32 0.25, %v967_v62  ;;  %v696_v22 = vsel %vm664_vm8, %v648_v50, %v680_v59  ;;  %v760_v2 = vmul.f32 %v1581_v12, %v1302_v51  ;;  %v761_v23 = vmul.f32 %v1581_v12, %v1303_v60 }
  0x4b   : > { %v998_v4 = vadd.f32 %v982_v63, %v854_v54  ;;  %v697_v5 = vsel %vm665_vm9, %v649_v56, %v681_v0  ;;  %v712_v6 = vmul.f32 0.25, %v696_v22  ;;  %v1334_v7 = vunpack.c.l.bf16 %v1405_v61  ;;  %v1393_v56 = vld [vmem:[%s1570_s28 + $0x30] sm:$0xff]  }
  0x4c   : > { %v999_v8 = vadd.f32 %v983_v1, %v855_v57  ;;  %v713_v9 = vmul.f32 0.25, %v697_v5  ;;  %v776_v10 = vadd.f32 %v1594_v15, %v760_v2  ;;  %v777_v11 = vadd.f32 %v1594_v15, %v761_v23  ;;  %v1400_v0 = vld [vmem:[%s1590_s10 + $0x30] sm:$0xff]  }
  0x4d   : > { %v1335_v13 = vunpack.c.h.bf16 %v1405_v61  ;;  %v904_v14 = vmul.f32 %v1581_v12, %v1334_v7  ;;  %v1274_v16 = vunpack.c.l.bf16 %v1392_v3  ;;  %v1275_v17 = vunpack.c.h.bf16 %v1392_v3 }
  0x4e   : > { %v1366_v19 = vpack.c.bf16 %v999_v8, %v998_v4  ;;  %vm792_vm10 = vcmp.ge.f32.partialorder %v776_v10, 0.0  ;;  %vm793_vm11 = vcmp.ge.f32.partialorder %v777_v11, 0.0  ;;  %v808_v24 = vmul.f32 0.2, %v776_v10 }
  0x4f   : > { %v809_v25 = vmul.f32 0.2, %v777_v11  ;;  %v905_v26 = vmul.f32 %v1581_v12, %v1335_v13  ;;  %v920_v27 = vadd.f32 %v1594_v15, %v904_v14  ;;  %v631_v28 = vmul.f32 %v1581_v12, %v1274_v16 }
  0x50   : > { %1411 = vst [vmem:[%s1655_s11 + $0x18] sm:$0xff] %v1366_v19   ;;  %v824_v29 = vsel %vm792_vm10, %v776_v10, %v808_v24  ;;  %v632_v30 = vmul.f32 %v1581_v12, %v1275_v17  ;;  %v1306_v31 = vunpack.c.l.bf16 %v1399_v18  ;;  %v1307_v32 = vunpack.c.h.bf16 %v1399_v18 }
  0x51   : > { %v825_v33 = vsel %vm793_vm11, %v777_v11, %v809_v25  ;;  %v840_v34 = vmul.f32 0.5, %v824_v29  ;;  %v921_v35 = vadd.f32 %v1594_v15, %v905_v26  ;;  %vm936_vm12 = vcmp.ge.f32.partialorder %v920_v27, 0.0  ;;  %v1407_v26 = vld [vmem:[%s1623_s30 + $0x30] sm:$0xff]  }
  0x52   : > { %v841_v36 = vmul.f32 0.5, %v825_v33  ;;  %v952_v37 = vmul.f32 0.2, %v920_v27  ;;  %v650_v38 = vadd.f32 %v1594_v15, %v631_v28  ;;  %v651_v20 = vadd.f32 %v1594_v15, %v632_v30 }
  0x53   : > { %v856_v39 = vadd.f32 %v840_v34, %v712_v6  ;;  %vm937_vm13 = vcmp.ge.f32.partialorder %v921_v35, 0.0  ;;  %v953_v40 = vmul.f32 0.2, %v921_v35  ;;  %v762_v41 = vmul.f32 %v1581_v12, %v1306_v31 }
  0x54   : > { %v857_v43 = vadd.f32 %v841_v36, %v713_v9  ;;  %v968_v44 = vsel %vm936_vm12, %v920_v27, %v952_v37  ;;  %vm666_vm14 = vcmp.ge.f32.partialorder %v650_v38, 0.0  ;;  %vm667_vm15 = vcmp.ge.f32.partialorder %v651_v20, 0.0 }
  0x55   : > { %v969_v45 = vsel %vm937_vm13, %v921_v35, %v953_v40  ;;  %v984_v46 = vmul.f32 0.25, %v968_v44  ;;  %v682_v47 = vmul.f32 0.2, %v650_v38  ;;  %v683_v48 = vmul.f32 0.2, %v651_v20  ;;  %v1401_v44 = vld [vmem:[%s1590_s10 + $0x38] sm:$0xff]  }
  0x56   : > { %v985_v49 = vmul.f32 0.25, %v969_v45  ;;  %v763_v21 = vmul.f32 %v1581_v12, %v1307_v32  ;;  %v778_v50 = vadd.f32 %v1594_v15, %v762_v41  ;;  %v1338_v51 = vunpack.c.l.bf16 %v1406_v42 }
  0x57   : > { %v1000_v52 = vadd.f32 %v984_v46, %v856_v39  ;;  %v698_v53 = vsel %vm666_vm14, %v650_v38, %v682_v47  ;;  %v699_v54 = vsel %vm667_vm15, %v651_v20, %v683_v48  ;;  %v1339_v55 = vunpack.c.h.bf16 %v1406_v42  ;;  %v1394_v39 = vld [vmem:[%s1570_s28 + $0x38] sm:$0xff]  }
  0x58   : > { %v1001_v57 = vadd.f32 %v985_v49, %v857_v43  ;;  %v714_v58 = vmul.f32 0.25, %v698_v53  ;;  %v715_v59 = vmul.f32 0.25, %v699_v54  ;;  %v779_v60 = vadd.f32 %v1594_v15, %v763_v21 }
  0x59   : > { %vm794_vm0 = vcmp.ge.f32.partialorder %v778_v50, 0.0  ;;  %v810_v61 = vmul.f32 0.2, %v778_v50  ;;  %v906_v62 = vmul.f32 %v1581_v12, %v1338_v51  ;;  %v907_v63 = vmul.f32 %v1581_v12, %v1339_v55 }
  0x5a   : > { %v1371_v1 = vpack.c.bf16 %v1001_v57, %v1000_v52  ;;  %vm795_vm1 = vcmp.ge.f32.partialorder %v779_v60, 0.0  ;;  %v811_v22 = vmul.f32 0.2, %v779_v60  ;;  %v1278_v2 = vunpack.c.l.bf16 %v1393_v56 }
  0x5b   : > { %v826_v23 = vsel %vm794_vm0, %v778_v50, %v810_v61  ;;  %v922_v3 = vadd.f32 %v1594_v15, %v906_v62  ;;  %v923_v4 = vadd.f32 %v1594_v15, %v907_v63  ;;  %v1279_v5 = vunpack.c.h.bf16 %v1393_v56  ;;  %v1408_v63 = vld [vmem:[%s1623_s30 + $0x38] sm:$0xff]  }
  0x5c   : > { %1412 = vst [vmem:[%s1655_s11 + $0x20] sm:$0xff] %v1371_v1   ;;  %v827_v6 = vsel %vm795_vm1, %v779_v60, %v811_v22  ;;  %v842_v7 = vmul.f32 0.5, %v826_v23  ;;  %v633_v8 = vmul.f32 %v1581_v12, %v1278_v2  ;;  %v1310_v9 = vunpack.c.l.bf16 %v1400_v0 }
  0x5d   : > { %v843_v10 = vmul.f32 0.5, %v827_v6  ;;  %vm938_vm2 = vcmp.ge.f32.partialorder %v922_v3, 0.0  ;;  %vm939_vm3 = vcmp.ge.f32.partialorder %v923_v4, 0.0  ;;  %v954_v11 = vmul.f32 0.2, %v922_v3 }
  0x5e   : > { %v858_v13 = vadd.f32 %v842_v7, %v714_v58  ;;  %v955_v14 = vmul.f32 0.2, %v923_v4  ;;  %v634_v16 = vmul.f32 %v1581_v12, %v1279_v5  ;;  %v652_v17 = vadd.f32 %v1594_v15, %v633_v8 }
  0x5f   : > { %v859_v18 = vadd.f32 %v843_v10, %v715_v59  ;;  %v970_v19 = vsel %vm938_vm2, %v922_v3, %v954_v11  ;;  %v1311_v24 = vunpack.c.h.bf16 %v1400_v0  ;;  %v764_v25 = vmul.f32 %v1581_v12, %v1310_v9 }
  0x60   : > { %v971_v27 = vsel %vm939_vm3, %v923_v4, %v955_v14  ;;  %v986_v28 = vmul.f32 0.25, %v970_v19  ;;  %v653_v29 = vadd.f32 %v1594_v15, %v634_v16  ;;  %vm668_vm4 = vcmp.ge.f32.partialorder %v652_v17, 0.0 }
  0x61   : > { %v987_v30 = vmul.f32 0.25, %v971_v27  ;;  %v684_v31 = vmul.f32 0.2, %v652_v17  ;;  %v765_v32 = vmul.f32 %v1581_v12, %v1311_v24  ;;  %v780_v33 = vadd.f32 %v1594_v15, %v764_v25 }
  0x62   : > { %v1002_v34 = vadd.f32 %v986_v28, %v858_v13  ;;  %vm669_vm5 = vcmp.ge.f32.partialorder %v653_v29, 0.0  ;;  %v685_v35 = vmul.f32 0.2, %v653_v29  ;;  %v1342_v36 = vunpack.c.l.bf16 %v1407_v26 }
  0x63   : > { %v1003_v37 = vadd.f32 %v987_v30, %v859_v18  ;;  %v700_v38 = vsel %vm668_vm4, %v652_v17, %v684_v31  ;;  %v781_v20 = vadd.f32 %v1594_v15, %v765_v32  ;;  %vm796_vm6 = vcmp.ge.f32.partialorder %v780_v33, 0.0 }
  0x64   : > { %v701_v40 = vsel %vm669_vm5, %v653_v29, %v685_v35  ;;  %v716_v41 = vmul.f32 0.25, %v700_v38  ;;  %v812_v42 = vmul.f32 0.2, %v780_v33  ;;  %v1343_v43 = vunpack.c.h.bf16 %v1407_v26 }
  0x65   : > { %v1376_v45 = vpack.c.bf16 %v1003_v37, %v1002_v34  ;;  %v717_v46 = vmul.f32 0.25, %v701_v40  ;;  %vm797_vm7 = vcmp.ge.f32.partialorder %v781_v20, 0.0  ;;  %v813_v47 = vmul.f32 0.2, %v781_v20 }
  0x66   : > { %v828_v48 = vsel %vm796_vm6, %v780_v33, %v812_v42  ;;  %v908_v49 = vmul.f32 %v1581_v12, %v1342_v36  ;;  %v909_v21 = vmul.f32 %v1581_v12, %v1343_v43  ;;  %v1282_v50 = vunpack.c.l.bf16 %v1394_v39 }
  0x67   : > { %1413 = vst [vmem:[%s1655_s11 + $0x28] sm:$0xff] %v1376_v45   ;;  %v829_v51 = vsel %vm797_vm7, %v781_v20, %v813_v47  ;;  %v844_v52 = vmul.f32 0.5, %v828_v48  ;;  %v1283_v53 = vunpack.c.h.bf16 %v1394_v39  ;;  %v1314_v54 = vunpack.c.l.bf16 %v1401_v44 }
  0x68   : > { %v845_v55 = vmul.f32 0.5, %v829_v51  ;;  %v924_v56 = vadd.f32 %v1594_v15, %v908_v49  ;;  %v925_v57 = vadd.f32 %v1594_v15, %v909_v21  ;;  %v635_v58 = vmul.f32 %v1581_v12, %v1282_v50 }
  0x69   : > { %v860_v59 = vadd.f32 %v844_v52, %v716_v41  ;;  %v636_v60 = vmul.f32 %v1581_v12, %v1283_v53  ;;  %v1315_v61 = vunpack.c.h.bf16 %v1401_v44  ;;  %v766_v62 = vmul.f32 %v1581_v12, %v1314_v54 }
  0x6a   : > { %v861_v0 = vadd.f32 %v845_v55, %v717_v46  ;;  %vm940_vm8 = vcmp.ge.f32.partialorder %v924_v56, 0.0  ;;  %vm941_vm9 = vcmp.ge.f32.partialorder %v925_v57, 0.0  ;;  %v956_v1 = vmul.f32 0.2, %v924_v56 }
  0x6b   : > { %v957_v22 = vmul.f32 0.2, %v925_v57  ;;  %v654_v2 = vadd.f32 %v1594_v15, %v635_v58  ;;  %v655_v23 = vadd.f32 %v1594_v15, %v636_v60  ;;  %v767_v3 = vmul.f32 %v1581_v12, %v1315_v61 }
  0x6c   : > { %v972_v4 = vsel %vm940_vm8, %v924_v56, %v956_v1  ;;  %v782_v5 = vadd.f32 %v1594_v15, %v766_v62  ;;  %v1346_v6 = vunpack.c.l.bf16 %v1408_v63  ;;  %v1347_v7 = vunpack.c.h.bf16 %v1408_v63 }
  0x6d   : > { %v973_v8 = vsel %vm941_vm9, %v925_v57, %v957_v22  ;;  %v988_v9 = vmul.f32 0.25, %v972_v4  ;;  %vm670_vm10 = vcmp.ge.f32.partialorder %v654_v2, 0.0  ;;  %vm671_vm11 = vcmp.ge.f32.partialorder %v655_v23, 0.0 }
  0x6e   : > { %v989_v10 = vmul.f32 0.25, %v973_v8  ;;  %v686_v11 = vmul.f32 0.2, %v654_v2  ;;  %v687_v13 = vmul.f32 0.2, %v655_v23  ;;  %v783_v14 = vadd.f32 %v1594_v15, %v767_v3 }
  0x6f   : > { %v1004_v16 = vadd.f32 %v988_v9, %v860_v59  ;;  %vm798_vm12 = vcmp.ge.f32.partialorder %v782_v5, 0.0  ;;  %v814_v17 = vmul.f32 0.2, %v782_v5  ;;  %v910_v18 = vmul.f32 %v1581_v12, %v1346_v6 }
  0x70   : > { %v1005_v19 = vadd.f32 %v989_v10, %v861_v0  ;;  %v702_v24 = vsel %vm670_vm10, %v654_v2, %v686_v11  ;;  %v703_v25 = vsel %vm671_vm11, %v655_v23, %v687_v13  ;;  %vm799_vm13 = vcmp.ge.f32.partialorder %v783_v14, 0.0 }
  0x71   : > { %v718_v26 = vmul.f32 0.25, %v702_v24  ;;  %v719_v27 = vmul.f32 0.25, %v703_v25  ;;  %v815_v28 = vmul.f32 0.2, %v783_v14  ;;  %v830_v29 = vsel %vm798_vm12, %v782_v5, %v814_v17 }
  0x72   : > { %v1381_v30 = vpack.c.bf16 %v1005_v19, %v1004_v16  ;;  %v846_v31 = vmul.f32 0.5, %v830_v29  ;;  %v911_v32 = vmul.f32 %v1581_v12, %v1347_v7  ;;  %v926_v33 = vadd.f32 %v1594_v15, %v910_v18 }
  0x73   : > { %v831_v34 = vsel %vm799_vm13, %v783_v14, %v815_v28 }
  0x74   : > { %1414 = vst [vmem:[%s1655_s11 + $0x30] sm:$0xff] %v1381_v30   ;;  %v847_v35 = vmul.f32 0.5, %v831_v34  ;;  %v862_v36 = vadd.f32 %v846_v31, %v718_v26  ;;  %v927_v37 = vadd.f32 %v1594_v15, %v911_v32  ;;  %vm942_vm14 = vcmp.ge.f32.partialorder %v926_v33, 0.0 }
  0x75   : > { %v958_v38 = vmul.f32 0.2, %v926_v33 }
  0x76   : > { %v863_v20 = vadd.f32 %v847_v35, %v719_v27  ;;  %vm943_vm15 = vcmp.ge.f32.partialorder %v927_v37, 0.0  ;;  %v959_v39 = vmul.f32 0.2, %v927_v37 }
  0x77   : > { %v974_v40 = vsel %vm942_vm14, %v926_v33, %v958_v38 }
  0x78   : > { %v975_v41 = vsel %vm943_vm15, %v927_v37, %v959_v39  ;;  %v990_v42 = vmul.f32 0.25, %v974_v40 }
  0x79   : > { %v991_v43 = vmul.f32 0.25, %v975_v41 }
  0x7a   : > { %v1006_v44 = vadd.f32 %v990_v42, %v862_v36 }
  0x7b   : > { %v1007_v12 = vadd.f32 %v991_v43, %v863_v20 }
  0x7d   : > { %v1386_v45 = vpack.c.bf16 %v1007_v12, %v1006_v44 }
  0x7f   : > { %1415 = vst [vmem:[%s1655_s11 + $0x38] sm:$0xff] %v1386_v45  }
  0x80 PF: > { %s15_s22 = sadd.s32 1, %s1496_s22   ;;  %s1774_s18 = smov %s1488_s20 }
  0x81   : > { %p12_p13 = scmp.ge.s32.totalorder %s15_s22, 10   ;;  %s1775_s19 = smov %s1492_s21 }
  0x82   : > { %s1776_s20 = smov %s1779_s23  ;;  %s1777_s21 = smov %s1783_s24 }
  0x83   :  { %14 = sbr.rel (!%p12_p13) target bundleno = 3 (0x3), region = 82 }

// kernel: resblock_down_forward.7
= control target key start
LH: loop header
LB: loop body
LE: loop exit
PB: predicated region body
PF: predicated region fallthrough
CT: control target
= control target key end

     0   :  { %s4106_s24 = smov 0   ;;  %s4108_s25 = smov 0   ;;  %s4911_s0 = inlined_call_operand.vmem [shape: bf16[2,6,80,192], index: 0, kind: input, shape index: {}, may-alias: {0,1,2}]   ;;  %s4912_s1 = inlined_call_operand.vmem [shape: bf16[2,6,80,192], index: 1, kind: input, shape index: {}, may-alias: {0,1,2}]   ;;  %s4913_s2 = inlined_call_operand.vmem [shape: bf16[2,6,80,192], index: 2, kind: input, shape index: {}, may-alias: {0,1,2}]   ;;  %s4914_s3 = inlined_call_operand.vmem [shape: bf16[9,192,128], index: 3, kind: input, shape index: {}]   ;;  %s4915_s4 = inlined_call_operand.vmem [shape: f32[1,128], index: 4, kind: input, shape index: {}]   ;;  %s4916_s5 = inlined_call_operand.vmem [shape: bf16[2,4,64,128], index: 5, kind: output, shape index: {0}]   ;;  %s4917_s6 = inlined_call_operand.vmem [shape: f32[2,4,1,128], index: 6, kind: output, shape index: {1}]   ;;  %s4918_s7 = inlined_call_operand.vmem [shape: f32[2,4,1,128], index: 7, kind: output, shape index: {2}]  }
   0x1   :  { %s4110_s26 = smov 0   ;;  %s4112_s27 = smov 0  }
   0x2   :  { %s4114_s28 = smov 0  }
   0x3 LB: > { %s33_s29 = sadd.s32 1, %s4056_s26  ;;  %s37_s30 = sadd.s32 1, %s4060_s27  ;;  %s4064_s28 = sphi %s4114_s28, %s18_s28   ;;  %s4060_s27 = sphi %s4112_s27, %s4923_s27   ;;  %s4056_s26 = sphi %s4110_s26, %s4922_s26   ;;  %s4052_s25 = sphi %s4108_s25, %s4921_s25   ;;  %s4048_s24 = sphi %s4106_s24, %s4920_s24  }
   0x4   : > { %p35_p0 = scmp.ge.s32.totalorder %s33_s29, 4  ;;  %p2811_p1 = scmp.ge.s32.totalorder %s4064_s28, 1 }
   0x5   : > { %p336_p2 = scmp.lt.s32.totalorder %s4064_s28, 9 }
   0x6   : > { %s4925_s29 = smov (%p35_p0, %s33_s29), 0  ;;  %s4927_s30 = smov (!%p35_p0, %s37_s30), %s4060_s27 }
   0x7   : > { %p337_p3 = pnand %p2811_p1, %p336_p2  ;;  %p39_p4 = scmp.ge.s32.totalorder %s4927_s30, 2 }
   0x8   : > { %p426_p5 = scmp.lt.s32.totalorder (!%p337_p3), %s4052_s25, 1  ;;  %p428_p6 = scmp.lt.s32.totalorder (!%p337_p3), %s4048_s24, 5 }
   0x9   : > { %s4929_s30 = smov (%p39_p4, %s4927_s30), 0  ;;  %340 = sbr.rel (%p337_p3) target bundleno = 481 (0x1e1), region = 40 }
   0xa   : > { %s435_s11 = sadd.s32 (!%p337_p3), 1, %s4048_s24  ;;  %p466_p9 = scmp.lt.s32.totalorder (!%p337_p3), %s4048_s24, 3 }
   0xb   : > { %p438_p7 = scmp.lt.s32.totalorder (!%p337_p3), %s435_s11, 5 }
   0xe   : > { %v3785_v0 = vld [vmem:[%s4914_s3 + $0x38] sm:$0xff]  ;;  %v3784_v3 = vld [vmem:[%s4914_s3 + $0x30] sm:$0xff]  ;;  %s4931_s25 = smov (!%p426_p5, %s4052_s25), 1  ;;  %v3783_v7 = vld [vmem:[%s4914_s3 + $0x28] sm:$0xff]  ;;  %vm642_vm0 = vcmask 523264   ;;  %s4933_s11 = smov (!%p438_p7, %s435_s11), 5 }
   0xf   : > { %v3805_v1 = vld [vmem:[%s4914_s3 + $0x98] sm:$0xff]  ;;  %655 = vmatpush.bf16.msra.mxu0 %v3785_v0  ;;  %v3804_v4 = vld [vmem:[%s4914_s3 + $0x90] sm:$0xff]  ;;  %s429_s20 = scalar_select %p428_p6, %s4048_s24, 5  ;;  %v3803_v8 = vld [vmem:[%s4914_s3 + $0x88] sm:$0xff] }
  0x10   : > { %v4147_v2 = vld [vmem:[%s4914_s3 + $0xb8] sm:$0xff]  ;;  %874 = vmatpush.bf16.msra.mxu2 %v3805_v1  ;;  %v4162_v5 = vld [vmem:[%s4914_s3 + $0xb0] sm:$0xff]  ;;  %s4171_s23 = smul.u32 120, %s4931_s25  ;;  %v4183_v9 = vld [vmem:[%s4914_s3 + $0xa8] sm:$0xff]  ;;  %s2818_s13 = sshll.u32 %s4931_s25, 2 }
  0x11   : > { %3977 = vmatpush.bf16.msra.mxu3 %v4147_v2  ;;  %v4168_v6 = vld [vmem:[%s4914_s3 + $0x58] sm:$0xff]  ;;  %s3981_s8 = smul.u32 20, %s429_s20  ;;  %v4190_v10 = vld [vmem:[%s4914_s3 + $0x50] sm:$0xff]  ;;  %v3782_v11 = vld [vmem:[%s4914_s3 + $0x20] sm:$0xff] }
  0x12   : > { %3973 = vmatpush.bf16.msra.mxu1 %v4168_v6  ;;  %v3802_v12 = vld [vmem:[%s4914_s3 + $0x80] sm:$0xff]  ;;  %v4215_v16 = vld [vmem:[%s4914_s3 + $0x48] sm:$0xff]  ;;  %v3829_v17 = vld [vmem:[%s4914_s3 + $0x118] sm:$0xff]  ;;  %s3983_s9 = smul.u32 20, %s4933_s11 }
  0x13   : > { %656 = vmatpush.bf16.msra.mxu0 %v3784_v3  ;;  %s432_s15 = sadd.s32 %s4171_s23, %s3981_s8  ;;  %v4206_v13 = vld [vmem:[%s4914_s3 + $0xa0] sm:$0xff]  ;;  %v3781_v19 = vld [vmem:[%s4914_s3 + $0x18] sm:$0xff]  ;;  %v3828_v24 = vld [vmem:[%s4914_s3 + $0x110] sm:$0xff] }
  0x14   : > { %875 = vmatpush.bf16.msra.mxu2 %v3804_v4  ;;  %s2812_s18 = sshll.u32 %s432_s15, 2  ;;  %v3801_v20 = vld [vmem:[%s4914_s3 + $0x78] sm:$0xff]  ;;  %v4231_v21 = vld [vmem:[%s4914_s3 + $0x40] sm:$0xff]  ;;  %v3780_v26 = vld [vmem:[%s4914_s3 + $0x10] sm:$0xff]  ;;  %s442_s12 = sadd.s32 %s3983_s9, %s4171_s23 }
  0x15   : > { %3978 = vmatpush.bf16.msra.mxu3 %v4162_v5  ;;  %s4195_s21 = scalar_lea.vmem %s4911_s0, %s2812_s18  ;;  %v3825_v25 = vld [vmem:[%s4914_s3 + $0xf8] sm:$0xff]  ;;  %v3800_v28 = vld [vmem:[%s4914_s3 + $0x70] sm:$0xff]  ;;  %v3827_v30 = vld [vmem:[%s4914_s3 + $0x108] sm:$0xff]  ;;  %s2813_s20 = sshll.u32 %s442_s12, 2 }
  0x16   : > { %v3792_v14 = vld [vmem:[%s4195_s21 + $0x1c] sm:$0xf]  ;;  %v2940_v15 = vld [vmem:[%s4195_s21 + $0x20] sm:$0xf0]  ;;  %3974 = vmatpush.bf16.msra.mxu1 %v4190_v10  ;;  %v2840_v23 = vld [vmem:[%s4195_s21 + $0x28] sm:$0xf0]  ;;  %s4443_s11 = scalar_lea.vmem %s4912_s1, %s2813_s20 }
  0x17   : > { %657 = vmatpush.bf16.msra.mxu0 %v3783_v7  ;;  %v2943_v18 = vor.u32 %v3792_v14, %v2940_v15  ;;  %v3774_v22 = vld [vmem:[%s4195_s21 + $0x24] sm:$0xf]  ;;  %v3824_v29 = vld [vmem:[%s4914_s3 + $0xf0] sm:$0xff]  ;;  %v3779_v31 = vld [vmem:[%s4914_s3 + $0x8] sm:$0xff]  ;;  %s446_s15 = sadd.s32 2, %s4048_s24  ;;  %s4937_s24 = smov (!%p466_p9, %s4048_s24), 3 }
  0x18   : > { %876 = vmatpush.bf16.msra.mxu2 %v3803_v8  ;;  %v2843_v27 = vor.u32 %v3774_v22, %v2840_v23  ;;  %v3799_v32 = vld [vmem:[%s4914_s3 + $0x68] sm:$0xff]  ;;  %v3826_v34 = vld [vmem:[%s4914_s3 + $0x100] sm:$0xff]  ;;  %v3791_v40 = vld [vmem:[%s4195_s21 + $0xc] sm:$0xf0]  ;;  %p4527_p8 = scmp.lt.s32.totalorder %s446_s15, 5 }
  0x19   : > { %3979 = vmatpush.bf16.msra.mxu3 %v4183_v9  ;;  %v3823_v33 = vld [vmem:[%s4914_s3 + $0xe8] sm:$0xff]  ;;  %v3778_v35 = vld [vmem:[%s4914_s3] sm:$0xff]  ;;  %v2948_v42 = vld [vmem:[%s4195_s21 + $0x30] sm:$0xf0] }
  0x1a   : > { %3975 = vmatpush.bf16.msra.mxu1 %v4215_v16  ;;  %v3798_v36 = vld [vmem:[%s4914_s3 + $0x60] sm:$0xff]  ;;  %v3771_v38 = vld [vmem:[%s4195_s21 + $0x4] sm:$0xf0]  ;;  %v3794_v41 = vld [vmem:[%s4195_s21 + $0x2c] sm:$0xf]  ;;  %s4935_s15 = smov (!%p4527_p8, %s446_s15), 5 }
  0x1b   : > { %658 = vmatpush.bf16.msra.mxu0 %v3782_v11  ;;  %v2822_v37 = vld [vmem:[%s4195_s21] sm:$0xf]  ;;  %v2930_v39 = vld [vmem:[%s4195_s21 + $0x8] sm:$0xf]  ;;  %v2951_v46 = vor.u32 %v3794_v41, %v2948_v42  ;;  %v3776_v47 = vld [vmem:[%s4195_s21 + $0x34] sm:$0xf] }
  0x1c   : > { %877 = vmatpush.bf16.msra.mxu2 %v3802_v12  ;;  %v3822_v43 = vld [vmem:[%s4914_s3 + $0xe0] sm:$0xff]  ;;  %v2823_v44 = vor.u32 %v3771_v38, %v2822_v37  ;;  %v2931_v45 = vor.u32 %v3791_v40, %v2930_v39  ;;  %v2848_v48 = vld [vmem:[%s4195_s21 + $0x38] sm:$0xf0]  ;;  %v3820_v52 = vld [vmem:[%s4914_s3 + $0xd0] sm:$0xff]  ;;  %s3984_s8 = smul.u32 20, %s4935_s15 }
  0x1d   : > { %3980 = vmatpush.bf16.msra.mxu3 %v4206_v13  ;;  %v3821_v49 = vld [vmem:[%s4914_s3 + $0xd8] sm:$0xff]  ;;  %v2851_v50 = vor.u32 %v3776_v47, %v2848_v48  ;;  %v3819_v53 = vld [vmem:[%s4914_s3 + $0xc8] sm:$0xff]  ;;  %v2830_v54 = vld [vmem:[%s4195_s21 + $0x10] sm:$0xf] }
  0x1e   : > { %3976 = vmatpush.bf16.msra.mxu1 %v4231_v21  ;;  %v3869_v51 = vld [vmem:[%s4914_s3 + $0x1d8] sm:$0xff]  ;;  %v3793_v57 = vld [vmem:[%s4195_s21 + $0x1c] sm:$0xf0]  ;;  %v2956_v59 = vld [vmem:[%s4195_s21 + $0x40] sm:$0xf0]  ;;  %s453_s14 = sadd.s32 %s3984_s8, %s4171_s23 }
  0x1f   : > { %659 = vmatpush.bf16.msra.mxu0 %v3781_v19  ;;  %v3773_v55 = vld [vmem:[%s4195_s21 + $0x14] sm:$0xf0]  ;;  %v3796_v58 = vld [vmem:[%s4195_s21 + $0x3c] sm:$0xf]  ;;  %v3818_v60 = vld [vmem:[%s4914_s3 + $0xc0] sm:$0xff]  ;;  %s2814_s15 = sshll.u32 %s453_s14, 2  ;;  %s484_s14 = sadd.s32 %s2818_s13, %s4937_s24 }
  0x20   : > { %3009 = vmatmul.msk.bf16.vlgmr.msra.gmra.mxu3 %vm642_vm0, %v2943_v18  ;;  %878 = vmatpush.bf16.msra.mxu2 %v3801_v20  ;;  %v2938_v56 = vld [vmem:[%s4195_s21 + $0x18] sm:$0xf]  ;;  %v2831_v61 = vor.u32 %v3773_v55, %v2830_v54  ;;  %v2959_v0 = vor.u32 %v3796_v58, %v2956_v59  ;;  %v3038_v1 = vld [vmem:[%s4195_s21 + $0x10] sm:$0xf]  ;;  %v3862_v7 = vld [vmem:[%s4914_s3 + $0x1a0] sm:$0xff]  ;;  %s4586_s19 = scalar_lea.vmem %s4913_s2, %s2814_s15  ;;  %s485_s15 = scalar_lea.vmem %s4917_s6, %s484_s14 }
  0x21   : > { %1126 = vmatpush.bf16.msrb.mxu3 %v3829_v17  ;;  %2902 = vmatmul.msk.bf16.vlgmr.msra.gmra.mxu1 %vm642_vm0, %v2843_v27  ;;  %v3865_v62 = vld [vmem:[%s4914_s3 + $0x1b8] sm:$0xff]  ;;  %v2939_v63 = vor.u32 %v3793_v57, %v2938_v56  ;;  %v3864_v3 = vld [vmem:[%s4914_s3 + $0x1b0] sm:$0xff]  ;;  %v2838_v8 = vld [vmem:[%s4195_s21 + $0x20] sm:$0xf]  ;;  %s495_s23 = scalar_lea.vmem %s4918_s7, %s484_s14 }
  0x22   : > { %1093 = vmatpush.bf16.msrb.mxu1 %v3825_v25  ;;  %v3795_v11 = vld [vmem:[%s4195_s21 + $0x2c] sm:$0xf0]  ;;  %v3810_v12 = vld [vmem:[%s4195_s21 + $0x14] sm:$0xf]  ;;  %v3046_v17 = vld [vmem:[%s4195_s21 + $0x20] sm:$0xf] }
  0x23   : > { %660 = vmatpush.bf16.msra.mxu0 %v3780_v26  ;;  %v3813_v18 = vld [vmem:[%s4195_s21 + $0x24] sm:$0xf0]  ;;  %v3845_v19 = vld [vmem:[%s4914_s3 + $0x158] sm:$0xff]  ;;  %v3844_v23 = vld [vmem:[%s4914_s3 + $0x150] sm:$0xff] }
  0x24   : > { %879 = vmatpush.bf16.msra.mxu2 %v3800_v28  ;;  %v3047_v20 = vor.u32 %v3813_v18, %v3046_v17  ;;  %v3861_v22 = vld [vmem:[%s4914_s3 + $0x198] sm:$0xff]  ;;  %v3848_v25 = vld [vmem:[%s4914_s3 + $0x170] sm:$0xff]  ;;  %v3843_v27 = vld [vmem:[%s4914_s3 + $0x148] sm:$0xff] }
  0x25   : > { %1127 = vmatpush.bf16.msrb.mxu3 %v3828_v24  ;;  %v3849_v24 = vld [vmem:[%s4914_s3 + $0x178] sm:$0xff]  ;;  %v3860_v26 = vld [vmem:[%s4914_s3 + $0x190] sm:$0xff]  ;;  %v3858_v47 = vld [vmem:[%s4914_s3 + $0x180] sm:$0xff] }
  0x26   : > { %1094 = vmatpush.bf16.msrb.mxu1 %v3824_v29  ;;  %v2846_v28 = vld [vmem:[%s4195_s21 + $0x30] sm:$0xf]  ;;  %v3847_v29 = vld [vmem:[%s4914_s3 + $0x168] sm:$0xff]  ;;  %v3815_v40 = vld [vmem:[%s4195_s21 + $0x34] sm:$0xf0] }
  0x27   : > { %661 = vmatpush.bf16.msra.mxu0 %v3779_v31  ;;  %v2954_v31 = vld [vmem:[%s4195_s21 + $0x38] sm:$0xf]  ;;  %v3054_v39 = vld [vmem:[%s4195_s21 + $0x30] sm:$0xf]  ;;  %v3839_v48 = vld [vmem:[%s4914_s3 + $0x128] sm:$0xff] }
  0x28   : > { %880 = vmatpush.bf16.msra.mxu2 %v3799_v32  ;;  %v3797_v32 = vld [vmem:[%s4195_s21 + $0x3c] sm:$0xf0]  ;;  %v3841_v41 = vld [vmem:[%s4914_s3 + $0x138] sm:$0xff]  ;;  %v3055_v42 = vor.u32 %v3815_v40, %v3054_v39  ;;  %v3908_v17 = vld [vmem:[%s4914_s3 + $0x290] sm:$0xff] }
  0x29   : > { %1128 = vmatpush.bf16.msrb.mxu3 %v3827_v30  ;;  %v3777_v30 = vld [vmem:[%s4195_s21 + $0x34] sm:$0xf0]  ;;  %v2955_v37 = vor.u32 %v3797_v32, %v2954_v31  ;;  %v3056_v54 = vld [vmem:[%s4195_s21 + $0x38] sm:$0xf0]  ;;  %v3838_v55 = vld [vmem:[%s4914_s3 + $0x120] sm:$0xff] }
  0x2a   : > { %1095 = vmatpush.bf16.msrb.mxu1 %v3823_v33  ;;  %v3812_v33 = vld [vmem:[%s4195_s21 + $0x24] sm:$0xf]  ;;  %v3062_v59 = vld [vmem:[%s4195_s21 + $0x40] sm:$0xf]  ;;  %v3883_v18 = vld [vmem:[%s4914_s3 + $0x208] sm:$0xff] }
  0x2b   : > { %662 = vmatpush.bf16.msra.mxu0 %v3778_v35  ;;  %v3842_v35 = vld [vmem:[%s4914_s3 + $0x140] sm:$0xff]  ;;  %v3262_v32 = vld [vmem:[%s4443_s11 + $0x18] sm:$0xf]  ;;  %v3852_v40 = vld [vmem:[%s4443_s11 + $0x1c] sm:$0xf] }
  0x2c   : > { %881 = vmatpush.bf16.msra.mxu2 %v3798_v36  ;;  %v2847_v36 = vor.u32 %v3777_v30, %v2846_v28  ;;  %v3887_v30 = vld [vmem:[%s4914_s3 + $0x228] sm:$0xff]  ;;  %v3902_v31 = vld [vmem:[%s4914_s3 + $0x260] sm:$0xff]  ;;  %v3833_v39 = vld [vmem:[%s4443_s11 + $0x14] sm:$0xf0] }
  0x2d   : > { %1129 = vmatpush.bf16.msrb.mxu3 %v3826_v34  ;;  %v3048_v34 = vld [vmem:[%s4195_s21 + $0x28] sm:$0xf0] }
  0x2e   : > { %1096 = vmatpush.bf16.msrb.mxu1 %v3822_v43  ;;  %663 = vmatmul.bf16.vlgmr.msra.gmra.mxu0 %v2823_v44  ;;  %v3051_v38 = vor.u32 %v3812_v33, %v3048_v34  ;;  %v3866_v43 = vld [vmem:[%s4914_s3 + $0x1c0] sm:$0xff] }
  0x2f   : > { %688 = vmatpush.bf16.msrb.mxu0 %v4168_v6  ;;  %882 = vmatmul.bf16.vlgmr.msra.gmra.mxu2 %v2931_v45  ;;  %v3863_v6 = vld [vmem:[%s4914_s3 + $0x1a8] sm:$0xff]  ;;  %v3846_v44 = vld [vmem:[%s4914_s3 + $0x160] sm:$0xff]  ;;  %v3840_v45 = vld [vmem:[%s4914_s3 + $0x130] sm:$0xff] }
  0x30   : > { %907 = vmatpush.bf16.msrb.mxu2 %v4147_v2  ;;  %3010 = vmatmul.msk.bf16.gmra.mxu3 %vm642_vm0, %v2951_v46  ;;  %v3811_v2 = vld [vmem:[%s4195_s21 + $0x14] sm:$0xf0]  ;;  %v3859_v46 = vld [vmem:[%s4914_s3 + $0x188] sm:$0xff]  ;;  %v3853_v33 = vld [vmem:[%s4443_s11 + $0x1c] sm:$0xf0] }
  0x31   : > { %1564 = vmatpush.bf16.msra.mxu3 %v3869_v51  ;;  %2903 = vmatmul.msk.bf16.gmra.mxu1 %vm642_vm0, %v2851_v50  ;;  %v3039_v4 = vor.u32 %v3811_v2, %v3038_v1  ;;  %v2824_v50 = vld [vmem:[%s4195_s21 + $0x8] sm:$0xf0]  ;;  %v3905_v1 = vld [vmem:[%s4914_s3 + $0x278] sm:$0xff]  ;;  %v3884_v2 = vld [vmem:[%s4914_s3 + $0x210] sm:$0xff]  ;;  %v3263_v34 = vor.u32 %v3853_v33, %v3262_v32 }
  0x32   : > { %1097 = vmatpush.bf16.msrb.mxu1 %v3821_v49  ;;  %v3770_v49 = vld [vmem:[%s4195_s21 + $0x4] sm:$0xf]  ;;  %v3790_v51 = vld [vmem:[%s4195_s21 + $0xc] sm:$0xf]  ;;  %v3470_v32 = vld [vmem:[%s4586_s19] sm:$0xf] }
  0x33   : > { %689 = vmatpush.bf16.msrb.mxu0 %v4190_v10  ;;  %v2946_v10 = vld [vmem:[%s4195_s21 + $0x28] sm:$0xf]  ;;  %v2827_v56 = vor.u32 %v3770_v49, %v2824_v50  ;;  %v3900_v49 = vld [vmem:[%s4914_s3 + $0x250] sm:$0xff] }
  0x34   : > { %908 = vmatpush.bf16.msrb.mxu2 %v4162_v5  ;;  %v3868_v5 = vld [vmem:[%s4914_s3 + $0x1d0] sm:$0xff]  ;;  %v2947_v15 = vor.u32 %v3795_v11, %v2946_v10  ;;  %v3148_v10 = vld [vmem:[%s4443_s11 + $0x8] sm:$0xf0]  ;;  %v3270_v50 = vld [vmem:[%s4443_s11 + $0x28] sm:$0xf] }
  0x35   : > { %1565 = vmatpush.bf16.msra.mxu3 %v3868_v5  ;;  %v3772_v5 = vld [vmem:[%s4195_s21 + $0x14] sm:$0xf]  ;;  %v3891_v33 = vld [vmem:[%s4586_s19 + $0x4] sm:$0xf0] }
  0x36   : > { %1098 = vmatpush.bf16.msrb.mxu1 %v3820_v52  ;;  %v2932_v52 = vld [vmem:[%s4195_s21 + $0x10] sm:$0xf0] }
  0x37   : > { %690 = vmatpush.bf16.msrb.mxu0 %v4215_v16  ;;  %v2935_v57 = vor.u32 %v3790_v51, %v2932_v52  ;;  %v3855_v51 = vld [vmem:[%s4443_s11 + $0x2c] sm:$0xf0] }
  0x38   : > { %909 = vmatpush.bf16.msrb.mxu2 %v4183_v9  ;;  %v3775_v9 = vld [vmem:[%s4195_s21 + $0x24] sm:$0xf0]  ;;  %v3271_v52 = vor.u32 %v3855_v51, %v3270_v50  ;;  %v3872_v51 = vld [vmem:[%s4443_s11 + $0x24] sm:$0xf] }
  0x39   : > { %v2839_v14 = vor.u32 %v3775_v9, %v2838_v8  ;;  %v3064_v8 = vld [vmem:[%s4195_s21 + $0x48] sm:$0xf0]  ;;  %v3830_v9 = vld [vmem:[%s4443_s11 + $0x4] sm:$0xf] }
  0x3a   : > { %1099 = vmatpush.bf16.msrb.mxu1 %v3819_v53  ;;  %v3814_v53 = vld [vmem:[%s4195_s21 + $0x34] sm:$0xf] }
  0x3b   : > { %691 = vmatpush.bf16.msrb.mxu0 %v4231_v21  ;;  %v3867_v21 = vld [vmem:[%s4914_s3 + $0x1c8] sm:$0xff]  ;;  %v3059_v58 = vor.u32 %v3814_v53, %v3056_v54  ;;  %v3906_v53 = vld [vmem:[%s4914_s3 + $0x280] sm:$0xff] }
  0x3c   : > { %910 = vmatpush.bf16.msrb.mxu2 %v4206_v13  ;;  %v3040_v13 = vld [vmem:[%s4195_s21 + $0x18] sm:$0xf0]  ;;  %1566 = vmatpush.bf16.msra.mxu3 %v3867_v21  ;;  %v3831_v21 = vld [vmem:[%s4443_s11 + $0x4] sm:$0xf0] }
  0x3d   : > { %v3043_v16 = vor.u32 %v3810_v12, %v3040_v13  ;;  %v3151_v13 = vor.u32 %v3830_v9, %v3148_v10  ;;  %v3857_v9 = vld [vmem:[%s4443_s11 + $0x3c] sm:$0xf0]  ;;  %v3929_v10 = vld [vmem:[%s4914_s3 + $0x2f8] sm:$0xff] }
  0x3e   : > { %1100 = vmatpush.bf16.msrb.mxu1 %v3818_v60  ;;  %668 = vmatmul.bf16.gmra.mxu0 %v2831_v61  ;;  %v3817_v60 = vld [vmem:[%s4195_s21 + $0x44] sm:$0xf0]  ;;  %v3889_v61 = vld [vmem:[%s4914_s3 + $0x238] sm:$0xff] }
  0x3f   : > { %887 = vmatmul.bf16.gmra.mxu2 %v2939_v63  ;;  %1312 = vmatpush.bf16.msra.mxu0 %v3845_v19  ;;  %v3909_v63 = vld [vmem:[%s4914_s3 + $0x298] sm:$0xff]  ;;  %v3903_v19 = vld [vmem:[%s4914_s3 + $0x268] sm:$0xff] }
  0x40   : > { %3011 = vmatmul.msk.bf16.gmra.mxu3 %vm642_vm0, %v2959_v0  ;;  %1345 = vmatpush.bf16.msra.mxu2 %v3849_v24  ;;  %v3885_v0 = vld [vmem:[%s4914_s3 + $0x218] sm:$0xff]  ;;  %v3832_v24 = vld [vmem:[%s4443_s11 + $0x14] sm:$0xf] }
  0x41   : > { %1101 = vmatmul.bf16.vlgmr.msrb.gmra.mxu1 %v3039_v4  ;;  %1567 = vmatpush.bf16.msra.mxu3 %v3866_v43  ;;  %v3904_v4 = vld [vmem:[%s4914_s3 + $0x270] sm:$0xff]  ;;  %v3164_v43 = vld [vmem:[%s4443_s11 + $0x28] sm:$0xf0] }
  0x42   : > { %1531 = vmatpush.bf16.msra.mxu1 %v3865_v62  ;;  %v3063_v62 = vor.u32 %v3817_v60, %v3062_v59  ;;  %v3835_v59 = vld [vmem:[%s4443_s11 + $0x24] sm:$0xf0]  ;;  %v3854_v60 = vld [vmem:[%s4443_s11 + $0x2c] sm:$0xf] }
  0x43   : > { %1313 = vmatpush.bf16.msra.mxu0 %v3844_v23  ;;  %v3256_v23 = vld [vmem:[%s4443_s11 + $0x10] sm:$0xf0] }
  0x44   : > { %1346 = vmatpush.bf16.msra.mxu2 %v3848_v25  ;;  %v3156_v25 = vld [vmem:[%s4443_s11 + $0x18] sm:$0xf0] }
  0x46   : > { %1532 = vmatpush.bf16.msra.mxu1 %v3864_v3  ;;  %v3888_v3 = vld [vmem:[%s4914_s3 + $0x230] sm:$0xff] }
  0x47   : > { %1314 = vmatpush.bf16.msra.mxu0 %v3843_v27  ;;  %v3882_v27 = vld [vmem:[%s4914_s3 + $0x200] sm:$0xff] }
  0x48   : > { %1347 = vmatpush.bf16.msra.mxu2 %v3847_v29  ;;  %v3159_v29 = vor.u32 %v3832_v24, %v3156_v25  ;;  %v3870_v24 = vld [vmem:[%s4443_s11 + $0x14] sm:$0xf]  ;;  %v3364_v25 = vld [vmem:[%s4443_s11 + $0x18] sm:$0xf0] }
  0x4a   : > { %1533 = vmatpush.bf16.msra.mxu1 %v3863_v6  ;;  %v2832_v6 = vld [vmem:[%s4195_s21 + $0x18] sm:$0xf0] }
  0x4b   : > { %1315 = vmatpush.bf16.msra.mxu0 %v3842_v35  ;;  %v2835_v11 = vor.u32 %v3772_v5, %v2832_v6  ;;  %v3907_v35 = vld [vmem:[%s4914_s3 + $0x288] sm:$0xff] }
  0x4c   : > { %1348 = vmatpush.bf16.msra.mxu2 %v3846_v44 }
  0x4e   : > { %1534 = vmatpush.bf16.msra.mxu1 %v3862_v7  ;;  %673 = vmatmul.bf16.gmra.mxu0 %v2839_v14  ;;  %v3816_v7 = vld [vmem:[%s4195_s21 + $0x44] sm:$0xf]  ;;  %v3254_v14 = vld [vmem:[%s4443_s11 + $0x8] sm:$0xf] }
  0x4f   : > { %892 = vmatmul.bf16.gmra.mxu2 %v2947_v15  ;;  %1316 = vmatpush.bf16.msra.mxu0 %v3841_v41  ;;  %v3067_v12 = vor.u32 %v3816_v7, %v3064_v8  ;;  %v3851_v15 = vld [vmem:[%s4443_s11 + $0xc] sm:$0xf0]  ;;  %v3264_v41 = vld [vmem:[%s4443_s11 + $0x20] sm:$0xf0]  ;;  %v3278_v8 = vld [vmem:[%s4443_s11 + $0x38] sm:$0xf] }
  0x50   : > { %3116 = vmatmul.msk.bf16.vlgmr.msrb.gmra.mxu3 %vm642_vm0, %v3043_v16  ;;  %v3255_v16 = vor.u32 %v3851_v15, %v3254_v14 }
  0x51   : > { %1106 = vmatmul.bf16.gmra.mxu1 %v3047_v20  ;;  %2002 = vmatpush.bf16.msrb.mxu3 %v3909_v63  ;;  %v3146_v20 = vld [vmem:[%s4443_s11] sm:$0xf]  ;;  %v3836_v63 = vld [vmem:[%s4443_s11 + $0x34] sm:$0xf] }
  0x52   : > { %1535 = vmatpush.bf16.msra.mxu1 %v3861_v22  ;;  %v3850_v22 = vld [vmem:[%s4443_s11 + $0xc] sm:$0xf] }
  0x53   : > { %1317 = vmatpush.bf16.msra.mxu0 %v3840_v45  ;;  %v3259_v28 = vor.u32 %v3850_v22, %v3256_v23  ;;  %v3880_v45 = vld [vmem:[%s4914_s3 + $0x1f0] sm:$0xff]  ;;  %v3280_v22 = vld [vmem:[%s4443_s11 + $0x40] sm:$0xf0] }
  0x55   : > { %2003 = vmatpush.bf16.msrb.mxu3 %v3908_v17  ;;  %v3925_v17 = vld [vmem:[%s4914_s3 + $0x2d8] sm:$0xff] }
  0x56   : > { %1536 = vmatpush.bf16.msra.mxu1 %v3860_v26  ;;  %v3147_v26 = vor.u32 %v3831_v21, %v3146_v20  ;;  %v3837_v20 = vld [vmem:[%s4443_s11 + $0x34] sm:$0xf0]  ;;  %v3856_v21 = vld [vmem:[%s4443_s11 + $0x3c] sm:$0xf] }
  0x57   : > { %1318 = vmatpush.bf16.msra.mxu0 %v3839_v48  ;;  %v3886_v48 = vld [vmem:[%s4914_s3 + $0x220] sm:$0xff] }
  0x59   : > { %2004 = vmatpush.bf16.msrb.mxu3 %v3907_v35  ;;  %v3928_v35 = vld [vmem:[%s4914_s3 + $0x2f0] sm:$0xff] }
  0x5a   : > { %1537 = vmatpush.bf16.msra.mxu1 %v3859_v46  ;;  %v3267_v46 = vor.u32 %v3852_v40, %v3264_v41 }
  0x5b   : > { %1319 = vmatpush.bf16.msra.mxu0 %v3838_v55 }
  0x5d   : > { %2005 = vmatpush.bf16.msrb.mxu3 %v3906_v53 }
  0x5e   : > { %678 = vmatmul.bf16.gmra.mxu0 %v2847_v36  ;;  %1538 = vmatpush.bf16.msra.mxu1 %v3858_v47  ;;  %v3881_v36 = vld [vmem:[%s4914_s3 + $0x1f8] sm:$0xff] }
  0x5f   : > { %897 = vmatmul.bf16.gmra.mxu2 %v2955_v37  ;;  %v3901_v37 = vld [vmem:[%s4914_s3 + $0x258] sm:$0xff] }
  0x60   : > { %3117 = vmatmul.msk.bf16.gmra.mxu3 %vm642_vm0, %v3051_v38  ;;  %v3154_v38 = vld [vmem:[%s4443_s11 + $0x10] sm:$0xf] }
  0x61   : > { %1111 = vmatmul.bf16.gmra.mxu1 %v3055_v42  ;;  %v3834_v42 = vld [vmem:[%s4443_s11 + $0x24] sm:$0xf]  ;;  %v3155_v44 = vor.u32 %v3833_v39, %v3154_v38  ;;  %v3948_v38 = vld [vmem:[%s4914_s3 + $0x350] sm:$0xff] }
  0x62   : > { %1969 = vmatpush.bf16.msrb.mxu1 %v3905_v1  ;;  %v3167_v47 = vor.u32 %v3834_v42, %v3164_v43  ;;  %v3898_v1 = vld [vmem:[%s4914_s3 + $0x240] sm:$0xff] }
  0x66   : > { %1970 = vmatpush.bf16.msrb.mxu1 %v3904_v4  ;;  %v3878_v4 = vld [vmem:[%s4914_s3 + $0x1e0] sm:$0xff] }
  0x6a   : > { %1971 = vmatpush.bf16.msrb.mxu1 %v3903_v19  ;;  %v3170_v19 = vld [vmem:[%s4443_s11 + $0x30] sm:$0xf] }
  0x6e   : > { %2900 = vmatmul.msk.bf16.vlgmr.msrb.gmra.mxu0 %vm642_vm0, %v2827_v56  ;;  %1972 = vmatpush.bf16.msrb.mxu1 %v3902_v31  ;;  %v3879_v56 = vld [vmem:[%s4914_s3 + $0x1e8] sm:$0xff]  ;;  %v3367_v31 = vor.u32 %v3870_v24, %v3364_v25  ;;  %v3892_v25 = vld [vmem:[%s4586_s19 + $0x14] sm:$0xf] }
  0x6f   : > { %3008 = vmatmul.msk.bf16.vlgmr.msrb.gmra.mxu2 %vm642_vm0, %v2935_v57  ;;  %1750 = vmatpush.bf16.msrb.mxu0 %v3885_v0  ;;  %v3899_v57 = vld [vmem:[%s4914_s3 + $0x248] sm:$0xff]  ;;  %v3172_v0 = vld [vmem:[%s4443_s11 + $0x38] sm:$0xf0] }
  0x70   : > { %3118 = vmatmul.msk.bf16.gmra.mxu3 %vm642_vm0, %v3059_v58  ;;  %1783 = vmatpush.bf16.msrb.mxu2 %v3889_v61  ;;  %v3162_v58 = vld [vmem:[%s4443_s11 + $0x20] sm:$0xf]  ;;  %v3272_v61 = vld [vmem:[%s4443_s11 + $0x30] sm:$0xf0]  ;;  %v3175_v7 = vor.u32 %v3836_v63, %v3172_v0  ;;  %v3478_v63 = vld [vmem:[%s4586_s19 + $0x10] sm:$0xf] }
  0x71   : > { %1116 = vmatmul.bf16.gmra.mxu1 %v3063_v62  ;;  %v3275_v6 = vor.u32 %v3854_v60, %v3272_v61  ;;  %v3893_v0 = vld [vmem:[%s4586_s19 + $0x14] sm:$0xf0]  ;;  %v3873_v24 = vld [vmem:[%s4443_s11 + $0x24] sm:$0xf0] }
  0x72   : > { %1973 = vmatpush.bf16.msrb.mxu1 %v3901_v37  ;;  %v3471_v37 = vor.u32 %v3891_v33, %v3470_v32 }
  0x73   : > { %1751 = vmatpush.bf16.msrb.mxu0 %v3884_v2 }
  0x74   : > { %1784 = vmatpush.bf16.msrb.mxu2 %v3888_v3  ;;  %v3163_v3 = vor.u32 %v3835_v59, %v3162_v58 }
  0x76   : > { %1974 = vmatpush.bf16.msrb.mxu1 %v3900_v49  ;;  %v3472_v49 = vld [vmem:[%s4586_s19 + $0x8] sm:$0xf0] }
  0x77   : > { %1752 = vmatpush.bf16.msrb.mxu0 %v3883_v18  ;;  %v3945_v18 = vld [vmem:[%s4914_s3 + $0x338] sm:$0xff] }
  0x78   : > { %1785 = vmatpush.bf16.msrb.mxu2 %v3887_v30  ;;  %v3283_v30 = vor.u32 %v3856_v21, %v3280_v22  ;;  %v3370_v21 = vld [vmem:[%s4443_s11 + $0x20] sm:$0xf]  ;;  %v3941_v22 = vld [vmem:[%s4914_s3 + $0x318] sm:$0xff] }
  0x79   : > { %v3371_v33 = vor.u32 %v3873_v24, %v3370_v21 }
  0x7a   : > { %1975 = vmatpush.bf16.msrb.mxu1 %v3899_v57 }
  0x7b   : > { %1753 = vmatpush.bf16.msrb.mxu0 %v3882_v27 }
  0x7c   : > { %1786 = vmatpush.bf16.msrb.mxu2 %v3886_v48  ;;  %v3890_v48 = vld [vmem:[%s4586_s19 + $0x4] sm:$0xf] }
  0x7d   : > { %v3475_v59 = vor.u32 %v3890_v48, %v3472_v49  ;;  %v3940_v49 = vld [vmem:[%s4914_s3 + $0x310] sm:$0xff] }
  0x7e   : > { %2901 = vmatmul.msk.bf16.gmra.mxu0 %vm642_vm0, %v2835_v11  ;;  %1976 = vmatpush.bf16.msrb.mxu1 %v3898_v1  ;;  %v3279_v11 = vor.u32 %v3857_v9, %v3278_v8  ;;  %v3922_v1 = vld [vmem:[%s4914_s3 + $0x2c0] sm:$0xff] }
  0x7f   : > { %3224 = vmatmul.msk.bf16.vlgmr.msra.gmra.mxu2 %vm642_vm0, %v3151_v13  ;;  %1754 = vmatpush.bf16.msrb.mxu0 %v3881_v36  ;;  %v3944_v36 = vld [vmem:[%s4914_s3 + $0x330] sm:$0xff] }
  0x80   : > { %3119 = vmatmul.msk.bf16.gmra.mxu3 %vm642_vm0, %v3067_v12  ;;  %v3949_v12 = vld [vmem:[%s4914_s3 + $0x358] sm:$0xff]  ;;  %2221 = vmatpush.bf16.msra.mxu2 %v3929_v10 }
  0x81   : > { %1539 = vmatmul.bf16.vlgmr.msra.gmra.mxu1 %v3255_v16 }
  0x82   : > { %2407 = vmatpush.bf16.msra.mxu1 %v3945_v18 }
  0x83   : > { %1755 = vmatpush.bf16.msrb.mxu0 %v3880_v45  ;;  %v3943_v45 = vld [vmem:[%s4914_s3 + $0x328] sm:$0xff] }
  0x84   : > { %2222 = vmatpush.bf16.msra.mxu2 %v3928_v35 }
  0x86   : > { %2408 = vmatpush.bf16.msra.mxu1 %v3944_v36 }
  0x87   : > { %1756 = vmatpush.bf16.msrb.mxu0 %v3879_v56 }
  0x8a   : > { %2409 = vmatpush.bf16.msra.mxu1 %v3943_v45  ;;  %v3895_v45 = vld [vmem:[%s4586_s19 + $0x24] sm:$0xf0] }
  0x8b   : > { %1757 = vmatpush.bf16.msrb.mxu0 %v3878_v4  ;;  %v4649_v4 = vld [vmem:[%s4915_s4] ss:$0 sm:$0xff] }
  0x8e   : > { %1320 = vmatmul.bf16.vlgmr.msra.gmra.mxu0 %v3147_v26 }
  0x8f   : > { %3225 = vmatmul.msk.bf16.gmra.mxu2 %vm642_vm0, %v3159_v29  ;;  %2188 = vmatpush.bf16.msra.mxu0 %v3925_v17 }
  0x90   : > { %3332 = vmatmul.msk.bf16.vlgmr.msra.gmra.mxu3 %vm642_vm0, %v3259_v28  ;;  %v3171_v28 = vor.u32 %v3837_v20, %v3170_v19  ;;  %v3921_v20 = vld [vmem:[%s4914_s3 + $0x2b8] sm:$0xff] }
  0x91   : > { %1544 = vmatmul.bf16.gmra.mxu1 %v3263_v34  ;;  %2440 = vmatpush.bf16.msra.mxu3 %v3949_v12  ;;  %v3924_v34 = vld [vmem:[%s4914_s3 + $0x2d0] sm:$0xff] }
  0x93   : > { %2189 = vmatpush.bf16.msra.mxu0 %v3924_v34 }
  0x95   : > { %2441 = vmatpush.bf16.msra.mxu3 %v3948_v38 }
  0x9e   : > { %1325 = vmatmul.bf16.gmra.mxu0 %v3155_v44  ;;  %v4515_v54 = vpop.f32.mrf.mxu1  ;;  %v3923_v44 = vld [vmem:[%s4914_s3 + $0x2c8] sm:$0xff] }
  0x9f   : > { %3226 = vmatmul.msk.bf16.gmra.mxu2 %vm642_vm0, %v3167_v47  ;;  %v3871_v47 = vld [vmem:[%s4443_s11 + $0x14] sm:$0xf0]  ;;  %2190 = vmatpush.bf16.msra.mxu0 %v3923_v44  ;;  %v3486_v44 = vld [vmem:[%s4586_s19 + $0x20] sm:$0xf] }
  0xa0   : > { %3333 = vmatmul.msk.bf16.gmra.mxu3 %vm642_vm0, %v3267_v46  ;;  %v3362_v46 = vld [vmem:[%s4443_s11 + $0x10] sm:$0xf] }
  0xa1   : > { %1549 = vmatmul.bf16.gmra.mxu1 %v3271_v52  ;;  %v3372_v52 = vld [vmem:[%s4443_s11 + $0x28] sm:$0xf0]  ;;  %v3363_v56 = vor.u32 %v3871_v47, %v3362_v46  ;;  %v3920_v47 = vld [vmem:[%s4914_s3 + $0x2b0] sm:$0xff] }
  0xa2   : > { %v3375_v60 = vor.u32 %v3872_v51, %v3372_v52 }
  0xa3   : > { %v4517_v55 = vpop.f32.mrf.mxu3  ;;  %2191 = vmatpush.bf16.msra.mxu0 %v3922_v1  ;;  %v3875_v1 = vld [vmem:[%s4443_s11 + $0x34] sm:$0xf0] }
  0xa6   : > { %v4534_v62 = vpop.f32.mrf.mxu1 }
  0xa7   : > { %2192 = vmatpush.bf16.msra.mxu0 %v3921_v20 }
  0xab   : > { %v4541_v2 = vpop.f32.mrf.mxu3  ;;  %v4546_v5 = vpop.f32.mrf.mxu0  ;;  %2193 = vmatpush.bf16.msra.mxu0 %v3920_v47  ;;  %v3496_v47 = vld [vmem:[%s4586_s19 + $0x38] sm:$0xf0] }
  0xae   : > { %1330 = vmatmul.bf16.gmra.mxu0 %v3163_v3  ;;  %v4560_v13 = vpop.f32.mrf.mxu1  ;;  %v3927_v3 = vld [vmem:[%s4914_s3 + $0x2e8] sm:$0xff] }
  0xaf   : > { %3227 = vmatmul.msk.bf16.gmra.mxu2 %vm642_vm0, %v3175_v7 }
  0xb0   : > { %3334 = vmatmul.msk.bf16.gmra.mxu3 %vm642_vm0, %v3275_v6  ;;  %v3947_v6 = vld [vmem:[%s4914_s3 + $0x348] sm:$0xff]  ;;  %2223 = vmatpush.bf16.msra.mxu2 %v3927_v3  ;;  %v3894_v3 = vld [vmem:[%s4586_s19 + $0x24] sm:$0xf] }
  0xb1   : > { %1554 = vmatmul.bf16.gmra.mxu1 %v3279_v11  ;;  %2442 = vmatpush.bf16.msra.mxu3 %v3947_v6  ;;  %v3876_v6 = vld [vmem:[%s4443_s11 + $0x44] sm:$0xf] }
  0xb2   : > { %v4562_v14 = vpop.f32.mrf.mxu2 }
  0xb3   : > { %v4564_v15 = vpop.f32.mrf.mxu3  ;;  %v4566_v16 = vpop.f32.mrf.mxu0 }
  0xb6   : > { %v4579_v23 = vpop.f32.mrf.mxu1 }
  0xba   : > { %v4588_v26 = vpop.f32.mrf.mxu2 }
  0xbb   : > { %v4590_v27 = vpop.f32.mrf.mxu3  ;;  %v4592_v29 = vpop.f32.mrf.mxu0 }
  0xbe   : > { %1335 = vmatmul.bf16.gmra.mxu0 %v3171_v28  ;;  %v1102_v39 = vpop.f32.mrf.mxu1 }
  0xbf   : > { %3440 = vmatmul.msk.bf16.vlgmr.msrb.gmra.mxu2 %vm642_vm0, %v3367_v31 }
  0xc0   : > { %3335 = vmatmul.msk.bf16.gmra.mxu3 %vm642_vm0, %v3283_v30  ;;  %v3874_v30 = vld [vmem:[%s4443_s11 + $0x34] sm:$0xf] }
  0xc1   : > { %1977 = vmatmul.bf16.vlgmr.msrb.gmra.mxu1 %v3471_v37 }
  0xc2   : > { %v888_v40 = vpop.f32.mrf.mxu2 }
  0xc3   : > { %v4610_v41 = vpop.f32.mrf.mxu3  ;;  %v4613_v42 = vadd.f32 %v4517_v55, %v888_v40  ;;  %v4615_v43 = vpop.f32.mrf.mxu0 }
  0xc6   : > { %v1104_v50 = vpop.f32.mrf.mxu1 }
  0xca   : > { %v890_v53 = vpop.f32.mrf.mxu2 }
  0xcb   : > { %v4629_v55 = vpop.f32.mrf.mxu3  ;;  %v4632_v57 = vadd.f32 %v4541_v2, %v890_v53  ;;  %v674_v58 = vpop.f32.mrf.mxu0  ;;  %v3942_v2 = vld [vmem:[%s4914_s3 + $0x320] sm:$0xff] }
  0xcc   : > { %v704_v61 = vadd.f32 %v4515_v54, %v674_v58  ;;  %v3479_v54 = vor.u32 %v3893_v0, %v3478_v63  ;;  %2410 = vmatpush.bf16.msra.mxu1 %v3942_v2  ;;  %v3919_v0 = vld [vmem:[%s4914_s3 + $0x2a8] sm:$0xff] }
  0xcd   : > { %v3488_v2 = vld [vmem:[%s4586_s19 + $0x28] sm:$0xf0]  ;;  %2194 = vmatpush.bf16.msra.mxu0 %v3919_v0  ;;  %v3931_v0 = vld [vmem:[%s4586_s19 + $0x14] sm:$0xf0] }
  0xce   : > { %1758 = vmatmul.bf16.vlgmr.msrb.gmra.mxu0 %v3363_v56  ;;  %v1107_v7 = vpop.f32.mrf.mxu1  ;;  %v717_v10 = vadd.f32 %v4649_v4, %v704_v61  ;;  %v3939_v61 = vld [vmem:[%s4914_s3 + $0x308] sm:$0xff] }
  0xcf   : > { %3441 = vmatmul.msk.bf16.gmra.mxu2 %vm642_vm0, %v3375_v60 }
  0xd0   : > { %3548 = vmatmul.msk.bf16.vlgmr.msrb.gmra.mxu3 %vm642_vm0, %v3475_v59  ;;  %2411 = vmatpush.bf16.msra.mxu1 %v3941_v22 }
  0xd1   : > { %1982 = vmatmul.bf16.gmra.mxu1 %v3479_v54 }
  0xd2   : > { %v893_v8 = vpop.f32.mrf.mxu2 }
  0xd3   : > { %v1131_v9 = vpop.f32.mrf.mxu3  ;;  %v923_v11 = vadd.f32 %v4564_v15, %v893_v8  ;;  %v676_v17 = vpop.f32.mrf.mxu0  ;;  %v3480_v15 = vld [vmem:[%s4586_s19 + $0x18] sm:$0xf0] }
  0xd4   : > { %v4658_v12 = vadd.f32 %v1131_v9, %v1102_v39  ;;  %v706_v18 = vadd.f32 %v4534_v62, %v676_v17  ;;  %v3380_v62 = vld [vmem:[%s4443_s11 + $0x38] sm:$0xf0]  ;;  %v3483_v34 = vor.u32 %v3892_v25, %v3480_v15  ;;  %2412 = vmatpush.bf16.msra.mxu1 %v3940_v49  ;;  %v3918_v17 = vld [vmem:[%s4914_s3 + $0x2a0] sm:$0xff]  ;;  %v3494_v15 = vld [vmem:[%s4586_s19 + $0x30] sm:$0xf] }
  0xd5   : > { %v4661_v19 = vadd.f32 %v923_v11, %v717_v10  ;;  %v3383_v39 = vor.u32 %v3874_v30, %v3380_v62  ;;  %v3491_v11 = vor.u32 %v3894_v3, %v3488_v2  ;;  %v3897_v30 = vld [vmem:[%s4586_s19 + $0x34] sm:$0xf0]  ;;  %2195 = vmatpush.bf16.msra.mxu0 %v3918_v17  ;;  %v3910_v49 = vld [vmem:[%s4586_s19 + $0xc] sm:$0xf] }
  0xd6   : > { %v1109_v28 = vpop.f32.mrf.mxu1  ;;  %v718_v35 = vadd.f32 %v4649_v4, %v706_v18 }
  0xd8   : > { %2413 = vmatpush.bf16.msra.mxu1 %v3939_v61  ;;  %v3686_v61 = vld [vmem:[%s4586_s19 + $0x10] sm:$0xf] }
  0xda   : > { %v895_v31 = vpop.f32.mrf.mxu2 }
  0xdb   : > { %v1133_v32 = vpop.f32.mrf.mxu3  ;;  %v925_v36 = vadd.f32 %v4590_v27, %v895_v31  ;;  %v679_v38 = vpop.f32.mrf.mxu0  ;;  %v3487_v27 = vor.u32 %v3895_v45, %v3486_v44  ;;  %v3877_v44 = vld [vmem:[%s4443_s11 + $0x44] sm:$0xf0]  ;;  %v3896_v45 = vld [vmem:[%s4586_s19 + $0x34] sm:$0xf] }
  0xdc   : > { %v4677_v37 = vadd.f32 %v1133_v32, %v1104_v50  ;;  %v709_v40 = vadd.f32 %v4560_v13, %v679_v38  ;;  %v3926_v13 = vld [vmem:[%s4914_s3 + $0x2e0] sm:$0xff] }
  0xdd   : > { %v4682_v46 = vadd.f32 %v925_v36, %v718_v35  ;;  %v3946_v50 = vld [vmem:[%s4914_s3 + $0x340] sm:$0xff]  ;;  %2224 = vmatpush.bf16.msra.mxu2 %v3926_v13 }
  0xde   : > { %1763 = vmatmul.bf16.gmra.mxu0 %v3371_v33  ;;  %v1112_v48 = vpop.f32.mrf.mxu1  ;;  %v719_v53 = vadd.f32 %v4649_v4, %v709_v40  ;;  %2443 = vmatpush.bf16.msra.mxu3 %v3946_v50  ;;  %v3386_v40 = vld [vmem:[%s4443_s11 + $0x40] sm:$0xf] }
  0xdf   : > { %3442 = vmatmul.msk.bf16.gmra.mxu2 %vm642_vm0, %v3383_v39 }
  0xe0   : > { %3549 = vmatmul.msk.bf16.gmra.mxu3 %vm642_vm0, %v3483_v34 }
  0xe1   : > { %1987 = vmatmul.bf16.gmra.mxu1 %v3487_v27 }
  0xe2   : > { %v898_v51 = vpop.f32.mrf.mxu2 }
  0xe3   : > { %v1136_v52 = vpop.f32.mrf.mxu3  ;;  %v928_v56 = vadd.f32 %v4610_v41, %v898_v51  ;;  %v681_v59 = vpop.f32.mrf.mxu0  ;;  %v3378_v41 = vld [vmem:[%s4443_s11 + $0x30] sm:$0xf]  ;;  %v3387_v51 = vor.u32 %v3877_v44, %v3386_v40 }
  0xe4   : > { %v4700_v58 = vadd.f32 %v1136_v52, %v1107_v7  ;;  %v711_v60 = vadd.f32 %v4579_v23, %v681_v59  ;;  %v3388_v23 = vld [vmem:[%s4443_s11 + $0x48] sm:$0xf0]  ;;  %v3938_v7 = vld [vmem:[%s4914_s3 + $0x300] sm:$0xff]  ;;  %v3379_v10 = vor.u32 %v3875_v1, %v3378_v41  ;;  %v3499_v52 = vor.u32 %v3896_v45, %v3496_v47  ;;  %v3586_v45 = vld [vmem:[%s4586_s19 + $0x18] sm:$0xf]  ;;  %s2815_s11 = sshll.u32 %s4937_s24, 3 }
  0xe5   : > { %v4706_v63 = vadd.f32 %v928_v56, %v719_v53  ;;  %2414 = vmatpush.bf16.msra.mxu1 %v3938_v7  ;;  %v3391_v24 = vor.u32 %v3876_v6, %v3388_v23  ;;  %v3913_v47 = vld [vmem:[%s4586_s19 + $0x1c] sm:$0xf0] }
  0xe6   : > { %v1114_v54 = vpop.f32.mrf.mxu1  ;;  %v720_v18 = vadd.f32 %v4649_v4, %v711_v60 }
  0xea   : > { %v900_v8 = vpop.f32.mrf.mxu2 }
  0xeb   : > { %v1138_v9 = vpop.f32.mrf.mxu3  ;;  %v930_v20 = vadd.f32 %v4629_v55, %v900_v8  ;;  %v693_v22 = vpop.f32.mrf.mxu0  ;;  %v3495_v55 = vor.u32 %v3897_v30, %v3494_v15 }
  0xec   : > { %v4725_v21 = vadd.f32 %v1138_v9, %v1109_v28  ;;  %v694_v25 = vadd.f32 %v693_v22, %v4546_v5  ;;  %v3588_v22 = vld [vmem:[%s4586_s19 + $0x20] sm:$0xf0] }
  0xed   : > { %v4730_v62 = vadd.f32 %v930_v20, %v720_v18  ;;  %v3688_v18 = vld [vmem:[%s4586_s19 + $0x18] sm:$0xf0] }
  0xee   : > { %1768 = vmatmul.bf16.gmra.mxu0 %v3379_v10  ;;  %v1117_v28 = vpop.f32.mrf.mxu1  ;;  %v713_v5 = vadd.f32 %v4649_v4, %v694_v25  ;;  %v3578_v10 = vld [vmem:[%s4586_s19 + $0x8] sm:$0xf] }
  0xef   : > { %3443 = vmatmul.msk.bf16.gmra.mxu2 %vm642_vm0, %v3391_v24 }
  0xf0   : > { %3550 = vmatmul.msk.bf16.gmra.mxu3 %vm642_vm0, %v3491_v11  ;;  %v3911_v11 = vld [vmem:[%s4586_s19 + $0xc] sm:$0xf0] }
  0xf1   : > { %1992 = vmatmul.bf16.gmra.mxu1 %v3495_v55  ;;  %v3579_v25 = vor.u32 %v3911_v11, %v3578_v10  ;;  %v3704_v10 = vld [vmem:[%s4586_s19 + $0x38] sm:$0xf0] }
  0xf2   : > { %v912_v31 = vpop.f32.mrf.mxu2 }
  0xf3   : > { %v1141_v32 = vpop.f32.mrf.mxu3  ;;  %v913_v33 = vadd.f32 %v912_v31, %v4562_v14  ;;  %v695_v35 = vpop.f32.mrf.mxu0  ;;  %v3580_v14 = vld [vmem:[%s4586_s19 + $0x10] sm:$0xf0]  ;;  %v3694_v31 = vld [vmem:[%s4586_s19 + $0x20] sm:$0xf] }
  0xf4   : > { %v1142_v34 = vadd.f32 %v1141_v32, %v1112_v48  ;;  %v696_v36 = vadd.f32 %v695_v35, %v4566_v16  ;;  %v3583_v59 = vor.u32 %v3910_v49, %v3580_v14  ;;  %v3933_v32 = vld [vmem:[%s4586_s19 + $0x24] sm:$0xf0]  ;;  %v3914_v14 = vld [vmem:[%s4586_s19 + $0x2c] sm:$0xf] }
  0xf5   : > { %v932_v38 = vadd.f32 %v913_v33, %v713_v5 }
  0xf6   : > { %v4738_v39 = vadd.f32 %v1142_v34, %v4661_v19  ;;  %v1119_v13 = vpop.f32.mrf.mxu1  ;;  %v714_v16 = vadd.f32 %v4649_v4, %v696_v36 }
  0xf7   : > { %v1151_v27 = vadd.f32 %v4658_v12, %v932_v38 }
  0xfa   : > { %v914_v48 = vpop.f32.mrf.mxu2 }
  0xfb   : > { %v1143_v50 = vpop.f32.mrf.mxu3  ;;  %v915_v19 = vadd.f32 %v914_v48, %v4588_v26  ;;  %v698_v56 = vpop.f32.mrf.mxu0  ;;  %v3687_v26 = vor.u32 %v3931_v0, %v3686_v61  ;;  %v3596_v48 = vld [vmem:[%s4586_s19 + $0x30] sm:$0xf0]  ;;  %v3935_v61 = vld [vmem:[%s4586_s19 + $0x34] sm:$0xf0] }
  0xfc   : > { %v1144_v53 = vadd.f32 %v1143_v50, %v1114_v54  ;;  %v699_v60 = vadd.f32 %v698_v56, %v4592_v29  ;;  %v3599_v56 = vor.u32 %v3914_v14, %v3596_v48 }
  0xfd   : > { %v933_v41 = vadd.f32 %v915_v19, %v714_v16 }
  0xfe   : > { %v4753_v12 = vadd.f32 %v1144_v53, %v4682_v46  ;;  %v715_v1 = vadd.f32 %v4649_v4, %v699_v60  ;;  %1773 = vmatmul.bf16.gmra.mxu0 %v3387_v51  ;;  %v1540_v2 = vpop.f32.mrf.mxu1  ;;  %v3587_v51 = vor.u32 %v3913_v47, %v3586_v45  ;;  %v3702_v60 = vld [vmem:[%s4586_s19 + $0x30] sm:$0xf] }
  0xff   : > { %3656 = vmatmul.msk.bf16.vlgmr.msra.gmra.mxu2 %vm642_vm0, %v3583_v59  ;;  %v1152_v3 = vadd.f32 %v4677_v37, %v933_v41 }
 0x100   : > { %3551 = vmatmul.msk.bf16.gmra.mxu3 %vm642_vm0, %v3499_v52  ;;  %v934_v29 = vadd.f32 %v4613_v42, %v715_v1  ;;  %v3930_v42 = vld [vmem:[%s4586_s19 + $0x14] sm:$0xf]  ;;  %v3703_v1 = vor.u32 %v3935_v61, %v3702_v60 }
 0x101   : > { %2415 = vmatmul.bf16.vlgmr.msra.gmra.mxu1 %v3687_v26  ;;  %v3691_v55 = vor.u32 %v3930_v42, %v3688_v18  ;;  %v3916_v42 = vld [vmem:[%s4586_s19 + $0x3c] sm:$0xf] }
 0x102   : > { %v1350_v54 = vpop.f32.mrf.mxu2  ;;  %v1153_v6 = vadd.f32 %v4700_v58, %v934_v29  ;;  %v3912_v58 = vld [vmem:[%s4586_s19 + $0x1c] sm:$0xf] }
 0x103   : > { %v1146_v46 = vpop.f32.mrf.mxu3  ;;  %v700_v7 = vpop.f32.mrf.mxu0 }
 0x104   : > { %v1147_v23 = vadd.f32 %v1146_v46, %v1117_v28  ;;  %v701_v8 = vadd.f32 %v700_v7, %v4615_v43  ;;  %v3594_v7 = vld [vmem:[%s4586_s19 + $0x28] sm:$0xf] }
 0x106   : > { %v4763_v9 = vadd.f32 %v1147_v23, %v4706_v63  ;;  %v716_v37 = vadd.f32 %v4649_v4, %v701_v8  ;;  %v1542_v20 = vpop.f32.mrf.mxu1  ;;  %v3591_v4 = vor.u32 %v3912_v58, %v3588_v22  ;;  %v3915_v8 = vld [vmem:[%s4586_s19 + $0x2c] sm:$0xf0] }
 0x108   : > { %v935_v17 = vadd.f32 %v4632_v57, %v716_v37  ;;  %v3934_v37 = vld [vmem:[%s4586_s19 + $0x34] sm:$0xf] }
 0x10a   : > { %v1352_v15 = vpop.f32.mrf.mxu2  ;;  %v1154_v43 = vadd.f32 %v4725_v21, %v935_v17  ;;  %v3695_v21 = vor.u32 %v3933_v32, %v3694_v31  ;;  %v3604_v17 = vld [vmem:[%s4586_s19 + $0x40] sm:$0xf0] }
 0x10b   : > { %v1148_v24 = vpop.f32.mrf.mxu3  ;;  %v1321_v30 = vpop.f32.mrf.mxu0 }
 0x10c   : > { %v1149_v63 = vadd.f32 %v1148_v24, %v1119_v13  ;;  %v1351_v28 = vadd.f32 %v1350_v54, %v1321_v30  ;;  %v3696_v13 = vld [vmem:[%s4586_s19 + $0x28] sm:$0xf0]  ;;  %v3710_v30 = vld [vmem:[%s4586_s19 + $0x40] sm:$0xf] }
 0x10e   : > { %v4777_v5 = vadd.f32 %v1149_v63, %v4730_v62  ;;  %v1370_v57 = vadd.f32 %v1351_v28, %v1151_v27  ;;  %2196 = vmatmul.bf16.vlgmr.msra.gmra.mxu0 %v3579_v25  ;;  %v1545_v33 = vpop.f32.mrf.mxu1  ;;  %v3932_v27 = vld [vmem:[%s4586_s19 + $0x24] sm:$0xf]  ;;  %v3707_v25 = vor.u32 %v3934_v37, %v3704_v10 }
 0x10f   : > { %3657 = vmatmul.msk.bf16.gmra.mxu2 %vm642_vm0, %v3591_v4  ;;  %v3699_v53 = vor.u32 %v3932_v27, %v3696_v13 }
 0x110   : > { %3764 = vmatmul.msk.bf16.vlgmr.msra.gmra.mxu3 %vm642_vm0, %v3691_v55  ;;  %v3937_v55 = vld [vmem:[%s4586_s19 + $0x44] sm:$0xf0] }
 0x111   : > { %2420 = vmatmul.bf16.gmra.mxu1 %v3695_v21  ;;  %v3711_v28 = vor.u32 %v3937_v55, %v3710_v30 }
 0x112   : > { %v1355_v35 = vpop.f32.mrf.mxu2 }
 0x113   : > { %v1569_v34 = vpop.f32.mrf.mxu3  ;;  %v1323_v38 = vpop.f32.mrf.mxu0 }
 0x114   : > { %v1570_v36 = vadd.f32 %v1569_v34, %v1540_v2  ;;  %v1353_v62 = vadd.f32 %v1352_v15, %v1323_v38  ;;  %v3607_v15 = vor.u32 %v3916_v42, %v3604_v17  ;;  %v3602_v38 = vld [vmem:[%s4586_s19 + $0x38] sm:$0xf] }
 0x116   : > { %v4781_v40 = vadd.f32 %v1570_v36, %v1370_v57  ;;  %v1371_v44 = vadd.f32 %v1353_v62, %v1152_v3  ;;  %v1547_v49 = vpop.f32.mrf.mxu1  ;;  %v3936_v62 = vld [vmem:[%s4586_s19 + $0x44] sm:$0xf] }
 0x11a   : > { %v1357_v52 = vpop.f32.mrf.mxu2 }
 0x11b   : > { %v1571_v50 = vpop.f32.mrf.mxu3  ;;  %v1326_v19 = vpop.f32.mrf.mxu0 }
 0x11c   : > { %v1572_v16 = vadd.f32 %v1571_v50, %v1542_v20  ;;  %v1356_v59 = vadd.f32 %v1355_v35, %v1326_v19  ;;  %v3595_v20 = vor.u32 %v3915_v8, %v3594_v7 }
 0x11e   : > { %v4791_v0 = vadd.f32 %v1572_v16, %v1371_v44  ;;  %v1372_v41 = vadd.f32 %v1356_v59, %v1153_v6  ;;  %2201 = vmatmul.bf16.gmra.mxu0 %v3587_v51  ;;  %v1550_v26 = vpop.f32.mrf.mxu1  ;;  %v3712_v44 = vld [vmem:[%s4586_s19 + $0x48] sm:$0xf0] }
 0x11f   : > { %3658 = vmatmul.msk.bf16.gmra.mxu2 %vm642_vm0, %v3599_v56  ;;  %v3715_v48 = vor.u32 %v3936_v62, %v3712_v44 }
 0x120   : > { %3765 = vmatmul.msk.bf16.gmra.mxu3 %vm642_vm0, %v3699_v53 }
 0x121   : > { %2425 = vmatmul.bf16.gmra.mxu1 %v3703_v1 }
 0x122   : > { %v1360_v29 = vpop.f32.mrf.mxu2 }
 0x123   : > { %v1574_v3 = vpop.f32.mrf.mxu3  ;;  %v1328_v46 = vpop.f32.mrf.mxu0 }
 0x124   : > { %v1575_v2 = vadd.f32 %v1574_v3, %v1545_v33  ;;  %v1358_v54 = vadd.f32 %v1357_v52, %v1328_v46 }
 0x126   : > { %v4795_v23 = vadd.f32 %v1575_v2, %v1372_v41  ;;  %v1373_v6 = vadd.f32 %v1358_v54, %v1154_v43  ;;  %v1552_v11 = vpop.f32.mrf.mxu1 }
 0x12a   : > { %v1362_v58 = vpop.f32.mrf.mxu2 }
 0x12b   : > { %v1576_v18 = vpop.f32.mrf.mxu3  ;;  %v1331_v24 = vpop.f32.mrf.mxu0 }
 0x12c   : > { %v1577_v22 = vadd.f32 %v1576_v18, %v1547_v49  ;;  %v1361_v63 = vadd.f32 %v1360_v29, %v1331_v24 }
 0x12e   : > { %v4805_v43 = vadd.f32 %v1577_v22, %v1373_v6  ;;  %v1374_v4 = vadd.f32 %v1361_v63, %v4738_v39  ;;  %2206 = vmatmul.bf16.gmra.mxu0 %v3595_v20  ;;  %v1555_v31 = vpop.f32.mrf.mxu1  ;;  %v3917_v39 = vld [vmem:[%s4586_s19 + $0x3c] sm:$0xf0]  ;;  %s2816_s19 = sshll.u32 %s4931_s25, 5 }
 0x12f   : > { %3659 = vmatmul.msk.bf16.gmra.mxu2 %vm642_vm0, %v3607_v15  ;;  %v3603_v27 = vor.u32 %v3917_v39, %v3602_v38  ;;  %s473_s20 = sadd.s32 %s2816_s19, %s2815_s11 }
 0x130   : > { %3766 = vmatmul.msk.bf16.gmra.mxu3 %vm642_vm0, %v3707_v25  ;;  %s2817_s22 = sshll.u32 %s473_s20, 2 }
 0x131   : > { %2430 = vmatmul.bf16.gmra.mxu1 %v3711_v28  ;;  %s4864_s10 = scalar_lea.vmem %s4916_s5, %s2817_s22 }
 0x132   : > { %v1365_v57 = vpop.f32.mrf.mxu2 }
 0x133   : > { %v1579_v32 = vpop.f32.mrf.mxu3  ;;  %v1333_v33 = vpop.f32.mrf.mxu0 }
 0x134   : > { %v1580_v21 = vadd.f32 %v1579_v32, %v1550_v26  ;;  %v1363_v34 = vadd.f32 %v1362_v58, %v1333_v33 }
 0x136   : > { %v1593_v35 = vadd.f32 %v1580_v21, %v1374_v4  ;;  %v1375_v36 = vadd.f32 %v1363_v34, %v4753_v12  ;;  %v1557_v45 = vpop.f32.mrf.mxu1 }
 0x13a   : > { %v1367_v13 = vpop.f32.mrf.mxu2 }
 0x13b   : > { %v1581_v47 = vpop.f32.mrf.mxu3  ;;  %v1336_v14 = vpop.f32.mrf.mxu0 }
 0x13c   : > { %v1582_v49 = vadd.f32 %v1581_v47, %v1552_v11  ;;  %v1366_v50 = vadd.f32 %v1365_v57, %v1336_v14 }
 0x13e   : > { %v4815_v51 = vadd.f32 %v1582_v49, %v1375_v36  ;;  %v1376_v52 = vadd.f32 %v1366_v50, %v4763_v9  ;;  %2211 = vmatmul.bf16.gmra.mxu0 %v3603_v27  ;;  %v1978_v12 = vpop.f32.mrf.mxu1 }
 0x140   : > { %3767 = vmatmul.msk.bf16.gmra.mxu3 %vm642_vm0, %v3715_v48 }
 0x142   : > { %v1788_v19 = vpop.f32.mrf.mxu2 }
 0x143   : > { %v1584_v16 = vpop.f32.mrf.mxu3  ;;  %v1338_v56 = vpop.f32.mrf.mxu0 }
 0x144   : > { %v1585_v53 = vadd.f32 %v1584_v16, %v1555_v31  ;;  %v1368_v59 = vadd.f32 %v1367_v13, %v1338_v56 }
 0x146   : > { %v1595_v60 = vadd.f32 %v1585_v53, %v1376_v52  ;;  %v1377_v61 = vadd.f32 %v1368_v59, %v4777_v5  ;;  %v1980_v41 = vpop.f32.mrf.mxu1 }
 0x14a   : > { %v1790_v26 = vpop.f32.mrf.mxu2 }
 0x14b   : > { %v1586_v1 = vpop.f32.mrf.mxu3  ;;  %v1759_v29 = vpop.f32.mrf.mxu0 }
 0x14c   : > { %v1587_v3 = vadd.f32 %v1586_v1, %v1557_v45  ;;  %v1789_v2 = vadd.f32 %v1788_v19, %v1759_v29 }
 0x14e   : > { %v4820_v46 = vadd.f32 %v1587_v3, %v1377_v61  ;;  %v1808_v9 = vadd.f32 %v1789_v2, %v4781_v40  ;;  %v1983_v54 = vpop.f32.mrf.mxu1 }
 0x152   : > { %v1793_v7 = vpop.f32.mrf.mxu2 }
 0x153   : > { %v2007_v6 = vpop.f32.mrf.mxu3  ;;  %v1761_v37 = vpop.f32.mrf.mxu0 }
 0x154   : > { %v2008_v8 = vadd.f32 %v2007_v6, %v1978_v12  ;;  %v1791_v19 = vadd.f32 %v1790_v26, %v1761_v37 }
 0x156   : > { %v2027_v10 = vadd.f32 %v2008_v8, %v1808_v9  ;;  %v4823_v11 = vpop.f32.mrf.mxu1  ;;  %v1809_v1 = vadd.f32 %v1791_v19, %v4791_v0 }
 0x15a   : > { %v4825_v5 = vpop.f32.mrf.mxu2 }
 0x15b   : > { %v2009_v42 = vpop.f32.mrf.mxu3  ;;  %v1764_v17 = vpop.f32.mrf.mxu0 }
 0x15c   : > { %v1794_v18 = vadd.f32 %v1793_v7, %v1764_v17 }
 0x15e   : > { %v1810_v20 = vadd.f32 %v1794_v18, %v4795_v23  ;;  %v1988_v58 = vpop.f32.mrf.mxu1 }
 0x162   : > { %v1798_v24 = vpop.f32.mrf.mxu2 }
 0x163   : > { %v2012_v22 = vpop.f32.mrf.mxu3  ;;  %v4828_v40 = vpop.f32.mrf.mxu0 }
 0x164   : > { %v2013_v25 = vadd.f32 %v2012_v22, %v1983_v54 }
 0x166   : > { %v4830_v15 = vadd.f32 %v2013_v25, %v1810_v20  ;;  %v4832_v63 = vpop.f32.mrf.mxu1 }
 0x16a   : > { %v4836_v55 = vpop.f32.mrf.mxu2 }
 0x16b   : > { %v4834_v30 = vpop.f32.mrf.mxu3  ;;  %v1769_v4 = vpop.f32.mrf.mxu0 }
 0x16c   : > { %v1799_v28 = vadd.f32 %v1798_v24, %v1769_v4  ;;  %v1796_v24 = vadd.f32 %v4825_v5, %v4828_v40 }
 0x16e   : > { %v1812_v31 = vadd.f32 %v1799_v28, %v1593_v35  ;;  %v1993_v32 = vpop.f32.mrf.mxu1 }
 0x172   : > { %v1803_v23 = vpop.f32.mrf.mxu2 }
 0x173   : > { %v2017_v57 = vpop.f32.mrf.mxu3  ;;  %v4838_v33 = vpop.f32.mrf.mxu0 }
 0x174   : > { %v2018_v21 = vadd.f32 %v2017_v57, %v1988_v58  ;;  %v1811_v57 = vadd.f32 %v1796_v24, %v4805_v43  ;;  %v1801_v19 = vadd.f32 %v4836_v55, %v4838_v33 }
 0x176   : > { %v4840_v34 = vadd.f32 %v2018_v21, %v1812_v31  ;;  %v4842_v36 = vpop.f32.mrf.mxu1  ;;  %v2015_v31 = vadd.f32 %v4834_v30, %v4823_v11 }
 0x17a   : > { %v4846_v39 = vpop.f32.mrf.mxu2 }
 0x17b   : > { %v4844_v38 = vpop.f32.mrf.mxu3  ;;  %v1774_v62 = vpop.f32.mrf.mxu0 }
 0x17c   : > { %v1804_v44 = vadd.f32 %v1803_v23, %v1774_v62 }
 0x17e   : > { %v1814_v45 = vadd.f32 %v1804_v44, %v1595_v60  ;;  %v2416_v49 = vpop.f32.mrf.mxu1  ;;  %v2010_v60 = vadd.f32 %v2009_v42, %v1980_v41 }
 0x180   : > { %v2028_v9 = vadd.f32 %v2010_v60, %v1809_v1  ;;  %v2020_v60 = vadd.f32 %v4844_v38, %v4832_v63 }
 0x182   : > { %v2226_v47 = vpop.f32.mrf.mxu2 }
 0x183   : > { %v2022_v35 = vpop.f32.mrf.mxu3  ;;  %v4848_v13 = vpop.f32.mrf.mxu0 }
 0x184   : > { %v2023_v27 = vadd.f32 %v2022_v35, %v1993_v32 }
 0x186   : > { %v4850_v14 = vadd.f32 %v2023_v27, %v1814_v45  ;;  %v2418_v12 = vpop.f32.mrf.mxu1  ;;  %v2030_v45 = vadd.f32 %v2015_v31, %v1811_v57 }
 0x18a   : > { %v2228_v50 = vpop.f32.mrf.mxu2 }
 0x18b   : > { %v4852_v48 = vpop.f32.mrf.mxu3  ;;  %v2197_v52 = vpop.f32.mrf.mxu0 }
 0x18c   : > { %v2227_v56 = vadd.f32 %v2226_v47, %v2197_v52 }
 0x18e   : > { %v2246_v29 = vadd.f32 %v2227_v56, %v2027_v10  ;;  %v2421_v2 = vpop.f32.mrf.mxu1 }
 0x192   : > { %v2231_v59 = vpop.f32.mrf.mxu2 }
 0x193   : > { %v2445_v16 = vpop.f32.mrf.mxu3  ;;  %v2199_v53 = vpop.f32.mrf.mxu0 }
 0x194   : > { %v2446_v61 = vadd.f32 %v2445_v16, %v2416_v49  ;;  %v2229_v3 = vadd.f32 %v2228_v50, %v2199_v53 }
 0x196   : > { %v2465_v54 = vadd.f32 %v2446_v61, %v2246_v29  ;;  %v2247_v7 = vadd.f32 %v2229_v3, %v2028_v9  ;;  %v2423_v58 = vpop.f32.mrf.mxu1  ;;  %v1813_v3 = vadd.f32 %v1801_v19, %v4815_v51 }
 0x198   : > { %v2503_v17 = vmul.f32 %v2465_v54, %v2465_v54 }
 0x19a   : > { %v2233_v0 = vpop.f32.mrf.mxu2 }
 0x19b   : > { %v2447_v6 = vpop.f32.mrf.mxu3  ;;  %v2202_v26 = vpop.f32.mrf.mxu0 }
 0x19c   : > { %v2448_v8 = vadd.f32 %v2447_v6, %v2418_v12  ;;  %v2232_v18 = vadd.f32 %v2231_v59, %v2202_v26 }
 0x19e   : > { %v2466_v37 = vadd.f32 %v2448_v8, %v2247_v7  ;;  %v2248_v25 = vadd.f32 %v2232_v18, %v4830_v15  ;;  %v2426_v15 = vpop.f32.mrf.mxu1 }
 0x1a0   : > { %v3953_v41 = vpack.c.bf16 %v2466_v37, %v2465_v54  ;;  %v2489_v10 = vadd.f32 %v2466_v37, %v2465_v54  ;;  %v2504_v42 = vmul.f32 %v2466_v37, %v2466_v37  ;;  %v2032_v54 = vadd.f32 %v2020_v60, %v1813_v3 }
 0x1a2   : > { %3954 = vst [vmem:[%s4864_s10] sm:$0xff] %v3953_v41   ;;  %v2511_v20 = vadd.f32 %v2504_v42, %v2503_v17  ;;  %v2236_v44 = vpop.f32.mrf.mxu2 }
 0x1a3   : > { %v2450_v22 = vpop.f32.mrf.mxu3  ;;  %v2204_v28 = vpop.f32.mrf.mxu0 }
 0x1a4   : > { %v2451_v4 = vadd.f32 %v2450_v22, %v2421_v2  ;;  %v2234_v62 = vadd.f32 %v2233_v0, %v2204_v28 }
 0x1a6   : > { %v2467_v32 = vadd.f32 %v2451_v4, %v2248_v25  ;;  %v2249_v27 = vadd.f32 %v2234_v62, %v2030_v45  ;;  %v2428_v1 = vpop.f32.mrf.mxu1 }
 0x1a8   : > { %v2490_v23 = vadd.f32 %v2489_v10, %v2467_v32  ;;  %v2505_v21 = vmul.f32 %v2467_v32, %v2467_v32  ;;  %v1806_v10 = vadd.f32 %v4846_v39, %v4848_v13 }
 0x1aa   : > { %v2512_v35 = vadd.f32 %v2511_v20, %v2505_v21  ;;  %v2238_v43 = vpop.f32.mrf.mxu2  ;;  %v1815_v25 = vadd.f32 %v1806_v10, %v4820_v46 }
 0x1ab   : > { %v2452_v47 = vpop.f32.mrf.mxu3  ;;  %v2207_v40 = vpop.f32.mrf.mxu0 }
 0x1ac   : > { %v2453_v5 = vadd.f32 %v2452_v47, %v2423_v58  ;;  %v2237_v11 = vadd.f32 %v2236_v44, %v2207_v40  ;;  %v2025_v58 = vadd.f32 %v4852_v48, %v4842_v36 }
 0x1ae   : > { %v2468_v49 = vadd.f32 %v2453_v5, %v2249_v27  ;;  %v2250_v53 = vadd.f32 %v2237_v11, %v4840_v34  ;;  %v2431_v38 = vpop.f32.mrf.mxu1 }
 0x1b0   : > { %v3958_v50 = vpack.c.bf16 %v2468_v49, %v2467_v32  ;;  %v2491_v52 = vadd.f32 %v2490_v23, %v2468_v49  ;;  %v2506_v12 = vmul.f32 %v2468_v49, %v2468_v49  ;;  %v2034_v32 = vadd.f32 %v2025_v58, %v1815_v25 }
 0x1b2   : > { %3970 = vst [vmem:[%s4864_s10 + $0x8] sm:$0xff] %v3958_v50   ;;  %v2513_v30 = vadd.f32 %v2512_v35, %v2506_v12  ;;  %v2241_v34 = vpop.f32.mrf.mxu2 }
 0x1b3   : > { %v2455_v16 = vpop.f32.mrf.mxu3  ;;  %v2209_v59 = vpop.f32.mrf.mxu0 }
 0x1b4   : > { %v2456_v56 = vadd.f32 %v2455_v16, %v2426_v15  ;;  %v2239_v9 = vadd.f32 %v2238_v43, %v2209_v59 }
 0x1b6   : > { %v2469_v61 = vadd.f32 %v2456_v56, %v2250_v53  ;;  %v2251_v8 = vadd.f32 %v2239_v9, %v2032_v54  ;;  %v2433_v23 = vpop.f32.mrf.mxu1 }
 0x1b8   : > { %v2492_v29 = vadd.f32 %v2491_v52, %v2469_v61  ;;  %v2507_v2 = vmul.f32 %v2469_v61, %v2469_v61 }
 0x1ba   : > { %v2514_v6 = vadd.f32 %v2513_v30, %v2507_v2  ;;  %v2243_v24 = vpop.f32.mrf.mxu2 }
 0x1bb   : > { %v2457_v7 = vpop.f32.mrf.mxu3  ;;  %v2212_v33 = vpop.f32.mrf.mxu0 }
 0x1bc   : > { %v2458_v55 = vadd.f32 %v2457_v7, %v2428_v1  ;;  %v2242_v63 = vadd.f32 %v2241_v34, %v2212_v33 }
 0x1be   : > { %v2470_v26 = vadd.f32 %v2458_v55, %v2251_v8  ;;  %v2252_v42 = vadd.f32 %v2242_v63, %v4850_v14 }
 0x1c0   : > { %v3963_v37 = vpack.c.bf16 %v2470_v26, %v2469_v61  ;;  %v2493_v17 = vadd.f32 %v2492_v29, %v2470_v26  ;;  %v2508_v0 = vmul.f32 %v2470_v26, %v2470_v26 }
 0x1c2   : > { %3971 = vst [vmem:[%s4864_s10 + $0x10] sm:$0xff] %v3963_v37   ;;  %v2515_v41 = vadd.f32 %v2514_v6, %v2508_v0 }
 0x1c3   : > { %v2460_v51 = vpop.f32.mrf.mxu3  ;;  %v2214_v20 = vpop.f32.mrf.mxu0 }
 0x1c4   : > { %v2461_v18 = vadd.f32 %v2460_v51, %v2431_v38  ;;  %v2244_v31 = vadd.f32 %v2243_v24, %v2214_v20 }
 0x1c6   : > { %v2471_v22 = vadd.f32 %v2461_v18, %v2252_v42  ;;  %v2253_v13 = vadd.f32 %v2244_v31, %v2034_v32 }
 0x1c8   : > { %v2494_v4 = vadd.f32 %v2493_v17, %v2471_v22  ;;  %v2509_v28 = vmul.f32 %v2471_v22, %v2471_v22 }
 0x1ca   : > { %v2516_v57 = vadd.f32 %v2515_v41, %v2509_v28 }
 0x1cb   : > { %v2462_v39 = vpop.f32.mrf.mxu3 }
 0x1cc   : > { %v2463_v14 = vadd.f32 %v2462_v39, %v2433_v23 }
 0x1ce   : > { %v2472_v21 = vadd.f32 %v2463_v14, %v2253_v13 }
 0x1d0   : > { %v3968_v62 = vpack.c.bf16 %v2472_v21, %v2471_v22  ;;  %v2495_v44 = vadd.f32 %v2494_v4, %v2472_v21  ;;  %v2510_v36 = vmul.f32 %v2472_v21, %v2472_v21 }
 0x1d2   : > { %3972 = vst [vmem:[%s4864_s10 + $0x18] sm:$0xff] %v3968_v62   ;;  %v2496_v48 = vrot.slane %v2495_v44, 4  ;;  %v2517_v45 = vadd.f32 %v2516_v57, %v2510_v36 }
 0x1d4   : > { %v2497_v35 = vadd.f32 %v2496_v48, %v2495_v44  ;;  %v2518_v46 = vrot.slane %v2517_v45, 4 }
 0x1d6   : > { %v2498_v47 = vrot.slane %v2497_v35, 2  ;;  %v2519_v27 = vadd.f32 %v2518_v46, %v2517_v45 }
 0x1d8   : > { %v2499_v5 = vadd.f32 %v2498_v47, %v2497_v35  ;;  %v2520_v40 = vrot.slane %v2519_v27, 2 }
 0x1da   : > { %v2500_v15 = vrot.slane %v2499_v5, 1  ;;  %v2521_v49 = vadd.f32 %v2520_v40, %v2519_v27 }
 0x1dc   : > { %v2501_v50 = vadd.f32 %v2500_v15, %v2499_v5  ;;  %v2522_v52 = vrot.slane %v2521_v49, 1 }
 0x1de   : > { %2502 = vst [vmem:[%s485_s15] sm:$0x1] %v2501_v50  ;;  %v2523_v12 = vadd.f32 %v2522_v52, %v2521_v49 }
 0x1e0   : > { %2524 = vst [vmem:[%s495_s23] sm:$0x1] %v2523_v12 }
 0x1e1 PF: > { %s18_s28 = sadd.s32 1, %s4064_s28   ;;  %s4920_s24 = smov %s4056_s26 }
 0x1e2   : > { %p15_p10 = scmp.ge.s32.totalorder %s18_s28, 10   ;;  %s4921_s25 = smov %s4060_s27 }
 0x1e3   : > { %s4922_s26 = smov %s4925_s29  ;;  %s4923_s27 = smov %s4929_s30 }
 0x1e4   :  { %17 = sbr.rel (!%p15_p10) target bundleno = 3 (0x3), region = 114 }

// kernel: resblock_down_forward.9
= control target key start
LH: loop header
LB: loop body
LE: loop exit
PB: predicated region body
PF: predicated region fallthrough
CT: control target
= control target key end

     0   :  { %9 = vsyncpa [#allocation3], 0  ;;  %s1197_s0 = inlined_call_operand.vmem [shape: bf16[2,256,128], index: 0, kind: input, shape index: {}]   ;;  %s1198_s1 = inlined_call_operand.vmem [shape: f32[2,1,128], index: 1, kind: input, shape index: {}]   ;;  %s1199_s2 = inlined_call_operand.vmem [shape: f32[2,1,128], index: 2, kind: input, shape index: {}]   ;;  %s1200_s3 = inlined_call_operand.vmem [shape: bf16[2,256,128], index: 3, kind: input, shape index: {}]   ;;  %s1201_s4 = inlined_call_operand.hbm [shape: bf16[2,256,128], index: 4, kind: output, shape index: {}]  }
   0x1   :  { %11 = vsyncpa [#allocation3 + $0x1], 0  ;;  %s984_s15 = smov 0   ;;  %s986_s16 = smov 0  }
   0x2   :  { %s988_s17 = smov 0   ;;  %s990_s18 = smov 0  }
   0x3   :  { %s992_s19 = smov 0   ;;  %s994_s20 = smov 0  }
   0x4   :  { %s996_s21 = smov 0   ;;  %s998_s22 = smov 0  }
   0x5 LB: > { %1206 = sst [smem:[#allocation5_spill]] %s947_s20  ;;  %s643_s23 = sadd.s32 4294967295, %s955_s22   ;;  %s955_s22 = sphi %s998_s22, %s17_s22   ;;  %s951_s21 = sphi %s996_s21, %s1215_s21   ;;  %s947_s20 = sphi %s994_s20, %s1214_s20   ;;  %s943_s19 = sphi %s992_s19, %s1213_s19   ;;  %s939_s18 = sphi %s990_s18, %s1212_s18   ;;  %s935_s17 = sphi %s988_s17, %s1218_s17   ;;  %s931_s16 = sphi %s986_s16, %s1217_s16   ;;  %s927_s15 = sphi %s984_s15, %s1216_s15  }
   0x6   : > { %1207 = sst [smem:[#allocation6_spill]] %s951_s21  ;;  %s644_s24 = sadd.s32 4294967294, %s955_s22  }
   0x7   : > { %s26_s25 = sadd.s32 1, %s947_s20  ;;  %s29_s26 = sadd.s32 1, %s951_s21 }
   0x8   : > { %p27_p0 = scmp.ge.s32.totalorder %s26_s25, 2  ;;  %p156_p1 = scmp.ne.s32.totalorder %s935_s17, %s931_s16 }
   0x9   : > { %p157_p2 = scmp.eq.s32.totalorder %s643_s23, 3  ;;  %p162_p5 = scmp.ne.s32.totalorder %s931_s16, %s927_s15 }
   0xa   : > { %s1220_s25 = smov (%p27_p0, %s26_s25), 0  ;;  %s1222_s26 = smov (!%p27_p0, %s29_s26), %s951_s21 }
   0xb   : > { %1208 = sst [smem:[#allocation7_spill]] %s1220_s25  ;;  %s142_s27 = ssub.s32 %s947_s20, %s1220_s25 }
   0xc   : > { %p1035_p3 = por %p157_p2, %p156_p1  ;;  %p31_p4 = scmp.ge.s32.totalorder %s1222_s26, 2 }
   0xd   : > { %p163_p6 = scmp.eq.s32.totalorder %s644_s24, 3  ;;  %p647_p7 = scmp.ge.s32.totalorder %s955_s22, 1 }
   0xe   : > { %s1224_s26 = smov (%p31_p4, %s1222_s26), 0  ;;  %p219_p9 = scmp.lt.s32.totalorder %s955_s22, 5 }
   0xf   : > { %1210 = sst [smem:[#allocation8_spill]] %s1224_s26  ;;  %p1044_p8 = por %p163_p6, %p162_p5 }
  0x10   : > { %s141_s30 = ssub.s32 %s951_s21, %s1224_s26  ;;  %s146_s5 = sadd.s32 1, %s935_s17 }
  0x11   : > { %s143_s6 = sor.u32 %s142_s27, %s141_s30  ;;  %p220_p10 = pnand %p647_p7, %p219_p9 }
  0x12   : > { %p144_p11 = scmp.eq.s32.totalorder %s143_s6, 0  ;;  %s1056_s8 = sshll.u32 (!%p220_p10), %s939_s18, 4 }
  0x13   : > { %223 = sbr.rel (%p220_p10) target bundleno = 82 (0x52), region = 36  ;;  %p265_p12 = scmp.lt.s32.totalorder (!%p220_p10), %s943_s19, 1 }
  0x14   : > { %s1053_s7 = scalar_select %p144_p11, %s935_s17, %s146_s5  }
  0x15   : > { %p267_p13 = scmp.lt.s32.totalorder (!%p220_p10), %s1056_s8, 31  ;;  %s261_s21 = sand.u32 (!%p220_p10), 1, %s931_s16  }
  0x16   : > { %s1104_s25 = sshll.u32 (!%p220_p10), %s261_s21, 6 }
  0x18   : > { %s266_s9 = scalar_select %p265_p12, %s943_s19, 1 }
  0x19   : > { %s268_s10 = scalar_select %p267_p13, %s1056_s8, 31 }
  0x1a   : > { %s650_s11 = sshll.u32 %s266_s9, 5  ;;  %s276_s14 = scalar_lea.vmem %s1198_s1, %s266_s9 }
  0x1b   : > { %s270_s23 = sadd.s32 %s650_s11, %s268_s10  ;;  %s279_s30 = scalar_lea.vmem %s1199_s2, %s266_s9  ;;  %v1078_v0 = vld [vmem:[%s276_s14] ss:$0 sm:$0xff] }
  0x1c   : > { %s651_s5 = sshll.u32 %s270_s23, 2  ;;  %v1080_v1 = vld [vmem:[%s279_s30] ss:$0 sm:$0xff]  ;;  %s1119_s9 = scalar_lea.vmem [#allocation2], %s1104_s25 }
  0x1d   : > { %s1071_s26 = scalar_lea.vmem %s1197_s0, %s651_s5  ;;  %s1076_s20 = scalar_lea.vmem %s1200_s3, %s651_s5 }
  0x1e   : > { %v662_v2 = vld [vmem:[%s1071_s26] sm:$0xff]   ;;  %v765_v4 = vld [vmem:[%s1071_s26 + $0x8] sm:$0xff]   ;;  %v766_v10 = vld [vmem:[%s1071_s26 + $0x10] sm:$0xff]   ;;  %s657_s10 = sshll.u32 %s943_s19, 5  ;;  %s522_s12 = sshll.u32 %s1119_s9, 4  ;;  %s523_s12 = int_to_ptr.vmem [resolvable:$true] %s522_s12 }
  0x1f   : > { %v694_v3 = vld [vmem:[%s1076_s20] sm:$0xff]   ;;  %v663_v5 = vunpack.c.l.bf16 %v662_v2  ;;  %v664_v6 = vunpack.c.h.bf16 %v662_v2  ;;  %v772_v9 = vld [vmem:[%s1076_s20 + $0x8] sm:$0xff]   ;;  %v1088_v11 = vld [vmem:[%s1076_s20 + $0x10] sm:$0xff]   ;;  %v667_v12 = vunpack.c.l.bf16 %v765_v4  ;;  %v668_v13 = vunpack.c.h.bf16 %v765_v4  ;;  %s508_s14 = scalar_lea.sflag [#allocation3], %s261_s21  ;;  %s881_s5 = scalar_lea.hbm %s1201_s4, 256 }
  0x20   : > { %v695_v7 = vunpack.c.l.bf16 %v694_v3  ;;  %v696_v8 = vunpack.c.h.bf16 %v694_v3  ;;  %v699_v14 = vunpack.c.l.bf16 %v772_v9  ;;  %v700_v15 = vunpack.c.h.bf16 %v772_v9  ;;  %v767_v20 = vld [vmem:[%s1071_s26 + $0x18] sm:$0xff]   ;;  %v768_v60 = vld [vmem:[%s1071_s26 + $0x20] sm:$0xff]  }
  0x21   : > { %v327_v16 = vmul.f32 %v1078_v0, %v663_v5  ;;  %v328_v17 = vmul.f32 %v1078_v0, %v664_v6  ;;  %v671_v18 = vunpack.c.l.bf16 %v766_v10  ;;  %v672_v19 = vunpack.c.h.bf16 %v766_v10  ;;  %v774_v47 = vld [vmem:[%s1076_s20 + $0x18] sm:$0xff]   ;;  %v775_v3 = vld [vmem:[%s1076_s20 + $0x20] sm:$0xff]  }
  0x22   : > { %v329_v21 = vmul.f32 %v1078_v0, %v667_v12  ;;  %v330_v22 = vmul.f32 %v1078_v0, %v668_v13  ;;  %v703_v23 = vunpack.c.l.bf16 %v1088_v11  ;;  %v704_v24 = vunpack.c.h.bf16 %v1088_v11 }
  0x23   : > { %v347_v25 = vadd.f32 %v1080_v1, %v327_v16  ;;  %v348_v26 = vadd.f32 %v1080_v1, %v328_v17  ;;  %v331_v27 = vmul.f32 %v1078_v0, %v671_v18  ;;  %v332_v28 = vmul.f32 %v1078_v0, %v672_v19 }
  0x24   : > { %v349_v29 = vadd.f32 %v1080_v1, %v329_v21  ;;  %v350_v30 = vadd.f32 %v1080_v1, %v330_v22  ;;  %v675_v31 = vunpack.c.l.bf16 %v767_v20  ;;  %v676_v32 = vunpack.c.h.bf16 %v767_v20 }
  0x25   : > { %vm363_vm0 = vcmp.ge.f32.partialorder %v347_v25, 0.0  ;;  %vm364_vm1 = vcmp.ge.f32.partialorder %v348_v26, 0.0  ;;  %v379_v33 = vmul.f32 0.2, %v347_v25  ;;  %v380_v34 = vmul.f32 0.2, %v348_v26 }
  0x26   : > { %vm365_vm2 = vcmp.ge.f32.partialorder %v349_v29, 0.0  ;;  %vm366_vm3 = vcmp.ge.f32.partialorder %v350_v30, 0.0  ;;  %v381_v35 = vmul.f32 0.2, %v349_v29  ;;  %v382_v36 = vmul.f32 0.2, %v350_v30 }
  0x27   : > { %v395_v37 = vsel %vm363_vm0, %v347_v25, %v379_v33  ;;  %v396_v38 = vsel %vm364_vm1, %v348_v26, %v380_v34  ;;  %v351_v39 = vadd.f32 %v1080_v1, %v331_v27  ;;  %v352_v40 = vadd.f32 %v1080_v1, %v332_v28 }
  0x28   : > { %v443_v41 = vadd.f32 %v695_v7, %v395_v37  ;;  %v444_v42 = vadd.f32 %v696_v8, %v396_v38  ;;  %v397_v43 = vsel %vm365_vm2, %v349_v29, %v381_v35  ;;  %v398_v44 = vsel %vm366_vm3, %v350_v30, %v382_v36  ;;  %v769_v7 = vld [vmem:[%s1071_s26 + $0x28] sm:$0xff]  }
  0x29   : > { %v445_v45 = vadd.f32 %v699_v14, %v397_v43  ;;  %v446_v46 = vadd.f32 %v700_v15, %v398_v44  ;;  %vm367_vm4 = vcmp.ge.f32.partialorder %v351_v39, 0.0  ;;  %vm368_vm5 = vcmp.ge.f32.partialorder %v352_v40, 0.0  ;;  %v776_v15 = vld [vmem:[%s1076_s20 + $0x28] sm:$0xff]   ;;  %v777_v43 = vld [vmem:[%s1076_s20 + $0x30] sm:$0xff]  }
  0x2a   : > { %v459_v48 = vmul.f32 0.70710677, %v443_v41  ;;  %v460_v49 = vmul.f32 0.70710677, %v444_v42  ;;  %v383_v50 = vmul.f32 0.2, %v351_v39  ;;  %v333_v51 = vmul.f32 %v1078_v0, %v675_v31 }
  0x2b   : > { %v461_v52 = vmul.f32 0.70710677, %v445_v45  ;;  %v462_v53 = vmul.f32 0.70710677, %v446_v46  ;;  %v384_v54 = vmul.f32 0.2, %v352_v40  ;;  %v334_v55 = vmul.f32 %v1078_v0, %v676_v32 }
  0x2c   : > { %v728_v56 = vpack.c.bf16 %v460_v49, %v459_v48  ;;  %v399_v57 = vsel %vm367_vm4, %v351_v39, %v383_v50  ;;  %v353_v58 = vadd.f32 %v1080_v1, %v333_v51  ;;  %v707_v59 = vunpack.c.l.bf16 %v774_v47 }
  0x2d   : > { %v733_v61 = vpack.c.bf16 %v462_v53, %v461_v52  ;;  %v400_v62 = vsel %vm368_vm5, %v352_v40, %v384_v54  ;;  %v447_v63 = vadd.f32 %v703_v23, %v399_v57  ;;  %v354_v2 = vadd.f32 %v1080_v1, %v334_v55 }
  0x2e   : > { %729 = vst [vmem:[%s1119_s9] sm:$0xff] %v728_v56   ;;  %v448_v4 = vadd.f32 %v704_v24, %v400_v62  ;;  %vm369_vm6 = vcmp.ge.f32.partialorder %v353_v58, 0.0  ;;  %v385_v5 = vmul.f32 0.2, %v353_v58  ;;  %v708_v6 = vunpack.c.h.bf16 %v774_v47  ;;  %v770_v24 = vld [vmem:[%s1071_s26 + $0x30] sm:$0xff]  }
  0x2f   : > { %779 = vst [vmem:[%s1119_s9 + $0x8] sm:$0xff] %v733_v61   ;;  %v463_v8 = vmul.f32 0.70710677, %v447_v63  ;;  %vm370_vm7 = vcmp.ge.f32.partialorder %v354_v2, 0.0  ;;  %v386_v9 = vmul.f32 0.2, %v354_v2  ;;  %v679_v10 = vunpack.c.l.bf16 %v768_v60 }
  0x30   : > { %v464_v11 = vmul.f32 0.70710677, %v448_v4  ;;  %v401_v12 = vsel %vm369_vm6, %v353_v58, %v385_v5  ;;  %v680_v13 = vunpack.c.h.bf16 %v768_v60  ;;  %v711_v14 = vunpack.c.l.bf16 %v775_v3  ;;  %v771_v58 = vld [vmem:[%s1071_s26 + $0x38] sm:$0xff]   ;;  %s519_s26 = sadd.s32 %s657_s10, %s1056_s8 }
  0x31   : > { %v402_v16 = vsel %vm370_vm7, %v354_v2, %v386_v9  ;;  %v449_v17 = vadd.f32 %v707_v59, %v401_v12  ;;  %v335_v18 = vmul.f32 %v1078_v0, %v679_v10  ;;  %v712_v19 = vunpack.c.h.bf16 %v775_v3  ;;  %s658_s19 = sshll.u32 %s519_s26, 2 }
  0x32   : > { %v738_v20 = vpack.c.bf16 %v464_v11, %v463_v8  ;;  %v450_v21 = vadd.f32 %v708_v6, %v402_v16  ;;  %v336_v22 = vmul.f32 %v1078_v0, %v680_v13  ;;  %v683_v23 = vunpack.c.l.bf16 %v769_v7  ;;  %v778_v13 = vld [vmem:[%s1076_s20 + $0x38] sm:$0xff]   ;;  %s521_s11 = scalar_lea.hbm %s1201_s4, %s658_s19 }
  0x33   : > { %v465_v25 = vmul.f32 0.70710677, %v449_v17  ;;  %v355_v26 = vadd.f32 %v1080_v1, %v335_v18  ;;  %v684_v27 = vunpack.c.h.bf16 %v769_v7  ;;  %v715_v28 = vunpack.c.l.bf16 %v776_v15  ;;  %s524_s13 = sshll.u32 %s521_s11, 4  ;;  %s525_s13 = int_to_ptr.hbm [resolvable:$true] %s524_s13 }
  0x34   : > { %780 = vst [vmem:[%s1119_s9 + $0x10] sm:$0xff] %v738_v20   ;;  %v466_v29 = vmul.f32 0.70710677, %v450_v21  ;;  %v356_v30 = vadd.f32 %v1080_v1, %v336_v22  ;;  %v337_v31 = vmul.f32 %v1078_v0, %v683_v23  ;;  %v716_v32 = vunpack.c.h.bf16 %v776_v15  ;;  %s875_s23 = sshra.s32 %s525_s13, 4  ;;  %s876_s23 = int_to_ptr.hbm [resolvable:$true] %s875_s23 }
  0x35   : > { %vm371_vm8 = vcmp.ge.f32.partialorder %v355_v26, 0.0  ;;  %v387_v33 = vmul.f32 0.2, %v355_v26  ;;  %v338_v34 = vmul.f32 %v1078_v0, %v684_v27  ;;  %v687_v35 = vunpack.c.l.bf16 %v770_v24  ;;  %s877_s24 = scalar_lea.hbm %s876_s23, 64  ;;  %p882_p4 = scmp.lt.s32.totalorder %s876_s23, %s1201_s4 }
  0x36   : > { %v743_v36 = vpack.c.bf16 %v466_v29, %v465_v25  ;;  %vm372_vm9 = vcmp.ge.f32.partialorder %v356_v30, 0.0  ;;  %v388_v37 = vmul.f32 0.2, %v356_v30  ;;  %v357_v38 = vadd.f32 %v1080_v1, %v337_v31  ;;  %p878_p0 = scmp.ne.s32.totalorder %s876_s23, %s877_s24  ;;  %p883_p5 = scmp.lt.s32.totalorder %s881_s5, %s877_s24 }
  0x37   : > { %v403_v39 = vsel %vm371_vm8, %v355_v26, %v387_v33  ;;  %v358_v40 = vadd.f32 %v1080_v1, %v338_v34  ;;  %v688_v41 = vunpack.c.h.bf16 %v770_v24  ;;  %v339_v42 = vmul.f32 %v1078_v0, %v687_v35 }
  0x38   : > { %781 = vst [vmem:[%s1119_s9 + $0x18] sm:$0xff] %v743_v36   ;;  %v404_v44 = vsel %vm372_vm9, %v356_v30, %v388_v37  ;;  %v451_v45 = vadd.f32 %v711_v14, %v403_v39  ;;  %vm373_vm10 = vcmp.ge.f32.partialorder %v357_v38, 0.0  ;;  %v389_v46 = vmul.f32 0.2, %v357_v38  ;;  %p879_p1 = pnand %p878_p0, %p1035_p3  ;;  %p884_p6 = por %p883_p5, %p882_p4 }
  0x39   : > { %v452_v47 = vadd.f32 %v712_v19, %v404_v44  ;;  %vm374_vm11 = vcmp.ge.f32.partialorder %v358_v40, 0.0  ;;  %v390_v48 = vmul.f32 0.2, %v358_v40  ;;  %v340_v49 = vmul.f32 %v1078_v0, %v688_v41 }
  0x3a   : > { %v467_v50 = vmul.f32 0.70710677, %v451_v45  ;;  %v405_v51 = vsel %vm373_vm10, %v357_v38, %v389_v46  ;;  %v359_v52 = vadd.f32 %v1080_v1, %v339_v42  ;;  %v719_v53 = vunpack.c.l.bf16 %v777_v43  ;;  %p880_p2 = pneg %p879_p1 }
  0x3b   : > { %v468_v54 = vmul.f32 0.70710677, %v452_v47  ;;  %v406_v55 = vsel %vm374_vm11, %v358_v40, %v390_v48  ;;  %v453_v56 = vadd.f32 %v715_v28, %v405_v51  ;;  %v360_v57 = vadd.f32 %v1080_v1, %v340_v49 }
  0x3c   : > { %v454_v59 = vadd.f32 %v716_v32, %v406_v55  ;;  %vm375_vm12 = vcmp.ge.f32.partialorder %v359_v52, 0.0  ;;  %v391_v60 = vmul.f32 0.2, %v359_v52  ;;  %v720_v61 = vunpack.c.h.bf16 %v777_v43  ;;  %p885_p7 = pnand %p884_p6, %p880_p2 }
  0x3d   : > { %v748_v62 = vpack.c.bf16 %v468_v54, %v467_v50  ;;  %v469_v63 = vmul.f32 0.70710677, %v453_v56  ;;  %vm376_vm13 = vcmp.ge.f32.partialorder %v360_v57, 0.0  ;;  %v392_v2 = vmul.f32 0.2, %v360_v57 }
  0x3e   : > { %v470_v3 = vmul.f32 0.70710677, %v454_v59  ;;  %v407_v4 = vsel %vm375_vm12, %v359_v52, %v391_v60  ;;  %v691_v5 = vunpack.c.l.bf16 %v771_v58  ;;  %v692_v6 = vunpack.c.h.bf16 %v771_v58 }
  0x3f   : > { %782 = vst [vmem:[%s1119_s9 + $0x20] sm:$0xff] %v748_v62   ;;  %v408_v7 = vsel %vm376_vm13, %v360_v57, %v392_v2  ;;  %v455_v8 = vadd.f32 %v719_v53, %v407_v4  ;;  %v723_v18 = vunpack.c.l.bf16 %v778_v13  ;;  %v724_v19 = vunpack.c.h.bf16 %v778_v13 }
  0x40   : > { %v753_v9 = vpack.c.bf16 %v470_v3, %v469_v63  ;;  %v456_v10 = vadd.f32 %v720_v61, %v408_v7  ;;  %v341_v11 = vmul.f32 %v1078_v0, %v691_v5  ;;  %v342_v12 = vmul.f32 %v1078_v0, %v692_v6 }
  0x41   : > { %v471_v14 = vmul.f32 0.70710677, %v455_v8 }
  0x42   : > { %783 = vst [vmem:[%s1119_s9 + $0x28] sm:$0xff] %v753_v9   ;;  %v472_v15 = vmul.f32 0.70710677, %v456_v10  ;;  %v361_v16 = vadd.f32 %v1080_v1, %v341_v11  ;;  %v362_v17 = vadd.f32 %v1080_v1, %v342_v12 }
  0x44   : > { %v758_v20 = vpack.c.bf16 %v472_v15, %v471_v14  ;;  %vm377_vm14 = vcmp.ge.f32.partialorder %v361_v16, 0.0  ;;  %vm378_vm15 = vcmp.ge.f32.partialorder %v362_v17, 0.0  ;;  %v393_v21 = vmul.f32 0.2, %v361_v16 }
  0x45   : > { %v394_v0 = vmul.f32 0.2, %v362_v17 }
  0x46   : > { %784 = vst [vmem:[%s1119_s9 + $0x30] sm:$0xff] %v758_v20   ;;  %v409_v22 = vsel %vm377_vm14, %v361_v16, %v393_v21 }
  0x47   : > { %v410_v23 = vsel %vm378_vm15, %v362_v17, %v394_v0  ;;  %v457_v24 = vadd.f32 %v723_v18, %v409_v22 }
  0x48   : > { %v458_v1 = vadd.f32 %v724_v19, %v410_v23 }
  0x49   : > { %v473_v25 = vmul.f32 0.70710677, %v457_v24 }
  0x4a   : > { %v474_v26 = vmul.f32 0.70710677, %v458_v1 }
  0x4c   : > { %v763_v27 = vpack.c.bf16 %v474_v26, %v473_v25 }
  0x4e   : > { %785 = vst [vmem:[%s1119_s9 + $0x38] sm:$0xff] %v763_v27  }
  0x4f   : > { %888 = shalt.err (!%p885_p7)
}
  0x50   : > { %s957_s21 = smov 64   ;;  %s958_s25 = smov 4  }
  0x51   : > { %786 = dma.vmem_to_hbm [thread:$0]  (%p1035_p3), %s523_s12, 1024, %s525_s13, %s508_s14, %s957_s21, %s957_s21, %s958_s25  }
  0x52 PF: > { %p792_p9 = scmp.ge.s32.totalorder %s955_s22, 2  ;;  %s539_s9 = sand.u32 1, %s927_s15  }
  0x53   : > { %s540_s10 = scalar_lea.sflag [#allocation3], %s539_s9 }
  0x54   : > { %p789_p10 = pnand %p792_p9, %p1044_p8 }
  0x56   : > { %p790_p11 = pneg %p789_p10 }
  0x58   : > { %922 = dma.done.wait (%p790_p11), %s540_s10, 1024  }
  0x59   : > { %924 = vsyncadd (%p790_p11), %s540_s10, 4294966272  ;;  %s17_s22 = sadd.s32 1, %s955_s22   ;;  %s1212_s18 = sld [smem:[#allocation5_spill]] }
  0x5a   : > { %p14_p12 = scmp.ge.s32.totalorder %s17_s22, 6   ;;  %s1213_s19 = sld [smem:[#allocation6_spill]] }
  0x5b   : > { %s1214_s20 = sld [smem:[#allocation7_spill]]  ;;  %s1216_s15 = smov %s931_s16 }
  0x5c   : > { %s1215_s21 = sld [smem:[#allocation8_spill]]  ;;  %s1217_s16 = smov %s935_s17 }
  0x5d   : > { %s1218_s17 = smov %s1053_s7  ;;  %16 = sbr.rel (!%p14_p12) target bundleno = 5 (0x5), region = 80 }
  0x62   :  { %546 = vsyncpa [#allocation3], 1 }
  0x63   :  { %548 = vsyncpa [#allocation3 + $0x1], 1 }

</bundles_post_ra>
